<compile_context>
chip_gen: v7x
topology: tpu7x:2x2x1
jax: 0.10.0
libtpu: 0.0.40
codegen_flags: <defaults>
</compile_context>

<pallas_src>
import functools

import jax
import jax.numpy as jnp
from jax import lax
from jax.experimental import pallas as pl
from jax.experimental.pallas import tpu as pltpu


# ---------------------------------------------------------------------------
# Fused whole-network kernel
# ---------------------------------------------------------------------------
def _net_kernel(x_ref, w1_ref, b1_ref, w2_ref, b2_ref,
                fw1_ref, fb1_ref, fw2_ref, fb2_ref, fw3_ref, fb3_ref,
                o_ref, slab_ref, *, batch, width):
    f32 = jnp.float32
    W = width                      # image width (32)
    img = W * W                    # 1024 flat positions per image

    def shl(v, s):
        # v[:, p] <- v[:, p + s] (circular).  Wrapped tail columns are never
        # consumed by a valid output (see invariant at the top of the file).
        return v if s == 0 else pltpu.roll(v, v.shape[-1] - s, axis=1)

    # ---- conv1 (3->6, 5x5 valid): build im2col-lite slab, one deep-K dot ----
    x = x_ref[...]                                           # (8, N) ch-padded
    for t in range(25):
        i, j = divmod(t, 5)
        slab_ref[8 * t:8 * t + 8, :] = shl(x, i * W + j)     # aligned stores
    y1 = jnp.maximum(
        jnp.dot(w1_ref[...], slab_ref[...], preferred_element_type=f32)
        + b1_ref[...], 0.0)                                  # (8, N)

    # ---- pool1 (2x2/2) kept at 2x-dilated flat positions, via rolls ---------
    m1 = jnp.maximum(y1, shl(y1, 1))
    p1 = jnp.maximum(m1, shl(m1, W))                         # (8, N)

    # ---- conv2 (6->16, 5x5 valid on the pooled grid): reuse the slab --------
    for t in range(25):
        i, j = divmod(t, 5)
        slab_ref[8 * t:8 * t + 8, :] = shl(p1, 2 * W * i + 2 * j)
    y2 = jnp.maximum(
        jnp.dot(w2_ref[...], slab_ref[...], preferred_element_type=f32)
        + b2_ref[...], 0.0)                                  # (16, N)

    # ---- pool2: only the 5 lane-tiles per image that hold valid features ----
    blk = 5 * 128        # 640 lanes; valid features need columns <= 594
    y2n = jnp.concatenate(
        [y2[:, b * img:b * img + blk] for b in range(batch)], axis=1)
    m2 = jnp.maximum(y2n, shl(y2n, 2))
    p2 = jnp.maximum(m2, shl(m2, 2 * W))                     # (16, blk*batch)

    # ---- FC head; fc1 as 25 accumulating tap matmuls (no feature gather) ----
    acc = jnp.zeros((120, batch), f32)
    for t in range(25):
        ph, pw = divmod(t, 5)
        off = 4 * W * ph + 4 * pw                            # 128*ph + 4*pw
        cols = jnp.concatenate(
            [p2[:, b * blk + off:b * blk + off + 1] for b in range(batch)],
            axis=1)                                          # (16, B)
        acc = acc + jnp.dot(fw1_ref[t], cols, preferred_element_type=f32)
    h1 = jnp.maximum(acc + fb1_ref[...], 0.0)                # (120, B)
    h2 = jnp.maximum(
        jnp.dot(fw2_ref[...], h1, preferred_element_type=f32) + fb2_ref[...],
        0.0)                                                 # (84, B)
    o_ref[...] = (jnp.dot(fw3_ref[...], h2, preferred_element_type=f32)
                  + fb3_ref[...]).astype(o_ref.dtype)        # (2, B)


# ---------------------------------------------------------------------------
# Wrapper
# ---------------------------------------------------------------------------
def net_forward(x, kp):
    """x: (B, 3, 32, 32) NCHW float32 -> (B, 2) logits."""
    B, C, H, W = x.shape
    assert C == 3 and H == 32 and W == 32, "architecture requires 3x32x32 input"
    N = B * H * W                       # flat lanes (always a multiple of 128)

    # channels-on-sublanes (zero-padded 3->8), flattened (b,h,w) on lanes.
    x_flat = jnp.transpose(x, (1, 0, 2, 3)).reshape(C, N)
    x_flat = jnp.pad(x_flat, ((0, 8 - C), (0, 0)))

    kernel = functools.partial(_net_kernel, batch=B, width=W)

    def full(shape):
        return pl.BlockSpec(shape, lambda i, _n=len(shape): (0,) * _n)

    out = pl.pallas_call(
        kernel,
        out_shape=jax.ShapeDtypeStruct((2, B), jnp.float32),
        grid=(1,),
        in_specs=[
            full((8, N)),
            full((8, 200)), full((8, 1)),
            full((16, 200)), full((16, 1)),
            full((25, 120, 16)), full((120, 1)),
            full((84, 120)), full((84, 1)),
            full((2, 84)), full((2, 1)),
        ],
        out_specs=full((2, B)),
        scratch_shapes=[pltpu.VMEM((200, N), jnp.float32)],   # shared im2col slab
        compiler_params=pltpu.CompilerParams(
            dimension_semantics=("arbitrary",)),
    )(x_flat,
      kp["w1s"], kp["b1c"],
      kp["w2s"], kp["b2c"],
      kp["fw1t"], kp["fb1c"],
      kp["fw2"], kp["fb2c"],
      kp["fw3"], kp["fb3c"])
    return out.T                                             # (B, 2)


# ---------------------------------------------------------------------------
# Parameters (PyTorch-convention shapes) and one-time kernel-layout prep
# ---------------------------------------------------------------------------
def init_params(key):
    ks = jax.random.split(key, 10)
    s = 0.1
    f32 = jnp.float32
    return {
        "conv1_w": s * jax.random.normal(ks[0], (6, 3, 5, 5), f32),
        "conv1_b": s * jax.random.normal(ks[1], (6,), f32),
        "conv2_w": s * jax.random.normal(ks[2], (16, 6, 5, 5), f32),
        "conv2_b": s * jax.random.normal(ks[3], (16,), f32),
        "fc1_w": s * jax.random.normal(ks[4], (120, 400), f32),   # (out, in)
        "fc1_b": s * jax.random.normal(ks[5], (120,), f32),
        "fc2_w": s * jax.random.normal(ks[6], (84, 120), f32),
        "fc2_b": s * jax.random.normal(ks[7], (84,), f32),
        "fc3_w": s * jax.random.normal(ks[8], (2, 84), f32),
        "fc3_b": s * jax.random.normal(ks[9], (2,), f32),
    }


def prepare_params(p):
    """Convert PyTorch-convention weights to the kernel's layouts (done once)."""
    f32 = jnp.float32
    # conv1: (6,3,5,5) -> (8, 200), column layout 8*(i*5+j) + c, zero padded.
    w1t = jnp.transpose(p["conv1_w"], (0, 2, 3, 1)).reshape(6, 25, 3)
    w1s = jnp.zeros((8, 25, 8), f32).at[:6, :, :3].set(w1t).reshape(8, 200)
    b1c = jnp.zeros((8, 1), f32).at[:6, 0].set(p["conv1_b"])
    # conv2: (16,6,5,5) -> (16, 200), column layout 8*(i*5+j) + c.
    w2t = jnp.transpose(p["conv2_w"], (0, 2, 3, 1)).reshape(16, 25, 6)
    w2s = jnp.zeros((16, 25, 8), f32).at[:, :, :6].set(w2t).reshape(16, 200)
    # fc1: torch flatten order is (c, ph, pw) -> per-tap (25, 120, 16) blocks.
    fw1t = p["fc1_w"].reshape(120, 16, 25).transpose(2, 0, 1)
    return {
        "w1s": w1s, "b1c": b1c,
        "w2s": w2s, "b2c": p["conv2_b"].reshape(16, 1),
        "fw1t": fw1t, "fb1c": p["fc1_b"].reshape(120, 1),
        "fw2": p["fc2_w"], "fb2c": p["fc2_b"].reshape(84, 1),
        "fw3": p["fc3_w"], "fb3c": p["fc3_b"].reshape(2, 1),
    }


# ---------------------------------------------------------------------------
# Pure-JAX reference (mirrors the PyTorch module) for the correctness check
# ---------------------------------------------------------------------------
def net_reference(x, p):
    hp = lax.Precision.HIGHEST

    def conv(a, w, b):
        y = lax.conv_general_dilated(
            a, w, (1, 1), "VALID",
            dimension_numbers=("NCHW", "OIHW", "NCHW"), precision=hp)
        return jax.nn.relu(y + b[None, :, None, None])

    def pool(a):
        B, C, H, W = a.shape
        return a.reshape(B, C, H // 2, 2, W // 2, 2).max(axis=(3, 5))

    a = pool(conv(x, p["conv1_w"], p["conv1_b"]))
    a = pool(conv(a, p["conv2_w"], p["conv2_b"]))
    a = a.reshape(a.shape[0], -1)
    a = jax.nn.relu(jnp.dot(a, p["fc1_w"].T, precision=hp) + p["fc1_b"])
    a = jax.nn.relu(jnp.dot(a, p["fc2_w"].T, precision=hp) + p["fc2_b"])
    return jnp.dot(a, p["fc3_w"].T, precision=hp) + p["fc3_b"]


if __name__ == "__main__":
    key = jax.random.PRNGKey(0)
    pkey, xkey = jax.random.split(key)
    params = init_params(pkey)
    kparams = prepare_params(params)

    # Architecture requires 3x32x32 input (fc1 expects 16*5*5 = 400 features).
    x = jax.random.normal(xkey, (2, 3, 32, 32), jnp.float32)   # NCHW

    fwd = jax.jit(net_forward)
    out = jax.block_until_ready(fwd(x, kparams))
    assert out.shape == (2, 2), out.shape

    ref = jax.block_until_ready(net_reference(x, params))
    err = float(jnp.max(jnp.abs(out - ref)))
    # All-f32 path: expected mismatch ~1e-6; 1e-3 still catches any layout bug.
    assert err < 1e-3, f"kernel/reference mismatch, max abs err = {err}"
    print("KERNEL_OK")
</pallas_src>

<mosaic_0001>
module attributes {stable_mosaic.version = 11 : i64} {
  func.func @_net_kernel(%arg0: i32, %arg1: memref<8x2048xf32, #tpu.memory_space<vmem>>, %arg2: memref<8x200xf32, #tpu.memory_space<vmem>>, %arg3: memref<8x1xf32, #tpu.memory_space<vmem>>, %arg4: memref<16x200xf32, #tpu.memory_space<vmem>>, %arg5: memref<16x1xf32, #tpu.memory_space<vmem>>, %arg6: memref<25x120x16xf32, #tpu.memory_space<vmem>>, %arg7: memref<120x1xf32, #tpu.memory_space<vmem>>, %arg8: memref<84x120xf32, #tpu.memory_space<vmem>>, %arg9: memref<84x1xf32, #tpu.memory_space<vmem>>, %arg10: memref<2x84xf32, #tpu.memory_space<vmem>>, %arg11: memref<2x1xf32, #tpu.memory_space<vmem>>, %arg12: memref<2x2xf32, #tpu.memory_space<vmem>>, %arg13: memref<200x2048xf32, #tpu.memory_space<vmem>>) attributes {dimension_semantics = [#tpu.dimension_semantics<arbitrary>], iteration_bounds = array<i64: 1>, scalar_prefetch = 0 : i64, scratch_operands = 1 : i64, tpu.core_type = #tpu.core_type<tc>, window_params = [{pipeline_mode = #tpu.pipeline_mode<synchronous>, transform_indices = @transform_0, window_bounds = array<i64: 8, 2048>}, {pipeline_mode = #tpu.pipeline_mode<synchronous>, transform_indices = @transform_1, window_bounds = array<i64: 8, 200>}, {pipeline_mode = #tpu.pipeline_mode<synchronous>, transform_indices = @transform_2, window_bounds = array<i64: 8, 1>}, {pipeline_mode = #tpu.pipeline_mode<synchronous>, transform_indices = @transform_3, window_bounds = array<i64: 16, 200>}, {pipeline_mode = #tpu.pipeline_mode<synchronous>, transform_indices = @transform_4, window_bounds = array<i64: 16, 1>}, {pipeline_mode = #tpu.pipeline_mode<synchronous>, transform_indices = @transform_5, window_bounds = array<i64: 25, 120, 16>}, {pipeline_mode = #tpu.pipeline_mode<synchronous>, transform_indices = @transform_6, window_bounds = array<i64: 120, 1>}, {pipeline_mode = #tpu.pipeline_mode<synchronous>, transform_indices = @transform_7, window_bounds = array<i64: 84, 120>}, {pipeline_mode = #tpu.pipeline_mode<synchronous>, transform_indices = @transform_8, window_bounds = array<i64: 84, 1>}, {pipeline_mode = #tpu.pipeline_mode<synchronous>, transform_indices = @transform_9, window_bounds = array<i64: 2, 84>}, {pipeline_mode = #tpu.pipeline_mode<synchronous>, transform_indices = @transform_10, window_bounds = array<i64: 2, 1>}, {pipeline_mode = #tpu.pipeline_mode<synchronous>, transform_indices = @transform_11, window_bounds = array<i64: 2, 2>}]} {
    %c0 = arith.constant 0 : index
    %c0_0 = arith.constant 0 : index
    %0 = vector.load %arg1[%c0, %c0_0] : memref<8x2048xf32, #tpu.memory_space<vmem>>, vector<8x2048xf32>
    %c0_1 = arith.constant 0 : index
    %c0_2 = arith.constant 0 : index
    %1 = vector.load %arg13[%c0_1, %c0_2] : memref<200x2048xf32, #tpu.memory_space<vmem>>, vector<8x2048xf32>
    tpu.vector_store %arg13[%c0_1, %c0_2], %0 {strides = array<i32>} : memref<200x2048xf32, #tpu.memory_space<vmem>>, vector<8x2048xf32>,
    %c2047_i32 = arith.constant 2047 : i32
    %2 = tpu.dynamic_rotate %0 by %c2047_i32 dim 1 : vector<8x2048xf32>, i32 -> vector<8x2048xf32>
    %c8 = arith.constant 8 : index
    %c0_3 = arith.constant 0 : index
    %3 = vector.load %arg13[%c8, %c0_3] : memref<200x2048xf32, #tpu.memory_space<vmem>>, vector<8x2048xf32>
    tpu.vector_store %arg13[%c8, %c0_3], %2 {strides = array<i32>} : memref<200x2048xf32, #tpu.memory_space<vmem>>, vector<8x2048xf32>,
    %c2046_i32 = arith.constant 2046 : i32
    %4 = tpu.dynamic_rotate %0 by %c2046_i32 dim 1 : vector<8x2048xf32>, i32 -> vector<8x2048xf32>
    %c16 = arith.constant 16 : index
    %c0_4 = arith.constant 0 : index
    %5 = vector.load %arg13[%c16, %c0_4] : memref<200x2048xf32, #tpu.memory_space<vmem>>, vector<8x2048xf32>
    tpu.vector_store %arg13[%c16, %c0_4], %4 {strides = array<i32>} : memref<200x2048xf32, #tpu.memory_space<vmem>>, vector<8x2048xf32>,
    %c2045_i32 = arith.constant 2045 : i32
    %6 = tpu.dynamic_rotate %0 by %c2045_i32 dim 1 : vector<8x2048xf32>, i32 -> vector<8x2048xf32>
    %c24 = arith.constant 24 : index
    %c0_5 = arith.constant 0 : index
    %7 = vector.load %arg13[%c24, %c0_5] : memref<200x2048xf32, #tpu.memory_space<vmem>>, vector<8x2048xf32>
    tpu.vector_store %arg13[%c24, %c0_5], %6 {strides = array<i32>} : memref<200x2048xf32, #tpu.memory_space<vmem>>, vector<8x2048xf32>,
    %c2044_i32 = arith.constant 2044 : i32
    %8 = tpu.dynamic_rotate %0 by %c2044_i32 dim 1 : vector<8x2048xf32>, i32 -> vector<8x2048xf32>
    %c32 = arith.constant 32 : index
    %c0_6 = arith.constant 0 : index
    %9 = vector.load %arg13[%c32, %c0_6] : memref<200x2048xf32, #tpu.memory_space<vmem>>, vector<8x2048xf32>
    tpu.vector_store %arg13[%c32, %c0_6], %8 {strides = array<i32>} : memref<200x2048xf32, #tpu.memory_space<vmem>>, vector<8x2048xf32>,
    %c2016_i32 = arith.constant 2016 : i32
    %10 = tpu.dynamic_rotate %0 by %c2016_i32 dim 1 : vector<8x2048xf32>, i32 -> vector<8x2048xf32>
    %c40 = arith.constant 40 : index
    %c0_7 = arith.constant 0 : index
    %11 = vector.load %arg13[%c40, %c0_7] : memref<200x2048xf32, #tpu.memory_space<vmem>>, vector<8x2048xf32>
    tpu.vector_store %arg13[%c40, %c0_7], %10 {strides = array<i32>} : memref<200x2048xf32, #tpu.memory_space<vmem>>, vector<8x2048xf32>,
    %c2015_i32 = arith.constant 2015 : i32
    %12 = tpu.dynamic_rotate %0 by %c2015_i32 dim 1 : vector<8x2048xf32>, i32 -> vector<8x2048xf32>
    %c48 = arith.constant 48 : index
    %c0_8 = arith.constant 0 : index
    %13 = vector.load %arg13[%c48, %c0_8] : memref<200x2048xf32, #tpu.memory_space<vmem>>, vector<8x2048xf32>
    tpu.vector_store %arg13[%c48, %c0_8], %12 {strides = array<i32>} : memref<200x2048xf32, #tpu.memory_space<vmem>>, vector<8x2048xf32>,
    %c2014_i32 = arith.constant 2014 : i32
    %14 = tpu.dynamic_rotate %0 by %c2014_i32 dim 1 : vector<8x2048xf32>, i32 -> vector<8x2048xf32>
    %c56 = arith.constant 56 : index
    %c0_9 = arith.constant 0 : index
    %15 = vector.load %arg13[%c56, %c0_9] : memref<200x2048xf32, #tpu.memory_space<vmem>>, vector<8x2048xf32>
    tpu.vector_store %arg13[%c56, %c0_9], %14 {strides = array<i32>} : memref<200x2048xf32, #tpu.memory_space<vmem>>, vector<8x2048xf32>,
    %c2013_i32 = arith.constant 2013 : i32
    %16 = tpu.dynamic_rotate %0 by %c2013_i32 dim 1 : vector<8x2048xf32>, i32 -> vector<8x2048xf32>
    %c64 = arith.constant 64 : index
    %c0_10 = arith.constant 0 : index
    %17 = vector.load %arg13[%c64, %c0_10] : memref<200x2048xf32, #tpu.memory_space<vmem>>, vector<8x2048xf32>
    tpu.vector_store %arg13[%c64, %c0_10], %16 {strides = array<i32>} : memref<200x2048xf32, #tpu.memory_space<vmem>>, vector<8x2048xf32>,
    %c2012_i32 = arith.constant 2012 : i32
    %18 = tpu.dynamic_rotate %0 by %c2012_i32 dim 1 : vector<8x2048xf32>, i32 -> vector<8x2048xf32>
    %c72 = arith.constant 72 : index
    %c0_11 = arith.constant 0 : index
    %19 = vector.load %arg13[%c72, %c0_11] : memref<200x2048xf32, #tpu.memory_space<vmem>>, vector<8x2048xf32>
    tpu.vector_store %arg13[%c72, %c0_11], %18 {strides = array<i32>} : memref<200x2048xf32, #tpu.memory_space<vmem>>, vector<8x2048xf32>,
    %c1984_i32 = arith.constant 1984 : i32
    %20 = tpu.dynamic_rotate %0 by %c1984_i32 dim 1 : vector<8x2048xf32>, i32 -> vector<8x2048xf32>
    %c80 = arith.constant 80 : index
    %c0_12 = arith.constant 0 : index
    %21 = vector.load %arg13[%c80, %c0_12] : memref<200x2048xf32, #tpu.memory_space<vmem>>, vector<8x2048xf32>
    tpu.vector_store %arg13[%c80, %c0_12], %20 {strides = array<i32>} : memref<200x2048xf32, #tpu.memory_space<vmem>>, vector<8x2048xf32>,
    %c1983_i32 = arith.constant 1983 : i32
    %22 = tpu.dynamic_rotate %0 by %c1983_i32 dim 1 : vector<8x2048xf32>, i32 -> vector<8x2048xf32>
    %c88 = arith.constant 88 : index
    %c0_13 = arith.constant 0 : index
    %23 = vector.load %arg13[%c88, %c0_13] : memref<200x2048xf32, #tpu.memory_space<vmem>>, vector<8x2048xf32>
    tpu.vector_store %arg13[%c88, %c0_13], %22 {strides = array<i32>} : memref<200x2048xf32, #tpu.memory_space<vmem>>, vector<8x2048xf32>,
    %c1982_i32 = arith.constant 1982 : i32
    %24 = tpu.dynamic_rotate %0 by %c1982_i32 dim 1 : vector<8x2048xf32>, i32 -> vector<8x2048xf32>
    %c96 = arith.constant 96 : index
    %c0_14 = arith.constant 0 : index
    %25 = vector.load %arg13[%c96, %c0_14] : memref<200x2048xf32, #tpu.memory_space<vmem>>, vector<8x2048xf32>
    tpu.vector_store %arg13[%c96, %c0_14], %24 {strides = array<i32>} : memref<200x2048xf32, #tpu.memory_space<vmem>>, vector<8x2048xf32>,
    %c1981_i32 = arith.constant 1981 : i32
    %26 = tpu.dynamic_rotate %0 by %c1981_i32 dim 1 : vector<8x2048xf32>, i32 -> vector<8x2048xf32>
    %c104 = arith.constant 104 : index
    %c0_15 = arith.constant 0 : index
    %27 = vector.load %arg13[%c104, %c0_15] : memref<200x2048xf32, #tpu.memory_space<vmem>>, vector<8x2048xf32>
    tpu.vector_store %arg13[%c104, %c0_15], %26 {strides = array<i32>} : memref<200x2048xf32, #tpu.memory_space<vmem>>, vector<8x2048xf32>,
    %c1980_i32 = arith.constant 1980 : i32
    %28 = tpu.dynamic_rotate %0 by %c1980_i32 dim 1 : vector<8x2048xf32>, i32 -> vector<8x2048xf32>
    %c112 = arith.constant 112 : index
    %c0_16 = arith.constant 0 : index
    %29 = vector.load %arg13[%c112, %c0_16] : memref<200x2048xf32, #tpu.memory_space<vmem>>, vector<8x2048xf32>
    tpu.vector_store %arg13[%c112, %c0_16], %28 {strides = array<i32>} : memref<200x2048xf32, #tpu.memory_space<vmem>>, vector<8x2048xf32>,
    %c1952_i32 = arith.constant 1952 : i32
    %30 = tpu.dynamic_rotate %0 by %c1952_i32 dim 1 : vector<8x2048xf32>, i32 -> vector<8x2048xf32>
    %c120 = arith.constant 120 : index
    %c0_17 = arith.constant 0 : index
    %31 = vector.load %arg13[%c120, %c0_17] : memref<200x2048xf32, #tpu.memory_space<vmem>>, vector<8x2048xf32>
    tpu.vector_store %arg13[%c120, %c0_17], %30 {strides = array<i32>} : memref<200x2048xf32, #tpu.memory_space<vmem>>, vector<8x2048xf32>,
    %c1951_i32 = arith.constant 1951 : i32
    %32 = tpu.dynamic_rotate %0 by %c1951_i32 dim 1 : vector<8x2048xf32>, i32 -> vector<8x2048xf32>
    %c128 = arith.constant 128 : index
    %c0_18 = arith.constant 0 : index
    %33 = vector.load %arg13[%c128, %c0_18] : memref<200x2048xf32, #tpu.memory_space<vmem>>, vector<8x2048xf32>
    tpu.vector_store %arg13[%c128, %c0_18], %32 {strides = array<i32>} : memref<200x2048xf32, #tpu.memory_space<vmem>>, vector<8x2048xf32>,
    %c1950_i32 = arith.constant 1950 : i32
    %34 = tpu.dynamic_rotate %0 by %c1950_i32 dim 1 : vector<8x2048xf32>, i32 -> vector<8x2048xf32>
    %c136 = arith.constant 136 : index
    %c0_19 = arith.constant 0 : index
    %35 = vector.load %arg13[%c136, %c0_19] : memref<200x2048xf32, #tpu.memory_space<vmem>>, vector<8x2048xf32>
    tpu.vector_store %arg13[%c136, %c0_19], %34 {strides = array<i32>} : memref<200x2048xf32, #tpu.memory_space<vmem>>, vector<8x2048xf32>,
    %c1949_i32 = arith.constant 1949 : i32
    %36 = tpu.dynamic_rotate %0 by %c1949_i32 dim 1 : vector<8x2048xf32>, i32 -> vector<8x2048xf32>
    %c144 = arith.constant 144 : index
    %c0_20 = arith.constant 0 : index
    %37 = vector.load %arg13[%c144, %c0_20] : memref<200x2048xf32, #tpu.memory_space<vmem>>, vector<8x2048xf32>
    tpu.vector_store %arg13[%c144, %c0_20], %36 {strides = array<i32>} : memref<200x2048xf32, #tpu.memory_space<vmem>>, vector<8x2048xf32>,
    %c1948_i32 = arith.constant 1948 : i32
    %38 = tpu.dynamic_rotate %0 by %c1948_i32 dim 1 : vector<8x2048xf32>, i32 -> vector<8x2048xf32>
    %c152 = arith.constant 152 : index
    %c0_21 = arith.constant 0 : index
    %39 = vector.load %arg13[%c152, %c0_21] : memref<200x2048xf32, #tpu.memory_space<vmem>>, vector<8x2048xf32>
    tpu.vector_store %arg13[%c152, %c0_21], %38 {strides = array<i32>} : memref<200x2048xf32, #tpu.memory_space<vmem>>, vector<8x2048xf32>,
    %c1920_i32 = arith.constant 1920 : i32
    %40 = tpu.dynamic_rotate %0 by %c1920_i32 dim 1 : vector<8x2048xf32>, i32 -> vector<8x2048xf32>
    %c160 = arith.constant 160 : index
    %c0_22 = arith.constant 0 : index
    %41 = vector.load %arg13[%c160, %c0_22] : memref<200x2048xf32, #tpu.memory_space<vmem>>, vector<8x2048xf32>
    tpu.vector_store %arg13[%c160, %c0_22], %40 {strides = array<i32>} : memref<200x2048xf32, #tpu.memory_space<vmem>>, vector<8x2048xf32>,
    %c1919_i32 = arith.constant 1919 : i32
    %42 = tpu.dynamic_rotate %0 by %c1919_i32 dim 1 : vector<8x2048xf32>, i32 -> vector<8x2048xf32>
    %c168 = arith.constant 168 : index
    %c0_23 = arith.constant 0 : index
    %43 = vector.load %arg13[%c168, %c0_23] : memref<200x2048xf32, #tpu.memory_space<vmem>>, vector<8x2048xf32>
    tpu.vector_store %arg13[%c168, %c0_23], %42 {strides = array<i32>} : memref<200x2048xf32, #tpu.memory_space<vmem>>, vector<8x2048xf32>,
    %c1918_i32 = arith.constant 1918 : i32
    %44 = tpu.dynamic_rotate %0 by %c1918_i32 dim 1 : vector<8x2048xf32>, i32 -> vector<8x2048xf32>
    %c176 = arith.constant 176 : index
    %c0_24 = arith.constant 0 : index
    %45 = vector.load %arg13[%c176, %c0_24] : memref<200x2048xf32, #tpu.memory_space<vmem>>, vector<8x2048xf32>
    tpu.vector_store %arg13[%c176, %c0_24], %44 {strides = array<i32>} : memref<200x2048xf32, #tpu.memory_space<vmem>>, vector<8x2048xf32>,
    %c1917_i32 = arith.constant 1917 : i32
    %46 = tpu.dynamic_rotate %0 by %c1917_i32 dim 1 : vector<8x2048xf32>, i32 -> vector<8x2048xf32>
    %c184 = arith.constant 184 : index
    %c0_25 = arith.constant 0 : index
    %47 = vector.load %arg13[%c184, %c0_25] : memref<200x2048xf32, #tpu.memory_space<vmem>>, vector<8x2048xf32>
    tpu.vector_store %arg13[%c184, %c0_25], %46 {strides = array<i32>} : memref<200x2048xf32, #tpu.memory_space<vmem>>, vector<8x2048xf32>,
    %c1916_i32 = arith.constant 1916 : i32
    %48 = tpu.dynamic_rotate %0 by %c1916_i32 dim 1 : vector<8x2048xf32>, i32 -> vector<8x2048xf32>
    %c192 = arith.constant 192 : index
    %c0_26 = arith.constant 0 : index
    %49 = vector.load %arg13[%c192, %c0_26] : memref<200x2048xf32, #tpu.memory_space<vmem>>, vector<8x2048xf32>
    tpu.vector_store %arg13[%c192, %c0_26], %48 {strides = array<i32>} : memref<200x2048xf32, #tpu.memory_space<vmem>>, vector<8x2048xf32>,
    %c0_27 = arith.constant 0 : index
    %c0_28 = arith.constant 0 : index
    %50 = vector.load %arg2[%c0_27, %c0_28] : memref<8x200xf32, #tpu.memory_space<vmem>>, vector<8x200xf32>
    %c0_29 = arith.constant 0 : index
    %c0_30 = arith.constant 0 : index
    %51 = vector.load %arg13[%c0_29, %c0_30] : memref<200x2048xf32, #tpu.memory_space<vmem>>, vector<200x2048xf32>
    %cst = arith.constant dense<0.000000e+00> : vector<8x2048xf32>
    %52 = tpu.matmul %50, %51, %cst {dimension_numbers = #tpu.dot_dimension_numbers<[1], [0], [0], [1], [0, 0, 1, 1], [], []>} : vector<8x200xf32>, vector<200x2048xf32>, vector<8x2048xf32> -> vector<8x2048xf32>
    %c0_31 = arith.constant 0 : index
    %c0_32 = arith.constant 0 : index
    %53 = vector.load %arg3[%c0_31, %c0_32] : memref<8x1xf32, #tpu.memory_space<vmem>>, vector<8x1xf32>
    %54 = vector.broadcast %53 : vector<8x1xf32> to vector<8x2048xf32>
    %55 = arith.addf %52, %54 : vector<8x2048xf32>
    %cst_33 = arith.constant 0.000000e+00 : f32
    %56 = vector.broadcast %cst_33 : f32 to vector<8x2048xf32>
    %57 = arith.maximumf %55, %56 : vector<8x2048xf32>
    %c2047_i32_34 = arith.constant 2047 : i32
    %58 = tpu.dynamic_rotate %57 by %c2047_i32_34 dim 1 : vector<8x2048xf32>, i32 -> vector<8x2048xf32>
    %59 = arith.maximumf %57, %58 : vector<8x2048xf32>
    %c2016_i32_35 = arith.constant 2016 : i32
    %60 = tpu.dynamic_rotate %59 by %c2016_i32_35 dim 1 : vector<8x2048xf32>, i32 -> vector<8x2048xf32>
    %61 = arith.maximumf %59, %60 : vector<8x2048xf32>
    %c0_36 = arith.constant 0 : index
    %c0_37 = arith.constant 0 : index
    %62 = vector.load %arg13[%c0_36, %c0_37] : memref<200x2048xf32, #tpu.memory_space<vmem>>, vector<8x2048xf32>
    tpu.vector_store %arg13[%c0_36, %c0_37], %61 {strides = array<i32>} : memref<200x2048xf32, #tpu.memory_space<vmem>>, vector<8x2048xf32>,
    %c2046_i32_38 = arith.constant 2046 : i32
    %63 = tpu.dynamic_rotate %61 by %c2046_i32_38 dim 1 : vector<8x2048xf32>, i32 -> vector<8x2048xf32>
    %c8_39 = arith.constant 8 : index
    %c0_40 = arith.constant 0 : index
    %64 = vector.load %arg13[%c8_39, %c0_40] : memref<200x2048xf32, #tpu.memory_space<vmem>>, vector<8x2048xf32>
    tpu.vector_store %arg13[%c8_39, %c0_40], %63 {strides = array<i32>} : memref<200x2048xf32, #tpu.memory_space<vmem>>, vector<8x2048xf32>,
    %c2044_i32_41 = arith.constant 2044 : i32
    %65 = tpu.dynamic_rotate %61 by %c2044_i32_41 dim 1 : vector<8x2048xf32>, i32 -> vector<8x2048xf32>
    %c16_42 = arith.constant 16 : index
    %c0_43 = arith.constant 0 : index
    %66 = vector.load %arg13[%c16_42, %c0_43] : memref<200x2048xf32, #tpu.memory_space<vmem>>, vector<8x2048xf32>
    tpu.vector_store %arg13[%c16_42, %c0_43], %65 {strides = array<i32>} : memref<200x2048xf32, #tpu.memory_space<vmem>>, vector<8x2048xf32>,
    %c2042_i32 = arith.constant 2042 : i32
    %67 = tpu.dynamic_rotate %61 by %c2042_i32 dim 1 : vector<8x2048xf32>, i32 -> vector<8x2048xf32>
    %c24_44 = arith.constant 24 : index
    %c0_45 = arith.constant 0 : index
    %68 = vector.load %arg13[%c24_44, %c0_45] : memref<200x2048xf32, #tpu.memory_space<vmem>>, vector<8x2048xf32>
    tpu.vector_store %arg13[%c24_44, %c0_45], %67 {strides = array<i32>} : memref<200x2048xf32, #tpu.memory_space<vmem>>, vector<8x2048xf32>,
    %c2040_i32 = arith.constant 2040 : i32
    %69 = tpu.dynamic_rotate %61 by %c2040_i32 dim 1 : vector<8x2048xf32>, i32 -> vector<8x2048xf32>
    %c32_46 = arith.constant 32 : index
    %c0_47 = arith.constant 0 : index
    %70 = vector.load %arg13[%c32_46, %c0_47] : memref<200x2048xf32, #tpu.memory_space<vmem>>, vector<8x2048xf32>
    tpu.vector_store %arg13[%c32_46, %c0_47], %69 {strides = array<i32>} : memref<200x2048xf32, #tpu.memory_space<vmem>>, vector<8x2048xf32>,
    %c1984_i32_48 = arith.constant 1984 : i32
    %71 = tpu.dynamic_rotate %61 by %c1984_i32_48 dim 1 : vector<8x2048xf32>, i32 -> vector<8x2048xf32>
    %c40_49 = arith.constant 40 : index
    %c0_50 = arith.constant 0 : index
    %72 = vector.load %arg13[%c40_49, %c0_50] : memref<200x2048xf32, #tpu.memory_space<vmem>>, vector<8x2048xf32>
    tpu.vector_store %arg13[%c40_49, %c0_50], %71 {strides = array<i32>} : memref<200x2048xf32, #tpu.memory_space<vmem>>, vector<8x2048xf32>,
    %c1982_i32_51 = arith.constant 1982 : i32
    %73 = tpu.dynamic_rotate %61 by %c1982_i32_51 dim 1 : vector<8x2048xf32>, i32 -> vector<8x2048xf32>
    %c48_52 = arith.constant 48 : index
    %c0_53 = arith.constant 0 : index
    %74 = vector.load %arg13[%c48_52, %c0_53] : memref<200x2048xf32, #tpu.memory_space<vmem>>, vector<8x2048xf32>
    tpu.vector_store %arg13[%c48_52, %c0_53], %73 {strides = array<i32>} : memref<200x2048xf32, #tpu.memory_space<vmem>>, vector<8x2048xf32>,
    %c1980_i32_54 = arith.constant 1980 : i32
    %75 = tpu.dynamic_rotate %61 by %c1980_i32_54 dim 1 : vector<8x2048xf32>, i32 -> vector<8x2048xf32>
    %c56_55 = arith.constant 56 : index
    %c0_56 = arith.constant 0 : index
    %76 = vector.load %arg13[%c56_55, %c0_56] : memref<200x2048xf32, #tpu.memory_space<vmem>>, vector<8x2048xf32>
    tpu.vector_store %arg13[%c56_55, %c0_56], %75 {strides = array<i32>} : memref<200x2048xf32, #tpu.memory_space<vmem>>, vector<8x2048xf32>,
    %c1978_i32 = arith.constant 1978 : i32
    %77 = tpu.dynamic_rotate %61 by %c1978_i32 dim 1 : vector<8x2048xf32>, i32 -> vector<8x2048xf32>
    %c64_57 = arith.constant 64 : index
    %c0_58 = arith.constant 0 : index
    %78 = vector.load %arg13[%c64_57, %c0_58] : memref<200x2048xf32, #tpu.memory_space<vmem>>, vector<8x2048xf32>
    tpu.vector_store %arg13[%c64_57, %c0_58], %77 {strides = array<i32>} : memref<200x2048xf32, #tpu.memory_space<vmem>>, vector<8x2048xf32>,
    %c1976_i32 = arith.constant 1976 : i32
    %79 = tpu.dynamic_rotate %61 by %c1976_i32 dim 1 : vector<8x2048xf32>, i32 -> vector<8x2048xf32>
    %c72_59 = arith.constant 72 : index
    %c0_60 = arith.constant 0 : index
    %80 = vector.load %arg13[%c72_59, %c0_60] : memref<200x2048xf32, #tpu.memory_space<vmem>>, vector<8x2048xf32>
    tpu.vector_store %arg13[%c72_59, %c0_60], %79 {strides = array<i32>} : memref<200x2048xf32, #tpu.memory_space<vmem>>, vector<8x2048xf32>,
    %c1920_i32_61 = arith.constant 1920 : i32
    %81 = tpu.dynamic_rotate %61 by %c1920_i32_61 dim 1 : vector<8x2048xf32>, i32 -> vector<8x2048xf32>
    %c80_62 = arith.constant 80 : index
    %c0_63 = arith.constant 0 : index
    %82 = vector.load %arg13[%c80_62, %c0_63] : memref<200x2048xf32, #tpu.memory_space<vmem>>, vector<8x2048xf32>
    tpu.vector_store %arg13[%c80_62, %c0_63], %81 {strides = array<i32>} : memref<200x2048xf32, #tpu.memory_space<vmem>>, vector<8x2048xf32>,
    %c1918_i32_64 = arith.constant 1918 : i32
    %83 = tpu.dynamic_rotate %61 by %c1918_i32_64 dim 1 : vector<8x2048xf32>, i32 -> vector<8x2048xf32>
    %c88_65 = arith.constant 88 : index
    %c0_66 = arith.constant 0 : index
    %84 = vector.load %arg13[%c88_65, %c0_66] : memref<200x2048xf32, #tpu.memory_space<vmem>>, vector<8x2048xf32>
    tpu.vector_store %arg13[%c88_65, %c0_66], %83 {strides = array<i32>} : memref<200x2048xf32, #tpu.memory_space<vmem>>, vector<8x2048xf32>,
    %c1916_i32_67 = arith.constant 1916 : i32
    %85 = tpu.dynamic_rotate %61 by %c1916_i32_67 dim 1 : vector<8x2048xf32>, i32 -> vector<8x2048xf32>
    %c96_68 = arith.constant 96 : index
    %c0_69 = arith.constant 0 : index
    %86 = vector.load %arg13[%c96_68, %c0_69] : memref<200x2048xf32, #tpu.memory_space<vmem>>, vector<8x2048xf32>
    tpu.vector_store %arg13[%c96_68, %c0_69], %85 {strides = array<i32>} : memref<200x2048xf32, #tpu.memory_space<vmem>>, vector<8x2048xf32>,
    %c1914_i32 = arith.constant 1914 : i32
    %87 = tpu.dynamic_rotate %61 by %c1914_i32 dim 1 : vector<8x2048xf32>, i32 -> vector<8x2048xf32>
    %c104_70 = arith.constant 104 : index
    %c0_71 = arith.constant 0 : index
    %88 = vector.load %arg13[%c104_70, %c0_71] : memref<200x2048xf32, #tpu.memory_space<vmem>>, vector<8x2048xf32>
    tpu.vector_store %arg13[%c104_70, %c0_71], %87 {strides = array<i32>} : memref<200x2048xf32, #tpu.memory_space<vmem>>, vector<8x2048xf32>,
    %c1912_i32 = arith.constant 1912 : i32
    %89 = tpu.dynamic_rotate %61 by %c1912_i32 dim 1 : vector<8x2048xf32>, i32 -> vector<8x2048xf32>
    %c112_72 = arith.constant 112 : index
    %c0_73 = arith.constant 0 : index
    %90 = vector.load %arg13[%c112_72, %c0_73] : memref<200x2048xf32, #tpu.memory_space<vmem>>, vector<8x2048xf32>
    tpu.vector_store %arg13[%c112_72, %c0_73], %89 {strides = array<i32>} : memref<200x2048xf32, #tpu.memory_space<vmem>>, vector<8x2048xf32>,
    %c1856_i32 = arith.constant 1856 : i32
    %91 = tpu.dynamic_rotate %61 by %c1856_i32 dim 1 : vector<8x2048xf32>, i32 -> vector<8x2048xf32>
    %c120_74 = arith.constant 120 : index
    %c0_75 = arith.constant 0 : index
    %92 = vector.load %arg13[%c120_74, %c0_75] : memref<200x2048xf32, #tpu.memory_space<vmem>>, vector<8x2048xf32>
    tpu.vector_store %arg13[%c120_74, %c0_75], %91 {strides = array<i32>} : memref<200x2048xf32, #tpu.memory_space<vmem>>, vector<8x2048xf32>,
    %c1854_i32 = arith.constant 1854 : i32
    %93 = tpu.dynamic_rotate %61 by %c1854_i32 dim 1 : vector<8x2048xf32>, i32 -> vector<8x2048xf32>
    %c128_76 = arith.constant 128 : index
    %c0_77 = arith.constant 0 : index
    %94 = vector.load %arg13[%c128_76, %c0_77] : memref<200x2048xf32, #tpu.memory_space<vmem>>, vector<8x2048xf32>
    tpu.vector_store %arg13[%c128_76, %c0_77], %93 {strides = array<i32>} : memref<200x2048xf32, #tpu.memory_space<vmem>>, vector<8x2048xf32>,
    %c1852_i32 = arith.constant 1852 : i32
    %95 = tpu.dynamic_rotate %61 by %c1852_i32 dim 1 : vector<8x2048xf32>, i32 -> vector<8x2048xf32>
    %c136_78 = arith.constant 136 : index
    %c0_79 = arith.constant 0 : index
    %96 = vector.load %arg13[%c136_78, %c0_79] : memref<200x2048xf32, #tpu.memory_space<vmem>>, vector<8x2048xf32>
    tpu.vector_store %arg13[%c136_78, %c0_79], %95 {strides = array<i32>} : memref<200x2048xf32, #tpu.memory_space<vmem>>, vector<8x2048xf32>,
    %c1850_i32 = arith.constant 1850 : i32
    %97 = tpu.dynamic_rotate %61 by %c1850_i32 dim 1 : vector<8x2048xf32>, i32 -> vector<8x2048xf32>
    %c144_80 = arith.constant 144 : index
    %c0_81 = arith.constant 0 : index
    %98 = vector.load %arg13[%c144_80, %c0_81] : memref<200x2048xf32, #tpu.memory_space<vmem>>, vector<8x2048xf32>
    tpu.vector_store %arg13[%c144_80, %c0_81], %97 {strides = array<i32>} : memref<200x2048xf32, #tpu.memory_space<vmem>>, vector<8x2048xf32>,
    %c1848_i32 = arith.constant 1848 : i32
    %99 = tpu.dynamic_rotate %61 by %c1848_i32 dim 1 : vector<8x2048xf32>, i32 -> vector<8x2048xf32>
    %c152_82 = arith.constant 152 : index
    %c0_83 = arith.constant 0 : index
    %100 = vector.load %arg13[%c152_82, %c0_83] : memref<200x2048xf32, #tpu.memory_space<vmem>>, vector<8x2048xf32>
    tpu.vector_store %arg13[%c152_82, %c0_83], %99 {strides = array<i32>} : memref<200x2048xf32, #tpu.memory_space<vmem>>, vector<8x2048xf32>,
    %c1792_i32 = arith.constant 1792 : i32
    %101 = tpu.dynamic_rotate %61 by %c1792_i32 dim 1 : vector<8x2048xf32>, i32 -> vector<8x2048xf32>
    %c160_84 = arith.constant 160 : index
    %c0_85 = arith.constant 0 : index
    %102 = vector.load %arg13[%c160_84, %c0_85] : memref<200x2048xf32, #tpu.memory_space<vmem>>, vector<8x2048xf32>
    tpu.vector_store %arg13[%c160_84, %c0_85], %101 {strides = array<i32>} : memref<200x2048xf32, #tpu.memory_space<vmem>>, vector<8x2048xf32>,
    %c1790_i32 = arith.constant 1790 : i32
    %103 = tpu.dynamic_rotate %61 by %c1790_i32 dim 1 : vector<8x2048xf32>, i32 -> vector<8x2048xf32>
    %c168_86 = arith.constant 168 : index
    %c0_87 = arith.constant 0 : index
    %104 = vector.load %arg13[%c168_86, %c0_87] : memref<200x2048xf32, #tpu.memory_space<vmem>>, vector<8x2048xf32>
    tpu.vector_store %arg13[%c168_86, %c0_87], %103 {strides = array<i32>} : memref<200x2048xf32, #tpu.memory_space<vmem>>, vector<8x2048xf32>,
    %c1788_i32 = arith.constant 1788 : i32
    %105 = tpu.dynamic_rotate %61 by %c1788_i32 dim 1 : vector<8x2048xf32>, i32 -> vector<8x2048xf32>
    %c176_88 = arith.constant 176 : index
    %c0_89 = arith.constant 0 : index
    %106 = vector.load %arg13[%c176_88, %c0_89] : memref<200x2048xf32, #tpu.memory_space<vmem>>, vector<8x2048xf32>
    tpu.vector_store %arg13[%c176_88, %c0_89], %105 {strides = array<i32>} : memref<200x2048xf32, #tpu.memory_space<vmem>>, vector<8x2048xf32>,
    %c1786_i32 = arith.constant 1786 : i32
    %107 = tpu.dynamic_rotate %61 by %c1786_i32 dim 1 : vector<8x2048xf32>, i32 -> vector<8x2048xf32>
    %c184_90 = arith.constant 184 : index
    %c0_91 = arith.constant 0 : index
    %108 = vector.load %arg13[%c184_90, %c0_91] : memref<200x2048xf32, #tpu.memory_space<vmem>>, vector<8x2048xf32>
    tpu.vector_store %arg13[%c184_90, %c0_91], %107 {strides = array<i32>} : memref<200x2048xf32, #tpu.memory_space<vmem>>, vector<8x2048xf32>,
    %c1784_i32 = arith.constant 1784 : i32
    %109 = tpu.dynamic_rotate %61 by %c1784_i32 dim 1 : vector<8x2048xf32>, i32 -> vector<8x2048xf32>
    %c192_92 = arith.constant 192 : index
    %c0_93 = arith.constant 0 : index
    %110 = vector.load %arg13[%c192_92, %c0_93] : memref<200x2048xf32, #tpu.memory_space<vmem>>, vector<8x2048xf32>
    tpu.vector_store %arg13[%c192_92, %c0_93], %109 {strides = array<i32>} : memref<200x2048xf32, #tpu.memory_space<vmem>>, vector<8x2048xf32>,
    %c0_94 = arith.constant 0 : index
    %c0_95 = arith.constant 0 : index
    %111 = vector.load %arg4[%c0_94, %c0_95] : memref<16x200xf32, #tpu.memory_space<vmem>>, vector<16x200xf32>
    %c0_96 = arith.constant 0 : index
    %c0_97 = arith.constant 0 : index
    %112 = vector.load %arg13[%c0_96, %c0_97] : memref<200x2048xf32, #tpu.memory_space<vmem>>, vector<200x2048xf32>
    %cst_98 = arith.constant dense<0.000000e+00> : vector<16x2048xf32>
    %113 = tpu.matmul %111, %112, %cst_98 {dimension_numbers = #tpu.dot_dimension_numbers<[1], [0], [0], [1], [0, 0, 1, 1], [], []>} : vector<16x200xf32>, vector<200x2048xf32>, vector<16x2048xf32> -> vector<16x2048xf32>
    %c0_99 = arith.constant 0 : index
    %c0_100 = arith.constant 0 : index
    %114 = vector.load %arg5[%c0_99, %c0_100] : memref<16x1xf32, #tpu.memory_space<vmem>>, vector<16x1xf32>
    %115 = vector.broadcast %114 : vector<16x1xf32> to vector<16x2048xf32>
    %116 = arith.addf %113, %115 : vector<16x2048xf32>
    %cst_101 = arith.constant 0.000000e+00 : f32
    %117 = vector.broadcast %cst_101 : f32 to vector<16x2048xf32>
    %118 = arith.maximumf %116, %117 : vector<16x2048xf32>
    %119 = vector.extract_strided_slice %118 {offsets = [0, 0], sizes = [16, 640], strides = [1, 1]} : vector<16x2048xf32> to vector<16x640xf32>
    %120 = vector.extract_strided_slice %118 {offsets = [0, 1024], sizes = [16, 640], strides = [1, 1]} : vector<16x2048xf32> to vector<16x640xf32>
    %121 = tpu.concatenate %119, %120 in 1 : vector<16x640xf32>, vector<16x640xf32> -> vector<16x1280xf32>
    %c1278_i32 = arith.constant 1278 : i32
    %122 = tpu.dynamic_rotate %121 by %c1278_i32 dim 1 : vector<16x1280xf32>, i32 -> vector<16x1280xf32>
    %123 = arith.maximumf %121, %122 : vector<16x1280xf32>
    %c1216_i32 = arith.constant 1216 : i32
    %124 = tpu.dynamic_rotate %123 by %c1216_i32 dim 1 : vector<16x1280xf32>, i32 -> vector<16x1280xf32>
    %125 = arith.maximumf %123, %124 : vector<16x1280xf32>
    %cst_102 = arith.constant 0.000000e+00 : f32
    %126 = vector.broadcast %cst_102 : f32 to vector<120x2xf32>
    %127 = vector.extract_strided_slice %125 {offsets = [0, 0], sizes = [16, 1], strides = [1, 1]} : vector<16x1280xf32> to vector<16x1xf32>
    %128 = vector.extract_strided_slice %125 {offsets = [0, 640], sizes = [16, 1], strides = [1, 1]} : vector<16x1280xf32> to vector<16x1xf32>
    %129 = tpu.concatenate %127, %128 in 1 : vector<16x1xf32>, vector<16x1xf32> -> vector<16x2xf32>
    %c0_103 = arith.constant 0 : index
    %c0_104 = arith.constant 0 : index
    %c0_105 = arith.constant 0 : index
    %130 = vector.load %arg6[%c0_103, %c0_104, %c0_105] : memref<25x120x16xf32, #tpu.memory_space<vmem>>, vector<1x120x16xf32>
    %131 = vector.shape_cast %130 : vector<1x120x16xf32> to vector<120x16xf32>
    %cst_106 = arith.constant dense<0.000000e+00> : vector<120x2xf32>
    %132 = tpu.matmul %131, %129, %cst_106 {dimension_numbers = #tpu.dot_dimension_numbers<[1], [0], [0], [1], [0, 0, 1, 1], [], []>} : vector<120x16xf32>, vector<16x2xf32>, vector<120x2xf32> -> vector<120x2xf32>
    %133 = arith.addf %126, %132 : vector<120x2xf32>
    %134 = vector.extract_strided_slice %125 {offsets = [0, 4], sizes = [16, 1], strides = [1, 1]} : vector<16x1280xf32> to vector<16x1xf32>
    %135 = vector.extract_strided_slice %125 {offsets = [0, 644], sizes = [16, 1], strides = [1, 1]} : vector<16x1280xf32> to vector<16x1xf32>
    %136 = tpu.concatenate %134, %135 in 1 : vector<16x1xf32>, vector<16x1xf32> -> vector<16x2xf32>
    %c1 = arith.constant 1 : index
    %c0_107 = arith.constant 0 : index
    %c0_108 = arith.constant 0 : index
    %137 = vector.load %arg6[%c1, %c0_107, %c0_108] : memref<25x120x16xf32, #tpu.memory_space<vmem>>, vector<1x120x16xf32>
    %138 = vector.shape_cast %137 : vector<1x120x16xf32> to vector<120x16xf32>
    %cst_109 = arith.constant dense<0.000000e+00> : vector<120x2xf32>
    %139 = tpu.matmul %138, %136, %cst_109 {dimension_numbers = #tpu.dot_dimension_numbers<[1], [0], [0], [1], [0, 0, 1, 1], [], []>} : vector<120x16xf32>, vector<16x2xf32>, vector<120x2xf32> -> vector<120x2xf32>
    %140 = arith.addf %133, %139 : vector<120x2xf32>
    %141 = vector.extract_strided_slice %125 {offsets = [0, 8], sizes = [16, 1], strides = [1, 1]} : vector<16x1280xf32> to vector<16x1xf32>
    %142 = vector.extract_strided_slice %125 {offsets = [0, 648], sizes = [16, 1], strides = [1, 1]} : vector<16x1280xf32> to vector<16x1xf32>
    %143 = tpu.concatenate %141, %142 in 1 : vector<16x1xf32>, vector<16x1xf32> -> vector<16x2xf32>
    %c2 = arith.constant 2 : index
    %c0_110 = arith.constant 0 : index
    %c0_111 = arith.constant 0 : index
    %144 = vector.load %arg6[%c2, %c0_110, %c0_111] : memref<25x120x16xf32, #tpu.memory_space<vmem>>, vector<1x120x16xf32>
    %145 = vector.shape_cast %144 : vector<1x120x16xf32> to vector<120x16xf32>
    %cst_112 = arith.constant dense<0.000000e+00> : vector<120x2xf32>
    %146 = tpu.matmul %145, %143, %cst_112 {dimension_numbers = #tpu.dot_dimension_numbers<[1], [0], [0], [1], [0, 0, 1, 1], [], []>} : vector<120x16xf32>, vector<16x2xf32>, vector<120x2xf32> -> vector<120x2xf32>
    %147 = arith.addf %140, %146 : vector<120x2xf32>
    %148 = vector.extract_strided_slice %125 {offsets = [0, 12], sizes = [16, 1], strides = [1, 1]} : vector<16x1280xf32> to vector<16x1xf32>
    %149 = vector.extract_strided_slice %125 {offsets = [0, 652], sizes = [16, 1], strides = [1, 1]} : vector<16x1280xf32> to vector<16x1xf32>
    %150 = tpu.concatenate %148, %149 in 1 : vector<16x1xf32>, vector<16x1xf32> -> vector<16x2xf32>
    %c3 = arith.constant 3 : index
    %c0_113 = arith.constant 0 : index
    %c0_114 = arith.constant 0 : index
    %151 = vector.load %arg6[%c3, %c0_113, %c0_114] : memref<25x120x16xf32, #tpu.memory_space<vmem>>, vector<1x120x16xf32>
    %152 = vector.shape_cast %151 : vector<1x120x16xf32> to vector<120x16xf32>
    %cst_115 = arith.constant dense<0.000000e+00> : vector<120x2xf32>
    %153 = tpu.matmul %152, %150, %cst_115 {dimension_numbers = #tpu.dot_dimension_numbers<[1], [0], [0], [1], [0, 0, 1, 1], [], []>} : vector<120x16xf32>, vector<16x2xf32>, vector<120x2xf32> -> vector<120x2xf32>
    %154 = arith.addf %147, %153 : vector<120x2xf32>
    %155 = vector.extract_strided_slice %125 {offsets = [0, 16], sizes = [16, 1], strides = [1, 1]} : vector<16x1280xf32> to vector<16x1xf32>
    %156 = vector.extract_strided_slice %125 {offsets = [0, 656], sizes = [16, 1], strides = [1, 1]} : vector<16x1280xf32> to vector<16x1xf32>
    %157 = tpu.concatenate %155, %156 in 1 : vector<16x1xf32>, vector<16x1xf32> -> vector<16x2xf32>
    %c4 = arith.constant 4 : index
    %c0_116 = arith.constant 0 : index
    %c0_117 = arith.constant 0 : index
    %158 = vector.load %arg6[%c4, %c0_116, %c0_117] : memref<25x120x16xf32, #tpu.memory_space<vmem>>, vector<1x120x16xf32>
    %159 = vector.shape_cast %158 : vector<1x120x16xf32> to vector<120x16xf32>
    %cst_118 = arith.constant dense<0.000000e+00> : vector<120x2xf32>
    %160 = tpu.matmul %159, %157, %cst_118 {dimension_numbers = #tpu.dot_dimension_numbers<[1], [0], [0], [1], [0, 0, 1, 1], [], []>} : vector<120x16xf32>, vector<16x2xf32>, vector<120x2xf32> -> vector<120x2xf32>
    %161 = arith.addf %154, %160 : vector<120x2xf32>
    %162 = vector.extract_strided_slice %125 {offsets = [0, 128], sizes = [16, 1], strides = [1, 1]} : vector<16x1280xf32> to vector<16x1xf32>
    %163 = vector.extract_strided_slice %125 {offsets = [0, 768], sizes = [16, 1], strides = [1, 1]} : vector<16x1280xf32> to vector<16x1xf32>
    %164 = tpu.concatenate %162, %163 in 1 : vector<16x1xf32>, vector<16x1xf32> -> vector<16x2xf32>
    %c5 = arith.constant 5 : index
    %c0_119 = arith.constant 0 : index
    %c0_120 = arith.constant 0 : index
    %165 = vector.load %arg6[%c5, %c0_119, %c0_120] : memref<25x120x16xf32, #tpu.memory_space<vmem>>, vector<1x120x16xf32>
    %166 = vector.shape_cast %165 : vector<1x120x16xf32> to vector<120x16xf32>
    %cst_121 = arith.constant dense<0.000000e+00> : vector<120x2xf32>
    %167 = tpu.matmul %166, %164, %cst_121 {dimension_numbers = #tpu.dot_dimension_numbers<[1], [0], [0], [1], [0, 0, 1, 1], [], []>} : vector<120x16xf32>, vector<16x2xf32>, vector<120x2xf32> -> vector<120x2xf32>
    %168 = arith.addf %161, %167 : vector<120x2xf32>
    %169 = vector.extract_strided_slice %125 {offsets = [0, 132], sizes = [16, 1], strides = [1, 1]} : vector<16x1280xf32> to vector<16x1xf32>
    %170 = vector.extract_strided_slice %125 {offsets = [0, 772], sizes = [16, 1], strides = [1, 1]} : vector<16x1280xf32> to vector<16x1xf32>
    %171 = tpu.concatenate %169, %170 in 1 : vector<16x1xf32>, vector<16x1xf32> -> vector<16x2xf32>
    %c6 = arith.constant 6 : index
    %c0_122 = arith.constant 0 : index
    %c0_123 = arith.constant 0 : index
    %172 = vector.load %arg6[%c6, %c0_122, %c0_123] : memref<25x120x16xf32, #tpu.memory_space<vmem>>, vector<1x120x16xf32>
    %173 = vector.shape_cast %172 : vector<1x120x16xf32> to vector<120x16xf32>
    %cst_124 = arith.constant dense<0.000000e+00> : vector<120x2xf32>
    %174 = tpu.matmul %173, %171, %cst_124 {dimension_numbers = #tpu.dot_dimension_numbers<[1], [0], [0], [1], [0, 0, 1, 1], [], []>} : vector<120x16xf32>, vector<16x2xf32>, vector<120x2xf32> -> vector<120x2xf32>
    %175 = arith.addf %168, %174 : vector<120x2xf32>
    %176 = vector.extract_strided_slice %125 {offsets = [0, 136], sizes = [16, 1], strides = [1, 1]} : vector<16x1280xf32> to vector<16x1xf32>
    %177 = vector.extract_strided_slice %125 {offsets = [0, 776], sizes = [16, 1], strides = [1, 1]} : vector<16x1280xf32> to vector<16x1xf32>
    %178 = tpu.concatenate %176, %177 in 1 : vector<16x1xf32>, vector<16x1xf32> -> vector<16x2xf32>
    %c7 = arith.constant 7 : index
    %c0_125 = arith.constant 0 : index
    %c0_126 = arith.constant 0 : index
    %179 = vector.load %arg6[%c7, %c0_125, %c0_126] : memref<25x120x16xf32, #tpu.memory_space<vmem>>, vector<1x120x16xf32>
    %180 = vector.shape_cast %179 : vector<1x120x16xf32> to vector<120x16xf32>
    %cst_127 = arith.constant dense<0.000000e+00> : vector<120x2xf32>
    %181 = tpu.matmul %180, %178, %cst_127 {dimension_numbers = #tpu.dot_dimension_numbers<[1], [0], [0], [1], [0, 0, 1, 1], [], []>} : vector<120x16xf32>, vector<16x2xf32>, vector<120x2xf32> -> vector<120x2xf32>
    %182 = arith.addf %175, %181 : vector<120x2xf32>
    %183 = vector.extract_strided_slice %125 {offsets = [0, 140], sizes = [16, 1], strides = [1, 1]} : vector<16x1280xf32> to vector<16x1xf32>
    %184 = vector.extract_strided_slice %125 {offsets = [0, 780], sizes = [16, 1], strides = [1, 1]} : vector<16x1280xf32> to vector<16x1xf32>
    %185 = tpu.concatenate %183, %184 in 1 : vector<16x1xf32>, vector<16x1xf32> -> vector<16x2xf32>
    %c8_128 = arith.constant 8 : index
    %c0_129 = arith.constant 0 : index
    %c0_130 = arith.constant 0 : index
    %186 = vector.load %arg6[%c8_128, %c0_129, %c0_130] : memref<25x120x16xf32, #tpu.memory_space<vmem>>, vector<1x120x16xf32>
    %187 = vector.shape_cast %186 : vector<1x120x16xf32> to vector<120x16xf32>
    %cst_131 = arith.constant dense<0.000000e+00> : vector<120x2xf32>
    %188 = tpu.matmul %187, %185, %cst_131 {dimension_numbers = #tpu.dot_dimension_numbers<[1], [0], [0], [1], [0, 0, 1, 1], [], []>} : vector<120x16xf32>, vector<16x2xf32>, vector<120x2xf32> -> vector<120x2xf32>
    %189 = arith.addf %182, %188 : vector<120x2xf32>
    %190 = vector.extract_strided_slice %125 {offsets = [0, 144], sizes = [16, 1], strides = [1, 1]} : vector<16x1280xf32> to vector<16x1xf32>
    %191 = vector.extract_strided_slice %125 {offsets = [0, 784], sizes = [16, 1], strides = [1, 1]} : vector<16x1280xf32> to vector<16x1xf32>
    %192 = tpu.concatenate %190, %191 in 1 : vector<16x1xf32>, vector<16x1xf32> -> vector<16x2xf32>
    %c9 = arith.constant 9 : index
    %c0_132 = arith.constant 0 : index
    %c0_133 = arith.constant 0 : index
    %193 = vector.load %arg6[%c9, %c0_132, %c0_133] : memref<25x120x16xf32, #tpu.memory_space<vmem>>, vector<1x120x16xf32>
    %194 = vector.shape_cast %193 : vector<1x120x16xf32> to vector<120x16xf32>
    %cst_134 = arith.constant dense<0.000000e+00> : vector<120x2xf32>
    %195 = tpu.matmul %194, %192, %cst_134 {dimension_numbers = #tpu.dot_dimension_numbers<[1], [0], [0], [1], [0, 0, 1, 1], [], []>} : vector<120x16xf32>, vector<16x2xf32>, vector<120x2xf32> -> vector<120x2xf32>
    %196 = arith.addf %189, %195 : vector<120x2xf32>
    %197 = vector.extract_strided_slice %125 {offsets = [0, 256], sizes = [16, 1], strides = [1, 1]} : vector<16x1280xf32> to vector<16x1xf32>
    %198 = vector.extract_strided_slice %125 {offsets = [0, 896], sizes = [16, 1], strides = [1, 1]} : vector<16x1280xf32> to vector<16x1xf32>
    %199 = tpu.concatenate %197, %198 in 1 : vector<16x1xf32>, vector<16x1xf32> -> vector<16x2xf32>
    %c10 = arith.constant 10 : index
    %c0_135 = arith.constant 0 : index
    %c0_136 = arith.constant 0 : index
    %200 = vector.load %arg6[%c10, %c0_135, %c0_136] : memref<25x120x16xf32, #tpu.memory_space<vmem>>, vector<1x120x16xf32>
    %201 = vector.shape_cast %200 : vector<1x120x16xf32> to vector<120x16xf32>
    %cst_137 = arith.constant dense<0.000000e+00> : vector<120x2xf32>
    %202 = tpu.matmul %201, %199, %cst_137 {dimension_numbers = #tpu.dot_dimension_numbers<[1], [0], [0], [1], [0, 0, 1, 1], [], []>} : vector<120x16xf32>, vector<16x2xf32>, vector<120x2xf32> -> vector<120x2xf32>
    %203 = arith.addf %196, %202 : vector<120x2xf32>
    %204 = vector.extract_strided_slice %125 {offsets = [0, 260], sizes = [16, 1], strides = [1, 1]} : vector<16x1280xf32> to vector<16x1xf32>
    %205 = vector.extract_strided_slice %125 {offsets = [0, 900], sizes = [16, 1], strides = [1, 1]} : vector<16x1280xf32> to vector<16x1xf32>
    %206 = tpu.concatenate %204, %205 in 1 : vector<16x1xf32>, vector<16x1xf32> -> vector<16x2xf32>
    %c11 = arith.constant 11 : index
    %c0_138 = arith.constant 0 : index
    %c0_139 = arith.constant 0 : index
    %207 = vector.load %arg6[%c11, %c0_138, %c0_139] : memref<25x120x16xf32, #tpu.memory_space<vmem>>, vector<1x120x16xf32>
    %208 = vector.shape_cast %207 : vector<1x120x16xf32> to vector<120x16xf32>
    %cst_140 = arith.constant dense<0.000000e+00> : vector<120x2xf32>
    %209 = tpu.matmul %208, %206, %cst_140 {dimension_numbers = #tpu.dot_dimension_numbers<[1], [0], [0], [1], [0, 0, 1, 1], [], []>} : vector<120x16xf32>, vector<16x2xf32>, vector<120x2xf32> -> vector<120x2xf32>
    %210 = arith.addf %203, %209 : vector<120x2xf32>
    %211 = vector.extract_strided_slice %125 {offsets = [0, 264], sizes = [16, 1], strides = [1, 1]} : vector<16x1280xf32> to vector<16x1xf32>
    %212 = vector.extract_strided_slice %125 {offsets = [0, 904], sizes = [16, 1], strides = [1, 1]} : vector<16x1280xf32> to vector<16x1xf32>
    %213 = tpu.concatenate %211, %212 in 1 : vector<16x1xf32>, vector<16x1xf32> -> vector<16x2xf32>
    %c12 = arith.constant 12 : index
    %c0_141 = arith.constant 0 : index
    %c0_142 = arith.constant 0 : index
    %214 = vector.load %arg6[%c12, %c0_141, %c0_142] : memref<25x120x16xf32, #tpu.memory_space<vmem>>, vector<1x120x16xf32>
    %215 = vector.shape_cast %214 : vector<1x120x16xf32> to vector<120x16xf32>
    %cst_143 = arith.constant dense<0.000000e+00> : vector<120x2xf32>
    %216 = tpu.matmul %215, %213, %cst_143 {dimension_numbers = #tpu.dot_dimension_numbers<[1], [0], [0], [1], [0, 0, 1, 1], [], []>} : vector<120x16xf32>, vector<16x2xf32>, vector<120x2xf32> -> vector<120x2xf32>
    %217 = arith.addf %210, %216 : vector<120x2xf32>
    %218 = vector.extract_strided_slice %125 {offsets = [0, 268], sizes = [16, 1], strides = [1, 1]} : vector<16x1280xf32> to vector<16x1xf32>
    %219 = vector.extract_strided_slice %125 {offsets = [0, 908], sizes = [16, 1], strides = [1, 1]} : vector<16x1280xf32> to vector<16x1xf32>
    %220 = tpu.concatenate %218, %219 in 1 : vector<16x1xf32>, vector<16x1xf32> -> vector<16x2xf32>
    %c13 = arith.constant 13 : index
    %c0_144 = arith.constant 0 : index
    %c0_145 = arith.constant 0 : index
    %221 = vector.load %arg6[%c13, %c0_144, %c0_145] : memref<25x120x16xf32, #tpu.memory_space<vmem>>, vector<1x120x16xf32>
    %222 = vector.shape_cast %221 : vector<1x120x16xf32> to vector<120x16xf32>
    %cst_146 = arith.constant dense<0.000000e+00> : vector<120x2xf32>
    %223 = tpu.matmul %222, %220, %cst_146 {dimension_numbers = #tpu.dot_dimension_numbers<[1], [0], [0], [1], [0, 0, 1, 1], [], []>} : vector<120x16xf32>, vector<16x2xf32>, vector<120x2xf32> -> vector<120x2xf32>
    %224 = arith.addf %217, %223 : vector<120x2xf32>
    %225 = vector.extract_strided_slice %125 {offsets = [0, 272], sizes = [16, 1], strides = [1, 1]} : vector<16x1280xf32> to vector<16x1xf32>
    %226 = vector.extract_strided_slice %125 {offsets = [0, 912], sizes = [16, 1], strides = [1, 1]} : vector<16x1280xf32> to vector<16x1xf32>
    %227 = tpu.concatenate %225, %226 in 1 : vector<16x1xf32>, vector<16x1xf32> -> vector<16x2xf32>
    %c14 = arith.constant 14 : index
    %c0_147 = arith.constant 0 : index
    %c0_148 = arith.constant 0 : index
    %228 = vector.load %arg6[%c14, %c0_147, %c0_148] : memref<25x120x16xf32, #tpu.memory_space<vmem>>, vector<1x120x16xf32>
    %229 = vector.shape_cast %228 : vector<1x120x16xf32> to vector<120x16xf32>
    %cst_149 = arith.constant dense<0.000000e+00> : vector<120x2xf32>
    %230 = tpu.matmul %229, %227, %cst_149 {dimension_numbers = #tpu.dot_dimension_numbers<[1], [0], [0], [1], [0, 0, 1, 1], [], []>} : vector<120x16xf32>, vector<16x2xf32>, vector<120x2xf32> -> vector<120x2xf32>
    %231 = arith.addf %224, %230 : vector<120x2xf32>
    %232 = vector.extract_strided_slice %125 {offsets = [0, 384], sizes = [16, 1], strides = [1, 1]} : vector<16x1280xf32> to vector<16x1xf32>
    %233 = vector.extract_strided_slice %125 {offsets = [0, 1024], sizes = [16, 1], strides = [1, 1]} : vector<16x1280xf32> to vector<16x1xf32>
    %234 = tpu.concatenate %232, %233 in 1 : vector<16x1xf32>, vector<16x1xf32> -> vector<16x2xf32>
    %c15 = arith.constant 15 : index
    %c0_150 = arith.constant 0 : index
    %c0_151 = arith.constant 0 : index
    %235 = vector.load %arg6[%c15, %c0_150, %c0_151] : memref<25x120x16xf32, #tpu.memory_space<vmem>>, vector<1x120x16xf32>
    %236 = vector.shape_cast %235 : vector<1x120x16xf32> to vector<120x16xf32>
    %cst_152 = arith.constant dense<0.000000e+00> : vector<120x2xf32>
    %237 = tpu.matmul %236, %234, %cst_152 {dimension_numbers = #tpu.dot_dimension_numbers<[1], [0], [0], [1], [0, 0, 1, 1], [], []>} : vector<120x16xf32>, vector<16x2xf32>, vector<120x2xf32> -> vector<120x2xf32>
    %238 = arith.addf %231, %237 : vector<120x2xf32>
    %239 = vector.extract_strided_slice %125 {offsets = [0, 388], sizes = [16, 1], strides = [1, 1]} : vector<16x1280xf32> to vector<16x1xf32>
    %240 = vector.extract_strided_slice %125 {offsets = [0, 1028], sizes = [16, 1], strides = [1, 1]} : vector<16x1280xf32> to vector<16x1xf32>
    %241 = tpu.concatenate %239, %240 in 1 : vector<16x1xf32>, vector<16x1xf32> -> vector<16x2xf32>
    %c16_153 = arith.constant 16 : index
    %c0_154 = arith.constant 0 : index
    %c0_155 = arith.constant 0 : index
    %242 = vector.load %arg6[%c16_153, %c0_154, %c0_155] : memref<25x120x16xf32, #tpu.memory_space<vmem>>, vector<1x120x16xf32>
    %243 = vector.shape_cast %242 : vector<1x120x16xf32> to vector<120x16xf32>
    %cst_156 = arith.constant dense<0.000000e+00> : vector<120x2xf32>
    %244 = tpu.matmul %243, %241, %cst_156 {dimension_numbers = #tpu.dot_dimension_numbers<[1], [0], [0], [1], [0, 0, 1, 1], [], []>} : vector<120x16xf32>, vector<16x2xf32>, vector<120x2xf32> -> vector<120x2xf32>
    %245 = arith.addf %238, %244 : vector<120x2xf32>
    %246 = vector.extract_strided_slice %125 {offsets = [0, 392], sizes = [16, 1], strides = [1, 1]} : vector<16x1280xf32> to vector<16x1xf32>
    %247 = vector.extract_strided_slice %125 {offsets = [0, 1032], sizes = [16, 1], strides = [1, 1]} : vector<16x1280xf32> to vector<16x1xf32>
    %248 = tpu.concatenate %246, %247 in 1 : vector<16x1xf32>, vector<16x1xf32> -> vector<16x2xf32>
    %c17 = arith.constant 17 : index
    %c0_157 = arith.constant 0 : index
    %c0_158 = arith.constant 0 : index
    %249 = vector.load %arg6[%c17, %c0_157, %c0_158] : memref<25x120x16xf32, #tpu.memory_space<vmem>>, vector<1x120x16xf32>
    %250 = vector.shape_cast %249 : vector<1x120x16xf32> to vector<120x16xf32>
    %cst_159 = arith.constant dense<0.000000e+00> : vector<120x2xf32>
    %251 = tpu.matmul %250, %248, %cst_159 {dimension_numbers = #tpu.dot_dimension_numbers<[1], [0], [0], [1], [0, 0, 1, 1], [], []>} : vector<120x16xf32>, vector<16x2xf32>, vector<120x2xf32> -> vector<120x2xf32>
    %252 = arith.addf %245, %251 : vector<120x2xf32>
    %253 = vector.extract_strided_slice %125 {offsets = [0, 396], sizes = [16, 1], strides = [1, 1]} : vector<16x1280xf32> to vector<16x1xf32>
    %254 = vector.extract_strided_slice %125 {offsets = [0, 1036], sizes = [16, 1], strides = [1, 1]} : vector<16x1280xf32> to vector<16x1xf32>
    %255 = tpu.concatenate %253, %254 in 1 : vector<16x1xf32>, vector<16x1xf32> -> vector<16x2xf32>
    %c18 = arith.constant 18 : index
    %c0_160 = arith.constant 0 : index
    %c0_161 = arith.constant 0 : index
    %256 = vector.load %arg6[%c18, %c0_160, %c0_161] : memref<25x120x16xf32, #tpu.memory_space<vmem>>, vector<1x120x16xf32>
    %257 = vector.shape_cast %256 : vector<1x120x16xf32> to vector<120x16xf32>
    %cst_162 = arith.constant dense<0.000000e+00> : vector<120x2xf32>
    %258 = tpu.matmul %257, %255, %cst_162 {dimension_numbers = #tpu.dot_dimension_numbers<[1], [0], [0], [1], [0, 0, 1, 1], [], []>} : vector<120x16xf32>, vector<16x2xf32>, vector<120x2xf32> -> vector<120x2xf32>
    %259 = arith.addf %252, %258 : vector<120x2xf32>
    %260 = vector.extract_strided_slice %125 {offsets = [0, 400], sizes = [16, 1], strides = [1, 1]} : vector<16x1280xf32> to vector<16x1xf32>
    %261 = vector.extract_strided_slice %125 {offsets = [0, 1040], sizes = [16, 1], strides = [1, 1]} : vector<16x1280xf32> to vector<16x1xf32>
    %262 = tpu.concatenate %260, %261 in 1 : vector<16x1xf32>, vector<16x1xf32> -> vector<16x2xf32>
    %c19 = arith.constant 19 : index
    %c0_163 = arith.constant 0 : index
    %c0_164 = arith.constant 0 : index
    %263 = vector.load %arg6[%c19, %c0_163, %c0_164] : memref<25x120x16xf32, #tpu.memory_space<vmem>>, vector<1x120x16xf32>
    %264 = vector.shape_cast %263 : vector<1x120x16xf32> to vector<120x16xf32>
    %cst_165 = arith.constant dense<0.000000e+00> : vector<120x2xf32>
    %265 = tpu.matmul %264, %262, %cst_165 {dimension_numbers = #tpu.dot_dimension_numbers<[1], [0], [0], [1], [0, 0, 1, 1], [], []>} : vector<120x16xf32>, vector<16x2xf32>, vector<120x2xf32> -> vector<120x2xf32>
    %266 = arith.addf %259, %265 : vector<120x2xf32>
    %267 = vector.extract_strided_slice %125 {offsets = [0, 512], sizes = [16, 1], strides = [1, 1]} : vector<16x1280xf32> to vector<16x1xf32>
    %268 = vector.extract_strided_slice %125 {offsets = [0, 1152], sizes = [16, 1], strides = [1, 1]} : vector<16x1280xf32> to vector<16x1xf32>
    %269 = tpu.concatenate %267, %268 in 1 : vector<16x1xf32>, vector<16x1xf32> -> vector<16x2xf32>
    %c20 = arith.constant 20 : index
    %c0_166 = arith.constant 0 : index
    %c0_167 = arith.constant 0 : index
    %270 = vector.load %arg6[%c20, %c0_166, %c0_167] : memref<25x120x16xf32, #tpu.memory_space<vmem>>, vector<1x120x16xf32>
    %271 = vector.shape_cast %270 : vector<1x120x16xf32> to vector<120x16xf32>
    %cst_168 = arith.constant dense<0.000000e+00> : vector<120x2xf32>
    %272 = tpu.matmul %271, %269, %cst_168 {dimension_numbers = #tpu.dot_dimension_numbers<[1], [0], [0], [1], [0, 0, 1, 1], [], []>} : vector<120x16xf32>, vector<16x2xf32>, vector<120x2xf32> -> vector<120x2xf32>
    %273 = arith.addf %266, %272 : vector<120x2xf32>
    %274 = vector.extract_strided_slice %125 {offsets = [0, 516], sizes = [16, 1], strides = [1, 1]} : vector<16x1280xf32> to vector<16x1xf32>
    %275 = vector.extract_strided_slice %125 {offsets = [0, 1156], sizes = [16, 1], strides = [1, 1]} : vector<16x1280xf32> to vector<16x1xf32>
    %276 = tpu.concatenate %274, %275 in 1 : vector<16x1xf32>, vector<16x1xf32> -> vector<16x2xf32>
    %c21 = arith.constant 21 : index
    %c0_169 = arith.constant 0 : index
    %c0_170 = arith.constant 0 : index
    %277 = vector.load %arg6[%c21, %c0_169, %c0_170] : memref<25x120x16xf32, #tpu.memory_space<vmem>>, vector<1x120x16xf32>
    %278 = vector.shape_cast %277 : vector<1x120x16xf32> to vector<120x16xf32>
    %cst_171 = arith.constant dense<0.000000e+00> : vector<120x2xf32>
    %279 = tpu.matmul %278, %276, %cst_171 {dimension_numbers = #tpu.dot_dimension_numbers<[1], [0], [0], [1], [0, 0, 1, 1], [], []>} : vector<120x16xf32>, vector<16x2xf32>, vector<120x2xf32> -> vector<120x2xf32>
    %280 = arith.addf %273, %279 : vector<120x2xf32>
    %281 = vector.extract_strided_slice %125 {offsets = [0, 520], sizes = [16, 1], strides = [1, 1]} : vector<16x1280xf32> to vector<16x1xf32>
    %282 = vector.extract_strided_slice %125 {offsets = [0, 1160], sizes = [16, 1], strides = [1, 1]} : vector<16x1280xf32> to vector<16x1xf32>
    %283 = tpu.concatenate %281, %282 in 1 : vector<16x1xf32>, vector<16x1xf32> -> vector<16x2xf32>
    %c22 = arith.constant 22 : index
    %c0_172 = arith.constant 0 : index
    %c0_173 = arith.constant 0 : index
    %284 = vector.load %arg6[%c22, %c0_172, %c0_173] : memref<25x120x16xf32, #tpu.memory_space<vmem>>, vector<1x120x16xf32>
    %285 = vector.shape_cast %284 : vector<1x120x16xf32> to vector<120x16xf32>
    %cst_174 = arith.constant dense<0.000000e+00> : vector<120x2xf32>
    %286 = tpu.matmul %285, %283, %cst_174 {dimension_numbers = #tpu.dot_dimension_numbers<[1], [0], [0], [1], [0, 0, 1, 1], [], []>} : vector<120x16xf32>, vector<16x2xf32>, vector<120x2xf32> -> vector<120x2xf32>
    %287 = arith.addf %280, %286 : vector<120x2xf32>
    %288 = vector.extract_strided_slice %125 {offsets = [0, 524], sizes = [16, 1], strides = [1, 1]} : vector<16x1280xf32> to vector<16x1xf32>
    %289 = vector.extract_strided_slice %125 {offsets = [0, 1164], sizes = [16, 1], strides = [1, 1]} : vector<16x1280xf32> to vector<16x1xf32>
    %290 = tpu.concatenate %288, %289 in 1 : vector<16x1xf32>, vector<16x1xf32> -> vector<16x2xf32>
    %c23 = arith.constant 23 : index
    %c0_175 = arith.constant 0 : index
    %c0_176 = arith.constant 0 : index
    %291 = vector.load %arg6[%c23, %c0_175, %c0_176] : memref<25x120x16xf32, #tpu.memory_space<vmem>>, vector<1x120x16xf32>
    %292 = vector.shape_cast %291 : vector<1x120x16xf32> to vector<120x16xf32>
    %cst_177 = arith.constant dense<0.000000e+00> : vector<120x2xf32>
    %293 = tpu.matmul %292, %290, %cst_177 {dimension_numbers = #tpu.dot_dimension_numbers<[1], [0], [0], [1], [0, 0, 1, 1], [], []>} : vector<120x16xf32>, vector<16x2xf32>, vector<120x2xf32> -> vector<120x2xf32>
    %294 = arith.addf %287, %293 : vector<120x2xf32>
    %295 = vector.extract_strided_slice %125 {offsets = [0, 528], sizes = [16, 1], strides = [1, 1]} : vector<16x1280xf32> to vector<16x1xf32>
    %296 = vector.extract_strided_slice %125 {offsets = [0, 1168], sizes = [16, 1], strides = [1, 1]} : vector<16x1280xf32> to vector<16x1xf32>
    %297 = tpu.concatenate %295, %296 in 1 : vector<16x1xf32>, vector<16x1xf32> -> vector<16x2xf32>
    %c24_178 = arith.constant 24 : index
    %c0_179 = arith.constant 0 : index
    %c0_180 = arith.constant 0 : index
    %298 = vector.load %arg6[%c24_178, %c0_179, %c0_180] : memref<25x120x16xf32, #tpu.memory_space<vmem>>, vector<1x120x16xf32>
    %299 = vector.shape_cast %298 : vector<1x120x16xf32> to vector<120x16xf32>
    %cst_181 = arith.constant dense<0.000000e+00> : vector<120x2xf32>
    %300 = tpu.matmul %299, %297, %cst_181 {dimension_numbers = #tpu.dot_dimension_numbers<[1], [0], [0], [1], [0, 0, 1, 1], [], []>} : vector<120x16xf32>, vector<16x2xf32>, vector<120x2xf32> -> vector<120x2xf32>
    %301 = arith.addf %294, %300 : vector<120x2xf32>
    %c0_182 = arith.constant 0 : index
    %c0_183 = arith.constant 0 : index
    %302 = vector.load %arg7[%c0_182, %c0_183] : memref<120x1xf32, #tpu.memory_space<vmem>>, vector<120x1xf32>
    %303 = vector.broadcast %302 : vector<120x1xf32> to vector<120x2xf32>
    %304 = arith.addf %301, %303 : vector<120x2xf32>
    %cst_184 = arith.constant 0.000000e+00 : f32
    %305 = vector.broadcast %cst_184 : f32 to vector<120x2xf32>
    %306 = arith.maximumf %304, %305 : vector<120x2xf32>
    %c0_185 = arith.constant 0 : index
    %c0_186 = arith.constant 0 : index
    %307 = vector.load %arg8[%c0_185, %c0_186] : memref<84x120xf32, #tpu.memory_space<vmem>>, vector<84x120xf32>
    %cst_187 = arith.constant dense<0.000000e+00> : vector<84x2xf32>
    %308 = tpu.matmul %307, %306, %cst_187 {dimension_numbers = #tpu.dot_dimension_numbers<[1], [0], [0], [1], [0, 0, 1, 1], [], []>} : vector<84x120xf32>, vector<120x2xf32>, vector<84x2xf32> -> vector<84x2xf32>
    %c0_188 = arith.constant 0 : index
    %c0_189 = arith.constant 0 : index
    %309 = vector.load %arg9[%c0_188, %c0_189] : memref<84x1xf32, #tpu.memory_space<vmem>>, vector<84x1xf32>
    %310 = vector.broadcast %309 : vector<84x1xf32> to vector<84x2xf32>
    %311 = arith.addf %308, %310 : vector<84x2xf32>
    %cst_190 = arith.constant 0.000000e+00 : f32
    %312 = vector.broadcast %cst_190 : f32 to vector<84x2xf32>
    %313 = arith.maximumf %311, %312 : vector<84x2xf32>
    %c0_191 = arith.constant 0 : index
    %c0_192 = arith.constant 0 : index
    %314 = vector.load %arg10[%c0_191, %c0_192] : memref<2x84xf32, #tpu.memory_space<vmem>>, vector<2x84xf32>
    %cst_193 = arith.constant dense<0.000000e+00> : vector<2x2xf32>
    %315 = tpu.matmul %314, %313, %cst_193 {dimension_numbers = #tpu.dot_dimension_numbers<[1], [0], [0], [1], [0, 0, 1, 1], [], []>} : vector<2x84xf32>, vector<84x2xf32>, vector<2x2xf32> -> vector<2x2xf32>
    %c0_194 = arith.constant 0 : index
    %c0_195 = arith.constant 0 : index
    %316 = vector.load %arg11[%c0_194, %c0_195] : memref<2x1xf32, #tpu.memory_space<vmem>>, vector<2x1xf32>
    %317 = vector.broadcast %316 : vector<2x1xf32> to vector<2x2xf32>
    %318 = arith.addf %315, %317 : vector<2x2xf32>
    %c0_196 = arith.constant 0 : index
    %c0_197 = arith.constant 0 : index
    %319 = vector.load %arg12[%c0_196, %c0_197] : memref<2x2xf32, #tpu.memory_space<vmem>>, vector<2x2xf32>
    tpu.vector_store %arg12[%c0_196, %c0_197], %318 {strides = array<i32>} : memref<2x2xf32, #tpu.memory_space<vmem>>, vector<2x2xf32>,
    return
  }
  func.func @transform_0(%arg0: i32) -> (i32, i32) {
    %c0_i32 = arith.constant 0 : i32
    %c0_i32_0 = arith.constant 0 : i32
    %c0_i32_1 = arith.constant 0 : i32
    return %c0_i32, %c0_i32_0 : i32, i32
  }
  func.func @transform_1(%arg0: i32) -> (i32, i32) {
    %c0_i32 = arith.constant 0 : i32
    %c0_i32_0 = arith.constant 0 : i32
    %c0_i32_1 = arith.constant 0 : i32
    return %c0_i32, %c0_i32_0 : i32, i32
  }
  func.func @transform_2(%arg0: i32) -> (i32, i32) {
    %c0_i32 = arith.constant 0 : i32
    %c0_i32_0 = arith.constant 0 : i32
    %c0_i32_1 = arith.constant 0 : i32
    return %c0_i32, %c0_i32_0 : i32, i32
  }
  func.func @transform_3(%arg0: i32) -> (i32, i32) {
    %c0_i32 = arith.constant 0 : i32
    %c0_i32_0 = arith.constant 0 : i32
    %c0_i32_1 = arith.constant 0 : i32
    return %c0_i32, %c0_i32_0 : i32, i32
  }
  func.func @transform_4(%arg0: i32) -> (i32, i32) {
    %c0_i32 = arith.constant 0 : i32
    %c0_i32_0 = arith.constant 0 : i32
    %c0_i32_1 = arith.constant 0 : i32
    return %c0_i32, %c0_i32_0 : i32, i32
  }
  func.func @transform_5(%arg0: i32) -> (i32, i32, i32) {
    %c0_i32 = arith.constant 0 : i32
    %c0_i32_0 = arith.constant 0 : i32
    %c0_i32_1 = arith.constant 0 : i32
    %c0_i32_2 = arith.constant 0 : i32
    return %c0_i32, %c0_i32_0, %c0_i32_1 : i32, i32, i32
  }
  func.func @transform_6(%arg0: i32) -> (i32, i32) {
    %c0_i32 = arith.constant 0 : i32
    %c0_i32_0 = arith.constant 0 : i32
    %c0_i32_1 = arith.constant 0 : i32
    return %c0_i32, %c0_i32_0 : i32, i32
  }
  func.func @transform_7(%arg0: i32) -> (i32, i32) {
    %c0_i32 = arith.constant 0 : i32
    %c0_i32_0 = arith.constant 0 : i32
    %c0_i32_1 = arith.constant 0 : i32
    return %c0_i32, %c0_i32_0 : i32, i32
  }
  func.func @transform_8(%arg0: i32) -> (i32, i32) {
    %c0_i32 = arith.constant 0 : i32
    %c0_i32_0 = arith.constant 0 : i32
    %c0_i32_1 = arith.constant 0 : i32
    return %c0_i32, %c0_i32_0 : i32, i32
  }
  func.func @transform_9(%arg0: i32) -> (i32, i32) {
    %c0_i32 = arith.constant 0 : i32
    %c0_i32_0 = arith.constant 0 : i32
    %c0_i32_1 = arith.constant 0 : i32
    return %c0_i32, %c0_i32_0 : i32, i32
  }
  func.func @transform_10(%arg0: i32) -> (i32, i32) {
    %c0_i32 = arith.constant 0 : i32
    %c0_i32_0 = arith.constant 0 : i32
    %c0_i32_1 = arith.constant 0 : i32
    return %c0_i32, %c0_i32_0 : i32, i32
  }
  func.func @transform_11(%arg0: i32) -> (i32, i32) {
    %c0_i32 = arith.constant 0 : i32
    %c0_i32_0 = arith.constant 0 : i32
    %c0_i32_1 = arith.constant 0 : i32
    return %c0_i32, %c0_i32_0 : i32, i32
  }
}

</mosaic_0001>

<bundles_post_ra>
// kernel: net_forward.1
= control target key start
LH: loop header
LB: loop body
LE: loop exit
PB: predicated region body
PF: predicated region fallthrough
CT: control target
= control target key end

     0   :  { %s15097_s29 = smov 127   ;;  %s15098_s30 = smov 126   ;;  %v102_v9 = vlaneseq  ;;  %vm1795_vm1 = vcmask 588800   ;;  %s22548_s0 = inlined_call_operand.vmem [shape: f32[8,2048], index: 0, kind: input, shape index: {}]   ;;  %s22549_s1 = inlined_call_operand.vmem [shape: f32[8,200], index: 1, kind: input, shape index: {}]   ;;  %s22550_s2 = inlined_call_operand.vmem [shape: f32[8,1], index: 2, kind: input, shape index: {}]   ;;  %s22551_s3 = inlined_call_operand.vmem [shape: f32[16,200], index: 3, kind: input, shape index: {}]   ;;  %s22552_s4 = inlined_call_operand.vmem [shape: f32[16,1], index: 4, kind: input, shape index: {}]   ;;  %s22553_s5 = inlined_call_operand.vmem [shape: f32[25,120,16], index: 5, kind: input, shape index: {}]   ;;  %s22554_s6 = inlined_call_operand.vmem [shape: f32[120,1], index: 6, kind: input, shape index: {}]   ;;  %s22555_s8 = inlined_call_operand.vmem [shape: f32[84,1], index: 8, kind: input, shape index: {}]   ;;  %s22556_s10 = inlined_call_operand.vmem [shape: f32[2,1], index: 10, kind: input, shape index: {}]   ;;  %s22557_s7 = inlined_call_operand.vmem [shape: f32[84,120], index: 7, kind: input, shape index: {}]   ;;  %s22558_s9 = inlined_call_operand.vmem [shape: f32[2,84], index: 9, kind: input, shape index: {}]   ;;  %s22559_s11 = inlined_call_operand.vmem [shape: f32[2,2], index: 11, kind: output, shape index: {}]  }
   0x1   :  { %v42_v0 = vld [vmem:[%s22548_s0 + $0x20] sm:$0xff]  ;;  %v15196_v1 = vld [vmem:[%s22548_s0 + $0x28] sm:$0xff]  ;;  %v15209_v4 = vld [vmem:[%s22548_s0 + $0x10] sm:$0xff]  ;;  %s15099_s12 = smov 125   ;;  %s15100_s13 = smov 124  }
   0x2   :  { %v15201_v2 = vld [vmem:[%s22548_s0 + $0x8] sm:$0xff]  ;;  %v15204_v3 = vpack.i.bf16 %v15196_v1, %v42_v0  ;;  %v15214_v5 = vld [vmem:[%s22548_s0] sm:$0xff]  ;;  %v15219_v6 = vld [vmem:[%s22548_s0 + $0x18] sm:$0xff]  ;;  %s22652_s14 = smov 96   ;;  %s22636_s15 = smov 95   ;;  %v15350_v12 = vand.u32 127, %v102_v9 }
   0x3   :  { %v15223_v7 = vpack.i.bf16 %v15209_v4, %v15201_v2  ;;  %v15231_v8 = vpack.i.bf16 %v15219_v6, %v15214_v5  ;;  %s22637_s16 = smov 94   ;;  %s22635_s17 = smov 93   ;;  %v15343_v10 = vld [vmem:[%s22548_s0 + $0x30] sm:$0xff]  ;;  %v15348_v11 = vld [vmem:[%s22548_s0 + $0x38] sm:$0xff]  ;;  %v15365_v15 = vld [vmem:[%s22548_s0 + $0x40] sm:$0xff] }
   0x4   :  { %13844 = vrot.lane.b32.xlu1 %v15204_v3, %s15097_s29  ;;  %s22594_s18 = smov 92   ;;  %s22592_s19 = smov 64   ;;  %v15356_v13 = vpack.i.bf16 %v15348_v11, %v15343_v10  ;;  %v15370_v16 = vld [vmem:[%s22548_s0 + $0x48] sm:$0xff]  ;;  %vm104_vm0 = vcmp.lt.s32.totalorder %v15350_v12, 127  ;;  %vm169_vm2 = vcmp.lt.s32.totalorder %v15350_v12, 126  ;;  %vm234_vm3 = vcmp.lt.s32.totalorder %v15350_v12, 125 }
   0x5   :  { %13834 = vrot.lane.b32.xlu0 %v15223_v7, %s15097_s29  ;;  %s22590_s20 = smov 63   ;;  %s22588_s21 = smov 62   ;;  %v15379_v20 = vpack.i.bf16 %v15370_v16, %v15365_v15  ;;  %v1388_v24 = vld [vmem:[%s22549_s1 + $0x8] sm:$0xff]  ;;  %vm299_vm4 = vcmp.lt.s32.totalorder %v15350_v12, 124  ;;  %vm364_vm5 = vcmp.lt.s32.totalorder %v15350_v12, 96  ;;  %vm22680_vm6 = vcmp.lt.s32.totalorder %v15350_v12, 95 }
   0x6   :  { %s22566_s22 = smov 61   ;;  %s22562_s23 = smov 60   ;;  %10471 = vmatprep.mubr.msk.f32.mxu0 %vm1795_vm1, %v1388_v24  ;;  %10472 = vmatprep.mubr.msk.f32.mxu1 %vm1795_vm1, %v1388_v24  ;;  %vm494_vm7 = vcmp.lt.s32.totalorder %v15350_v12, 94  ;;  %vm22679_vm8 = vcmp.lt.s32.totalorder %v15350_v12, 93  ;;  %vm22662_vm9 = vcmp.lt.s32.totalorder %v15350_v12, 92  ;;  %vm22661_vm10 = vcmp.lt.s32.totalorder %v15350_v12, 64 }
   0x7   :  { %s22560_s24 = smov 32   ;;  %s22564_s25 = smov 31   ;;  %vm22660_vm11 = vcmp.lt.s32.totalorder %v15350_v12, 63  ;;  %vm22613_vm12 = vcmp.lt.s32.totalorder %v15350_v12, 62  ;;  %vm22609_vm13 = vcmp.lt.s32.totalorder %v15350_v12, 61  ;;  %vm22620_vm14 = vcmp.lt.s32.totalorder %v15350_v12, 60 }
   0x8   :  { %13849 = vrot.lane.b32.xlu1 %v15223_v7, %s15098_s30  ;;  %s15113_s26 = smov 30   ;;  %s15114_s27 = smov 29   ;;  %vm22619_vm15 = vcmp.lt.s32.totalorder %v15350_v12, 32 }
   0x9   :  { %13839 = vrot.lane.b32.xlu0 %v15231_v8, %s15097_s29  ;;  %s15115_s28 = smov 28  }
   0xc   :  { %13859 = vrot.lane.b32.xlu1 %v15231_v8, %s15098_s30 }
   0xd   :  { %13854 = vrot.lane.b32.xlu0 %v15223_v7, %s15099_s12 }
  0x10   :  { %13869 = vrot.lane.b32.xlu1 %v15231_v8, %s15099_s12 }
  0x11   :  { %13864 = vrot.lane.b32.xlu0 %v15204_v3, %s15098_s30 }
  0x14   :  { %269 = vrot.lane.b32.xlu1 %v15201_v2, %s15100_s13 }
  0x15   :  { %13874 = vrot.lane.b32.xlu0 %v15204_v3, %s15099_s12 }
  0x18   :  { %13879 = vrot.lane.b32.xlu1 %v15223_v7, %s22652_s14 }
  0x19   :  { %271 = vrot.lane.b32.xlu0 %v15209_v4, %s15100_s13 }
  0x1c   :  { %273 = vrot.lane.b32.xlu1 %v15219_v6, %s15100_s13 }
  0x1d   :  { %267 = vrot.lane.b32.xlu0 %v15214_v5, %s15100_s13 }
  0x20   :  { %13884 = vrot.lane.b32.xlu1 %v15231_v8, %s22652_s14 }
  0x21   :  { %275 = vrot.lane.b32.xlu0 %v42_v0, %s15100_s13 }
  0x24   :  { %13894 = vrot.lane.b32.xlu1 %v15223_v7, %s22636_s15 }
  0x25   :  { %13889 = vrot.lane.b32.xlu0 %v15204_v3, %s22652_s14 }
  0x28   :  { %13904 = vrot.lane.b32.xlu1 %v15231_v8, %s22636_s15 }
  0x29   :  { %13899 = vrot.lane.b32.xlu0 %v15223_v7, %s22637_s16 }
  0x2c   :  { %13914 = vrot.lane.b32.xlu1 %v15231_v8, %s22637_s16 }
  0x2d   :  { %13909 = vrot.lane.b32.xlu0 %v15204_v3, %s22636_s15 }
  0x30   :  { %13924 = vrot.lane.b32.xlu1 %v15223_v7, %s22635_s17 }
  0x31   :  { %13919 = vrot.lane.b32.xlu0 %v15204_v3, %s22637_s16 }
  0x34   :  { %13934 = vrot.lane.b32.xlu1 %v15231_v8, %s22635_s17 }
  0x35   :  { %13929 = vrot.lane.b32.xlu0 %v15223_v7, %s22594_s18 }
  0x38   :  { %13944 = vrot.lane.b32.xlu1 %v15231_v8, %s22594_s18 }
  0x39   :  { %13939 = vrot.lane.b32.xlu0 %v15204_v3, %s22635_s17 }
  0x3c   :  { %13954 = vrot.lane.b32.xlu1 %v15223_v7, %s22592_s19 }
  0x3d   :  { %13949 = vrot.lane.b32.xlu0 %v15204_v3, %s22594_s18 }
  0x40   :  { %13964 = vrot.lane.b32.xlu1 %v15231_v8, %s22592_s19 }
  0x41   :  { %13959 = vrot.lane.b32.xlu0 %v15223_v7, %s22590_s20 }
  0x44   :  { %13974 = vrot.lane.b32.xlu1 %v15231_v8, %s22590_s20 }
  0x45   :  { %13969 = vrot.lane.b32.xlu0 %v15204_v3, %s22592_s19 }
  0x48   :  { %13984 = vrot.lane.b32.xlu1 %v15223_v7, %s22588_s21 }
  0x49   :  { %13979 = vrot.lane.b32.xlu0 %v15204_v3, %s22590_s20 }
  0x4c   :  { %13994 = vrot.lane.b32.xlu1 %v15231_v8, %s22588_s21 }
  0x4d   :  { %13989 = vrot.lane.b32.xlu0 %v15223_v7, %s22566_s22 }
  0x50   :  { %14004 = vrot.lane.b32.xlu1 %v15231_v8, %s22566_s22 }
  0x51   :  { %13999 = vrot.lane.b32.xlu0 %v15204_v3, %s22588_s21 }
  0x54   :  { %14014 = vrot.lane.b32.xlu1 %v15223_v7, %s22562_s23 }
  0x55   :  { %14009 = vrot.lane.b32.xlu0 %v15204_v3, %s22566_s22  ;;  %s22717_s22 = smov 61  }
  0x58   :  { %14024 = vrot.lane.b32.xlu1 %v15231_v8, %s22562_s23 }
  0x59   :  { %14019 = vrot.lane.b32.xlu0 %v15223_v7, %s22560_s24 }
  0x5c   :  { %14034 = vrot.lane.b32.xlu1 %v15231_v8, %s22560_s24 }
  0x5d   :  { %14029 = vrot.lane.b32.xlu0 %v15204_v3, %s22562_s23  ;;  %s22720_s23 = smov 32  }
  0x60   :  { %14044 = vrot.lane.b32.xlu1 %v15223_v7, %s22564_s25 }
  0x61   :  { %14039 = vrot.lane.b32.xlu0 %v15204_v3, %s22560_s24  ;;  %s22722_s24 = smov 31  }
  0x64   :  { %14054 = vrot.lane.b32.xlu1 %v15231_v8, %s22564_s25 }
  0x65   :  { %14049 = vrot.lane.b32.xlu0 %v15223_v7, %s15113_s26 }
  0x68   :  { %14064 = vrot.lane.b32.xlu1 %v15231_v8, %s15113_s26 }
  0x69   :  { %14059 = vrot.lane.b32.xlu0 %v15204_v3, %s22564_s25  ;;  %s22718_s25 = smov 60  }
  0x6c   :  { %14074 = vrot.lane.b32.xlu1 %v15223_v7, %s15114_s27 }
  0x6d   :  { %14069 = vrot.lane.b32.xlu0 %v15204_v3, %s15113_s26 }
  0x70   :  { %14084 = vrot.lane.b32.xlu1 %v15231_v8, %s15114_s27 }
  0x71   :  { %14079 = vrot.lane.b32.xlu0 %v15223_v7, %s15115_s28 }
  0x74   :  { %14094 = vrot.lane.b32.xlu1 %v15231_v8, %s15115_s28 }
  0x75   :  { %14089 = vrot.lane.b32.xlu0 %v15204_v3, %s15114_s27 }
  0x76   :  { %v15360_v14 = vpop.permute.xlu1 %13844 }
  0x77   :  { %v13835_v17 = vpop.permute.xlu0 %13834  ;;  %v22587_v21 = vunpack.i.l.bf16 %v15360_v14 }
  0x78   :  { %v13837_v18 = vunpack.i.h.bf16 %v13835_v17  ;;  %v13836_v19 = vunpack.i.l.bf16 %v13835_v17  ;;  %14104 = vrot.lane.b32.xlu1 %v15356_v13, %s15097_s29 }
  0x79   :  { %14099 = vrot.lane.b32.xlu0 %v15204_v3, %s15115_s28 }
  0x7a   :  { %v13850_v22 = vpop.permute.xlu1 %13849  ;;  %v118_v23 = vsel %vm104_vm0, %v13836_v19, %v13837_v18 }
  0x7b   :  { %v15387_v25 = vpop.permute.xlu0 %13839  ;;  %v15390_v26 = vpack.c.bf16 %v118_v23, %v15201_v2  ;;  %v13852_v27 = vunpack.i.h.bf16 %v13850_v22  ;;  %v13851_v28 = vunpack.i.l.bf16 %v13850_v22 }
  0x7c   :  { %22705 = vst [vmem:[#allocation3_spill] sm:$0xff] %v15387_v25  ;;  %v13842_v29 = vunpack.i.h.bf16 %v15387_v25  ;;  %v22575_v30 = vunpack.i.l.bf16 %v15387_v25  ;;  %277 = vrot.lane.b32.xlu1 %v15196_v1, %s15100_s13 }
  0x7d   :  { %13016 = vmatprep.subr.bf16.mxu0 %v15390_v26  ;;  %14109 = vrot.lane.b32.xlu0 %v15379_v20, %s15097_s29  ;;  %v183_v41 = vsel %vm169_vm2, %v13851_v28, %v13852_v27 }
  0x7e   :  { %v15402_v31 = vpop.permute.xlu1 %13859  ;;  %v119_v32 = vsel %vm104_vm0, %v22575_v30, %v13836_v19  ;;  %v116_v33 = vsel %vm104_vm0, %v13842_v29, %v22587_v21  ;;  %v117_v34 = vsel %vm104_vm0, %v13837_v18, %v13842_v29 }
  0x7f   :  { %22706 = vst [vmem:[#allocation4_spill] sm:$0xff] %v15402_v31  ;;  %v13855_v35 = vpop.permute.xlu0 %13854  ;;  %v15415_v36 = vpack.c.bf16 %v119_v32, %v15214_v5  ;;  %v15418_v37 = vpack.c.bf16 %v116_v33, %v15219_v6  ;;  %v15424_v40 = vpack.c.bf16 %v117_v34, %v15209_v4  ;;  %v22573_v42 = vunpack.i.l.bf16 %v15402_v31 }
  0x80   :  { %v13857_v38 = vunpack.i.h.bf16 %v13855_v35  ;;  %v13856_v39 = vunpack.i.l.bf16 %v13855_v35  ;;  %14119 = vrot.lane.b32.xlu1 %v15356_v13, %s15099_s12  ;;  %v13862_v48 = vunpack.i.h.bf16 %v15402_v31 }
  0x81   :  { %22707 = vst [vmem:[#allocation5_spill] sm:$0xff] %v15415_v36  ;;  %14114 = vrot.lane.b32.xlu0 %v15356_v13, %s15098_s30  ;;  %13018 = vmatpush1.bf16.msra.mxu0 %v15415_v36  ;;  %v184_v50 = vsel %vm169_vm2, %v22573_v42, %v13851_v28 }
  0x82   :  { %13064 = vmatprep.subr.bf16.mxu1 %v15418_v37  ;;  %v15433_v43 = vpop.permute.xlu1 %13869  ;;  %v248_v44 = vsel %vm234_vm3, %v13856_v39, %v13857_v38  ;;  %v182_v59 = vsel %vm169_vm2, %v13852_v27, %v13862_v48 }
  0x83   :  { %22708 = vst [vmem:[#allocation6_spill] sm:$0xff] %v15433_v43  ;;  %13066 = vmatpush1.bf16.msra.mxu1 %v15424_v40  ;;  %v22574_v45 = vunpack.i.l.bf16 %v15433_v43  ;;  %v15439_v46 = vpop.permute.xlu0 %13864  ;;  %v15441_v47 = vpack.c.bf16 %v248_v44, %v183_v41  ;;  %v13872_v49 = vunpack.i.h.bf16 %v15433_v43 }
  0x84   :  { %14129 = vrot.lane.b32.xlu1 %v15379_v20, %s15099_s12  ;;  %v22585_v52 = vunpack.i.h.bf16 %v15439_v46  ;;  %v13866_v53 = vunpack.i.l.bf16 %v15439_v46 }
  0x85   :  { %14124 = vrot.lane.b32.xlu0 %v15379_v20, %s15098_s30  ;;  %13020 = vmatprep.subr.bf16.mxu0 %v15441_v47  ;;  %v249_v51 = vsel %vm234_vm3, %v22574_v45, %v13856_v39  ;;  %v247_v60 = vsel %vm234_vm3, %v13857_v38, %v13872_v49 }
  0x86   :  { %v270_v54 = vpop.permute.xlu1 %269  ;;  %v15460_v55 = vpack.c.bf16 %v249_v51, %v184_v50  ;;  %v181_v62 = vsel %vm169_vm2, %v13862_v48, %v13866_v53  ;;  %v180_v0 = vsel %vm169_vm2, %v13866_v53, %v22585_v52  ;;  %v15495_v7 = vpack.c.bf16 %v247_v60, %v182_v59 }
  0x87   :  { %v15462_v56 = vpop.permute.xlu0 %13874 }
  0x88   :  { %22709 = vst [vmem:[#allocation7_spill] sm:$0xff] %v15460_v55  ;;  %v22583_v57 = vunpack.i.h.bf16 %v15462_v56  ;;  %v13876_v58 = vunpack.i.l.bf16 %v15462_v56  ;;  %14134 = vrot.lane.b32.xlu1 %v15356_v13, %s22652_s14  ;;  %13022 = vmatpush1.bf16.msra.mxu0 %v15460_v55 }
  0x89   :  { %279 = vrot.lane.b32.xlu0 %v15343_v10, %s15100_s13 }
  0x8a   :  { %v13880_v61 = vpop.permute.xlu1 %13879  ;;  %v246_v63 = vsel %vm234_vm3, %v13872_v49, %v13876_v58  ;;  %v245_v1 = vsel %vm234_vm3, %v13876_v58, %v22583_v57 }
  0x8b   :  { %v13882_v2 = vunpack.i.h.bf16 %v13880_v61  ;;  %v13881_v3 = vunpack.i.l.bf16 %v13880_v61  ;;  %v272_v4 = vpop.permute.xlu0 %271  ;;  %v15489_v5 = vpack.c.bf16 %v246_v63, %v181_v62  ;;  %v15491_v6 = vpack.c.bf16 %v245_v1, %v180_v0 }
  0x8c   :  { %283 = vrot.lane.b32.xlu1 %v15365_v15, %s15100_s13  ;;  %v15499_v8 = vsel %vm299_vm4, %v270_v54, %v272_v4 }
  0x8d   :  { %281 = vrot.lane.b32.xlu0 %v15348_v11, %s15100_s13  ;;  %13068 = vmatprep.subr.bf16.mxu1 %v15489_v5  ;;  %v378_v9 = vsel %vm364_vm5, %v13881_v3, %v13882_v2 }
  0x8e   :  { %13070 = vmatpush1.bf16.msra.mxu1 %v15495_v7  ;;  %v274_v10 = vpop.permute.xlu1 %273  ;;  %v13023_v17 = vpack.c.bf16 %v378_v9, %v15499_v8 }
  0x8f   :  { %v15508_v15 = vpop.permute.xlu0 %267  ;;  %v15561_v44 = vsel %vm299_vm4, %v272_v4, %v274_v10 }
  0x90   :  { %22710 = vst [vmem:[#allocation8_spill] sm:$0xff] %v15508_v15  ;;  %14144 = vrot.lane.b32.xlu1 %v15356_v13, %s22636_s15  ;;  %13024 = vmatprep.subr.bf16.mxu0 %v13023_v17  ;;  %v15524_v22 = vsel %vm299_vm4, %v15508_v15, %v270_v54 }
  0x91   :  { %14139 = vrot.lane.b32.xlu0 %v15379_v20, %s22652_s14  ;;  %22712 = vst [vmem:[#allocation10_spill] sm:$0xff] %v15524_v22 }
  0x92   :  { %v15514_v11 = vpop.permute.xlu1 %13884 }
  0x93   :  { %22711 = vst [vmem:[#allocation9_spill] sm:$0xff] %v15514_v11  ;;  %v22571_v18 = vunpack.i.l.bf16 %v15514_v11  ;;  %v15517_v19 = vpop.permute.xlu0 %275  ;;  %v13887_v23 = vunpack.i.h.bf16 %v15514_v11 }
  0x94   :  { %14154 = vrot.lane.b32.xlu1 %v15379_v20, %s22636_s15  ;;  %v15551_v38 = vsel %vm299_vm4, %v274_v10, %v15517_v19 }
  0x95   :  { %14149 = vrot.lane.b32.xlu0 %v15356_v13, %s22637_s16  ;;  %v379_v24 = vsel %vm364_vm5, %v22571_v18, %v13881_v3  ;;  %v377_v35 = vsel %vm364_vm5, %v13882_v2, %v13887_v23 }
  0x96   :  { %v15533_v27 = vpop.permute.xlu1 %13894  ;;  %v13025_v28 = vpack.c.bf16 %v379_v24, %v15524_v22  ;;  %v13073_v53 = vpack.c.bf16 %v377_v35, %v15561_v44 }
  0x97   :  { %v15536_v29 = vpop.permute.xlu0 %13889  ;;  %v13897_v32 = vunpack.i.h.bf16 %v15533_v27  ;;  %v13896_v33 = vunpack.i.l.bf16 %v15533_v27 }
  0x98   :  { %v22582_v34 = vunpack.i.l.bf16 %v15536_v29  ;;  %14164 = vrot.lane.b32.xlu1 %v15356_v13, %s22635_s17  ;;  %13026 = vmatpush1.bf16.msra.mxu0 %v13025_v28 }
  0x99   :  { %14159 = vrot.lane.b32.xlu0 %v15379_v20, %s22637_s16  ;;  %v443_v54 = vsel %vm22680_vm6, %v13896_v33, %v13897_v32 }
  0x9a   :  { %v15553_v39 = vpop.permute.xlu1 %13904  ;;  %v376_v41 = vsel %vm364_vm5, %v13887_v23, %v22582_v34 }
  0x9b   :  { %22713 = vst [vmem:[#allocation11_spill] sm:$0xff] %v15553_v39  ;;  %v13900_v48 = vpop.permute.xlu0 %13899  ;;  %v13071_v49 = vpack.c.bf16 %v376_v41, %v15551_v38  ;;  %v22569_v58 = vunpack.i.l.bf16 %v15553_v39  ;;  %v13907_v17 = vunpack.i.h.bf16 %v15553_v39 }
  0x9c   :  { %v13902_v50 = vunpack.i.h.bf16 %v13900_v48  ;;  %v13901_v51 = vunpack.i.l.bf16 %v13900_v48  ;;  %14174 = vrot.lane.b32.xlu1 %v15379_v20, %s22635_s17 }
  0x9d   :  { %14169 = vrot.lane.b32.xlu0 %v15356_v13, %s22594_s18  ;;  %13072 = vmatprep.subr.bf16.mxu1 %v13071_v49  ;;  %v444_v1 = vsel %vm22680_vm6, %v22569_v58, %v13896_v33 }
  0x9e   :  { %13074 = vmatpush1.bf16.msra.mxu1 %v13073_v53  ;;  %v15573_v59 = vpop.permute.xlu1 %13914  ;;  %v508_v60 = vsel %vm494_vm7, %v13901_v51, %v13902_v50 }
  0x9f   :  { %22714 = vst [vmem:[#allocation12_spill] sm:$0xff] %v15573_v59  ;;  %v22568_v61 = vunpack.i.l.bf16 %v15573_v59  ;;  %v15578_v62 = vpop.permute.xlu0 %13909  ;;  %v13027_v63 = vpack.c.bf16 %v508_v60, %v443_v54  ;;  %v13917_v0 = vunpack.i.h.bf16 %v15573_v59  ;;  %v442_v60 = vsel %vm22680_vm6, %v13897_v32, %v13907_v17 }
  0xa0   :  { %14184 = vrot.lane.b32.xlu1 %v15356_v13, %s22592_s19  ;;  %v22580_v3 = vunpack.i.h.bf16 %v15578_v62  ;;  %v13911_v4 = vunpack.i.l.bf16 %v15578_v62 }
  0xa1   :  { %14179 = vrot.lane.b32.xlu0 %v15379_v20, %s22594_s18  ;;  %13028 = vmatprep.subr.bf16.mxu0 %v13027_v63  ;;  %v509_v2 = vsel %vm494_vm7, %v22568_v61, %v13901_v51  ;;  %v507_v35 = vsel %vm494_vm7, %v13902_v50, %v13917_v0  ;;  %s22738_s18 = smov 92  }
  0xa2   :  { %v15595_v9 = vpop.permute.xlu1 %13924  ;;  %v13029_v10 = vpack.c.bf16 %v509_v2, %v444_v1  ;;  %v15616_v41 = vsel %vm22680_vm6, %v13911_v4, %v22580_v3  ;;  %v441_v50 = vsel %vm22680_vm6, %v13907_v17, %v13911_v4 }
  0xa3   :  { %v15598_v23 = vpop.permute.xlu0 %13919  ;;  %v13927_v24 = vunpack.i.h.bf16 %v15595_v9  ;;  %v13926_v27 = vunpack.i.l.bf16 %v15595_v9 }
  0xa4   :  { %v22578_v28 = vunpack.i.h.bf16 %v15598_v23  ;;  %v13921_v33 = vunpack.i.l.bf16 %v15598_v23  ;;  %14194 = vrot.lane.b32.xlu1 %v15379_v20, %s22592_s19  ;;  %13030 = vmatpush1.bf16.msra.mxu0 %v13029_v10  ;;  %v13077_v10 = vpack.c.bf16 %v507_v35, %v442_v60  ;;  %s22741_s19 = smov 64  }
  0xa5   :  { %14189 = vrot.lane.b32.xlu0 %v15356_v13, %s22590_s20  ;;  %v573_v4 = vsel %vm22679_vm8, %v13926_v27, %v13927_v24 }
  0xa6   :  { %v15622_v48 = vsel %vm494_vm7, %v13921_v33, %v22578_v28  ;;  %v15624_v49 = vpop.permute.xlu1 %13934  ;;  %v506_v51 = vsel %vm494_vm7, %v13917_v0, %v13921_v33 }
  0xa7   :  { %22715 = vst [vmem:[#allocation13_spill] sm:$0xff] %v15624_v49  ;;  %v13930_v53 = vpop.permute.xlu0 %13929  ;;  %v13075_v54 = vpack.c.bf16 %v506_v51, %v441_v50  ;;  %v22570_v0 = vunpack.i.l.bf16 %v15624_v49  ;;  %v13937_v61 = vunpack.i.h.bf16 %v15624_v49 }
  0xa8   :  { %v13932_v1 = vunpack.i.h.bf16 %v13930_v53  ;;  %v13931_v2 = vunpack.i.l.bf16 %v13930_v53  ;;  %14204 = vrot.lane.b32.xlu1 %v15356_v13, %s22588_s21 }
  0xa9   :  { %14199 = vrot.lane.b32.xlu0 %v15379_v20, %s22590_s20  ;;  %13076 = vmatprep.subr.bf16.mxu1 %v13075_v54  ;;  %v574_v53 = vsel %vm22679_vm8, %v22570_v0, %v13926_v27  ;;  %v572_v30 = vsel %vm22679_vm8, %v13927_v24, %v13937_v61  ;;  %s22742_s20 = smov 63  }
  0xaa   :  { %13078 = vmatpush1.bf16.msra.mxu1 %v13077_v10  ;;  %v15643_v32 = vpop.permute.xlu1 %13944  ;;  %v638_v17 = vsel %vm22662_vm9, %v13931_v2, %v13932_v1 }
  0xab   :  { %22716 = vst [vmem:[#allocation14_spill] sm:$0xff] %v15643_v32  ;;  %v22572_v33 = vunpack.i.l.bf16 %v15643_v32  ;;  %v15648_v35 = vpop.permute.xlu0 %13939  ;;  %v13031_v50 = vpack.c.bf16 %v638_v17, %v573_v4  ;;  %v13947_v51 = vunpack.i.h.bf16 %v15643_v32 }
  0xac   :  { %14214 = vrot.lane.b32.xlu1 %v15379_v20, %s22588_s21  ;;  %v22576_v60 = vunpack.i.h.bf16 %v15648_v35  ;;  %v13941_v10 = vunpack.i.l.bf16 %v15648_v35  ;;  %s22781_s21 = smov 93  }
  0xad   :  { %14209 = vrot.lane.b32.xlu0 %v15356_v13, %s22717_s22  ;;  %13032 = vmatprep.subr.bf16.mxu0 %v13031_v50  ;;  %v639_v54 = vsel %vm22662_vm9, %v22572_v33, %v13931_v2  ;;  %v637_v2 = vsel %vm22662_vm9, %v13932_v1, %v13947_v51 }
  0xae   :  { %v15665_v4 = vpop.permute.xlu1 %13954  ;;  %v13033_v17 = vpack.c.bf16 %v639_v54, %v574_v53  ;;  %v15686_v53 = vsel %vm22679_vm8, %v13941_v10, %v22576_v60  ;;  %v571_v1 = vsel %vm22679_vm8, %v13937_v61, %v13941_v10  ;;  %v13081_v28 = vpack.c.bf16 %v637_v2, %v572_v30 }
  0xaf   :  { %v15668_v50 = vpop.permute.xlu0 %13949  ;;  %v13957_v58 = vunpack.i.h.bf16 %v15665_v4  ;;  %v13956_v27 = vunpack.i.l.bf16 %v15665_v4 }
  0xb0   :  { %v22577_v0 = vunpack.i.h.bf16 %v15668_v50  ;;  %v13951_v18 = vunpack.i.l.bf16 %v15668_v50  ;;  %14224 = vrot.lane.b32.xlu1 %v15356_v13, %s22718_s25  ;;  %13034 = vmatpush1.bf16.msra.mxu0 %v13033_v17 }
  0xb1   :  { %14219 = vrot.lane.b32.xlu0 %v15379_v20, %s22717_s22 }
  0xb2   :  { %v15692_v54 = vsel %vm22662_vm9, %v13951_v18, %v22577_v0  ;;  %v15694_v17 = vpop.permute.xlu1 %13964  ;;  %v636_v33 = vsel %vm22662_vm9, %v13947_v51, %v13951_v18  ;;  %v703_v18 = vsel %vm22661_vm10, %v13956_v27, %v13957_v58 }
  0xb3   :  { %22719 = vst [vmem:[#allocation15_spill] sm:$0xff] %v15694_v17  ;;  %v13960_v42 = vpop.permute.xlu0 %13959  ;;  %v13079_v45 = vpack.c.bf16 %v636_v33, %v571_v1  ;;  %v22579_v33 = vunpack.i.l.bf16 %v15694_v17 }
  0xb4   :  { %v13962_v0 = vunpack.i.h.bf16 %v13960_v42  ;;  %v13961_v63 = vunpack.i.l.bf16 %v13960_v42  ;;  %14234 = vrot.lane.b32.xlu1 %v15379_v20, %s22718_s25 }
  0xb5   :  { %14229 = vrot.lane.b32.xlu0 %v15356_v13, %s22720_s23  ;;  %13080 = vmatprep.subr.bf16.mxu1 %v13079_v45  ;;  %v704_v45 = vsel %vm22661_vm10, %v22579_v33, %v13956_v27 }
  0xb6   :  { %13082 = vmatpush1.bf16.msra.mxu1 %v13081_v28  ;;  %v15715_v61 = vpop.permute.xlu1 %13974  ;;  %v768_v42 = vsel %vm22660_vm11, %v13961_v63, %v13962_v0 }
  0xb7   :  { %22721 = vst [vmem:[#allocation16_spill] sm:$0xff] %v15715_v61  ;;  %v22581_v9 = vunpack.i.l.bf16 %v15715_v61  ;;  %v15720_v30 = vpop.permute.xlu0 %13969  ;;  %v13035_v24 = vpack.c.bf16 %v768_v42, %v703_v18  ;;  %v13977_v51 = vunpack.i.h.bf16 %v15715_v61  ;;  %v13967_v42 = vunpack.i.h.bf16 %v15694_v17 }
  0xb8   :  { %14244 = vrot.lane.b32.xlu1 %v15356_v13, %s22722_s24  ;;  %v22584_v10 = vunpack.i.h.bf16 %v15720_v30  ;;  %v13971_v2 = vunpack.i.l.bf16 %v15720_v30 }
  0xb9   :  { %14239 = vrot.lane.b32.xlu0 %v15379_v20, %s22720_s23  ;;  %13036 = vmatprep.subr.bf16.mxu0 %v13035_v24  ;;  %v769_v28 = vsel %vm22660_vm11, %v22581_v9, %v13961_v63  ;;  %v767_v63 = vsel %vm22660_vm11, %v13962_v0, %v13977_v51 }
  0xba   :  { %v15737_v1 = vpop.permute.xlu1 %13984  ;;  %v13037_v18 = vpack.c.bf16 %v769_v28, %v704_v45  ;;  %v15758_v45 = vsel %vm22661_vm10, %v13971_v2, %v22584_v10  ;;  %v701_v0 = vsel %vm22661_vm10, %v13967_v42, %v13971_v2  ;;  %v702_v10 = vsel %vm22661_vm10, %v13957_v58, %v13967_v42  ;;  %v15790_v58 = vld [vmem:[%s22548_s0 + $0x50] sm:$0xff] }
  0xbb   :  { %v15740_v24 = vpop.permute.xlu0 %13979  ;;  %v13986_v27 = vunpack.i.l.bf16 %v15737_v1  ;;  %v13085_v60 = vpack.c.bf16 %v767_v63, %v702_v10  ;;  %v22724_v2 = vunpack.i.h.bf16 %v15737_v1  ;;  %v22729_v17 = vunpack.i.h.bf16 %v15737_v1 }
  0xbc   :  { %v22586_v33 = vunpack.i.h.bf16 %v15740_v24  ;;  %v13981_v3 = vunpack.i.l.bf16 %v15740_v24  ;;  %14254 = vrot.lane.b32.xlu1 %v15379_v20, %s22722_s24  ;;  %13038 = vmatpush1.bf16.msra.mxu0 %v13037_v18 }
  0xbd   :  { %14249 = vrot.lane.b32.xlu0 %v15356_v13, %s15113_s26 }
  0xbe   :  { %v15764_v28 = vsel %vm22660_vm11, %v13981_v3, %v22586_v33  ;;  %v15766_v18 = vpop.permute.xlu1 %13994  ;;  %v766_v9 = vsel %vm22660_vm11, %v13977_v51, %v13981_v3  ;;  %v833_v3 = vsel %vm22613_vm12, %v13986_v27, %v22724_v2 }
  0xbf   :  { %22723 = vst [vmem:[#allocation17_spill] sm:$0xff] %v15766_v18  ;;  %v13990_v34 = vpop.permute.xlu0 %13989  ;;  %v13083_v57 = vpack.c.bf16 %v766_v9, %v701_v0  ;;  %v22597_v9 = vunpack.i.l.bf16 %v15766_v18 }
  0xc0   :  { %v13992_v33 = vunpack.i.h.bf16 %v13990_v34  ;;  %v13991_v21 = vunpack.i.l.bf16 %v13990_v34  ;;  %14264 = vrot.lane.b32.xlu1 %v15356_v13, %s15114_s27  ;;  %v15795_v34 = vld [vmem:[%s22548_s0 + $0x58] sm:$0xff] }
  0xc1   :  { %14259 = vrot.lane.b32.xlu0 %v15379_v20, %s15113_s26  ;;  %13084 = vmatprep.subr.bf16.mxu1 %v13083_v57  ;;  %v15808_v63 = vpack.i.bf16 %v15795_v34, %v15790_v58 }
  0xc2   :  { %13086 = vmatpush1.bf16.msra.mxu1 %v13085_v60  ;;  %v15797_v4 = vpop.permute.xlu1 %14004  ;;  %v898_v51 = vsel %vm22609_vm13, %v13991_v21, %v13992_v33  ;;  %v834_v60 = vsel %vm22613_vm12, %v22597_v9, %v13986_v27  ;;  %v15831_v27 = vld [vmem:[%s22548_s0 + $0x68] sm:$0xff] }
  0xc3   :  { %22725 = vst [vmem:[#allocation18_spill] sm:$0xff] %v15797_v4  ;;  %v22598_v10 = vunpack.i.l.bf16 %v15797_v4  ;;  %v15802_v42 = vpop.permute.xlu0 %13999  ;;  %v13039_v57 = vpack.c.bf16 %v898_v51, %v833_v3  ;;  %v14007_v0 = vunpack.i.h.bf16 %v15797_v4 }
  0xc4   :  { %14274 = vrot.lane.b32.xlu1 %v15379_v20, %s15114_s27  ;;  %v14001_v51 = vunpack.i.l.bf16 %v15802_v42 }
  0xc5   :  { %14269 = vrot.lane.b32.xlu0 %v15356_v13, %s15115_s28  ;;  %13040 = vmatprep.subr.bf16.mxu0 %v13039_v57  ;;  %v899_v2 = vsel %vm22609_vm13, %v22598_v10, %v13991_v21  ;;  %v15826_v13 = vld [vmem:[%s22548_s0 + $0x60] sm:$0xff]  ;;  %v13997_v57 = vunpack.i.h.bf16 %v15766_v18  ;;  %v897_v55 = vsel %vm22609_vm13, %v13992_v33, %v14007_v0 }
  0xc6   :  { %v14015_v52 = vpop.permute.xlu1 %14014  ;;  %v13041_v22 = vpack.c.bf16 %v899_v2, %v834_v60  ;;  %v15844_v2 = vpack.i.bf16 %v15831_v27, %v15826_v13 }
  0xc7   :  { %v15834_v9 = vpop.permute.xlu0 %14009  ;;  %v14017_v21 = vunpack.i.h.bf16 %v14015_v52  ;;  %v14016_v10 = vunpack.i.l.bf16 %v14015_v52  ;;  %v22726_v52 = vunpack.i.h.bf16 %v15802_v42  ;;  %v831_v33 = vsel %vm22613_vm12, %v13997_v57, %v14001_v51 }
  0xc8   :  { %v14011_v60 = vunpack.i.l.bf16 %v15834_v9  ;;  %14284 = vrot.lane.b32.xlu1 %v15808_v63, %s15097_s29  ;;  %13042 = vmatpush1.bf16.msra.mxu0 %v13041_v22  ;;  %v22727_v22 = vunpack.i.h.bf16 %v15834_v9 }
  0xc9   :  { %14279 = vrot.lane.b32.xlu0 %v15379_v20, %s15115_s28  ;;  %v15854_v3 = vsel %vm22613_vm12, %v14001_v51, %v22726_v52  ;;  %v832_v52 = vsel %vm22613_vm12, %v22729_v17, %v13997_v57  ;;  %v963_v51 = vsel %vm22620_vm14, %v14016_v10, %v14017_v21  ;;  %vm1144_vm12 = vcmp.lt.s32.totalorder %v15350_v12, 30 }
  0xca   :  { %v15860_v20 = vsel %vm22609_vm13, %v14011_v60, %v22727_v22  ;;  %v15862_v36 = vpop.permute.xlu1 %14024  ;;  %v896_v4 = vsel %vm22609_vm13, %v14007_v0, %v14011_v60  ;;  %v13089_v59 = vpack.c.bf16 %v897_v55, %v832_v52  ;;  %vm1079_vm13 = vcmp.lt.s32.totalorder %v15350_v12, 31 }
  0xcb   :  { %22728 = vst [vmem:[#allocation19_spill] sm:$0xff] %v15862_v36  ;;  %v14020_v18 = vpop.permute.xlu0 %14019  ;;  %v13087_v61 = vpack.c.bf16 %v896_v4, %v831_v33  ;;  %v22608_v0 = vunpack.i.l.bf16 %v15862_v36  ;;  %v14027_v57 = vunpack.i.h.bf16 %v15862_v36 }
  0xcc   :  { %v14022_v22 = vunpack.i.h.bf16 %v14020_v18  ;;  %v14021_v32 = vunpack.i.l.bf16 %v14020_v18  ;;  %285 = vrot.lane.b32.xlu1 %v15370_v16, %s15100_s13 }
  0xcd   :  { %14289 = vrot.lane.b32.xlu0 %v15844_v2, %s15097_s29  ;;  %13088 = vmatprep.subr.bf16.mxu1 %v13087_v61 }
  0xce   :  { %13090 = vmatpush1.bf16.msra.mxu1 %v13089_v59  ;;  %v15881_v17 = vpop.permute.xlu1 %14034  ;;  %v1028_v1 = vsel %vm22619_vm15, %v14021_v32, %v14022_v22  ;;  %v964_v59 = vsel %vm22620_vm14, %v22608_v0, %v14016_v10 }
  0xcf   :  { %22730 = vst [vmem:[#allocation20_spill] sm:$0xff] %v15881_v17  ;;  %v14037_v18 = vunpack.i.h.bf16 %v15881_v17  ;;  %v22610_v16 = vunpack.i.l.bf16 %v15881_v17  ;;  %v15887_v55 = vpop.permute.xlu0 %14029  ;;  %v13043_v4 = vpack.c.bf16 %v1028_v1, %v963_v51 }
  0xd0   :  { %14299 = vrot.lane.b32.xlu1 %v15808_v63, %s15099_s12  ;;  %v22614_v60 = vunpack.i.h.bf16 %v15887_v55  ;;  %v14031_v33 = vunpack.i.l.bf16 %v15887_v55 }
  0xd1   :  { %14294 = vrot.lane.b32.xlu0 %v15808_v63, %s15098_s30  ;;  %13044 = vmatprep.subr.bf16.mxu0 %v13043_v4  ;;  %v1029_v61 = vsel %vm22619_vm15, %v22610_v16, %v14021_v32  ;;  %v1027_v4 = vsel %vm22619_vm15, %v14022_v22, %v14037_v18 }
  0xd2   :  { %v15904_v52 = vpop.permute.xlu1 %14044  ;;  %v13045_v51 = vpack.c.bf16 %v1029_v61, %v964_v59  ;;  %v962_v59 = vsel %vm22620_vm14, %v14017_v21, %v14027_v57  ;;  %v15925_v22 = vsel %vm22620_vm14, %v14031_v33, %v22614_v60  ;;  %v961_v16 = vsel %vm22620_vm14, %v14027_v57, %v14031_v33 }
  0xd3   :  { %v15906_v1 = vpop.permute.xlu0 %14039  ;;  %v14046_v10 = vunpack.i.l.bf16 %v15904_v52  ;;  %v13093_v36 = vpack.c.bf16 %v1027_v4, %v962_v59  ;;  %v15116_v33 = vmov 0   ;;  %vm1274_vm14 = vcmp.lt.s32.totalorder %v15350_v12, 28 }
  0xd4   :  { %v22617_v0 = vunpack.i.h.bf16 %v15906_v1  ;;  %v14041_v32 = vunpack.i.l.bf16 %v15906_v1  ;;  %14309 = vrot.lane.b32.xlu1 %v15844_v2, %s15099_s12  ;;  %13046 = vmatpush1.bf16.msra.mxu0 %v13045_v51 }
  0xd5   :  { %14304 = vrot.lane.b32.xlu0 %v15844_v2, %s15098_s30  ;;  %14498 = vset.pattern.permute.xlu1 %v15116_v33 }
  0xd6   :  { %v15931_v61 = vsel %vm22619_vm15, %v14041_v32, %v22617_v0  ;;  %v15933_v51 = vpop.permute.xlu1 %14054  ;;  %v1026_v21 = vsel %vm22619_vm15, %v14037_v18, %v14041_v32  ;;  %v22732_v0 = vunpack.i.h.bf16 %v15904_v52  ;;  %14739 = vset.pattern.permute.xlu0 %v15116_v33  ;;  %vm1209_vm15 = vcmp.lt.s32.totalorder %v15350_v12, 29 }
  0xd7   :  { %22731 = vst [vmem:[#allocation21_spill] sm:$0xff] %v15933_v51  ;;  %v14050_v49 = vpop.permute.xlu0 %14049  ;;  %v13091_v17 = vpack.c.bf16 %v1026_v21, %v961_v16  ;;  %v22618_v18 = vunpack.i.l.bf16 %v15933_v51 }
  0xd8   :  { %v14052_v39 = vunpack.i.h.bf16 %v14050_v49  ;;  %v14051_v15 = vunpack.i.l.bf16 %v14050_v49  ;;  %14314 = vrot.lane.b32.xlu1 %v15808_v63, %s22652_s14  ;;  %v1093_v57 = vsel %vm1079_vm13, %v14046_v10, %v22732_v0 }
  0xd9   :  { %287 = vrot.lane.b32.xlu0 %v15790_v58, %s15100_s13  ;;  %13092 = vmatprep.subr.bf16.mxu1 %v13091_v17 }
  0xda   :  { %13094 = vmatpush1.bf16.msra.mxu1 %v13093_v36  ;;  %v15951_v16 = vpop.permute.xlu1 %14064  ;;  %v1158_v49 = vsel %vm1144_vm12, %v14051_v15, %v14052_v39  ;;  %v1094_v36 = vsel %vm1079_vm13, %v22618_v18, %v14046_v10 }
  0xdb   :  { %22733 = vst [vmem:[#allocation22_spill] sm:$0xff] %v15951_v16  ;;  %v22621_v4 = vunpack.i.l.bf16 %v15951_v16  ;;  %v15956_v32 = vpop.permute.xlu0 %14059  ;;  %v13047_v59 = vpack.c.bf16 %v1158_v49, %v1093_v57  ;;  %v14067_v58 = vunpack.i.h.bf16 %v15951_v16 }
  0xdc   :  { %291 = vrot.lane.b32.xlu1 %v15826_v13, %s15100_s13  ;;  %v22624_v17 = vunpack.i.h.bf16 %v15956_v32  ;;  %v14061_v21 = vunpack.i.l.bf16 %v15956_v32 }
  0xdd   :  { %289 = vrot.lane.b32.xlu0 %v15795_v34, %s15100_s13  ;;  %13048 = vmatprep.subr.bf16.mxu0 %v13047_v59  ;;  %v1159_v0 = vsel %vm1144_vm12, %v22621_v4, %v14051_v15  ;;  %v14057_v34 = vunpack.i.h.bf16 %v15933_v51  ;;  %v1157_v15 = vsel %vm1144_vm12, %v14052_v39, %v14067_v58  ;;  %v22735_v51 = vunpack.i.h.bf16 %v15904_v52 }
  0xde   :  { %v15973_v57 = vpop.permute.xlu1 %14074  ;;  %v13049_v49 = vpack.c.bf16 %v1159_v0, %v1094_v36  ;;  %v15994_v36 = vsel %vm1079_vm13, %v14061_v21, %v22624_v17 }
  0xdf   :  { %v15976_v33 = vpop.permute.xlu0 %14069  ;;  %v14076_v10 = vunpack.i.l.bf16 %v15973_v57  ;;  %v1091_v39 = vsel %vm1079_vm13, %v14057_v34, %v14061_v21  ;;  %v1092_v17 = vsel %vm1079_vm13, %v22735_v51, %v14057_v34  ;;  %v22736_v21 = vunpack.i.h.bf16 %v15973_v57 }
  0xe0   :  { %v22626_v18 = vunpack.i.h.bf16 %v15976_v33  ;;  %v14071_v60 = vunpack.i.l.bf16 %v15976_v33  ;;  %14324 = vrot.lane.b32.xlu1 %v15808_v63, %s22636_s15  ;;  %13050 = vmatpush1.bf16.msra.mxu0 %v13049_v49  ;;  %v13097_v43 = vpack.c.bf16 %v1157_v15, %v1092_v17 }
  0xe1   :  { %14319 = vrot.lane.b32.xlu0 %v15844_v2, %s22652_s14  ;;  %s22770_s14 = smov 96  }
  0xe2   :  { %v16000_v0 = vsel %vm1144_vm12, %v14071_v60, %v22626_v18  ;;  %v16002_v49 = vpop.permute.xlu1 %14084  ;;  %v1156_v4 = vsel %vm1144_vm12, %v14067_v58, %v14071_v60  ;;  %v1223_v60 = vsel %vm1209_vm15, %v14076_v10, %v22736_v21 }
  0xe3   :  { %22734 = vst [vmem:[#allocation23_spill] sm:$0xff] %v16002_v49  ;;  %v14080_v59 = vpop.permute.xlu0 %14079  ;;  %v13095_v16 = vpack.c.bf16 %v1156_v4, %v1091_v39  ;;  %v22631_v4 = vunpack.i.l.bf16 %v16002_v49  ;;  %v14087_v11 = vunpack.i.h.bf16 %v16002_v49 }
  0xe4   :  { %v14082_v18 = vunpack.i.h.bf16 %v14080_v59  ;;  %v14081_v31 = vunpack.i.l.bf16 %v14080_v59  ;;  %14334 = vrot.lane.b32.xlu1 %v15844_v2, %s22636_s15  ;;  %v13847_v59 = vunpack.i.h.bf16 %v15360_v14  ;;  %s22746_s15 = smov 62  }
  0xe5   :  { %14329 = vrot.lane.b32.xlu0 %v15808_v63, %s22637_s16  ;;  %13096 = vmatprep.subr.bf16.mxu1 %v13095_v16 }
  0xe6   :  { %13098 = vmatpush1.bf16.msra.mxu1 %v13097_v43  ;;  %v16023_v52 = vpop.permute.xlu1 %14094  ;;  %v1288_v51 = vsel %vm1274_vm14, %v14081_v31, %v14082_v18  ;;  %v1224_v43 = vsel %vm1209_vm15, %v22631_v4, %v14076_v10 }
  0xe7   :  { %22737 = vst [vmem:[#allocation24_spill] sm:$0xff] %v16023_v52  ;;  %v22630_v58 = vunpack.i.l.bf16 %v16023_v52  ;;  %v16028_v17 = vpop.permute.xlu0 %14089  ;;  %v13051_v34 = vpack.c.bf16 %v1288_v51, %v1223_v60  ;;  %v14097_v15 = vunpack.i.h.bf16 %v16023_v52 }
  0xe8   :  { %14344 = vrot.lane.b32.xlu1 %v15808_v63, %s22635_s17  ;;  %v22632_v39 = vunpack.i.h.bf16 %v16028_v17  ;;  %v14091_v21 = vunpack.i.l.bf16 %v16028_v17 }
  0xe9   :  { %14339 = vrot.lane.b32.xlu0 %v15844_v2, %s22637_s16  ;;  %13052 = vmatprep.subr.bf16.mxu0 %v13051_v34  ;;  %v1289_v16 = vsel %vm1274_vm14, %v22630_v58, %v14081_v31  ;;  %v1287_v31 = vsel %vm1274_vm14, %v14082_v18, %v14097_v15  ;;  %s22774_s16 = smov 94  }
  0xea   :  { %v16046_v60 = vpop.permute.xlu1 %14104  ;;  %v13053_v51 = vpack.c.bf16 %v1289_v16, %v1224_v43  ;;  %v22739_v43 = vunpack.i.l.bf16 %v15360_v14  ;;  %v16068_v58 = vsel %vm1209_vm15, %v14091_v21, %v22632_v39  ;;  %v1221_v14 = vsel %vm1209_vm15, %v14087_v11, %v14091_v21 }
  0xeb   :  { %v16049_v34 = vpop.permute.xlu0 %14099  ;;  %v22740_v39 = vunpack.i.h.bf16 %v15973_v57  ;;  %v15080_v57 = vld [vmem:[%s22548_s0 + $0x20] sm:$0xff] }
  0xec   :  { %v22634_v25 = vunpack.i.h.bf16 %v16049_v34  ;;  %v14101_v10 = vunpack.i.l.bf16 %v16049_v34  ;;  %14354 = vrot.lane.b32.xlu1 %v15844_v2, %s22635_s17  ;;  %13054 = vmatpush1.bf16.msra.mxu0 %v13053_v51  ;;  %v115_v16 = vsel %vm104_vm0, %v22739_v43, %v13847_v59  ;;  %v14106_v51 = vunpack.i.l.bf16 %v16046_v60  ;;  %s22775_s17 = smov 95  }
  0xed   :  { %14349 = vrot.lane.b32.xlu0 %v15808_v63, %s22738_s18  ;;  %13056 = vmatprep.subr.bf16.mxu0 %v15424_v40  ;;  %v1222_v52 = vsel %vm1209_vm15, %v22740_v39, %v14087_v11 }
  0xee   :  { %v16074_v2 = vsel %vm1274_vm14, %v14101_v10, %v22634_v25  ;;  %v16076_v40 = vpop.permute.xlu1 %277  ;;  %v1286_v18 = vsel %vm1274_vm14, %v14097_v15, %v14101_v10  ;;  %v13101_v21 = vpack.c.bf16 %v1287_v31, %v1222_v52  ;;  %v13103_v15 = vpack.c.bf16 %v115_v16, %v15080_v57 }
  0xef   :  { %v16083_v43 = vpop.permute.xlu0 %14109  ;;  %v13099_v4 = vpack.c.bf16 %v1286_v18, %v1221_v14 }
  0xf0   :  { %14359 = vrot.lane.b32.xlu1 %v15808_v63, %s22741_s19  ;;  %13058 = vmatpush1.bf16.msra.mxu0 %v15390_v26  ;;  %v114_v26 = vsel %vm104_vm0, %v13847_v59, %v14106_v51  ;;  %v22638_v52 = vunpack.i.l.bf16 %v16083_v43  ;;  %v15081_v59 = vld [vmem:[%s22548_s0 + $0x28] sm:$0xff] }
  0xf1   :  { %616 = vrot.lane.b32.xlu0 %v15826_v13, %s22738_s18  ;;  %13100 = vmatprep.subr.bf16.mxu1 %v13099_v4  ;;  %v16122_v16 = vpack.c.bf16 %v114_v26, %v15081_v59 }
  0xf2   :  { %13060 = vmatprep.subr.bf16.mxu0 %v15495_v7  ;;  %13102 = vmatpush1.bf16.msra.mxu1 %v13101_v21  ;;  %v16100_v11 = vpop.permute.xlu1 %14119  ;;  %v14107_v7 = vunpack.i.h.bf16 %v16046_v60  ;;  %v22745_v21 = vunpack.i.h.bf16 %v15462_v56 }
  0xf3   :  { %v22641_v39 = vunpack.i.l.bf16 %v16100_v11  ;;  %v16103_v10 = vpop.permute.xlu0 %14114  ;;  %13104 = vmatprep.subr.bf16.mxu1 %v13103_v15 }
  0xf4   :  { %v22640_v4 = vunpack.i.l.bf16 %v16103_v10  ;;  %681 = vrot.lane.b32.xlu1 %v15826_v13, %s22741_s19  ;;  %13062 = vmatpush1.bf16.msra.mxu0 %v15441_v47 }
  0xf5   :  { %14364 = vrot.lane.b32.xlu0 %v15808_v63, %s22742_s20  ;;  %1847 = vmatprep.subr.mxu0 %v15561_v44  ;;  %v22744_v44 = vunpack.i.h.bf16 %v15439_v46  ;;  %v244_v57 = vsel %vm234_vm3, %v22745_v21, %v22641_v39  ;;  %v112_v46 = vsel %vm104_vm0, %v14107_v7, %v22638_v52  ;;  %v310_v21 = vsel %vm299_vm4, %v15517_v19, %v16076_v40 }
  0xf6   :  { %13106 = vmatpush1.bf16.msra.mxu1 %v15418_v37  ;;  %v16117_v31 = vpop.permute.xlu1 %14129  ;;  %v16132_v37 = vld [vmem:[%s22549_s1] sm:$0xff]  ;;  %v113_v19 = vsel %vm104_vm0, %v14106_v51, %v14107_v7 }
  0xf7   :  { %22743 = vst [vmem:[#allocation25_spill] sm:$0xff] %v16117_v31  ;;  %v22639_v47 = vunpack.i.h.bf16 %v16117_v31  ;;  %v14131_v60 = vunpack.i.l.bf16 %v16117_v31  ;;  %v16126_v14 = vpop.permute.xlu0 %14124  ;;  %13108 = vmatprep.subr.bf16.mxu1 %v15491_v6  ;;  %v179_v18 = vsel %vm169_vm2, %v22744_v44, %v22640_v4  ;;  %v14122_v44 = vunpack.i.h.bf16 %v16100_v11 }
  0xf8   :  { %v22643_v26 = vunpack.i.h.bf16 %v16126_v14  ;;  %v14126_v59 = vunpack.i.l.bf16 %v16126_v14  ;;  %14369 = vrot.lane.b32.xlu1 %v15808_v63, %s22746_s15  ;;  %1848 = vmatpush1.msra.mxu0 %v15499_v8  ;;  %v16169_v25 = vpack.c.bf16 %v244_v57, %v179_v18  ;;  %v14117_v4 = vunpack.i.h.bf16 %v16103_v10  ;;  %v15082_v18 = vld [vmem:[%s22548_s0 + $0x38] sm:$0xff] }
  0xf9   :  { %746 = vrot.lane.b32.xlu0 %v15826_v13, %s22742_s20  ;;  %13112 = vmatprep.subr.bf16.mxu0 %v16122_v16  ;;  %v241_v56 = vsel %vm234_vm3, %v14131_v60, %v22639_v47  ;;  %v13892_v47 = vunpack.i.h.bf16 %v15536_v29  ;;  %v16187_v57 = vpack.c.bf16 %v112_v46, %v15082_v18  ;;  %v22748_v46 = vunpack.i.l.bf16 %v15536_v29  ;;  %v15084_v18 = vld [vmem:[%s22548_s0 + $0x30] sm:$0xff] }
  0xfa   :  { %13110 = vmatpush1.bf16.msra.mxu1 %v15489_v5  ;;  %v14135_v8 = vpop.permute.xlu1 %14134  ;;  %1864 = vmatmul.mubr.f32.vlgmr.msra.gmra.mrb[0].mxu0 %v16132_v37  ;;  %v176_v52 = vsel %vm169_vm2, %v14126_v59, %v22643_v26  ;;  %v242_v26 = vsel %vm234_vm3, %v14122_v44, %v14131_v60  ;;  %v177_v7 = vsel %vm169_vm2, %v14117_v4, %v14126_v59  ;;  %v22750_v29 = vunpack.i.l.bf16 %v16103_v10 }
  0xfb   :  { %v14136_v5 = vunpack.i.l.bf16 %v14135_v8  ;;  %v280_v39 = vpop.permute.xlu0 %279  ;;  %1918 = vmatprep.subr.mxu1 %v310_v21  ;;  %13114 = vmatpush1.bf16.msra.mxu0 %v13103_v15  ;;  %v16177_v49 = vpack.c.bf16 %v241_v56, %v176_v52  ;;  %v16205_v52 = vld [vmem:[%s22549_s1 + $0x8] sm:$0xff]  ;;  %v375_v56 = vsel %vm364_vm5, %v22748_v46, %v13892_v47  ;;  %v16222_v31 = vpack.c.bf16 %v113_v19, %v15084_v18 }
  0xfc   :  { %13116 = vmatprep.subr.bf16.mxu0 %v16169_v25  ;;  %811 = vrot.lane.b32.xlu1 %v15826_v13, %s22746_s15  ;;  %v16194_v15 = vsel %vm299_vm4, %v16076_v40, %v280_v39  ;;  %22747 = vst [vmem:[#allocation26_spill] sm:$0xff] %v16205_v52  ;;  %v14137_v46 = vunpack.i.h.bf16 %v14135_v8  ;;  %v13121_v19 = vpack.c.bf16 %v375_v56, %v310_v21 }
  0xfd   :  { %14374 = vrot.lane.b32.xlu0 %v15808_v63, %s22717_s22  ;;  %v374_v51 = vsel %vm364_vm5, %v13892_v47, %v14136_v5  ;;  %10473 = vmatprep.mubr.msk.f32.mxu0 %vm1795_vm1, %v16205_v52  ;;  %v178_v47 = vsel %vm169_vm2, %v22750_v29, %v14117_v4 }
  0xfe   :  { %1919 = vmatpush1.msra.mxu1 %v15551_v38  ;;  %v16210_v40 = vpop.permute.xlu1 %283  ;;  %v13119_v60 = vpack.c.bf16 %v374_v51, %v16194_v15  ;;  %v22749_v38 = vunpack.i.l.bf16 %v16100_v11 }
  0xff   :  { %v282_v59 = vpop.permute.xlu0 %281  ;;  %13118 = vmatpush1.bf16.msra.mxu0 %v15491_v6  ;;  %13160 = vmatprep.subr.bf16.mxu1 %v16187_v57  ;;  %v16235_v6 = vpack.c.bf16 %v242_v26, %v177_v7 }
 0x100   :  { %v243_v51 = vsel %vm234_vm3, %v22749_v38, %v14122_v44  ;;  %1935 = vmatmul.mubr.f32.vlgmr.msra.gmra.mrb[0].mxu1 %v16132_v37  ;;  %14379 = vrot.lane.b32.xlu1 %v15808_v63, %s22718_s25  ;;  %v373_v44 = vsel %vm364_vm5, %v14136_v5, %v14137_v46  ;;  %v16254_v8 = vsel %vm299_vm4, %v280_v39, %v282_v59 }
 0x101   :  { %13162 = vmatpush1.bf16.msra.mxu1 %v16222_v31  ;;  %876 = vrot.lane.b32.xlu0 %v15826_v13, %s22717_s22  ;;  %v16243_v4 = vpack.c.bf16 %v243_v51, %v178_v47  ;;  %v16262_v21 = vsel %vm299_vm4, %v282_v59, %v16210_v40  ;;  %v13169_v18 = vpack.c.bf16 %v373_v44, %v16254_v8 }
 0x102   :  { %13120 = vmatprep.subr.bf16.mxu0 %v13119_v60  ;;  %13164 = vmatprep.subr.bf16.mxu1 %v16235_v6  ;;  %v14145_v11 = vpop.permute.xlu1 %14144 }
 0x103   :  { %v16241_v10 = vpop.permute.xlu0 %14139  ;;  %13122 = vmatpush1.bf16.msra.mxu0 %v13121_v19  ;;  %10474 = vmatprep.mubr.msk.f32.mxu1 %vm1795_vm1, %v16205_v52  ;;  %v14146_v7 = vunpack.i.l.bf16 %v14145_v11  ;;  %v14147_v59 = vunpack.i.h.bf16 %v14145_v11  ;;  %v22752_v19 = vunpack.i.h.bf16 %v15578_v62 }
 0x104   :  { %v22645_v26 = vunpack.i.l.bf16 %v16241_v10  ;;  %941 = vrot.lane.b32.xlu1 %v15826_v13, %s22718_s25 }
 0x105   :  { %13166 = vmatpush1.bf16.msra.mxu1 %v16243_v4  ;;  %14384 = vrot.lane.b32.xlu0 %v15808_v63, %s22720_s23  ;;  %v439_v44 = vsel %vm22680_vm6, %v22752_v19, %v14146_v7 }
 0x106   :  { %v16264_v60 = vpop.permute.xlu1 %14154  ;;  %v372_v5 = vsel %vm364_vm5, %v14137_v46, %v22645_v26 }
 0x107   :  { %22751 = vst [vmem:[#allocation27_spill] sm:$0xff] %v16264_v60  ;;  %v14150_v39 = vpop.permute.xlu0 %14149  ;;  %v13167_v56 = vpack.c.bf16 %v372_v5, %v16262_v21  ;;  %v22646_v38 = vunpack.i.h.bf16 %v16264_v60  ;;  %v14156_v47 = vunpack.i.l.bf16 %v16264_v60  ;;  %v22753_v5 = vunpack.i.h.bf16 %v15598_v23 }
 0x108   :  { %v14151_v51 = vunpack.i.l.bf16 %v14150_v39  ;;  %14389 = vrot.lane.b32.xlu1 %v15808_v63, %s22722_s24  ;;  %v14152_v29 = vunpack.i.h.bf16 %v14150_v39  ;;  %v438_v23 = vsel %vm22680_vm6, %v14146_v7, %v14147_v59 }
 0x109   :  { %1006 = vrot.lane.b32.xlu0 %v15826_v13, %s22720_s23  ;;  %13168 = vmatprep.subr.bf16.mxu1 %v13167_v56  ;;  %v16292_v56 = vsel %vm22680_vm6, %v14156_v47, %v22646_v38  ;;  %v437_v7 = vsel %vm22680_vm6, %v14147_v59, %v14156_v47  ;;  %v16329_v59 = vld [vmem:[%s22548_s0 + $0x70] sm:$0xff] }
 0x10a   :  { %13170 = vmatpush1.bf16.msra.mxu1 %v13169_v18  ;;  %v14165_v46 = vpop.permute.xlu1 %14164  ;;  %v504_v26 = vsel %vm494_vm7, %v22753_v5, %v14151_v51  ;;  %v503_v19 = vsel %vm494_vm7, %v14151_v51, %v14152_v29  ;;  %v22755_v5 = vpack.c.bf16 %v15622_v48, %v15616_v41 }
 0x10b   :  { %v16286_v11 = vpop.permute.xlu0 %14159  ;;  %v13123_v39 = vpack.c.bf16 %v504_v26, %v439_v44  ;;  %v14166_v26 = vunpack.i.l.bf16 %v14165_v46  ;;  %v13173_v41 = vpack.c.bf16 %v503_v19, %v438_v23  ;;  %v14167_v48 = vunpack.i.h.bf16 %v14165_v46 }
 0x10c   :  { %22754 = vst [vmem:[#allocation28_spill] sm:$0xff] %v16286_v11  ;;  %v22649_v18 = vunpack.i.h.bf16 %v16286_v11  ;;  %v14161_v62 = vunpack.i.l.bf16 %v16286_v11  ;;  %1071 = vrot.lane.b32.xlu1 %v15826_v13, %s22722_s24  ;;  %v22757_v46 = vunpack.i.h.bf16 %v15648_v35 }
 0x10d   :  { %14394 = vrot.lane.b32.xlu0 %v15808_v63, %s15113_s26  ;;  %13124 = vmatprep.subr.bf16.mxu0 %v13123_v39 }
 0x10e   :  { %v16308_v44 = vsel %vm494_vm7, %v14161_v62, %v22649_v18  ;;  %13126 = vmatpush1.bf16.msra.mxu0 %v22755_v5  ;;  %v16313_v38 = vpop.permute.xlu1 %14174  ;;  %v502_v51 = vsel %vm494_vm7, %v14152_v29, %v14161_v62  ;;  %v16334_v29 = vld [vmem:[%s22548_s0 + $0x78] sm:$0xff]  ;;  %v569_v23 = vsel %vm22679_vm8, %v22757_v46, %v14166_v26  ;;  %v568_v46 = vsel %vm22679_vm8, %v14166_v26, %v14167_v48 }
 0x10f   :  { %22756 = vst [vmem:[#allocation29_spill] sm:$0xff] %v16313_v38  ;;  %v14170_v39 = vpop.permute.xlu0 %14169  ;;  %v13171_v60 = vpack.c.bf16 %v502_v51, %v437_v7  ;;  %v22654_v18 = vunpack.i.h.bf16 %v16313_v38  ;;  %v14176_v47 = vunpack.i.l.bf16 %v16313_v38 }
 0x110   :  { %v14171_v52 = vunpack.i.l.bf16 %v14170_v39  ;;  %14399 = vrot.lane.b32.xlu1 %v15808_v63, %s15114_s27  ;;  %v14172_v5 = vunpack.i.h.bf16 %v14170_v39 }
 0x111   :  { %1136 = vrot.lane.b32.xlu0 %v15826_v13, %s15113_s26  ;;  %13172 = vmatprep.subr.bf16.mxu1 %v13171_v60  ;;  %v22758_v60 = vunpack.i.h.bf16 %v15668_v50  ;;  %v16351_v39 = vsel %vm22679_vm8, %v14176_v47, %v22654_v18  ;;  %v16359_v50 = vpack.i.bf16 %v16334_v29, %v16329_v59  ;;  %v22760_v18 = vpack.c.bf16 %v15692_v54, %v15686_v53 }
 0x112   :  { %13174 = vmatpush1.bf16.msra.mxu1 %v13173_v41  ;;  %v14185_v62 = vpop.permute.xlu1 %14184 }
 0x113   :  { %v634_v19 = vsel %vm22662_vm9, %v22758_v60, %v14171_v52  ;;  %v16345_v7 = vpop.permute.xlu0 %14179  ;;  %v14186_v60 = vunpack.i.l.bf16 %v14185_v62  ;;  %v14187_v54 = vunpack.i.h.bf16 %v14185_v62 }
 0x114   :  { %22759 = vst [vmem:[#allocation30_spill] sm:$0xff] %v16345_v7  ;;  %v13127_v51 = vpack.c.bf16 %v634_v19, %v569_v23  ;;  %v22656_v41 = vunpack.i.h.bf16 %v16345_v7  ;;  %v14181_v35 = vunpack.i.l.bf16 %v16345_v7  ;;  %1201 = vrot.lane.b32.xlu1 %v15826_v13, %s15114_s27  ;;  %v633_v23 = vsel %vm22662_vm9, %v14171_v52, %v14172_v5 }
 0x115   :  { %14404 = vrot.lane.b32.xlu0 %v15808_v63, %s15115_s28  ;;  %v567_v52 = vsel %vm22679_vm8, %v14167_v48, %v14176_v47  ;;  %v13177_v53 = vpack.c.bf16 %v633_v23, %v568_v46  ;;  %v22761_v47 = vunpack.i.h.bf16 %v15720_v30 }
 0x116   :  { %13128 = vmatprep.subr.bf16.mxu0 %v13127_v51  ;;  %v16371_v19 = vsel %vm22662_vm9, %v14181_v35, %v22656_v41  ;;  %v16376_v11 = vpop.permute.xlu1 %14194  ;;  %v632_v63 = vsel %vm22662_vm9, %v14172_v5, %v14181_v35 }
 0x117   :  { %13130 = vmatpush1.bf16.msra.mxu0 %v22760_v18  ;;  %v14190_v26 = vpop.permute.xlu0 %14189  ;;  %v13175_v51 = vpack.c.bf16 %v632_v63, %v567_v52  ;;  %v22659_v41 = vunpack.i.h.bf16 %v16376_v11  ;;  %v14196_v48 = vunpack.i.l.bf16 %v16376_v11  ;;  %v699_v35 = vsel %vm22661_vm10, %v22761_v47, %v14186_v60 }
 0x118   :  { %v14191_v38 = vunpack.i.l.bf16 %v14190_v26  ;;  %14409 = vrot.lane.b32.xlu1 %v16359_v50, %s15097_s29  ;;  %v14192_v18 = vunpack.i.h.bf16 %v14190_v26  ;;  %v22762_v52 = vunpack.i.h.bf16 %v15740_v24  ;;  %v698_v24 = vsel %vm22661_vm10, %v14186_v60, %v14187_v54 }
 0x119   :  { %1266 = vrot.lane.b32.xlu0 %v15826_v13, %s15115_s28  ;;  %13176 = vmatprep.subr.bf16.mxu1 %v13175_v51  ;;  %v16404_v13 = vsel %vm22661_vm10, %v14196_v48, %v22659_v41  ;;  %v22763_v47 = vpack.c.bf16 %v15764_v28, %v15758_v45 }
 0x11a   :  { %13178 = vmatpush1.bf16.msra.mxu1 %v13177_v53  ;;  %v14205_v5 = vpop.permute.xlu1 %14204  ;;  %v764_v46 = vsel %vm22660_vm11, %v22762_v52, %v14191_v38  ;;  %v763_v26 = vsel %vm22660_vm11, %v14191_v38, %v14192_v18  ;;  %v697_v38 = vsel %vm22661_vm10, %v14187_v54, %v14196_v48  ;;  %v22764_v48 = vunpack.i.h.bf16 %v15802_v42 }
 0x11b   :  { %v16398_v62 = vpop.permute.xlu0 %14199  ;;  %v13131_v23 = vpack.c.bf16 %v764_v46, %v699_v35  ;;  %v14206_v51 = vunpack.i.l.bf16 %v14205_v5  ;;  %v13181_v45 = vpack.c.bf16 %v763_v26, %v698_v24  ;;  %v14207_v28 = vunpack.i.h.bf16 %v14205_v5 }
 0x11c   :  { %v22658_v63 = vunpack.i.h.bf16 %v16398_v62  ;;  %v14201_v30 = vunpack.i.l.bf16 %v16398_v62  ;;  %14414 = vrot.lane.b32.xlu1 %v16359_v50, %s15098_s30  ;;  %vm22767_vm10 = vcmp.lt.s32.totalorder %v15350_v12, 61 }
 0x11d   :  { %293 = vrot.lane.b32.xlu0 %v15831_v27, %s15100_s13  ;;  %13132 = vmatprep.subr.bf16.mxu0 %v13131_v23 }
 0x11e   :  { %v16420_v53 = vsel %vm22660_vm11, %v14201_v30, %v22658_v63  ;;  %13134 = vmatpush1.bf16.msra.mxu0 %v22763_v47  ;;  %v16425_v35 = vpop.permute.xlu1 %14214  ;;  %v762_v60 = vsel %vm22660_vm11, %v14192_v18, %v14201_v30  ;;  %vm22765_vm11 = vcmp.lt.s32.totalorder %v15350_v12, 62 }
 0x11f   :  { %v14210_v52 = vpop.permute.xlu0 %14209  ;;  %v13179_v46 = vpack.c.bf16 %v762_v60, %v697_v38  ;;  %v22663_v63 = vunpack.i.h.bf16 %v16425_v35  ;;  %v14216_v54 = vunpack.i.l.bf16 %v16425_v35  ;;  %v829_v30 = vsel %vm22765_vm11, %v22764_v48, %v14206_v51  ;;  %vm22768_vm9 = vmmov %vm22765_vm11 }
 0x120   :  { %v14211_v41 = vunpack.i.l.bf16 %v14210_v52  ;;  %295 = vrot.lane.b32.xlu1 %v16329_v59, %s15100_s13  ;;  %v14212_v47 = vunpack.i.h.bf16 %v14210_v52  ;;  %v22766_v38 = vunpack.i.h.bf16 %v15834_v9  ;;  %vm22769_vm11 = vmmov %vm22768_vm9 }
 0x121   :  { %14419 = vrot.lane.b32.xlu0 %v16359_v50, %s15099_s12  ;;  %13180 = vmatprep.subr.bf16.mxu1 %v13179_v46  ;;  %v16453_v60 = vsel %vm22768_vm9, %v14216_v54, %v22663_v63  ;;  %v828_v9 = vsel %vm22769_vm11, %v14206_v51, %v14207_v28  ;;  %vm22771_vm9 = vmmov %vm22767_vm10 }
 0x122   :  { %13182 = vmatpush1.bf16.msra.mxu1 %v13181_v45  ;;  %v14225_v18 = vpop.permute.xlu1 %14224  ;;  %v894_v24 = vsel %vm22767_vm10, %v22766_v38, %v14211_v41  ;;  %v893_v46 = vsel %vm22767_vm10, %v14211_v41, %v14212_v47  ;;  %v827_v41 = vsel %vm22769_vm11, %v14207_v28, %v14216_v54  ;;  %vm22773_vm10 = vmmov %vm22771_vm9  ;;  %vm22779_vm11 = vcmp.lt.s32.totalorder %v15350_v12, 32 }
 0x123   :  { %v16447_v5 = vpop.permute.xlu0 %14219  ;;  %v13135_v26 = vpack.c.bf16 %v894_v24, %v829_v30  ;;  %v14226_v45 = vunpack.i.l.bf16 %v14225_v18  ;;  %v22772_v30 = vpack.c.bf16 %v15860_v20, %v15854_v3  ;;  %v13185_v3 = vpack.c.bf16 %v893_v46, %v828_v9 }
 0x124   :  { %v22664_v52 = vunpack.i.h.bf16 %v16447_v5  ;;  %v14221_v42 = vunpack.i.l.bf16 %v16447_v5  ;;  %297 = vrot.lane.b32.xlu1 %v16334_v29, %s15100_s13  ;;  %v16487_v20 = vpack.i.bf16 %v16329_v59, %v15831_v27  ;;  %v14227_v28 = vunpack.i.h.bf16 %v14225_v18 }
 0x125   :  { %14424 = vrot.lane.b32.xlu0 %v16359_v50, %s22770_s14  ;;  %13136 = vmatprep.subr.bf16.mxu0 %v13135_v26  ;;  %v22778_v9 = vunpack.i.h.bf16 %v15906_v1 }
 0x126   :  { %v16469_v48 = vsel %vm22771_vm9, %v14221_v42, %v22664_v52  ;;  %13138 = vmatpush1.bf16.msra.mxu0 %v22772_v30  ;;  %v16474_v38 = vpop.permute.xlu1 %14234  ;;  %v892_v51 = vsel %vm22773_vm10, %v14212_v47, %v14221_v42  ;;  %v22776_v30 = vunpack.i.h.bf16 %v15887_v55  ;;  %vm22777_vm9 = vcmp.lt.s32.totalorder %v15350_v12, 60 }
 0x127   :  { %v14230_v24 = vpop.permute.xlu0 %14229  ;;  %v13183_v26 = vpack.c.bf16 %v892_v51, %v827_v41  ;;  %v22666_v52 = vunpack.i.h.bf16 %v16474_v38  ;;  %v14236_v47 = vunpack.i.l.bf16 %v16474_v38  ;;  %vm22780_vm10 = vmmov %vm22777_vm9  ;;  %v958_v1 = vsel %vm22777_vm9, %v14226_v45, %v14227_v28 }
 0x128   :  { %v14231_v23 = vunpack.i.l.bf16 %v14230_v24  ;;  %14434 = vrot.lane.b32.xlu1 %v16359_v50, %s22774_s16  ;;  %v14232_v54 = vunpack.i.h.bf16 %v14230_v24  ;;  %v959_v41 = vsel %vm22777_vm9, %v22776_v30, %v14226_v45 }
 0x129   :  { %14429 = vrot.lane.b32.xlu0 %v16359_v50, %s22775_s17  ;;  %13184 = vmatprep.subr.bf16.mxu1 %v13183_v26  ;;  %v16506_v51 = vsel %vm22780_vm10, %v14236_v47, %v22666_v52  ;;  %vm22782_vm10 = vmmov %vm22779_vm11 }
 0x12a   :  { %13186 = vmatpush1.bf16.msra.mxu1 %v13185_v3  ;;  %v14245_v42 = vpop.permute.xlu1 %14244  ;;  %v1024_v27 = vsel %vm22779_vm11, %v22778_v9, %v14231_v23  ;;  %v1023_v26 = vsel %vm22779_vm11, %v14231_v23, %v14232_v54  ;;  %v957_v23 = vsel %vm22777_vm9, %v14227_v28, %v14236_v47  ;;  %vm22784_vm11 = vmmov %vm22782_vm10  ;;  %v22785_v47 = vunpack.i.h.bf16 %v15956_v32 }
 0x12b   :  { %v16500_v18 = vpop.permute.xlu0 %14239  ;;  %v13139_v46 = vpack.c.bf16 %v1024_v27, %v959_v41  ;;  %v14246_v3 = vunpack.i.l.bf16 %v14245_v42  ;;  %v22783_v41 = vpack.c.bf16 %v15931_v61, %v15925_v22  ;;  %v13189_v22 = vpack.c.bf16 %v1023_v26, %v958_v1 }
 0x12c   :  { %v22665_v24 = vunpack.i.h.bf16 %v16500_v18  ;;  %v14241_v55 = vunpack.i.l.bf16 %v16500_v18  ;;  %14444 = vrot.lane.b32.xlu1 %v16487_v20, %s22738_s18  ;;  %v14247_v61 = vunpack.i.h.bf16 %v14245_v42 }
 0x12d   :  { %14439 = vrot.lane.b32.xlu0 %v16359_v50, %s22781_s21  ;;  %13140 = vmatprep.subr.bf16.mxu0 %v13139_v46  ;;  %s15120_s21 = smov 58  }
 0x12e   :  { %v16522_v30 = vsel %vm22782_vm10, %v14241_v55, %v22665_v24  ;;  %13142 = vmatpush1.bf16.msra.mxu0 %v22783_v41  ;;  %v16527_v9 = vpop.permute.xlu1 %14254  ;;  %v1022_v50 = vsel %vm22784_vm11, %v14232_v54, %v14241_v55  ;;  %v1089_v55 = vsel %vm1079_vm13, %v22785_v47, %v14246_v3  ;;  %vm22803_vm10 = vcmp.lt.s32.totalorder %v15350_v12, 92 }
 0x12f   :  { %v14250_v45 = vpop.permute.xlu0 %14249  ;;  %v13187_v27 = vpack.c.bf16 %v1022_v50, %v957_v23  ;;  %v22667_v24 = vunpack.i.h.bf16 %v16527_v9  ;;  %v14256_v28 = vunpack.i.l.bf16 %v16527_v9  ;;  %v22786_v23 = vunpack.i.h.bf16 %v15976_v33  ;;  %vm22808_vm9 = vmmov %vm22803_vm10 }
 0x130   :  { %v14251_v52 = vunpack.i.l.bf16 %v14250_v45  ;;  %14449 = vrot.lane.b32.xlu1 %v16487_v20, %s22741_s19  ;;  %v14252_v41 = vunpack.i.h.bf16 %v14250_v45  ;;  %v1088_v33 = vsel %vm1079_vm13, %v14246_v3, %v14247_v61  ;;  %vm22809_vm11 = vmmov %vm22808_vm9 }
 0x131   :  { %622 = vrot.lane.b32.xlu0 %v16334_v29, %s22738_s18  ;;  %13188 = vmatprep.subr.bf16.mxu1 %v13187_v27  ;;  %v16555_v50 = vsel %vm1079_vm13, %v14256_v28, %v22667_v24 }
 0x132   :  { %13190 = vmatpush1.bf16.msra.mxu1 %v13189_v22  ;;  %v14265_v54 = vpop.permute.xlu1 %14264  ;;  %v1154_v1 = vsel %vm1144_vm12, %v22786_v23, %v14251_v52  ;;  %v1153_v27 = vsel %vm1144_vm12, %v14251_v52, %v14252_v41  ;;  %v1087_v52 = vsel %vm1079_vm13, %v14247_v61, %v14256_v28  ;;  %v14112_v61 = vunpack.i.h.bf16 %v16083_v43 }
 0x133   :  { %v16549_v42 = vpop.permute.xlu0 %14259  ;;  %v13143_v26 = vpack.c.bf16 %v1154_v1, %v1089_v55  ;;  %v14266_v22 = vunpack.i.l.bf16 %v14265_v54  ;;  %v22787_v55 = vpack.c.bf16 %v16000_v0, %v15994_v36  ;;  %v13193_v36 = vpack.c.bf16 %v1153_v27, %v1088_v33 }
 0x134   :  { %v22668_v45 = vunpack.i.h.bf16 %v16549_v42  ;;  %v14261_v32 = vunpack.i.l.bf16 %v16549_v42  ;;  %687 = vrot.lane.b32.xlu1 %v16334_v29, %s22741_s19  ;;  %v14267_v0 = vunpack.i.h.bf16 %v14265_v54  ;;  %v22789_v33 = vunpack.i.h.bf16 %v16049_v34 }
 0x135   :  { %14454 = vrot.lane.b32.xlu0 %v16487_v20, %s22742_s20  ;;  %13144 = vmatprep.subr.bf16.mxu0 %v13143_v26 }
 0x136   :  { %v16571_v47 = vsel %vm1144_vm12, %v14261_v32, %v22668_v45  ;;  %13146 = vmatpush1.bf16.msra.mxu0 %v22787_v55  ;;  %v16576_v23 = vpop.permute.xlu1 %14274  ;;  %v1152_v3 = vsel %vm1144_vm12, %v14252_v41, %v14261_v32  ;;  %v22788_v32 = vunpack.i.h.bf16 %v16028_v17  ;;  %v1218_v34 = vsel %vm1209_vm15, %v14266_v22, %v14267_v0 }
 0x137   :  { %v14270_v1 = vpop.permute.xlu0 %14269  ;;  %v13191_v26 = vpack.c.bf16 %v1152_v3, %v1087_v52  ;;  %v22669_v45 = vunpack.i.h.bf16 %v16576_v23  ;;  %v14276_v41 = vunpack.i.l.bf16 %v16576_v23 }
 0x138   :  { %v14271_v46 = vunpack.i.l.bf16 %v14270_v1  ;;  %14459 = vrot.lane.b32.xlu1 %v16487_v20, %s22746_s15  ;;  %v14272_v55 = vunpack.i.h.bf16 %v14270_v1  ;;  %v1219_v52 = vsel %vm1209_vm15, %v22788_v32, %v14266_v22 }
 0x139   :  { %752 = vrot.lane.b32.xlu0 %v16334_v29, %s22742_s20  ;;  %13192 = vmatprep.subr.bf16.mxu1 %v13191_v26  ;;  %v16607_v1 = vsel %vm1209_vm15, %v14276_v41, %v22669_v45  ;;  %v1217_v22 = vsel %vm1209_vm15, %v14267_v0, %v14276_v41  ;;  %s15126_s20 = smov 116  }
 0x13a   :  { %13194 = vmatpush1.bf16.msra.mxu1 %v13193_v36  ;;  %v16591_v28 = vpop.permute.xlu1 %14284  ;;  %v1284_v54 = vsel %vm1274_vm14, %v22789_v33, %v14271_v46  ;;  %v1283_v36 = vsel %vm1274_vm14, %v14271_v46, %v14272_v55 }
 0x13b   :  { %v16601_v27 = vpop.permute.xlu0 %14279  ;;  %v13147_v3 = vpack.c.bf16 %v1284_v54, %v1219_v52  ;;  %v22790_v52 = vpack.c.bf16 %v16074_v2, %v16068_v58  ;;  %v22791_v54 = vunpack.i.l.bf16 %v16083_v43  ;;  %v13197_v2 = vpack.c.bf16 %v1283_v36, %v1218_v34  ;;  %v15085_v43 = vld [vmem:[%s22548_s0 + $0x40] sm:$0xff] }
 0x13c   :  { %v22670_v26 = vunpack.i.h.bf16 %v16601_v27  ;;  %v14281_v17 = vunpack.i.l.bf16 %v16601_v27  ;;  %817 = vrot.lane.b32.xlu1 %v16334_v29, %s22746_s15  ;;  %v14286_v41 = vunpack.i.l.bf16 %v16591_v28 }
 0x13d   :  { %14464 = vrot.lane.b32.xlu0 %v16487_v20, %s22717_s22  ;;  %13148 = vmatprep.subr.bf16.mxu0 %v13147_v3  ;;  %v111_v3 = vsel %vm104_vm0, %v22791_v54, %v14112_v61 }
 0x13e   :  { %v16623_v32 = vsel %vm1274_vm14, %v14281_v17, %v22670_v26  ;;  %13150 = vmatpush1.bf16.msra.mxu0 %v22790_v52  ;;  %v16628_v33 = vpop.permute.xlu1 %285  ;;  %v1282_v46 = vsel %vm1274_vm14, %v14272_v55, %v14281_v17  ;;  %v13199_v0 = vpack.c.bf16 %v111_v3, %v15085_v43  ;;  %v14287_v17 = vunpack.i.h.bf16 %v16591_v28  ;;  %v22793_v43 = vld [vmem:[#allocation25_spill] sm:$0xff] }
 0x13f   :  { %v16638_v45 = vpop.permute.xlu0 %14289  ;;  %13152 = vmatprep.subr.bf16.mxu0 %v16222_v31  ;;  %v13195_v26 = vpack.c.bf16 %v1282_v46, %v1217_v22  ;;  %v16653_v31 = vld [vmem:[%s22548_s0 + $0x68] sm:$0xff]  ;;  %v110_v46 = vsel %vm104_vm0, %v14112_v61, %v14286_v41  ;;  %v22792_v61 = vunpack.i.h.bf16 %v16126_v14  ;;  %v306_v14 = vsel %vm299_vm4, %v16210_v40, %v16628_v33 }
 0x140   :  { %14469 = vrot.lane.b32.xlu1 %v16487_v20, %s22718_s25  ;;  %v16657_v55 = vpack.i.bf16 %v16329_v59, %v16653_v31  ;;  %v22672_v34 = vunpack.i.l.bf16 %v16638_v45 }
 0x141   :  { %882 = vrot.lane.b32.xlu0 %v16334_v29, %s22717_s22  ;;  %13196 = vmatprep.subr.bf16.mxu1 %v13195_v26 }
 0x142   :  { %13154 = vmatpush1.bf16.msra.mxu0 %v16122_v16  ;;  %13198 = vmatpush1.bf16.msra.mxu1 %v13197_v2  ;;  %v16660_v20 = vpop.permute.xlu1 %14299  ;;  %v108_v3 = vsel %vm104_vm0, %v14287_v17, %v22672_v34 }
 0x143   :  { %v14295_v26 = vpop.permute.xlu0 %14294  ;;  %13156 = vmatprep.subr.bf16.mxu0 %v16243_v4  ;;  %13200 = vmatprep.subr.bf16.mxu1 %v13199_v0  ;;  %v14301_v36 = vunpack.i.l.bf16 %v16660_v20  ;;  %v14302_v54 = vunpack.i.h.bf16 %v16660_v20  ;;  %v22794_v20 = vunpack.i.h.bf16 %v22793_v43 }
 0x144   :  { %947 = vrot.lane.b32.xlu1 %v16334_v29, %s22718_s25  ;;  %v14296_v52 = vunpack.i.l.bf16 %v14295_v26 }
 0x145   :  { %14474 = vrot.lane.b32.xlu0 %v16657_v55, %s22720_s23  ;;  %v240_v58 = vsel %vm234_vm3, %v22794_v20, %v14301_v36  ;;  %v109_v20 = vsel %vm104_vm0, %v14286_v41, %v14287_v17 }
 0x146   :  { %13158 = vmatpush1.bf16.msra.mxu0 %v16169_v25  ;;  %13202 = vmatpush1.bf16.msra.mxu1 %v16187_v57  ;;  %v16673_v16 = vpop.permute.xlu1 %14309  ;;  %v175_v2 = vsel %vm169_vm2, %v22792_v61, %v14296_v52  ;;  %v15087_v61 = vld [vmem:[%s22548_s0 + $0x48] sm:$0xff] }
 0x147   :  { %v22671_v4 = vunpack.i.h.bf16 %v16673_v16  ;;  %v14311_v28 = vunpack.i.l.bf16 %v16673_v16  ;;  %v16677_v22 = vpop.permute.xlu0 %14304  ;;  %1989 = vmatprep.subr.mxu0 %v16254_v8  ;;  %13204 = vmatprep.subr.bf16.mxu1 %v16177_v49  ;;  %v14297_v8 = vunpack.i.h.bf16 %v14295_v26  ;;  %v16717_v43 = vpack.c.bf16 %v110_v46, %v15087_v61  ;;  %v15088_v61 = vld [vmem:[%s22548_s0 + $0x58] sm:$0xff] }
 0x148   :  { %v22674_v25 = vunpack.i.h.bf16 %v16677_v22  ;;  %v14306_v57 = vunpack.i.l.bf16 %v16677_v22  ;;  %14479 = vrot.lane.b32.xlu1 %v16657_v55, %s22722_s24  ;;  %v16733_v46 = vpack.c.bf16 %v240_v58, %v175_v2  ;;  %v16738_v41 = vpack.c.bf16 %v108_v3, %v15088_v61 }
 0x149   :  { %1012 = vrot.lane.b32.xlu0 %v16334_v29, %s22720_s23  ;;  %v237_v24 = vsel %vm234_vm3, %v14311_v28, %v22671_v4  ;;  %v238_v17 = vsel %vm234_vm3, %v14302_v54, %v14311_v28  ;;  %s15119_s23 = smov 56  }
 0x14a   :  { %1990 = vmatpush1.msra.mxu0 %v16194_v15  ;;  %13206 = vmatpush1.bf16.msra.mxu1 %v16235_v6  ;;  %v16708_v26 = vpop.permute.xlu1 %14314  ;;  %v172_v15 = vsel %vm169_vm2, %v14306_v57, %v22674_v25  ;;  %v14142_v6 = vunpack.i.h.bf16 %v16241_v10  ;;  %v173_v2 = vsel %vm169_vm2, %v14297_v8, %v14306_v57  ;;  %v174_v57 = vsel %vm169_vm2, %v14296_v52, %v14297_v8 }
 0x14b   :  { %v14316_v4 = vunpack.i.l.bf16 %v16708_v26  ;;  %v288_v34 = vpop.permute.xlu0 %287  ;;  %2006 = vmatmul.mubr.f32.vlgmr.msra.gmra.mrb[2].mxu0 %v16132_v37  ;;  %2060 = vmatprep.subr.mxu1 %v306_v14  ;;  %v16728_v40 = vpack.c.bf16 %v237_v24, %v172_v15  ;;  %v239_v15 = vsel %vm234_vm3, %v14301_v36, %v14302_v54  ;;  %v22795_v36 = vunpack.i.l.bf16 %v16241_v10 }
 0x14c   :  { %13208 = vmatprep.subr.bf16.mxu0 %v16717_v43  ;;  %1077 = vrot.lane.b32.xlu1 %v16334_v29, %s22722_s24  ;;  %v16745_v24 = vsel %vm299_vm4, %v16628_v33, %v288_v34  ;;  %v15089_v33 = vld [vmem:[%s22548_s0 + $0x50] sm:$0xff]  ;;  %v16783_v54 = vpack.c.bf16 %v239_v15, %v174_v57  ;;  %s15125_s24 = smov 121  }
 0x14d   :  { %13210 = vmatpush1.bf16.msra.mxu0 %v13199_v0  ;;  %14484 = vrot.lane.b32.xlu0 %v16657_v55, %s15113_s26  ;;  %v370_v58 = vsel %vm364_vm5, %v14142_v6, %v14316_v4  ;;  %v16760_v0 = vpack.c.bf16 %v109_v20, %v15089_v33  ;;  %v16773_v20 = vpack.c.bf16 %v238_v17, %v173_v2  ;;  %v22796_v17 = vld [vmem:[#allocation26_spill] sm:$0xff] }
 0x14e   :  { %13212 = vmatprep.subr.bf16.mxu0 %v16733_v46  ;;  %2061 = vmatpush1.msra.mxu1 %v16262_v21  ;;  %v16755_v28 = vpop.permute.xlu1 %291  ;;  %v13215_v3 = vpack.c.bf16 %v370_v58, %v16745_v24  ;;  %v14317_v21 = vunpack.i.h.bf16 %v16708_v26 }
 0x14f   :  { %v290_v61 = vpop.permute.xlu0 %289  ;;  %2077 = vmatmul.mubr.f32.vlgmr.msra.gmra.mrb[2].mxu1 %v16132_v37  ;;  %13256 = vmatprep.subr.bf16.mxu1 %v16738_v41  ;;  %v371_v37 = vsel %vm364_vm5, %v22795_v36, %v14142_v6 }
 0x150   :  { %13258 = vmatpush1.bf16.msra.mxu1 %v16760_v0  ;;  %14489 = vrot.lane.b32.xlu1 %v16657_v55, %s15114_s27  ;;  %v13217_v8 = vpack.c.bf16 %v371_v37, %v306_v14  ;;  %v16796_v10 = vsel %vm299_vm4, %v290_v61, %v16755_v28  ;;  %v16800_v6 = vsel %vm299_vm4, %v288_v34, %v290_v61 }
 0x151   :  { %13214 = vmatpush1.bf16.msra.mxu0 %v16177_v49  ;;  %1142 = vrot.lane.b32.xlu0 %v16334_v29, %s15113_s26  ;;  %v369_v49 = vsel %vm364_vm5, %v14316_v4, %v14317_v21  ;;  %v1789_v4 = vld [vmem:[%s22550_s2] sm:$0xff] }
 0x152   :  { %13216 = vmatprep.subr.bf16.mxu0 %v13215_v3  ;;  %13260 = vmatprep.subr.bf16.mxu1 %v16773_v20  ;;  %v14325_v52 = vpop.permute.xlu1 %14324  ;;  %v13265_v33 = vpack.c.bf16 %v369_v49, %v16800_v6  ;;  %v22800_v49 = vld [vmem:[#allocation28_spill] sm:$0xff] }
 0x153   :  { %v16785_v26 = vpop.permute.xlu0 %14319  ;;  %10475 = vmatprep.mubr.msk.f32.mxu0 %vm1795_vm1, %v22796_v17  ;;  %10476 = vmatprep.mubr.msk.f32.mxu1 %vm1795_vm1, %v22796_v17  ;;  %v14326_v58 = vunpack.i.l.bf16 %v14325_v52  ;;  %v14327_v3 = vunpack.i.h.bf16 %v14325_v52 }
 0x154   :  { %v22673_v14 = vunpack.i.l.bf16 %v16785_v26  ;;  %13262 = vmatpush1.bf16.msra.mxu1 %v16783_v54  ;;  %1207 = vrot.lane.b32.xlu1 %v16334_v29, %s15114_s27 }
 0x155   :  { %13218 = vmatpush1.bf16.msra.mxu0 %v13217_v8  ;;  %14494 = vrot.lane.b32.xlu0 %v16657_v55, %s15115_s28 }
 0x156   :  { %v16811_v2 = vpop.permute.xlu1 %14334  ;;  %v368_v34 = vsel %vm364_vm5, %v14317_v21, %v22673_v14  ;;  %v22798_v21 = vld [vmem:[#allocation27_spill] sm:$0xff] }
 0x157   :  { %22797 = vst [vmem:[#allocation25_spill] sm:$0xff] %v16811_v2  ;;  %v14330_v15 = vpop.permute.xlu0 %14329  ;;  %v13263_v57 = vpack.c.bf16 %v368_v34, %v16796_v10  ;;  %v22675_v55 = vunpack.i.h.bf16 %v16811_v2  ;;  %v14336_v61 = vunpack.i.l.bf16 %v16811_v2  ;;  %v22799_v17 = vunpack.i.h.bf16 %v22798_v21 }
 0x158   :  { %v14332_v36 = vunpack.i.h.bf16 %v14330_v15  ;;  %v14331_v37 = vunpack.i.l.bf16 %v14330_v15  ;;  %1792 = vperm.xlu1 %14498, %v1789_v4   ;;  %v22801_v34 = vunpack.i.h.bf16 %v22800_v49  ;;  %v434_v15 = vsel %vm22680_vm6, %v14326_v58, %v14327_v3 }
 0x159   :  { %1272 = vrot.lane.b32.xlu0 %v16334_v29, %s15115_s28  ;;  %13264 = vmatprep.subr.bf16.mxu1 %v13263_v57  ;;  %v435_v52 = vsel %vm22680_vm6, %v22799_v17, %v14326_v58  ;;  %v16841_v57 = vsel %vm22680_vm6, %v14336_v61, %v22675_v55  ;;  %v433_v49 = vsel %vm22680_vm6, %v14327_v3, %v14336_v61 }
 0x15a   :  { %13266 = vmatpush1.bf16.msra.mxu1 %v13265_v33  ;;  %v14345_v8 = vpop.permute.xlu1 %14344  ;;  %v500_v14 = vsel %vm494_vm7, %v22801_v34, %v14331_v37  ;;  %v499_v4 = vsel %vm494_vm7, %v14331_v37, %v14332_v36  ;;  %v22802_v37 = vpack.c.bf16 %v16308_v44, %v16292_v56 }
 0x15b   :  { %v16835_v25 = vpop.permute.xlu0 %14339  ;;  %v13219_v33 = vpack.c.bf16 %v500_v14, %v435_v52  ;;  %v14347_v58 = vunpack.i.h.bf16 %v14345_v8  ;;  %v14346_v34 = vunpack.i.l.bf16 %v14345_v8  ;;  %v13269_v63 = vpack.c.bf16 %v499_v4, %v434_v15 }
 0x15c   :  { %v22676_v21 = vunpack.i.h.bf16 %v16835_v25  ;;  %v14341_v17 = vunpack.i.l.bf16 %v16835_v25 }
 0x15d   :  { %13220 = vmatprep.subr.bf16.mxu0 %v13219_v33  ;;  %v564_v2 = vsel %vm22679_vm8, %v14346_v34, %v14347_v58 }
 0x15e   :  { %v16851_v14 = vsel %vm494_vm7, %v14341_v17, %v22676_v21  ;;  %13222 = vmatpush1.bf16.msra.mxu0 %v22802_v37  ;;  %v16856_v52 = vpop.permute.xlu1 %14354  ;;  %v498_v55 = vsel %vm494_vm7, %v14332_v36, %v14341_v17  ;;  %v22804_v36 = vld [vmem:[#allocation29_spill] sm:$0xff] }
 0x15f   :  { %v22678_v3 = vunpack.i.l.bf16 %v16856_v52  ;;  %v14350_v61 = vpop.permute.xlu0 %14349  ;;  %v13267_v8 = vpack.c.bf16 %v498_v55, %v433_v49  ;;  %v22805_v15 = vunpack.i.h.bf16 %v22804_v36  ;;  %v22806_v55 = vld [vmem:[#allocation30_spill] sm:$0xff] }
 0x160   :  { %v14352_v7 = vunpack.i.h.bf16 %v14350_v61  ;;  %v14351_v21 = vunpack.i.l.bf16 %v14350_v61  ;;  %v22807_v17 = vunpack.i.h.bf16 %v22806_v55 }
 0x161   :  { %13268 = vmatprep.subr.bf16.mxu1 %v13267_v8  ;;  %v565_v4 = vsel %vm22679_vm8, %v22805_v15, %v14346_v34  ;;  %v563_v37 = vsel %vm22679_vm8, %v14347_v58, %v22678_v3 }
 0x162   :  { %v629_v56 = vsel %vm22803_vm10, %v14351_v21, %v14352_v7  ;;  %13270 = vmatpush1.bf16.msra.mxu1 %v13269_v63  ;;  %v14360_v44 = vpop.permute.xlu1 %14359  ;;  %v630_v49 = vsel %vm22808_vm9, %v22807_v17, %v14351_v21  ;;  %v22810_v21 = vpack.c.bf16 %v16371_v19, %v16351_v39  ;;  %vm22811_vm10 = vcmp.lt.s32.totalorder %v15350_v12, 64 }
 0x163   :  { %v16879_v61 = vpop.permute.xlu0 %616  ;;  %v13223_v8 = vpack.c.bf16 %v630_v49, %v565_v4  ;;  %v13273_v36 = vpack.c.bf16 %v629_v56, %v564_v2  ;;  %v14362_v33 = vunpack.i.h.bf16 %v14360_v44  ;;  %v14361_v15 = vunpack.i.l.bf16 %v14360_v44  ;;  %vm22812_vm9 = vmmov %vm22811_vm10 }
 0x164   :  { %v628_v63 = vsel %vm22809_vm11, %v14352_v7, %v16879_v61  ;;  %vm22813_vm11 = vcmp.lt.s32.totalorder %v15350_v12, 63  ;;  %v22814_v39 = vunpack.i.h.bf16 %v16376_v11  ;;  %vm22815_vm8 = vmmov %vm22812_vm9  ;;  %v22816_v44 = vunpack.i.h.bf16 %v16398_v62 }
 0x165   :  { %13224 = vmatprep.subr.bf16.mxu0 %v13223_v8  ;;  %v13271_v34 = vpack.c.bf16 %v628_v63, %v563_v37  ;;  %v694_v4 = vsel %vm22811_vm10, %v14361_v15, %v14362_v33  ;;  %vm22817_vm6 = vmmov %vm22813_vm11 }
 0x166   :  { %13226 = vmatpush1.bf16.msra.mxu0 %v22810_v21  ;;  %v16887_v55 = vpop.permute.xlu1 %681  ;;  %v695_v19 = vsel %vm22815_vm8, %v22814_v39, %v14361_v15  ;;  %vm22818_vm10 = vmmov %vm22817_vm6  ;;  %v22819_v15 = vpack.c.bf16 %v16420_v53, %v16404_v13  ;;  %v22823_v13 = vunpack.i.h.bf16 %v16425_v35 }
 0x167   :  { %v14365_v17 = vpop.permute.xlu0 %14364  ;;  %13272 = vmatprep.subr.bf16.mxu1 %v13271_v34  ;;  %v693_v7 = vsel %vm22812_vm9, %v14362_v33, %v16887_v55  ;;  %vm22822_vm9 = vcmp.lt.s32.totalorder %v15350_v12, 61 }
 0x168   :  { %v14367_v58 = vunpack.i.h.bf16 %v14365_v17  ;;  %v14366_v3 = vunpack.i.l.bf16 %v14365_v17  ;;  %13274 = vmatpush1.bf16.msra.mxu1 %v13273_v36 }
 0x16a   :  { %v759_v2 = vsel %vm22813_vm11, %v14366_v3, %v14367_v58  ;;  %v14370_v56 = vpop.permute.xlu1 %14369  ;;  %v760_v49 = vsel %vm22817_vm6, %v22816_v44, %v14366_v3  ;;  %vm22820_vm6 = vcmp.lt.s32.totalorder %v15350_v12, 62 }
 0x16b   :  { %v16904_v37 = vpop.permute.xlu0 %746  ;;  %v13227_v8 = vpack.c.bf16 %v760_v49, %v695_v19  ;;  %v13277_v63 = vpack.c.bf16 %v759_v2, %v694_v4  ;;  %v14372_v36 = vunpack.i.h.bf16 %v14370_v56  ;;  %v14371_v11 = vunpack.i.l.bf16 %v14370_v56  ;;  %vm22821_vm8 = vmmov %vm22820_vm6 }
 0x16c   :  { %v758_v33 = vsel %vm22818_vm10, %v14367_v58, %v16904_v37  ;;  %vm22824_vm11 = vmmov %vm22820_vm6  ;;  %v22825_v2 = vunpack.i.h.bf16 %v16447_v5 }
 0x16d   :  { %13228 = vmatprep.subr.bf16.mxu0 %v13227_v8  ;;  %v13275_v34 = vpack.c.bf16 %v758_v33, %v693_v7  ;;  %v824_v39 = vsel %vm22820_vm6, %v14371_v11, %v14372_v36  ;;  %v825_v53 = vsel %vm22824_vm11, %v22823_v13, %v14371_v11  ;;  %vm22826_vm10 = vmmov %vm22822_vm9  ;;  %vm22831_vm11 = vcmp.lt.s32.totalorder %v15350_v12, 32 }
 0x16e   :  { %13230 = vmatpush1.bf16.msra.mxu0 %v22819_v15  ;;  %v16912_v62 = vpop.permute.xlu1 %811  ;;  %vm22827_vm6 = vmmov %vm22822_vm9 }
 0x16f   :  { %v14375_v21 = vpop.permute.xlu0 %14374  ;;  %13276 = vmatprep.subr.bf16.mxu1 %v13275_v34  ;;  %v823_v58 = vsel %vm22821_vm8, %v14372_v36, %v16912_v62  ;;  %v22828_v36 = vpack.c.bf16 %v16469_v48, %v16453_v60  ;;  %vm22829_vm8 = vcmp.lt.s32.totalorder %v15350_v12, 60  ;;  %v22832_v60 = vunpack.i.h.bf16 %v16474_v38 }
 0x170   :  { %v14377_v3 = vunpack.i.h.bf16 %v14375_v21  ;;  %v14376_v17 = vunpack.i.l.bf16 %v14375_v21  ;;  %13278 = vmatpush1.bf16.msra.mxu1 %v13277_v63 }
 0x172   :  { %v889_v4 = vsel %vm22822_vm9, %v14376_v17, %v14377_v3  ;;  %v14380_v7 = vpop.permute.xlu1 %14379  ;;  %v890_v56 = vsel %vm22826_vm10, %v22825_v2, %v14376_v17  ;;  %vm22830_vm9 = vmmov %vm22829_vm8 }
 0x173   :  { %v16929_v19 = vpop.permute.xlu0 %876  ;;  %v13231_v44 = vpack.c.bf16 %v890_v56, %v825_v53  ;;  %v13281_v8 = vpack.c.bf16 %v889_v4, %v824_v39  ;;  %v14382_v33 = vunpack.i.h.bf16 %v14380_v7  ;;  %v14381_v35 = vunpack.i.l.bf16 %v14380_v7  ;;  %vm22833_vm10 = vmmov %vm22829_vm8 }
 0x174   :  { %v888_v49 = vsel %vm22827_vm6, %v14377_v3, %v16929_v19  ;;  %vm22835_vm6 = vmmov %vm22831_vm11 }
 0x175   :  { %13232 = vmatprep.subr.bf16.mxu0 %v13231_v44  ;;  %v13279_v63 = vpack.c.bf16 %v888_v49, %v823_v58  ;;  %v954_v21 = vsel %vm22829_vm8, %v14381_v35, %v14382_v33  ;;  %v955_v48 = vsel %vm22833_vm10, %v22832_v60, %v14381_v35  ;;  %v22834_v58 = vunpack.i.h.bf16 %v16500_v18  ;;  %vm22836_vm8 = vmmov %vm22835_vm6 }
 0x176   :  { %13234 = vmatpush1.bf16.msra.mxu0 %v22828_v36  ;;  %v16937_v5 = vpop.permute.xlu1 %941  ;;  %v22837_v49 = vpack.c.bf16 %v16522_v30, %v16506_v51  ;;  %v22838_v51 = vunpack.i.h.bf16 %v16527_v9  ;;  %vm22867_vm10 = vcmp.lt.s32.totalorder %v15350_v12, 92 }
 0x177   :  { %v14385_v34 = vpop.permute.xlu0 %14384  ;;  %13280 = vmatprep.subr.bf16.mxu1 %v13279_v63  ;;  %v953_v3 = vsel %vm22830_vm9, %v14382_v33, %v16937_v5 }
 0x178   :  { %v14387_v11 = vunpack.i.h.bf16 %v14385_v34  ;;  %v14386_v15 = vunpack.i.l.bf16 %v14385_v34  ;;  %13282 = vmatpush1.bf16.msra.mxu1 %v13281_v8 }
 0x17a   :  { %v1019_v17 = vsel %vm22831_vm11, %v14386_v15, %v14387_v11  ;;  %v14390_v39 = vpop.permute.xlu1 %14389  ;;  %v1020_v4 = vsel %vm22835_vm6, %v22834_v58, %v14386_v15  ;;  %v22839_v15 = vunpack.i.h.bf16 %v16549_v42  ;;  %vm22866_vm11 = vcmp.lt.s32.totalorder %v15350_v12, 93 }
 0x17b   :  { %v16954_v7 = vpop.permute.xlu0 %1006  ;;  %v13235_v13 = vpack.c.bf16 %v1020_v4, %v955_v48  ;;  %v13285_v2 = vpack.c.bf16 %v1019_v17, %v954_v21  ;;  %v14392_v56 = vunpack.i.h.bf16 %v14390_v39  ;;  %v14391_v38 = vunpack.i.l.bf16 %v14390_v39 }
 0x17c   :  { %v1018_v53 = vsel %vm22836_vm8, %v14387_v11, %v16954_v7  ;;  %v22840_v4 = vpack.c.bf16 %v16571_v47, %v16555_v50  ;;  %vm22869_vm8 = vmmov %vm22867_vm10 }
 0x17d   :  { %13236 = vmatprep.subr.bf16.mxu0 %v13235_v13  ;;  %v13283_v44 = vpack.c.bf16 %v1018_v53, %v953_v3  ;;  %v1084_v35 = vsel %vm1079_vm13, %v14391_v38, %v14392_v56  ;;  %v1085_v30 = vsel %vm1079_vm13, %v22838_v51, %v14391_v38  ;;  %v14292_v53 = vunpack.i.h.bf16 %v16638_v45 }
 0x17e   :  { %13238 = vmatpush1.bf16.msra.mxu0 %v22837_v49  ;;  %v16962_v18 = vpop.permute.xlu1 %1071  ;;  %v22841_v49 = vunpack.i.h.bf16 %v16576_v23  ;;  %v22843_v51 = vunpack.i.l.bf16 %v16638_v45 }
 0x17f   :  { %v14395_v8 = vpop.permute.xlu0 %14394  ;;  %13284 = vmatprep.subr.bf16.mxu1 %v13283_v44  ;;  %v1083_v36 = vsel %vm1079_vm13, %v14392_v56, %v16962_v18 }
 0x180   :  { %v14397_v33 = vunpack.i.h.bf16 %v14395_v8  ;;  %v14396_v63 = vunpack.i.l.bf16 %v14395_v8  ;;  %13286 = vmatpush1.bf16.msra.mxu1 %v13285_v2  ;;  %v107_v23 = vsel %vm104_vm0, %v22843_v51, %v14292_v53 }
 0x182   :  { %v1149_v34 = vsel %vm1144_vm12, %v14396_v63, %v14397_v33  ;;  %v14400_v11 = vpop.permute.xlu1 %14399  ;;  %v1150_v21 = vsel %vm1144_vm12, %v22839_v15, %v14396_v63 }
 0x183   :  { %v16979_v3 = vpop.permute.xlu0 %1136  ;;  %v13239_v17 = vpack.c.bf16 %v1150_v21, %v1085_v30  ;;  %v13289_v60 = vpack.c.bf16 %v1149_v34, %v1084_v35  ;;  %v14402_v48 = vunpack.i.h.bf16 %v14400_v11  ;;  %v14401_v9 = vunpack.i.l.bf16 %v14400_v11 }
 0x184   :  { %v1148_v39 = vsel %vm1144_vm12, %v14397_v33, %v16979_v3  ;;  %v22842_v33 = vunpack.i.h.bf16 %v16601_v27  ;;  %v22844_v27 = vpack.c.bf16 %v16623_v32, %v16607_v1 }
 0x185   :  { %13240 = vmatprep.subr.bf16.mxu0 %v13239_v17  ;;  %v13287_v58 = vpack.c.bf16 %v1148_v39, %v1083_v36  ;;  %v1214_v44 = vsel %vm1209_vm15, %v14401_v9, %v14402_v48  ;;  %v1215_v8 = vsel %vm1209_vm15, %v22841_v49, %v14401_v9  ;;  %v15090_v17 = vld [vmem:[%s22548_s0 + $0x60] sm:$0xff]  ;;  %s15127_s0 = smov 117  }
 0x186   :  { %13242 = vmatpush1.bf16.msra.mxu0 %v22840_v4  ;;  %v16987_v42 = vpop.permute.xlu1 %1201  ;;  %v13295_v39 = vpack.c.bf16 %v107_v23, %v15090_v17 }
 0x187   :  { %v14405_v13 = vpop.permute.xlu0 %14404  ;;  %13288 = vmatprep.subr.bf16.mxu1 %v13287_v58  ;;  %v1213_v38 = vsel %vm1209_vm15, %v14402_v48, %v16987_v42 }
 0x188   :  { %v14407_v2 = vunpack.i.h.bf16 %v14405_v13  ;;  %v14406_v56 = vunpack.i.l.bf16 %v14405_v13  ;;  %13290 = vmatpush1.bf16.msra.mxu1 %v13289_v60 }
 0x18a   :  { %v1279_v50 = vsel %vm1274_vm14, %v14406_v56, %v14407_v2  ;;  %v14410_v47 = vpop.permute.xlu1 %14409  ;;  %v1280_v63 = vsel %vm1274_vm14, %v22842_v33, %v14406_v56  ;;  %v22849_v33 = vld [vmem:[#allocation6_spill] sm:$0xff] }
 0x18b   :  { %v17005_v35 = vpop.permute.xlu0 %1266  ;;  %v13243_v36 = vpack.c.bf16 %v1280_v63, %v1215_v8  ;;  %v13293_v11 = vpack.c.bf16 %v1279_v50, %v1214_v44  ;;  %v14411_v45 = vunpack.i.l.bf16 %v14410_v47  ;;  %v14412_v32 = vunpack.i.h.bf16 %v14410_v47  ;;  %v17067_v8 = vld [vmem:[%s22549_s1] sm:$0xff] }
 0x18c   :  { %v1278_v34 = vsel %vm1274_vm14, %v14407_v2, %v17005_v35  ;;  %v14322_v44 = vunpack.i.h.bf16 %v16785_v26  ;;  %v22848_v50 = vunpack.i.h.bf16 %v16677_v22  ;;  %v22850_v22 = vunpack.i.l.bf16 %v22849_v33 }
 0x18d   :  { %13244 = vmatprep.subr.bf16.mxu0 %v13243_v36  ;;  %v13291_v30 = vpack.c.bf16 %v1278_v34, %v1213_v38  ;;  %v106_v9 = vsel %vm104_vm0, %v14292_v53, %v14411_v45  ;;  %v105_v53 = vsel %vm104_vm0, %v14411_v45, %v14412_v32 }
 0x18e   :  { %13246 = vmatpush1.bf16.msra.mxu0 %v22844_v27  ;;  %v14415_v15 = vpop.permute.xlu1 %14414 }
 0x18f   :  { %v294_v21 = vpop.permute.xlu0 %293  ;;  %13248 = vmatprep.subr.bf16.mxu0 %v16760_v0  ;;  %13292 = vmatprep.subr.bf16.mxu1 %v13291_v30  ;;  %v14416_v0 = vunpack.i.l.bf16 %v14415_v15  ;;  %v14417_v2 = vunpack.i.h.bf16 %v14415_v15 }
 0x190   :  { %13294 = vmatpush1.bf16.msra.mxu1 %v13293_v11  ;;  %v17083_v11 = vpack.c.bf16 %v105_v53, %v16329_v59 }
 0x191   :  { %13296 = vmatprep.subr.bf16.mxu1 %v13295_v39  ;;  %v171_v47 = vsel %vm169_vm2, %v22848_v50, %v14416_v0  ;;  %v170_v23 = vsel %vm169_vm2, %v14416_v0, %v14417_v2  ;;  %v22860_v50 = vunpack.i.l.bf16 %v16785_v26 }
 0x192   :  { %13250 = vmatpush1.bf16.msra.mxu0 %v16717_v43  ;;  %v17022_v60 = vpop.permute.xlu1 %295 }
 0x193   :  { %v14420_v48 = vpop.permute.xlu0 %14419  ;;  %13252 = vmatprep.subr.bf16.mxu0 %v16783_v54  ;;  %v22845_v54 = vunpack.i.h.bf16 %v16673_v16  ;;  %v17092_v30 = vsel %vm299_vm4, %v294_v21, %v17022_v60 }
 0x194   :  { %v14421_v1 = vunpack.i.l.bf16 %v14420_v48  ;;  %13298 = vmatpush1.bf16.msra.mxu1 %v16738_v41  ;;  %v14422_v43 = vunpack.i.h.bf16 %v14420_v48  ;;  %v17037_v41 = vsel %vm299_vm4, %v16755_v28, %v294_v21  ;;  %v22853_v21 = vld [vmem:[#allocation9_spill] sm:$0xff]  ;;  %v15092_v48 = vld [vmem:[%s22549_s1 + $0x8] sm:$0xff]  ;;  %s15117_s1 = smov 120  }
 0x195   :  { %13300 = vmatprep.subr.bf16.mxu1 %v16728_v40 }
 0x196   :  { %13254 = vmatpush1.bf16.msra.mxu0 %v16733_v46  ;;  %v17028_v58 = vpop.permute.xlu1 %297  ;;  %v236_v46 = vsel %vm234_vm3, %v22845_v54, %v14421_v1  ;;  %v250_v63 = vsel %vm234_vm3, %v14422_v43, %v22850_v22  ;;  %v235_v27 = vsel %vm234_vm3, %v14421_v1, %v14422_v43  ;;  %v22855_v43 = vunpack.i.h.bf16 %v16835_v25 }
 0x197   :  { %v14425_v4 = vpop.permute.xlu0 %14424  ;;  %2131 = vmatprep.subr.mxu0 %v16800_v6  ;;  %v17047_v6 = vpack.c.bf16 %v106_v9, %v16653_v31  ;;  %vm22858_vm3 = vcmp.lt.s32.totalorder %v15350_v12, 95  ;;  %v14357_v25 = vunpack.i.h.bf16 %v16856_v52 }
 0x198   :  { %v14426_v13 = vunpack.i.l.bf16 %v14425_v4  ;;  %13302 = vmatpush1.bf16.msra.mxu1 %v16773_v20  ;;  %v22846_v20 = vld [vmem:[#allocation3_spill] sm:$0xff]  ;;  %v14427_v16 = vunpack.i.h.bf16 %v14425_v4  ;;  %vm22863_vm9 = vmmov %vm22858_vm3 }
 0x199   :  { %2202 = vmatprep.subr.mxu1 %v17037_v41  ;;  %v22847_v56 = vunpack.i.l.bf16 %v22846_v20  ;;  %vm22868_vm6 = vmmov %vm22858_vm3 }
 0x19a   :  { %2132 = vmatpush1.msra.mxu0 %v16745_v24  ;;  %v17055_v38 = vpop.permute.xlu1 %14434  ;;  %v17071_v24 = vpack.c.bf16 %v236_v46, %v171_v47  ;;  %v366_v51 = vsel %vm364_vm5, %v14322_v44, %v14426_v13  ;;  %v367_v47 = vsel %vm364_vm5, %v22860_v50, %v14322_v44  ;;  %v365_v33 = vsel %vm364_vm5, %v14426_v13, %v14427_v16 }
 0x19b   :  { %v120_v28 = vsel %vm104_vm0, %v14412_v32, %v22847_v56  ;;  %v14436_v31 = vunpack.i.l.bf16 %v17055_v38  ;;  %v17062_v49 = vpop.permute.xlu0 %14429  ;;  %2148 = vmatmul.mubr.f32.vlgmr.msra.gmra.mrb[4].mxu0 %v17067_v8  ;;  %13304 = vmatprep.subr.bf16.mxu0 %v17047_v6  ;;  %v14437_v32 = vunpack.i.h.bf16 %v17055_v38  ;;  %v13311_v9 = vpack.c.bf16 %v366_v51, %v17092_v30 }
 0x19c   :  { %v14431_v36 = vunpack.i.l.bf16 %v17062_v49  ;;  %2203 = vmatpush1.msra.mxu1 %v16796_v10  ;;  %13306 = vmatpush1.bf16.msra.mxu0 %v13295_v39  ;;  %v17080_v34 = vpack.c.bf16 %v120_v28, %v16334_v29  ;;  %v22851_v29 = vld [vmem:[#allocation4_spill] sm:$0xff]  ;;  %v22854_v39 = vunpack.i.l.bf16 %v22853_v21  ;;  %v14432_v1 = vunpack.i.h.bf16 %v17062_v49 }
 0x19d   :  { %2219 = vmatmul.mubr.f32.vlgmr.msra.gmra.mrb[4].mxu1 %v17067_v8  ;;  %13308 = vmatprep.subr.bf16.mxu0 %v17071_v24  ;;  %v22852_v10 = vunpack.i.l.bf16 %v22851_v29  ;;  %v496_v4 = vsel %vm494_vm7, %v22855_v43, %v14436_v31  ;;  %v22859_v28 = vld [vmem:[#allocation8_spill] sm:$0xff]  ;;  %v17149_v49 = vsel %vm299_vm4, %v17022_v60, %v17028_v58  ;;  %v13313_v22 = vpack.c.bf16 %v367_v47, %v17037_v41  ;;  %v22878_v47 = vld [vmem:[#allocation13_spill] sm:$0xff] }
 0x19e   :  { %13352 = vmatprep.subr.bf16.mxu1 %v17080_v34  ;;  %v17103_v15 = vpop.permute.xlu1 %14444  ;;  %v380_v45 = vsel %vm364_vm5, %v14427_v16, %v22854_v39  ;;  %10477 = vmatprep.mubr.msk.f32.mxu0 %vm1795_vm1, %v15092_v48  ;;  %v17137_v38 = vsel %vm299_vm4, %v17028_v58, %v22859_v28  ;;  %v495_v21 = vsel %vm494_vm7, %v14436_v31, %v14437_v32 }
 0x19f   :  { %v185_v59 = vsel %vm169_vm2, %v14417_v2, %v22852_v10  ;;  %13354 = vmatpush1.bf16.msra.mxu1 %v17083_v11  ;;  %v14440_v0 = vpop.permute.xlu0 %14439  ;;  %10478 = vmatprep.mubr.msk.f32.mxu1 %vm1795_vm1, %v15092_v48  ;;  %v14447_v54 = vunpack.i.h.bf16 %v17103_v15  ;;  %v14446_v46 = vunpack.i.l.bf16 %v17103_v15  ;;  %v22856_v2 = vld [vmem:[#allocation25_spill] sm:$0xff]  ;;  %v13359_v26 = vpack.c.bf16 %v380_v45, %v17137_v38 }
 0x1a0   :  { %v17105_v17 = vpack.c.bf16 %v250_v63, %v185_v59  ;;  %v14441_v53 = vunpack.i.l.bf16 %v14440_v0  ;;  %13310 = vmatpush1.bf16.msra.mxu0 %v16728_v40  ;;  %v22857_v20 = vunpack.i.h.bf16 %v22856_v2  ;;  %v17143_v40 = vpack.c.bf16 %v235_v27, %v170_v23  ;;  %v22861_v23 = vld [vmem:[#allocation11_spill] sm:$0xff]  ;;  %v22864_v59 = vld [vmem:[#allocation12_spill] sm:$0xff] }
 0x1a1   :  { %13312 = vmatprep.subr.bf16.mxu0 %v13311_v9  ;;  %v22862_v29 = vunpack.i.l.bf16 %v22861_v23  ;;  %v22865_v60 = vunpack.i.l.bf16 %v22864_v59  ;;  %v626_v16 = vsel %vm22867_vm10, %v14446_v46, %v14447_v54  ;;  %v14442_v27 = vunpack.i.h.bf16 %v14440_v0 }
 0x1a2   :  { %13356 = vmatprep.subr.bf16.mxu1 %v17105_v17  ;;  %v431_v56 = vsel %vm22858_vm3, %v22857_v20, %v14431_v36  ;;  %v14450_v63 = vpop.permute.xlu1 %14449  ;;  %v561_v41 = vsel %vm22866_vm11, %v14357_v25, %v14441_v53  ;;  %v13361_v15 = vpack.c.bf16 %v365_v33, %v17149_v49  ;;  %v430_v39 = vsel %vm22868_vm6, %v14431_v36, %v14432_v1  ;;  %vm22872_vm3 = vmmov %vm22869_vm8 }
 0x1a3   :  { %13358 = vmatpush1.bf16.msra.mxu1 %v17143_v40  ;;  %v623_v44 = vpop.permute.xlu0 %622  ;;  %v13315_v51 = vpack.c.bf16 %v496_v4, %v431_v56  ;;  %v445_v10 = vsel %vm22863_vm9, %v14432_v1, %v22862_v29  ;;  %v510_v58 = vsel %vm494_vm7, %v14437_v32, %v22865_v60  ;;  %v14452_v13 = vunpack.i.h.bf16 %v14450_v63  ;;  %v22870_v4 = vld [vmem:[#allocation14_spill] sm:$0xff]  ;;  %vm22876_vm9 = vmmov %vm22866_vm11  ;;  %v22885_v29 = vld [vmem:[#allocation15_spill] sm:$0xff] }
 0x1a4   :  { %13360 = vmatprep.subr.bf16.mxu1 %v13359_v26  ;;  %13314 = vmatpush1.bf16.msra.mxu0 %v13313_v22  ;;  %v14451_v45 = vunpack.i.l.bf16 %v14450_v63  ;;  %v13363_v9 = vpack.c.bf16 %v510_v58, %v445_v10  ;;  %v627_v43 = vsel %vm22869_vm8, %v16879_v61, %v14446_v46  ;;  %v22871_v2 = vunpack.i.l.bf16 %v22870_v4  ;;  %vm22877_vm11 = vmmov %vm22876_vm9  ;;  %v22889_v60 = vld [vmem:[#allocation16_spill] sm:$0xff] }
 0x1a5   :  { %13316 = vmatprep.subr.bf16.mxu0 %v13315_v51  ;;  %v13319_v56 = vpack.c.bf16 %v626_v16, %v561_v41  ;;  %v22873_v36 = vpack.c.bf16 %v16851_v14, %v16841_v57  ;;  %vm22874_vm7 = vcmp.lt.s32.totalorder %v15350_v12, 64  ;;  %v22875_v61 = vunpack.i.l.bf16 %v16856_v52  ;;  %vm22880_vm10 = vmmov %vm22876_vm9 }
 0x1a6   :  { %v688_v48 = vpop.permute.xlu1 %687  ;;  %v640_v0 = vsel %vm22872_vm3, %v623_v44, %v22871_v2  ;;  %v691_v32 = vsel %vm22874_vm7, %v14451_v45, %v14452_v13  ;;  %v560_v46 = vsel %vm22877_vm11, %v14441_v53, %v14442_v27  ;;  %v13365_v50 = vpack.c.bf16 %v495_v21, %v430_v39  ;;  %vm22881_vm6 = vmmov %vm22872_vm3 }
 0x1a7   :  { %13362 = vmatpush1.bf16.msra.mxu1 %v13361_v15  ;;  %v14455_v20 = vpop.permute.xlu0 %14454  ;;  %v562_v1 = vsel %vm22876_vm9, %v22875_v61, %v14357_v25  ;;  %v22879_v33 = vunpack.i.l.bf16 %v22878_v47  ;;  %v625_v57 = vsel %vm22881_vm6, %v14447_v54, %v623_v44  ;;  %vm22882_vm8 = vcmp.lt.s32.totalorder %v15350_v12, 63  ;;  %vm22883_vm3 = vmmov %vm22874_vm7 }
 0x1a8   :  { %v14457_v28 = vunpack.i.h.bf16 %v14455_v20  ;;  %v14456_v31 = vunpack.i.l.bf16 %v14455_v20  ;;  %13364 = vmatprep.subr.bf16.mxu1 %v13363_v9  ;;  %13318 = vmatpush1.bf16.msra.mxu0 %v22873_v36  ;;  %v13321_v26 = vpack.c.bf16 %v627_v43, %v562_v1  ;;  %v690_v25 = vsel %vm22883_vm3, %v14452_v13, %v688_v48  ;;  %vm22884_vm7 = vmmov %vm22882_vm8  ;;  %v22898_v36 = vld [vmem:[#allocation17_spill] sm:$0xff] }
 0x1a9   :  { %13320 = vmatprep.subr.bf16.mxu0 %v13319_v56  ;;  %v575_v22 = vsel %vm22880_vm10, %v14442_v27, %v22879_v33  ;;  %v22886_v10 = vunpack.i.l.bf16 %v22885_v29  ;;  %vm22887_vm9 = vmmov %vm22883_vm3  ;;  %v22890_v58 = vunpack.i.l.bf16 %v22889_v60  ;;  %v13369_v41 = vpack.c.bf16 %v625_v57, %v560_v46  ;;  %v22902_v46 = vld [vmem:[#allocation18_spill] sm:$0xff] }
 0x1aa   :  { %v14460_v14 = vpop.permute.xlu1 %14459  ;;  %v13367_v63 = vpack.c.bf16 %v640_v0, %v575_v22  ;;  %v756_v52 = vsel %vm22882_vm8, %v14456_v31, %v14457_v28  ;;  %v757_v53 = vsel %vm22884_vm7, %v16904_v37, %v14456_v31  ;;  %vm22888_vm11 = vmmov %vm22884_vm7  ;;  %vm22893_vm8 = vcmp.lt.s32.totalorder %v15350_v12, 62 }
 0x1ab   :  { %13366 = vmatpush1.bf16.msra.mxu1 %v13365_v50  ;;  %v753_v51 = vpop.permute.xlu0 %752  ;;  %v13323_v23 = vpack.c.bf16 %v756_v52, %v691_v32  ;;  %v705_v54 = vsel %vm22887_vm9, %v688_v48, %v22886_v10  ;;  %v14462_v44 = vunpack.i.h.bf16 %v14460_v14  ;;  %vm22891_vm10 = vmmov %vm22884_vm7  ;;  %v14461_v27 = vunpack.i.l.bf16 %v14460_v14 }
 0x1ac   :  { %v755_v59 = vsel %vm22888_vm11, %v14457_v28, %v753_v51  ;;  %v770_v13 = vsel %vm22891_vm10, %v753_v51, %v22890_v58  ;;  %13368 = vmatprep.subr.bf16.mxu1 %v13367_v63  ;;  %13322 = vmatpush1.bf16.msra.mxu0 %v13321_v26  ;;  %vm22892_vm6 = vmmov %vm22883_vm3  ;;  %vm22896_vm9 = vcmp.lt.s32.totalorder %v15350_v12, 61  ;;  %v22899_v32 = vunpack.i.l.bf16 %v22898_v36 }
 0x1ad   :  { %v692_v37 = vsel %vm22892_vm6, %v16887_v55, %v14451_v45  ;;  %13324 = vmatprep.subr.bf16.mxu0 %v13323_v23  ;;  %v13371_v16 = vpack.c.bf16 %v770_v13, %v705_v54  ;;  %v13373_v39 = vpack.c.bf16 %v755_v59, %v690_v25  ;;  %v821_v4 = vsel %vm22893_vm8, %v14461_v27, %v14462_v44  ;;  %vm22894_vm3 = vmmov %vm22893_vm8  ;;  %v22910_v59 = vld [vmem:[#allocation19_spill] sm:$0xff] }
 0x1ae   :  { %v818_v15 = vpop.permute.xlu1 %817  ;;  %v13325_v21 = vpack.c.bf16 %v757_v53, %v692_v37  ;;  %v822_v55 = vsel %vm22894_vm3, %v16912_v62, %v14461_v27  ;;  %vm22895_vm7 = vmmov %vm22894_vm3  ;;  %v22903_v50 = vunpack.i.l.bf16 %v22902_v46  ;;  %v22911_v60 = vunpack.i.l.bf16 %v22910_v59  ;;  %v22914_v37 = vld [vmem:[#allocation20_spill] sm:$0xff] }
 0x1af   :  { %13370 = vmatpush1.bf16.msra.mxu1 %v13369_v41  ;;  %v14465_v48 = vpop.permute.xlu0 %14464  ;;  %v820_v45 = vsel %vm22895_vm7, %v14462_v44, %v818_v15  ;;  %vm22897_vm11 = vmmov %vm22896_vm9  ;;  %v22915_v41 = vunpack.i.l.bf16 %v22914_v37  ;;  %v22925_v37 = vld [vmem:[#allocation5_spill] sm:$0xff] }
 0x1b0   :  { %v14467_v9 = vunpack.i.h.bf16 %v14465_v48  ;;  %v14466_v43 = vunpack.i.l.bf16 %v14465_v48  ;;  %13372 = vmatprep.subr.bf16.mxu1 %v13371_v16  ;;  %13326 = vmatpush1.bf16.msra.mxu0 %v13325_v21  ;;  %vm22900_vm10 = vmmov %vm22894_vm3  ;;  %vm22905_vm3 = vcmp.lt.s32.totalorder %v15350_v12, 60 }
 0x1b1   :  { %v835_v62 = vsel %vm22900_vm10, %v818_v15, %v22899_v32  ;;  %vm22901_vm6 = vmmov %vm22896_vm9 }
 0x1b2   :  { %v887_v2 = vsel %vm22896_vm9, %v16929_v19, %v14466_v43  ;;  %v14470_v0 = vpop.permute.xlu1 %14469  ;;  %v886_v20 = vsel %vm22897_vm11, %v14466_v43, %v14467_v9  ;;  %vm22904_vm8 = vmmov %vm22901_vm6  ;;  %vm22908_vm11 = vcmp.lt.s32.totalorder %v15350_v12, 32 }
 0x1b3   :  { %13374 = vmatpush1.bf16.msra.mxu1 %v13373_v39  ;;  %v883_v56 = vpop.permute.xlu0 %882  ;;  %v13327_v28 = vpack.c.bf16 %v886_v20, %v821_v4  ;;  %v13329_v31 = vpack.c.bf16 %v887_v2, %v822_v55  ;;  %v14472_v61 = vunpack.i.h.bf16 %v14470_v0  ;;  %v14471_v22 = vunpack.i.l.bf16 %v14470_v0  ;;  %vm22906_vm7 = vmmov %vm22905_vm3 }
 0x1b4   :  { %v885_v1 = vsel %vm22901_vm6, %v14467_v9, %v883_v56  ;;  %v900_v19 = vsel %vm22904_vm8, %v883_v56, %v22903_v50  ;;  %vm22907_vm9 = vmmov %vm22905_vm3 }
 0x1b5   :  { %v13377_v47 = vpack.c.bf16 %v885_v1, %v820_v45  ;;  %13328 = vmatprep.subr.bf16.mxu0 %v13327_v28  ;;  %v13375_v33 = vpack.c.bf16 %v900_v19, %v835_v62  ;;  %v951_v52 = vsel %vm22905_vm3, %v14471_v22, %v14472_v61  ;;  %v952_v25 = vsel %vm22906_vm7, %v16937_v5, %v14471_v22  ;;  %vm22909_vm10 = vmmov %vm22908_vm11 }
 0x1b6   :  { %13330 = vmatpush1.bf16.msra.mxu0 %v13329_v31  ;;  %v948_v57 = vpop.permute.xlu1 %947  ;;  %vm22912_vm6 = vmmov %vm22905_vm3  ;;  %v22917_v31 = vld [vmem:[#allocation21_spill] sm:$0xff] }
 0x1b7   :  { %v14475_v14 = vpop.permute.xlu0 %14474  ;;  %13376 = vmatprep.subr.bf16.mxu1 %v13375_v33  ;;  %v950_v53 = vsel %vm22907_vm9, %v14472_v61, %v948_v57  ;;  %v965_v58 = vsel %vm22912_vm6, %v948_v57, %v22911_v60  ;;  %vm22913_vm8 = vmmov %vm22909_vm10  ;;  %v22918_v36 = vunpack.i.l.bf16 %v22917_v31  ;;  %v22919_v61 = vld [vmem:[#allocation22_spill] sm:$0xff] }
 0x1b8   :  { %v14477_v63 = vunpack.i.h.bf16 %v14475_v14  ;;  %v14476_v26 = vunpack.i.l.bf16 %v14475_v14  ;;  %13378 = vmatpush1.bf16.msra.mxu1 %v13377_v47  ;;  %vm22916_vm3 = vmmov %vm22913_vm8  ;;  %v22920_v1 = vunpack.i.l.bf16 %v22919_v61 }
 0x1b9   :  { %vm22930_vm7 = vmmov %vm22912_vm6 }
 0x1ba   :  { %v1017_v51 = vsel %vm22908_vm11, %v16954_v7, %v14476_v26  ;;  %v14480_v23 = vpop.permute.xlu1 %14479  ;;  %v1016_v29 = vsel %vm22909_vm10, %v14476_v26, %v14477_v63  ;;  %vm3009_vm11 = vcmp.lt.s32.totalorder %v15350_v12, 58 }
 0x1bb   :  { %v1013_v10 = vpop.permute.xlu0 %1012  ;;  %v13331_v54 = vpack.c.bf16 %v1016_v29, %v951_v52  ;;  %v13333_v44 = vpack.c.bf16 %v1017_v51, %v952_v25  ;;  %v14482_v5 = vunpack.i.h.bf16 %v14480_v23  ;;  %v14481_v15 = vunpack.i.l.bf16 %v14480_v23  ;;  %v22921_v29 = vld [vmem:[#allocation23_spill] sm:$0xff] }
 0x1bc   :  { %v1015_v13 = vsel %vm22913_vm8, %v14477_v63, %v1013_v10  ;;  %v1030_v7 = vsel %vm22916_vm3, %v1013_v10, %v22915_v41  ;;  %v22922_v10 = vunpack.i.l.bf16 %v22921_v29  ;;  %vm22934_vm3 = vmmov %vm22912_vm6 }
 0x1bd   :  { %v13381_v16 = vpack.c.bf16 %v1015_v13, %v950_v53  ;;  %13332 = vmatprep.subr.bf16.mxu0 %v13331_v54  ;;  %v13379_v27 = vpack.c.bf16 %v1030_v7, %v965_v58  ;;  %v1081_v43 = vsel %vm1079_vm13, %v14481_v15, %v14482_v5  ;;  %v1082_v4 = vsel %vm1079_vm13, %v16962_v18, %v14481_v15 }
 0x1be   :  { %13334 = vmatpush1.bf16.msra.mxu0 %v13333_v44  ;;  %v1078_v21 = vpop.permute.xlu1 %1077  ;;  %v22923_v44 = vld [vmem:[#allocation24_spill] sm:$0xff] }
 0x1bf   :  { %v14485_v39 = vpop.permute.xlu0 %14484  ;;  %13380 = vmatprep.subr.bf16.mxu1 %v13379_v27  ;;  %v1080_v55 = vsel %vm1079_vm13, %v14482_v5, %v1078_v21  ;;  %v1095_v32 = vsel %vm1079_vm13, %v1078_v21, %v22918_v36  ;;  %v22924_v59 = vunpack.i.l.bf16 %v22923_v44  ;;  %vm2752_vm13 = vcmp.lt.s32.totalorder %v15350_v12, 120 }
 0x1c0   :  { %v14487_v48 = vunpack.i.h.bf16 %v14485_v39  ;;  %v14486_v9 = vunpack.i.l.bf16 %v14485_v39  ;;  %13382 = vmatpush1.bf16.msra.mxu1 %v13381_v16  ;;  %v22926_v16 = vld [vmem:[#allocation7_spill] sm:$0xff] }
 0x1c2   :  { %v1147_v45 = vsel %vm1144_vm12, %v16979_v3, %v14486_v9  ;;  %v1146_v2 = vsel %vm1144_vm12, %v14486_v9, %v14487_v48  ;;  %v14490_v0 = vpop.permute.xlu1 %14489 }
 0x1c3   :  { %v1143_v20 = vpop.permute.xlu0 %1142  ;;  %v13335_v56 = vpack.c.bf16 %v1146_v2, %v1081_v43  ;;  %v13337_v28 = vpack.c.bf16 %v1147_v45, %v1082_v4  ;;  %v14492_v18 = vunpack.i.h.bf16 %v14490_v0  ;;  %v14491_v19 = vunpack.i.l.bf16 %v14490_v0 }
 0x1c4   :  { %v1145_v62 = vsel %vm1144_vm12, %v14487_v48, %v1143_v20  ;;  %v1160_v3 = vsel %vm1144_vm12, %v1143_v20, %v22920_v1  ;;  %vm22928_vm12 = vcmp.lt.s32.totalorder %v15350_v12, 64 }
 0x1c5   :  { %v13385_v46 = vpack.c.bf16 %v1145_v62, %v1080_v55  ;;  %13336 = vmatprep.subr.bf16.mxu0 %v13335_v56  ;;  %v13383_v50 = vpack.c.bf16 %v1160_v3, %v1095_v32  ;;  %v1211_v57 = vsel %vm1209_vm15, %v14491_v19, %v14492_v18  ;;  %v1212_v63 = vsel %vm1209_vm15, %v16987_v42, %v14491_v19  ;;  %vm22931_vm9 = vmmov %vm22928_vm12 }
 0x1c6   :  { %13338 = vmatpush1.bf16.msra.mxu0 %v13337_v28  ;;  %v1208_v14 = vpop.permute.xlu1 %1207  ;;  %vm22933_vm8 = vmmov %vm22931_vm9 }
 0x1c7   :  { %v14495_v47 = vpop.permute.xlu0 %14494  ;;  %13384 = vmatprep.subr.bf16.mxu1 %v13383_v50  ;;  %v1210_v26 = vsel %vm1209_vm15, %v14492_v18, %v1208_v14  ;;  %v1225_v54 = vsel %vm1209_vm15, %v1208_v14, %v22922_v10  ;;  %vm22929_vm15 = vcmp.lt.s32.totalorder %v15350_v12, 62 }
 0x1c8   :  { %v14497_v33 = vunpack.i.h.bf16 %v14495_v47  ;;  %v14496_v22 = vunpack.i.l.bf16 %v14495_v47  ;;  %13386 = vmatpush1.bf16.msra.mxu1 %v13385_v46  ;;  %vm22932_vm10 = vmmov %vm22929_vm15 }
 0x1ca   :  { %v1277_v52 = vsel %vm1274_vm14, %v17005_v35, %v14496_v22  ;;  %v1276_v25 = vsel %vm1274_vm14, %v14496_v22, %v14497_v33 }
 0x1cb   :  { %v1273_v53 = vpop.permute.xlu0 %1272  ;;  %v13339_v51 = vpack.c.bf16 %v1276_v25, %v1211_v57  ;;  %v13341_v23 = vpack.c.bf16 %v1277_v52, %v1212_v63 }
 0x1cc   :  { %v1275_v42 = vsel %vm1274_vm14, %v14497_v33, %v1273_v53  ;;  %v1290_v60 = vsel %vm1274_vm14, %v1273_v53, %v22924_v59  ;;  %vm3074_vm14 = vcmp.lt.s32.totalorder %v15350_v12, 56 }
 0x1cd   :  { %v13389_v35 = vpack.c.bf16 %v1275_v42, %v1210_v26  ;;  %13340 = vmatprep.subr.bf16.mxu0 %v13339_v51  ;;  %v13387_v58 = vpack.c.bf16 %v1290_v60, %v1225_v54  ;;  %v1865_v5 = vpop.f32.mrb[0].mxu0 }
 0x1ce   :  { %13342 = vmatpush1.bf16.msra.mxu0 %v13341_v23  ;;  %v1867_v13 = vpop.f32.mrb[1].mxu0 }
 0x1cf   :  { %13344 = vmatprep.subr.bf16.mxu0 %v17083_v11  ;;  %13388 = vmatprep.subr.bf16.mxu1 %v13387_v58 }
 0x1d0   :  { %13390 = vmatpush1.bf16.msra.mxu1 %v13389_v35 }
 0x1d1   :  { %13392 = vmatprep.subr.bf16.mxu1 %v22925_v37 }
 0x1d2   :  { %13346 = vmatpush1.bf16.msra.mxu0 %v17047_v6  ;;  %v22927_v6 = vld [vmem:[#allocation10_spill] sm:$0xff] }
 0x1d3   :  { %13348 = vmatprep.subr.bf16.mxu0 %v17143_v40  ;;  %v1936_v41 = vpop.f32.mrb[0].mxu1 }
 0x1d4   :  { %13394 = vmatpush1.bf16.msra.mxu1 %v17080_v34  ;;  %v1938_v7 = vpop.f32.mrb[1].mxu1 }
 0x1d5   :  { %13396 = vmatprep.subr.bf16.mxu1 %v22926_v16 }
 0x1d6   :  { %13350 = vmatpush1.bf16.msra.mxu0 %v17071_v24 }
 0x1d7   :  { %2273 = vmatprep.subr.mxu0 %v17149_v49  ;;  %v17313_v27 = vpop.permute.xlu1 %1792 }
 0x1d8   :  { %v1868_v11 = vadd.f32 %v1867_v13, %v17313_v27  ;;  %v1937_v15 = vadd.f32 %v1936_v41, %v17313_v27  ;;  %13398 = vmatpush1.bf16.msra.mxu1 %v17105_v17  ;;  %v1939_v40 = vadd.f32 %v1938_v7, %v17313_v27  ;;  %v1866_v17 = vadd.f32 %v1865_v5, %v17313_v27 }
 0x1d9   :  { %2344 = vmatprep.subr.mxu1 %v22927_v6 }
 0x1da   :  { %v2368_v34 = vmax.f32 %v1868_v11, 0.0  ;;  %v2369_v21 = vmax.f32 %v1937_v15, 0.0  ;;  %2274 = vmatpush1.msra.mxu0 %v17092_v30  ;;  %v2370_v24 = vmax.f32 %v1939_v40, 0.0  ;;  %v2367_v49 = vmax.f32 %v1866_v17, 0.0 }
 0x1db   :  { %2290 = vmatmul.mubr.f32.vlgmr.msra.gmra.mrb[6].mxu0 %v17067_v8 }
 0x1dc   :  { %2345 = vmatpush1.msra.mxu1 %v17137_v38  ;;  %2387 = vrot.lane.b32.xlu1 %v2369_v21, %s15097_s29 }
 0x1dd   :  { %2361 = vmatmul.mubr.f32.vlgmr.msra.gmra.mrb[6].mxu1 %v17067_v8  ;;  %2385 = vrot.lane.b32.xlu0 %v2368_v34, %s15097_s29 }
 0x1e1   :  { %2389 = vrot.lane.b32.xlu0 %v2370_v24, %s15097_s29 }
 0x1e5   :  { %2383 = vrot.lane.b32.xlu0 %v2367_v49, %s15097_s29 }
 0x21e   :  { %v2007_v39 = vpop.f32.mrb[2].mxu0 }
 0x21f   :  { %v17330_v30 = vadd.f32 %v2007_v39, %v17313_v27  ;;  %v2009_v48 = vpop.f32.mrb[3].mxu0 }
 0x220   :  { %v17334_v9 = vadd.f32 %v2009_v48, %v17313_v27 }
 0x221   :  { %v2371_v38 = vmax.f32 %v17330_v30, 0.0 }
 0x222   :  { %v2078_v8 = vpop.f32.mrb[2].mxu1  ;;  %v2372_v55 = vmax.f32 %v17334_v9, 0.0 }
 0x223   :  { %v17337_v43 = vadd.f32 %v2078_v8, %v17313_v27  ;;  %v2080_v4 = vpop.f32.mrb[3].mxu1  ;;  %2391 = vrot.lane.b32.xlu1 %v2371_v38, %s15097_s29 }
 0x224   :  { %v17343_v2 = vadd.f32 %v2080_v4, %v17313_v27 }
 0x225   :  { %v2373_v45 = vmax.f32 %v17337_v43, 0.0 }
 0x226   :  { %v2374_v0 = vmax.f32 %v17343_v2, 0.0 }
 0x227   :  { %2393 = vrot.lane.b32.xlu1 %v2372_v55, %s15097_s29  ;;  %2395 = vrot.lane.b32.xlu0 %v2373_v45, %s15097_s29 }
 0x22b   :  { %2397 = vrot.lane.b32.xlu1 %v2374_v0, %s15097_s29 }
 0x24e   :  { %v2388_v20 = vpop.permute.xlu1 %2387 }
 0x24f   :  { %v2386_v56 = vpop.permute.xlu0 %2385 }
 0x250   :  { %v2428_v28 = vsel %vm104_vm0, %v2386_v56, %v2388_v20 }
 0x251   :  { %v17355_v31 = vmax.f32 %v2368_v34, %v2428_v28 }
 0x253   :  { %2449 = vrot.lane.b32.xlu1 %v17355_v31, %s22770_s14  ;;  %v2390_v36 = vpop.permute.xlu0 %2389 }
 0x254   :  { %v2427_v46 = vsel %vm104_vm0, %v2388_v20, %v2390_v36 }
 0x255   :  { %v17368_v19 = vmax.f32 %v2369_v21, %v2427_v46 }
 0x257   :  { %v17365_v50 = vpop.permute.xlu0 %2383 }
 0x258   :  { %v2429_v47 = vsel %vm104_vm0, %v17365_v50, %v2386_v56 }
 0x259   :  { %v17375_v33 = vmax.f32 %v2367_v49, %v2429_v47 }
 0x26e   :  { %v2149_v32 = vpop.f32.mrb[4].mxu0 }
 0x26f   :  { %v17360_v18 = vadd.f32 %v2149_v32, %v17313_v27  ;;  %v2151_v62 = vpop.f32.mrb[5].mxu0 }
 0x270   :  { %v2220_v61 = vpop.f32.mrb[4].mxu1  ;;  %v2152_v26 = vadd.f32 %v2151_v62, %v17313_v27 }
 0x271   :  { %v2375_v1 = vmax.f32 %v17360_v18, 0.0  ;;  %v2222_v3 = vpop.f32.mrb[5].mxu1  ;;  %v2221_v53 = vadd.f32 %v2220_v61, %v17313_v27 }
 0x272   :  { %v17378_v22 = vadd.f32 %v2222_v3, %v17313_v27  ;;  %v2376_v25 = vmax.f32 %v2152_v26, 0.0 }
 0x273   :  { %2399 = vrot.lane.b32.xlu0 %v2375_v1, %s15097_s29  ;;  %v2377_v51 = vmax.f32 %v2221_v53, 0.0 }
 0x274   :  { %v2378_v57 = vmax.f32 %v17378_v22, 0.0 }
 0x277   :  { %2451 = vrot.lane.b32.xlu0 %v17368_v19, %s22770_s14 }
 0x27b   :  { %2447 = vrot.lane.b32.xlu0 %v17375_v33, %s22770_s14 }
 0x27f   :  { %2405 = vrot.lane.b32.xlu0 %v2378_v57, %s15097_s29 }
 0x295   :  { %v2392_v14 = vpop.permute.xlu1 %2391 }
 0x296   :  { %v2426_v63 = vsel %vm104_vm0, %v2390_v36, %v2392_v14 }
 0x297   :  { %v17389_v52 = vmax.f32 %v2370_v24, %v2426_v63 }
 0x299   :  { %2453 = vrot.lane.b32.xlu1 %v17389_v52, %s22770_s14  ;;  %v2394_v54 = vpop.permute.xlu1 %2393  ;;  %v2396_v13 = vpop.permute.xlu0 %2395 }
 0x29a   :  { %v2425_v5 = vsel %vm104_vm0, %v2392_v14, %v2394_v54  ;;  %v2424_v16 = vsel %vm104_vm0, %v2394_v54, %v2396_v13 }
 0x29b   :  { %v17412_v7 = vmax.f32 %v2371_v38, %v2425_v5  ;;  %v17422_v6 = vmax.f32 %v2372_v55, %v2424_v16 }
 0x29d   :  { %2401 = vrot.lane.b32.xlu1 %v2376_v25, %s15097_s29  ;;  %v2398_v11 = vpop.permute.xlu1 %2397 }
 0x2a1   :  { %2403 = vrot.lane.b32.xlu1 %v2377_v51, %s15097_s29 }
 0x2ae   :  { %v2291_v23 = vpop.f32.mrb[6].mxu0 }
 0x2af   :  { %v2292_v29 = vadd.f32 %v2291_v23, %v17313_v27  ;;  %v2293_v10 = vpop.f32.mrb[7].mxu0 }
 0x2b0   :  { %v17398_v42 = vadd.f32 %v2293_v10, %v17313_v27  ;;  %v2362_v44 = vpop.f32.mrb[6].mxu1 }
 0x2b1   :  { %v2379_v59 = vmax.f32 %v2292_v29, 0.0  ;;  %v17401_v60 = vadd.f32 %v2362_v44, %v17313_v27  ;;  %v2364_v35 = vpop.f32.mrb[7].mxu1 }
 0x2b2   :  { %v2380_v58 = vmax.f32 %v17398_v42, 0.0  ;;  %v17410_v41 = vadd.f32 %v2364_v35, %v17313_v27  ;;  %v2423_v27 = vsel %vm104_vm0, %v2396_v13, %v2398_v11  ;;  %v17580_v35 = vld [vmem:[%s22551_s3 + $0x8] sm:$0xff] }
 0x2b3   :  { %2407 = vrot.lane.b32.xlu1 %v2379_v59, %s15097_s29  ;;  %v2381_v37 = vmax.f32 %v17401_v60, 0.0  ;;  %v17433_v40 = vmax.f32 %v2373_v45, %v2423_v27  ;;  %10479 = vmatprep.mubr.msk.f32.mxu0 %vm1795_vm1, %v17580_v35 }
 0x2b4   :  { %2409 = vrot.lane.b32.xlu0 %v2380_v58, %s15097_s29  ;;  %v2382_v15 = vmax.f32 %v17410_v41, 0.0  ;;  %10481 = vmatprep.mubr.msk.f32.mxu1 %vm1795_vm1, %v17580_v35 }
 0x2b7   :  { %2411 = vrot.lane.b32.xlu1 %v2381_v37, %s15097_s29 }
 0x2b8   :  { %2455 = vrot.lane.b32.xlu0 %v17412_v7, %s22770_s14 }
 0x2bb   :  { %2413 = vrot.lane.b32.xlu1 %v2382_v15, %s15097_s29  ;;  %s15118_s29 = smov 122  }
 0x2bc   :  { %2457 = vrot.lane.b32.xlu0 %v17422_v6, %s22770_s14 }
 0x2bf   :  { %2459 = vrot.lane.b32.xlu1 %v17433_v40, %s22770_s14 }
 0x2c5   :  { %v2450_v17 = vpop.permute.xlu1 %2449 }
 0x2e5   :  { %v2400_v34 = vpop.permute.xlu0 %2399 }
 0x2e6   :  { %v2422_v21 = vsel %vm104_vm0, %v2398_v11, %v2400_v34 }
 0x2e7   :  { %v17441_v24 = vmax.f32 %v2374_v0, %v2422_v21 }
 0x2e9   :  { %2461 = vrot.lane.b32.xlu0 %v17441_v24, %s22770_s14  ;;  %v2452_v49 = vpop.permute.xlu0 %2451 }
 0x2ea   :  { %v2492_v0 = vsel %vm364_vm5, %v2450_v17, %v2452_v49 }
 0x2eb   :  { %v17468_v20 = vmax.f32 %v17355_v31, %v2492_v0 }
 0x2ed   :  { %v17445_v30 = vpop.permute.xlu0 %2447 }
 0x2ee   :  { %v2493_v56 = vsel %vm364_vm5, %v17445_v30, %v2450_v17 }
 0x2ef   :  { %v17476_v28 = vmax.f32 %v17375_v33, %v2493_v56 }
 0x2f1   :  { %v2406_v8 = vpop.permute.xlu0 %2405 }
 0x30b   :  { %v2454_v39 = vpop.permute.xlu1 %2453 }
 0x30c   :  { %v2491_v36 = vsel %vm364_vm5, %v2452_v49, %v2454_v39 }
 0x30f   :  { %v2402_v48 = vpop.permute.xlu1 %2401 }
 0x310   :  { %v2421_v38 = vsel %vm104_vm0, %v2400_v34, %v2402_v48 }
 0x311   :  { %v17449_v9 = vmax.f32 %v2375_v1, %v2421_v38  ;;  %v17491_v1 = vmax.f32 %v17368_v19, %v2491_v36 }
 0x313   :  { %v2404_v43 = vpop.permute.xlu1 %2403  ;;  %2463 = vrot.lane.b32.xlu1 %v17449_v9, %s22770_s14  ;;  %v14499_v22 = vpack.i.bf16 %v17491_v1, %v17468_v20 }
 0x314   :  { %v2419_v4 = vsel %vm104_vm0, %v2404_v43, %v2406_v8  ;;  %v2420_v55 = vsel %vm104_vm0, %v2402_v48, %v2404_v43 }
 0x315   :  { %v17457_v45 = vmax.f32 %v2376_v25, %v2420_v55  ;;  %v17459_v2 = vmax.f32 %v2377_v51, %v2419_v4 }
 0x317   :  { %2465 = vrot.lane.b32.xlu1 %v17457_v45, %s22770_s14  ;;  %2467 = vrot.lane.b32.xlu0 %v17459_v2, %s22770_s14 }
 0x31b   :  { %2722 = vrot.lane.b32.xlu0 %v17468_v20, %s15117_s1 }
 0x31f   :  { %2720 = vrot.lane.b32.xlu0 %v17476_v28, %s15117_s1 }
 0x325   :  { %v2408_v32 = vpop.permute.xlu1 %2407 }
 0x326   :  { %v2418_v31 = vsel %vm104_vm0, %v2406_v8, %v2408_v32  ;;  %v2410_v18 = vpop.permute.xlu0 %2409 }
 0x327   :  { %v17486_v62 = vmax.f32 %v2378_v57, %v2418_v31  ;;  %v2417_v61 = vsel %vm104_vm0, %v2408_v32, %v2410_v18 }
 0x328   :  { %v17493_v3 = vmax.f32 %v2379_v59, %v2417_v61 }
 0x329   :  { %v2412_v46 = vpop.permute.xlu1 %2411  ;;  %2469 = vrot.lane.b32.xlu1 %v17486_v62, %s22770_s14 }
 0x32a   :  { %v2416_v47 = vsel %vm104_vm0, %v2410_v18, %v2412_v46  ;;  %2471 = vrot.lane.b32.xlu0 %v17493_v3, %s22770_s14  ;;  %v2456_v19 = vpop.permute.xlu0 %2455 }
 0x32b   :  { %v17501_v33 = vmax.f32 %v2380_v58, %v2416_v47  ;;  %v2490_v57 = vsel %vm364_vm5, %v2454_v39, %v2456_v19 }
 0x32c   :  { %v17518_v14 = vmax.f32 %v17389_v52, %v2490_v57 }
 0x32d   :  { %2473 = vrot.lane.b32.xlu1 %v17501_v33, %s22770_s14  ;;  %v2414_v26 = vpop.permute.xlu1 %2413 }
 0x32e   :  { %14500 = vrot.lane.b32.xlu0 %v14499_v22, %s15098_s30  ;;  %v14539_v63 = vpack.i.bf16 %v17518_v14, %v17476_v28  ;;  %v2458_v52 = vpop.permute.xlu0 %2457  ;;  %v2415_v10 = vsel %vm104_vm0, %v2412_v46, %v2414_v26  ;;  %v2430_v44 = vsel %vm104_vm0, %v2414_v26, %v17365_v50  ;;  %vm2687_vm0 = vcmp.lt.s32.totalorder %v15350_v12, 122  ;;  %v10812_v12 = vld [vmem:[%s22553_s5 + $0x558] sm:$0xff] }
 0x32f   :  { %v2489_v51 = vsel %vm364_vm5, %v2456_v19, %v2458_v52  ;;  %v17551_v42 = vmax.f32 %v2381_v37, %v2415_v10  ;;  %v17561_v59 = vmax.f32 %v2382_v15, %v2430_v44 }
 0x330   :  { %v17539_v29 = vmax.f32 %v17412_v7, %v2489_v51 }
 0x331   :  { %14510 = vrot.lane.b32.xlu1 %v14499_v22, %s15118_s29  ;;  %v2460_v25 = vpop.permute.xlu1 %2459 }
 0x332   :  { %14505 = vrot.lane.b32.xlu0 %v14499_v22, %s15100_s13  ;;  %v2488_v53 = vsel %vm364_vm5, %v2458_v52, %v2460_v25 }
 0x333   :  { %v17535_v23 = vmax.f32 %v17422_v6, %v2488_v53 }
 0x335   :  { %2724 = vrot.lane.b32.xlu1 %v17491_v1, %s15117_s1  ;;  %v14579_v54 = vpack.i.bf16 %v17535_v23, %v17539_v29 }
 0x336   :  { %14515 = vrot.lane.b32.xlu0 %v14499_v22, %s22741_s19 }
 0x339   :  { %14525 = vrot.lane.b32.xlu1 %v14499_v22, %s22718_s25 }
 0x33a   :  { %14520 = vrot.lane.b32.xlu0 %v14499_v22, %s22746_s15 }
 0x33d   :  { %14535 = vrot.lane.b32.xlu1 %v14499_v22, %s15119_s23 }
 0x33e   :  { %14530 = vrot.lane.b32.xlu0 %v14499_v22, %s15120_s21 }
 0x341   :  { %14540 = vrot.lane.b32.xlu1 %v14539_v63, %s15098_s30 }
 0x342   :  { %14545 = vrot.lane.b32.xlu0 %v14539_v63, %s15100_s13 }
 0x345   :  { %14550 = vrot.lane.b32.xlu1 %v14539_v63, %s15118_s29 }
 0x346   :  { %14560 = vrot.lane.b32.xlu0 %v14539_v63, %s22746_s15 }
 0x349   :  { %14555 = vrot.lane.b32.xlu1 %v14539_v63, %s22741_s19 }
 0x34a   :  { %14570 = vrot.lane.b32.xlu0 %v14539_v63, %s15120_s21 }
 0x34d   :  { %14565 = vrot.lane.b32.xlu1 %v14539_v63, %s22718_s25 }
 0x34e   :  { %2726 = vrot.lane.b32.xlu0 %v17518_v14, %s15117_s1 }
 0x351   :  { %14575 = vrot.lane.b32.xlu1 %v14539_v63, %s15119_s23 }
 0x352   :  { %14580 = vrot.lane.b32.xlu0 %v14579_v54, %s15098_s30 }
 0x355   :  { %2475 = vrot.lane.b32.xlu1 %v17551_v42, %s22770_s14 }
 0x356   :  { %14590 = vrot.lane.b32.xlu0 %v14579_v54, %s15118_s29 }
 0x359   :  { %2477 = vrot.lane.b32.xlu1 %v17561_v59, %s22770_s14 }
 0x35a   :  { %2728 = vrot.lane.b32.xlu0 %v17539_v29, %s15117_s1 }
 0x35b   :  { %v2462_v50 = vpop.permute.xlu0 %2461 }
 0x35c   :  { %v2487_v60 = vsel %vm364_vm5, %v2460_v25, %v2462_v50 }
 0x35d   :  { %14585 = vrot.lane.b32.xlu1 %v14579_v54, %s15100_s13  ;;  %v17583_v58 = vmax.f32 %v17433_v40, %v2487_v60 }
 0x35e   :  { %2730 = vrot.lane.b32.xlu0 %v17535_v23, %s15117_s1 }
 0x361   :  { %14595 = vrot.lane.b32.xlu1 %v14579_v54, %s22741_s19 }
 0x362   :  { %14600 = vrot.lane.b32.xlu0 %v14579_v54, %s22746_s15 }
 0x365   :  { %14605 = vrot.lane.b32.xlu1 %v14579_v54, %s22718_s25 }
 0x366   :  { %14610 = vrot.lane.b32.xlu0 %v14579_v54, %s15120_s21 }
 0x369   :  { %14615 = vrot.lane.b32.xlu1 %v14579_v54, %s15119_s23 }
 0x36d   :  { %2732 = vrot.lane.b32.xlu1 %v17583_v58, %s15117_s1 }
 0x385   :  { %v2464_v5 = vpop.permute.xlu1 %2463 }
 0x386   :  { %v2486_v13 = vsel %vm364_vm5, %v2462_v50, %v2464_v5 }
 0x387   :  { %v17594_v37 = vmax.f32 %v17441_v24, %v2486_v13 }
 0x389   :  { %v14629_v41 = vpack.i.bf16 %v17594_v37, %v17583_v58  ;;  %v2468_v7 = vpop.permute.xlu0 %2467  ;;  %v2466_v16 = vpop.permute.xlu1 %2465 }
 0x38a   :  { %v2485_v11 = vsel %vm364_vm5, %v2464_v5, %v2466_v16  ;;  %v2484_v15 = vsel %vm364_vm5, %v2466_v16, %v2468_v7 }
 0x38b   :  { %14630 = vrot.lane.b32.xlu0 %v14629_v41, %s15118_s29  ;;  %14620 = vrot.lane.b32.xlu1 %v14629_v41, %s15098_s30  ;;  %v17611_v27 = vmax.f32 %v17449_v9, %v2485_v11  ;;  %v17614_v40 = vmax.f32 %v17457_v45, %v2484_v15 }
 0x38d   :  { %v17606_v6 = vpop.permute.xlu0 %2722  ;;  %v14664_v21 = vpack.i.bf16 %v17614_v40, %v17611_v27 }
 0x38f   :  { %14635 = vrot.lane.b32.xlu0 %v14629_v41, %s22741_s19  ;;  %14625 = vrot.lane.b32.xlu1 %v14629_v41, %s15100_s13 }
 0x391   :  { %v17618_v34 = vpop.permute.xlu0 %2720 }
 0x393   :  { %14640 = vrot.lane.b32.xlu0 %v14629_v41, %s22746_s15  ;;  %14645 = vrot.lane.b32.xlu1 %v14629_v41, %s22718_s25 }
 0x397   :  { %14650 = vrot.lane.b32.xlu0 %v14629_v41, %s15120_s21  ;;  %14655 = vrot.lane.b32.xlu1 %v14629_v41, %s15119_s23 }
 0x39b   :  { %v2470_v24 = vpop.permute.xlu1 %2469  ;;  %2734 = vrot.lane.b32.xlu0 %v17594_v37, %s15117_s1  ;;  %14665 = vrot.lane.b32.xlu1 %v14664_v21, %s15100_s13 }
 0x39c   :  { %v2472_v17 = vpop.permute.xlu0 %2471  ;;  %v2483_v49 = vsel %vm364_vm5, %v2468_v7, %v2470_v24 }
 0x39d   :  { %v17635_v38 = vmax.f32 %v17459_v2, %v2483_v49  ;;  %v2482_v0 = vsel %vm364_vm5, %v2470_v24, %v2472_v17 }
 0x39f   :  { %v17627_v39 = vpop.permute.xlu1 %2473  ;;  %2736 = vrot.lane.b32.xlu1 %v17611_v27, %s15117_s1  ;;  %14660 = vrot.lane.b32.xlu0 %v14664_v21, %s15098_s30  ;;  %v14679_v2 = vpack.i.bf16 %v17635_v38, %v17614_v40 }
 0x3a0   :  { %v17632_v48 = vpop.permute.xlu0 %14500  ;;  %v2481_v57 = vsel %vm364_vm5, %v2472_v17, %v17627_v39 }
 0x3a1   :  { %v14503_v9 = vunpack.i.h.bf16 %v17632_v48  ;;  %v14502_v8 = vunpack.i.l.bf16 %v17632_v48  ;;  %v17706_v51 = vmax.f32 %v17493_v3, %v2481_v57 }
 0x3a3   :  { %v17639_v43 = vpop.permute.xlu1 %14510  ;;  %14670 = vrot.lane.b32.xlu0 %v14664_v21, %s15118_s29  ;;  %2740 = vrot.lane.b32.xlu1 %v17635_v38, %s15117_s1  ;;  %v2572_v4 = vsel %vm169_vm2, %v14502_v8, %v14503_v9 }
 0x3a4   :  { %v17648_v55 = vpop.permute.xlu0 %14505  ;;  %v17651_v45 = vpack.c.bf16 %v2572_v4, %v17468_v20  ;;  %v17666_v20 = vmax.f32 %v17486_v62, %v2482_v0  ;;  %v14513_v62 = vunpack.i.h.bf16 %v17639_v43  ;;  %v14512_v46 = vunpack.i.l.bf16 %v17639_v43 }
 0x3a5   :  { %v14508_v47 = vunpack.i.h.bf16 %v17648_v55  ;;  %v14507_v22 = vunpack.i.l.bf16 %v17648_v55 }
 0x3a6   :  { %13400 = vmatprep.subr.bf16.mxu0 %v17651_v45  ;;  %v14699_v18 = vpack.i.bf16 %v17666_v20, %v17635_v38  ;;  %v2701_v53 = vsel %vm2687_vm0, %v14512_v46, %v14513_v62  ;;  %v17756_v4 = vpack.i.bf16 %v17666_v20, %v17611_v27 }
 0x3a7   :  { %v17658_v56 = vpop.permute.xlu1 %2724  ;;  %2738 = vrot.lane.b32.xlu0 %v17614_v40, %s15117_s1  ;;  %14680 = vrot.lane.b32.xlu1 %v14679_v2, %s22746_s15  ;;  %v2636_v52 = vsel %vm299_vm4, %v14507_v22, %v14508_v47 }
 0x3a8   :  { %v17663_v36 = vpop.permute.xlu0 %14515  ;;  %v17723_v13 = vpack.c.bf16 %v2701_v53, %v2636_v52  ;;  %v2766_v17 = vsel %vm2752_vm13, %v17606_v6, %v17658_v56 }
 0x3a9   :  { %v14518_v10 = vunpack.i.h.bf16 %v17663_v36  ;;  %v14517_v54 = vunpack.i.l.bf16 %v17663_v36 }
 0x3ab   :  { %v17668_v32 = vpop.permute.xlu1 %14525  ;;  %14675 = vrot.lane.b32.xlu0 %v14679_v2, %s22741_s19  ;;  %14690 = vrot.lane.b32.xlu1 %v14679_v2, %s15120_s21  ;;  %v2830_v21 = vsel %vm22928_vm12, %v14517_v54, %v14518_v10  ;;  %vm22935_vm12 = vmmov %vm22932_vm10 }
 0x3ac   :  { %v17672_v31 = vpop.permute.xlu0 %14520  ;;  %v14528_v60 = vunpack.i.h.bf16 %v17668_v32  ;;  %v14527_v41 = vunpack.i.l.bf16 %v17668_v32 }
 0x3ad   :  { %v14523_v7 = vunpack.i.h.bf16 %v17672_v31  ;;  %v14522_v16 = vunpack.i.l.bf16 %v17672_v31 }
 0x3af   :  { %v17676_v61 = vpop.permute.xlu1 %14535  ;;  %14685 = vrot.lane.b32.xlu0 %v14679_v2, %s22718_s25  ;;  %14700 = vrot.lane.b32.xlu1 %v14699_v18, %s15098_s30 }
 0x3b0   :  { %v17684_v19 = vpop.permute.xlu0 %14530  ;;  %v22685_v57 = vunpack.i.h.bf16 %v17676_v61  ;;  %v14537_v52 = vunpack.i.l.bf16 %v17676_v61 }
 0x3b1   :  { %v22684_v53 = vunpack.i.h.bf16 %v17684_v19 }
 0x3b3   :  { %v17690_v63 = vpop.permute.xlu1 %14540  ;;  %14695 = vrot.lane.b32.xlu0 %v14679_v2, %s15119_s23  ;;  %14710 = vrot.lane.b32.xlu1 %v14699_v18, %s15118_s29 }
 0x3b4   :  { %v22683_v26 = vunpack.i.l.bf16 %v17690_v63  ;;  %v17695_v25 = vpop.permute.xlu0 %14545 }
 0x3b5   :  { %v22682_v50 = vunpack.i.l.bf16 %v17695_v25 }
 0x3b6   :  { %v2573_v44 = vsel %vm169_vm2, %v22683_v26, %v14502_v8 }
 0x3b7   :  { %v17716_v5 = vpop.permute.xlu1 %14550  ;;  %2679 = vrot.lane.b32.xlu1 %v17706_v51, %s15118_s29  ;;  %2551 = vrot.lane.b32.xlu0 %v17706_v51, %s15098_s30  ;;  %v13401_v3 = vpack.c.bf16 %v2573_v44, %v17476_v28  ;;  %v2637_v28 = vsel %vm299_vm4, %v22682_v50, %v14507_v22  ;;  %v2894_v22 = vsel %vm22929_vm15, %v14522_v16, %v14523_v7  ;;  %v14532_v44 = vunpack.i.l.bf16 %v17684_v19  ;;  %vm22937_vm15 = vmmov %vm22933_vm8 }
 0x3b8   :  { %v22681_v11 = vunpack.i.l.bf16 %v17716_v5  ;;  %v17729_v15 = vpop.permute.xlu0 %14560  ;;  %v3088_v50 = vsel %vm3074_vm14, %v14537_v52, %v22685_v57 }
 0x3b9   :  { %13402 = vmatpush1.bf16.msra.mxu0 %v13401_v3  ;;  %v2767_v3 = vsel %vm2752_vm13, %v17618_v34, %v17606_v6 }
 0x3ba   :  { %v2702_v24 = vsel %vm2687_vm0, %v22681_v11, %v14512_v46  ;;  %13404 = vmatprep.subr.bf16.mxu0 %v17723_v13  ;;  %v17762_v46 = vpack.c.bf16 %v2830_v21, %v2766_v17  ;;  %v14562_v21 = vunpack.i.l.bf16 %v17729_v15 }
 0x3bb   :  { %v17749_v49 = vpop.permute.xlu1 %14555  ;;  %2742 = vrot.lane.b32.xlu1 %v17666_v20, %s15117_s1  ;;  %14705 = vrot.lane.b32.xlu0 %v14699_v18, %s15100_s13  ;;  %v13405_v8 = vpack.c.bf16 %v2702_v24, %v2637_v28  ;;  %v2958_v18 = vsel %vm22930_vm7, %v14527_v41, %v14528_v60  ;;  %vm22939_vm7 = vmmov %vm22932_vm10 }
 0x3bc   :  { %v14557_v2 = vunpack.i.l.bf16 %v17749_v49  ;;  %v17760_v0 = vpop.permute.xlu0 %14570  ;;  %v17794_v11 = vpack.c.bf16 %v2958_v18, %v2894_v22 }
 0x3bd   :  { %13406 = vmatpush1.bf16.msra.mxu0 %v13405_v8 }
 0x3be   :  { %v2831_v28 = vsel %vm22931_vm9, %v14557_v2, %v14517_v54  ;;  %13408 = vmatprep.subr.bf16.mxu0 %v17762_v46  ;;  %v14543_v54 = vunpack.i.h.bf16 %v17690_v63  ;;  %v3023_v2 = vsel %vm3009_vm11, %v14532_v44, %v22684_v53  ;;  %vm22940_vm9 = vmmov %vm22934_vm3 }
 0x3bf   :  { %v17785_v24 = vpop.permute.xlu1 %14565  ;;  %14715 = vrot.lane.b32.xlu1 %v17756_v4, %s22741_s19  ;;  %2615 = vrot.lane.b32.xlu0 %v17706_v51, %s15100_s13  ;;  %v13409_v17 = vpack.c.bf16 %v2831_v28, %v2767_v3  ;;  %v2895_v3 = vsel %vm22932_vm10, %v14562_v21, %v14522_v16  ;;  %v14572_v28 = vunpack.i.l.bf16 %v17760_v0  ;;  %v17820_v16 = vpack.c.bf16 %v3088_v50, %v3023_v2  ;;  %vm22941_vm10 = vmmov %vm22933_vm8 }
 0x3c0   :  { %v14567_v6 = vunpack.i.l.bf16 %v17785_v24  ;;  %v17792_v8 = vpop.permute.xlu0 %2726  ;;  %v14553_v21 = vunpack.i.h.bf16 %v17716_v5  ;;  %v14548_v50 = vunpack.i.h.bf16 %v17695_v25 }
 0x3c1   :  { %13410 = vmatpush1.bf16.msra.mxu0 %v13409_v17  ;;  %v3024_v57 = vsel %vm3009_vm11, %v14572_v28, %v14532_v44 }
 0x3c2   :  { %v2959_v22 = vsel %vm22912_vm6, %v14567_v6, %v14527_v41  ;;  %13412 = vmatprep.subr.bf16.mxu0 %v17794_v11  ;;  %v2571_v6 = vsel %vm169_vm2, %v14503_v9, %v14543_v54  ;;  %v2700_v28 = vsel %vm2687_vm0, %v14513_v62, %v14553_v21  ;;  %v14568_v62 = vunpack.i.h.bf16 %v17785_v24  ;;  %vm22943_vm6 = vmmov %vm22939_vm7 }
 0x3c3   :  { %v17811_v18 = vpop.permute.xlu1 %14575  ;;  %14720 = vrot.lane.b32.xlu1 %v17756_v4, %s22746_s15  ;;  %2744 = vrot.lane.b32.xlu0 %v17706_v51, %s15117_s1  ;;  %v13413_v17 = vpack.c.bf16 %v2959_v22, %v2895_v3  ;;  %v14563_v22 = vunpack.i.h.bf16 %v17729_v15 }
 0x3c4   :  { %v14577_v26 = vunpack.i.l.bf16 %v17811_v18  ;;  %v17818_v53 = vpop.permute.xlu0 %14580  ;;  %v14578_v15 = vunpack.i.h.bf16 %v17811_v18  ;;  %v2957_v36 = vsel %vm22934_vm3, %v14528_v60, %v14568_v62 }
 0x3c5   :  { %v14582_v41 = vunpack.i.l.bf16 %v17818_v53  ;;  %13414 = vmatpush1.bf16.msra.mxu0 %v13413_v17  ;;  %v2893_v60 = vsel %vm22935_vm12, %v14523_v7, %v14563_v22 }
 0x3c6   :  { %v3089_v3 = vsel %vm3074_vm14, %v14577_v26, %v14537_v52  ;;  %13416 = vmatprep.subr.bf16.mxu0 %v17820_v16  ;;  %v17847_v26 = vpack.c.bf16 %v2571_v6, %v17491_v1  ;;  %v2635_v1 = vsel %vm299_vm4, %v14508_v47, %v14548_v50 }
 0x3c7   :  { %v17834_v2 = vpop.permute.xlu1 %2475  ;;  %14725 = vrot.lane.b32.xlu1 %v17756_v4, %s22718_s25  ;;  %2809 = vrot.lane.b32.xlu0 %v17706_v51, %s22741_s19  ;;  %v13417_v48 = vpack.c.bf16 %v3089_v3, %v3024_v57  ;;  %v2570_v9 = vsel %vm169_vm2, %v14543_v54, %v14582_v41  ;;  %v14558_v57 = vunpack.i.h.bf16 %v17749_v49  ;;  %v17872_v43 = vpack.c.bf16 %v2700_v28, %v2635_v1 }
 0x3c8   :  { %v17844_v44 = vpop.permute.xlu0 %14590  ;;  %v17850_v52 = vpack.c.bf16 %v2570_v9, %v17518_v14  ;;  %v17879_v49 = vsel %vm2752_vm13, %v17658_v56, %v17792_v8  ;;  %v2480_v55 = vsel %vm364_vm5, %v17627_v39, %v17834_v2  ;;  %v22936_v3 = vunpack.i.h.bf16 %v17676_v61 }
 0x3c9   :  { %13418 = vmatpush1.bf16.msra.mxu0 %v13417_v48  ;;  %v14592_v47 = vunpack.i.l.bf16 %v17844_v44  ;;  %v17905_v6 = vmax.f32 %v17501_v33, %v2480_v55  ;;  %v14573_v33 = vunpack.i.h.bf16 %v17760_v0  ;;  %v13431_v0 = vpack.c.bf16 %v2957_v36, %v2893_v60 }
 0x3ca   :  { %13420 = vmatprep.subr.bf16.mxu0 %v17847_v26  ;;  %13448 = vmatprep.subr.bf16.mxu1 %v17850_v52  ;;  %v14583_v36 = vunpack.i.h.bf16 %v17818_v53 }
 0x3cb   :  { %v17859_v54 = vpop.permute.xlu1 %2477  ;;  %14730 = vrot.lane.b32.xlu1 %v17756_v4, %s15120_s21  ;;  %2873 = vrot.lane.b32.xlu0 %v17706_v51, %s22746_s15 }
 0x3cc   :  { %13450 = vmatpush1.bf16.msra.mxu1 %v17847_v26  ;;  %v17870_v14 = vpop.permute.xlu0 %2728  ;;  %v2569_v60 = vsel %vm169_vm2, %v14582_v41, %v14583_v36 }
 0x3cd   :  { %13422 = vmatpush1.bf16.msra.mxu0 %v17651_v45  ;;  %v2829_v45 = vsel %vm22933_vm8, %v14518_v10, %v14558_v57  ;;  %v2764_v31 = vsel %vm2752_vm13, %v17792_v8, %v17870_v14  ;;  %v22938_v8 = vunpack.i.h.bf16 %v17684_v19 }
 0x3ce   :  { %13424 = vmatprep.subr.bf16.mxu0 %v17872_v43  ;;  %v13427_v17 = vpack.c.bf16 %v2829_v45, %v17879_v49 }
 0x3cf   :  { %v17889_v24 = vpop.permute.xlu1 %14585  ;;  %14735 = vrot.lane.b32.xlu1 %v17756_v4, %s15119_s23  ;;  %2937 = vrot.lane.b32.xlu0 %v17706_v51, %s22718_s25  ;;  %v2699_v4 = vsel %vm2687_vm0, %v14553_v21, %v14592_v47  ;;  %v3022_v9 = vsel %vm3009_vm11, %v22938_v8, %v14573_v33 }
 0x3d0   :  { %v14587_v39 = vunpack.i.l.bf16 %v17889_v24  ;;  %v17900_v56 = vpop.permute.xlu0 %2730 }
 0x3d1   :  { %13426 = vmatpush1.bf16.msra.mxu0 %v17723_v13 }
 0x3d2   :  { %13428 = vmatprep.subr.bf16.mxu0 %v13427_v17  ;;  %v2634_v10 = vsel %vm299_vm4, %v14548_v50, %v14587_v39  ;;  %v3087_v50 = vsel %vm3074_vm14, %v22936_v3, %v14578_v15 }
 0x3d3   :  { %v17921_v18 = vpop.permute.xlu1 %14595  ;;  %2553 = vrot.lane.b32.xlu1 %v17905_v6, %s15098_s30  ;;  %3001 = vrot.lane.b32.xlu0 %v17706_v51, %s15120_s21  ;;  %v17927_v32 = vpack.c.bf16 %v2699_v4, %v2634_v10  ;;  %v14588_v4 = vunpack.i.h.bf16 %v17889_v24 }
 0x3d4   :  { %v14597_v13 = vunpack.i.l.bf16 %v17921_v18  ;;  %v17934_v21 = vpop.permute.xlu0 %14600  ;;  %v14598_v3 = vunpack.i.h.bf16 %v17921_v18 }
 0x3d5   :  { %13430 = vmatpush1.bf16.msra.mxu0 %v17762_v46  ;;  %13452 = vmatprep.subr.bf16.mxu1 %v17927_v32  ;;  %v14602_v7 = vunpack.i.l.bf16 %v17934_v21  ;;  %v2633_v41 = vsel %vm299_vm4, %v14587_v39, %v14588_v4 }
 0x3d6   :  { %13432 = vmatprep.subr.bf16.mxu0 %v13431_v0  ;;  %13454 = vmatpush1.bf16.msra.mxu1 %v17872_v43  ;;  %v2828_v46 = vsel %vm22937_vm15, %v14558_v57, %v14597_v13  ;;  %v13435_v57 = vpack.c.bf16 %v3087_v50, %v3022_v9  ;;  %v18071_v50 = vld [vmem:[%s22551_s3 + $0x18] sm:$0xff]  ;;  %vm22946_vm15 = vmmov %vm22933_vm8 }
 0x3d7   :  { %v17952_v48 = vpop.permute.xlu1 %14605  ;;  %2681 = vrot.lane.b32.xlu1 %v17905_v6, %s15118_s29  ;;  %3066 = vrot.lane.b32.xlu0 %v17706_v51, %s15119_s23  ;;  %v17958_v61 = vpack.c.bf16 %v2828_v46, %v2764_v31  ;;  %v2892_v19 = vsel %vm22939_vm7, %v14563_v22, %v14602_v7 }
 0x3d8   :  { %v14607_v28 = vunpack.i.l.bf16 %v17952_v48  ;;  %v17965_v1 = vpop.permute.xlu0 %14610  ;;  %v14608_v39 = vunpack.i.h.bf16 %v17952_v48 }
 0x3d9   :  { %13434 = vmatpush1.bf16.msra.mxu0 %v17794_v11  ;;  %13456 = vmatprep.subr.bf16.mxu1 %v17958_v61  ;;  %v14612_v55 = vunpack.i.l.bf16 %v17965_v1  ;;  %v14613_v46 = vunpack.i.h.bf16 %v17965_v1 }
 0x3da   :  { %13436 = vmatprep.subr.bf16.mxu0 %v13435_v57  ;;  %13458 = vmatpush1.bf16.msra.mxu1 %v13427_v17  ;;  %v2956_v45 = vsel %vm22940_vm9, %v14568_v62, %v14607_v28 }
 0x3db   :  { %v17979_v10 = vpop.permute.xlu1 %14615  ;;  %2811 = vrot.lane.b32.xlu1 %v17905_v6, %s22741_s19  ;;  %2617 = vrot.lane.b32.xlu0 %v17905_v6, %s15100_s13  ;;  %v17985_v11 = vpack.c.bf16 %v2956_v45, %v2892_v19  ;;  %v3021_v62 = vsel %vm3009_vm11, %v14573_v33, %v14612_v55  ;;  %v14593_v33 = vunpack.i.h.bf16 %v17844_v44 }
 0x3dc   :  { %v14617_v17 = vunpack.i.l.bf16 %v17979_v10 }
 0x3dd   :  { %13438 = vmatpush1.bf16.msra.mxu0 %v17820_v16  ;;  %13460 = vmatprep.subr.bf16.mxu1 %v17985_v11 }
 0x3de   :  { %13440 = vmatprep.subr.bf16.mxu0 %v17850_v52  ;;  %13462 = vmatpush1.bf16.msra.mxu1 %v13431_v0  ;;  %v3086_v22 = vsel %vm3074_vm14, %v14578_v15, %v14617_v17  ;;  %v2479_v15 = vsel %vm364_vm5, %v17834_v2, %v17859_v54  ;;  %v18016_v0 = vpack.c.bf16 %v2569_v60, %v17539_v29 }
 0x3df   :  { %2939 = vrot.lane.b32.xlu1 %v17905_v6, %s22718_s25  ;;  %2746 = vrot.lane.b32.xlu0 %v17905_v6, %s15117_s1  ;;  %v13463_v16 = vpack.c.bf16 %v3086_v22, %v3021_v62  ;;  %v18031_v29 = vmax.f32 %v17551_v42, %v2479_v15  ;;  %v2698_v2 = vsel %vm2687_vm0, %v14592_v47, %v14593_v33  ;;  %v18051_v42 = vld [vmem:[%s22551_s3] sm:$0xff]  ;;  %v14603_v47 = vunpack.i.h.bf16 %v17934_v21  ;;  %v18145_v19 = vpop.permute.xlu1 %2732 }
 0x3e1   :  { %13442 = vmatpush1.bf16.msra.mxu0 %v17847_v26  ;;  %13464 = vmatprep.subr.bf16.mxu1 %v13463_v16  ;;  %v18041_v26 = vpack.c.bf16 %v2698_v2, %v2633_v41  ;;  %v2891_v8 = vsel %vm22943_vm6, %v14602_v7, %v14603_v47  ;;  %v3651_v7 = vld [vmem:[%s22552_s4] sm:$0xff] }
 0x3e2   :  { %13444 = vmatprep.subr.bf16.mxu0 %v17927_v32  ;;  %13466 = vmatpush1.bf16.msra.mxu1 %v13435_v57 }
 0x3e3   :  { %3068 = vrot.lane.b32.xlu1 %v17905_v6, %s15119_s23  ;;  %2875 = vrot.lane.b32.xlu0 %v17905_v6, %s22746_s15 }
 0x3e4   :  { %13468 = vmatprep.subr.bf16.mxu1 %v18016_v0 }
 0x3e5   :  { %13446 = vmatpush1.bf16.msra.mxu0 %v17872_v43  ;;  %v18064_v43 = vsel %vm2752_vm13, %v17870_v14, %v17900_v56 }
 0x3e6   :  { %3717 = vmatprep.subr.mxu0 %v2764_v31  ;;  %13470 = vmatpush1.bf16.msra.mxu1 %v17850_v52  ;;  %v2827_v52 = vsel %vm22941_vm10, %v14597_v13, %v14598_v3  ;;  %v2494_v13 = vsel %vm364_vm5, %v17859_v54, %v17445_v30  ;;  %v14618_v31 = vunpack.i.h.bf16 %v17979_v10  ;;  %vm22942_vm5 = vmmov %vm22934_vm3  ;;  %v3652_v54 = vld [vmem:[%s22552_s4 + $0x8] sm:$0xff] }
 0x3e7   :  { %2619 = vrot.lane.b32.xlu1 %v18031_v29, %s15100_s13  ;;  %3003 = vrot.lane.b32.xlu0 %v17905_v6, %s15120_s21  ;;  %v18080_v14 = vpack.c.bf16 %v2827_v52, %v18064_v43  ;;  %v2955_v30 = vsel %vm22942_vm5, %v14607_v28, %v14608_v39  ;;  %v3020_v28 = vsel %vm3009_vm11, %v14612_v55, %v14613_v46  ;;  %vm22944_vm3 = vmmov %vm22943_vm6 }
 0x3e8   :  { %13472 = vmatprep.subr.bf16.mxu1 %v18041_v26  ;;  %v18116_v9 = vpack.c.bf16 %v2955_v30, %v2891_v8  ;;  %vm22945_vm12 = vmmov %vm22942_vm5 }
 0x3e9   :  { %3718 = vmatpush1.msra.mxu0 %v17879_v49  ;;  %v18090_v49 = vld [vmem:[%s22551_s3 + $0x10] sm:$0xff]  ;;  %vm22947_vm7 = vmmov %vm22944_vm3 }
 0x3ea   :  { %3734 = vmatmul.mubr.f32.vlgmr.msra.gmra.mrb[8].mxu0 %v18051_v42  ;;  %13474 = vmatpush1.bf16.msra.mxu1 %v17927_v32  ;;  %v18105_v32 = vmax.f32 %v17561_v59, %v2494_v13  ;;  %v3085_v59 = vsel %vm3074_vm14, %v14617_v17, %v14618_v31  ;;  %vm22948_vm9 = vmmov %vm22942_vm5 }
 0x3eb   :  { %2748 = vrot.lane.b32.xlu1 %v18031_v29, %s15117_s1  ;;  %2555 = vrot.lane.b32.xlu0 %v18031_v29, %s15098_s30  ;;  %v18139_v57 = vpack.c.bf16 %v3085_v59, %v3020_v28  ;;  %vm22949_vm10 = vmmov %vm22933_vm8 }
 0x3ec   :  { %13476 = vmatprep.subr.bf16.mxu1 %v18080_v14  ;;  %10480 = vmatprep.mubr.msk.f32.mxu0 %vm1795_vm1, %v18071_v50  ;;  %vm22950_vm5 = vmmov %vm22933_vm8 }
 0x3ed   :  { %vm22951_vm6 = vmmov %vm22948_vm9 }
 0x3ee   :  { %3740 = vmatmul.mubr.f32.gmra.mrb[10].mxu0 %v18090_v49  ;;  %13478 = vmatpush1.bf16.msra.mxu1 %v17958_v61  ;;  %v14740_v61 = vpack.i.bf16 %v18105_v32, %v18031_v29 }
 0x3ef   :  { %3660 = vperm.xlu1 %14498, %v3652_v54   ;;  %2683 = vrot.lane.b32.xlu0 %v18031_v29, %s15118_s29 }
 0x3f0   :  { %13480 = vmatprep.subr.bf16.mxu1 %v18116_v9  ;;  %10483 = vmatprep.mubr.msk.f32.mxu0 %vm1795_vm1, %v17580_v35 }
 0x3f2   :  { %13482 = vmatpush1.bf16.msra.mxu1 %v17985_v11 }
 0x3f3   :  { %14741 = vrot.lane.b32.xlu1 %v14740_v61, %s22741_s19  ;;  %3655 = vperm.xlu0 %14739, %v3651_v7  }
 0x3f4   :  { %13484 = vmatprep.subr.bf16.mxu1 %v18139_v57 }
 0x3f6   :  { %13486 = vmatpush1.bf16.msra.mxu1 %v13463_v16 }
 0x3f7   :  { %14751 = vrot.lane.b32.xlu1 %v14740_v61, %s22718_s25  ;;  %14746 = vrot.lane.b32.xlu0 %v14740_v61, %s22746_s15  ;;  %s15128_s25 = smov 112  }
 0x3fb   :  { %3070 = vrot.lane.b32.xlu1 %v18031_v29, %s15119_s23  ;;  %3005 = vrot.lane.b32.xlu0 %v18031_v29, %s15120_s21 }
 0x3fd   :  { %v18151_v55 = vpop.permute.xlu1 %14620  ;;  %v18153_v45 = vpop.permute.xlu0 %14630 }
 0x3fe   :  { %v14622_v11 = vunpack.i.l.bf16 %v18151_v55  ;;  %v14632_v17 = vunpack.i.l.bf16 %v18153_v45  ;;  %v14623_v8 = vunpack.i.h.bf16 %v18151_v55 }
 0x3ff   :  { %2621 = vrot.lane.b32.xlu1 %v18105_v32, %s15100_s13  ;;  %2685 = vrot.lane.b32.xlu0 %v18105_v32, %s15118_s29 }
 0x400   :  { %v2568_v62 = vsel %vm169_vm2, %v14583_v36, %v14622_v11  ;;  %v2567_v10 = vsel %vm169_vm2, %v14622_v11, %v14623_v8 }
 0x401   :  { %v18165_v22 = vpop.permute.xlu1 %14625  ;;  %v18167_v16 = vpop.permute.xlu0 %14635  ;;  %v18170_v60 = vpack.c.bf16 %v2568_v62, %v17535_v23  ;;  %v2697_v23 = vsel %vm2687_vm0, %v14593_v33, %v14632_v17  ;;  %v2762_v33 = vsel %vm2752_vm13, %v17900_v56, %v18145_v19 }
 0x402   :  { %v14627_v15 = vunpack.i.l.bf16 %v18165_v22  ;;  %v14637_v41 = vunpack.i.l.bf16 %v18167_v16 }
 0x403   :  { %2750 = vrot.lane.b32.xlu1 %v18105_v32, %s15117_s1  ;;  %13488 = vmatprep.subr.bf16.mxu1 %v18170_v60 }
 0x404   :  { %13496 = vmatprep.subr.bf16.mxu0 %v18170_v60  ;;  %13490 = vmatpush1.bf16.msra.mxu1 %v18016_v0  ;;  %v2632_v53 = vsel %vm299_vm4, %v14588_v4, %v14627_v15  ;;  %v2826_v24 = vsel %vm22933_vm8, %v14598_v3, %v14637_v41  ;;  %vm22952_vm8 = vmmov %vm22944_vm3 }
 0x405   :  { %13498 = vmatpush1.bf16.msra.mxu0 %v18016_v0  ;;  %v18190_v36 = vpop.permute.xlu1 %14645  ;;  %v18192_v2 = vpop.permute.xlu0 %14640  ;;  %v13491_v52 = vpack.c.bf16 %v2697_v23, %v2632_v53  ;;  %v13503_v0 = vpack.c.bf16 %v2826_v24, %v2762_v33 }
 0x406   :  { %v14647_v4 = vunpack.i.l.bf16 %v18190_v36  ;;  %v14642_v44 = vunpack.i.l.bf16 %v18192_v2  ;;  %v14643_v11 = vunpack.i.h.bf16 %v18192_v2 }
 0x407   :  { %13492 = vmatprep.subr.bf16.mxu1 %v13491_v52  ;;  %13500 = vmatprep.subr.bf16.mxu0 %v13491_v52 }
 0x408   :  { %13494 = vmatpush1.bf16.msra.mxu1 %v18041_v26  ;;  %v2890_v3 = vsel %vm22944_vm3, %v14603_v47, %v14642_v44  ;;  %v2954_v30 = vsel %vm22945_vm12, %v14608_v39, %v14647_v4  ;;  %v14628_v47 = vunpack.i.h.bf16 %v18165_v22  ;;  %v2889_v2 = vsel %vm22947_vm7, %v14642_v44, %v14643_v11  ;;  %vm22953_vm3 = vmmov %vm22950_vm5 }
 0x409   :  { %13502 = vmatpush1.bf16.msra.mxu0 %v18041_v26  ;;  %v18208_v18 = vpop.permute.xlu1 %14655  ;;  %v14651_v13 = vpop.permute.xlu0 %14650  ;;  %3794 = vmatprep.subr.mxu1 %v2762_v33  ;;  %v13507_v26 = vpack.c.bf16 %v2954_v30, %v2890_v3  ;;  %vm22954_vm12 = vmmov %vm22953_vm3 }
 0x40a   :  { %v14657_v56 = vunpack.i.l.bf16 %v18208_v18  ;;  %v14652_v54 = vunpack.i.l.bf16 %v14651_v13  ;;  %13504 = vmatprep.subr.bf16.mxu0 %v13503_v0  ;;  %v2631_v61 = vsel %vm299_vm4, %v14627_v15, %v14628_v47  ;;  %v14658_v23 = vunpack.i.h.bf16 %v18208_v18 }
 0x40c   :  { %3795 = vmatpush1.msra.mxu1 %v18064_v43  ;;  %v3019_v48 = vsel %vm3009_vm11, %v14613_v46, %v14652_v54  ;;  %v3084_v39 = vsel %vm3074_vm14, %v14618_v31, %v14657_v56  ;;  %v14633_v31 = vunpack.i.h.bf16 %v18153_v45  ;;  %v18250_v46 = vpack.c.bf16 %v2567_v10, %v17583_v58 }
 0x40d   :  { %13506 = vmatpush1.bf16.msra.mxu0 %v18080_v14  ;;  %v18222_v21 = vpop.permute.xlu1 %14665  ;;  %v18224_v59 = vpop.permute.xlu0 %2734  ;;  %3811 = vmatmul.mubr.f32.vlgmr.msra.gmra.mrb[8].mxu1 %v18051_v42  ;;  %v13511_v43 = vpack.c.bf16 %v3084_v39, %v3019_v48  ;;  %v3083_v18 = vsel %vm3074_vm14, %v14657_v56, %v14658_v23 }
 0x40e   :  { %13508 = vmatprep.subr.bf16.mxu0 %v13507_v26  ;;  %10482 = vmatprep.mubr.msk.f32.mxu1 %vm1795_vm1, %v18071_v50  ;;  %v2696_v58 = vsel %vm2687_vm0, %v14632_v17, %v14633_v31  ;;  %v18275_v62 = vsel %vm2752_vm13, %v18145_v19, %v18224_v59 }
 0x40f   :  { %v18267_v28 = vpack.c.bf16 %v2696_v58, %v2631_v61  ;;  %v14667_v61 = vunpack.i.l.bf16 %v18222_v21 }
 0x411   :  { %13510 = vmatpush1.bf16.msra.mxu0 %v18116_v9  ;;  %v18239_v14 = vpop.permute.xlu1 %2736  ;;  %v14661_v1 = vpop.permute.xlu0 %14660  ;;  %3817 = vmatmul.mubr.f32.gmra.mrb[10].mxu1 %v18090_v49 }
 0x412   :  { %13512 = vmatprep.subr.bf16.mxu0 %v13511_v43  ;;  %10485 = vmatprep.mubr.msk.f32.mxu1 %vm1795_vm1, %v17580_v35  ;;  %v14638_v35 = vunpack.i.h.bf16 %v18167_v16  ;;  %v14663_v16 = vunpack.i.h.bf16 %v14661_v1  ;;  %v14662_v33 = vunpack.i.l.bf16 %v14661_v1  ;;  %v2760_v22 = vsel %vm2752_vm13, %v18224_v59, %v18239_v14 }
 0x414   :  { %v2825_v17 = vsel %vm22946_vm15, %v14637_v41, %v14638_v35  ;;  %v2565_v44 = vsel %vm169_vm2, %v14662_v33, %v14663_v16  ;;  %v2566_v56 = vsel %vm169_vm2, %v14623_v8, %v14662_v33  ;;  %v14668_v8 = vunpack.i.h.bf16 %v18222_v21  ;;  %vm22955_vm15 = vmmov %vm22947_vm7 }
 0x415   :  { %13514 = vmatpush1.bf16.msra.mxu0 %v18139_v57  ;;  %v18253_v9 = vpop.permute.xlu1 %2740  ;;  %v18255_v7 = vpop.permute.xlu0 %14670  ;;  %v14648_v57 = vunpack.i.h.bf16 %v18190_v36  ;;  %v13523_v53 = vpack.c.bf16 %v2825_v17, %v18275_v62  ;;  %v14653_v36 = vunpack.i.h.bf16 %v14651_v13  ;;  %v13545_v10 = vpack.c.bf16 %v2565_v44, %v17611_v27  ;;  %vm22956_vm7 = vmmov %vm22951_vm6 }
 0x416   :  { %13516 = vmatprep.subr.bf16.mxu0 %v18250_v46  ;;  %v13535_v35 = vpack.c.bf16 %v2566_v56, %v17594_v37  ;;  %v2630_v37 = vsel %vm299_vm4, %v14628_v47, %v14667_v61  ;;  %v2629_v17 = vsel %vm299_vm4, %v14667_v61, %v14668_v8 }
 0x417   :  { %v2953_v24 = vsel %vm22948_vm9, %v14647_v4, %v14648_v57  ;;  %vm22957_vm9 = vmmov %vm22951_vm6 }
 0x418   :  { %v13527_v41 = vpack.c.bf16 %v2953_v24, %v2889_v2 }
 0x419   :  { %13518 = vmatpush1.bf16.msra.mxu0 %v18170_v60  ;;  %v18278_v15 = vpop.permute.xlu1 %14680  ;;  %v18280_v45 = vpop.permute.xlu0 %2738 }
 0x41a   :  { %13520 = vmatprep.subr.bf16.mxu0 %v18267_v28  ;;  %v14683_v33 = vunpack.i.h.bf16 %v18278_v15  ;;  %v14682_v44 = vunpack.i.l.bf16 %v18278_v15  ;;  %v2759_v61 = vsel %vm2752_vm13, %v18239_v14, %v18280_v45 }
 0x41d   :  { %13522 = vmatpush1.bf16.msra.mxu0 %v13491_v52  ;;  %v18289_v19 = vpop.permute.xlu1 %14690  ;;  %v18291_v60 = vpop.permute.xlu0 %14675  ;;  %v3018_v52 = vsel %vm3009_vm11, %v14652_v54, %v14653_v36 }
 0x41e   :  { %13524 = vmatprep.subr.bf16.mxu0 %v13523_v53  ;;  %v13531_v4 = vpack.c.bf16 %v3083_v18, %v3018_v52  ;;  %v14678_v27 = vunpack.i.h.bf16 %v18291_v60  ;;  %v14677_v57 = vunpack.i.l.bf16 %v18291_v60 }
 0x421   :  { %13526 = vmatpush1.bf16.msra.mxu0 %v13503_v0  ;;  %v14701_v3 = vpop.permute.xlu1 %14700  ;;  %v18297_v30 = vpop.permute.xlu0 %14685  ;;  %v14672_v0 = vunpack.i.l.bf16 %v18255_v7 }
 0x422   :  { %v14702_v13 = vunpack.i.l.bf16 %v14701_v3  ;;  %13528 = vmatprep.subr.bf16.mxu0 %v13527_v41  ;;  %v14703_v53 = vunpack.i.h.bf16 %v14701_v3  ;;  %v14688_v36 = vunpack.i.h.bf16 %v18297_v30  ;;  %v14687_v2 = vunpack.i.l.bf16 %v18297_v30 }
 0x423   :  { %v2695_v55 = vsel %vm2687_vm0, %v14633_v31, %v14672_v0 }
 0x424   :  { %v2564_v48 = vsel %vm169_vm2, %v14663_v16, %v14702_v13  ;;  %v13539_v11 = vpack.c.bf16 %v2695_v55, %v2630_v37 }
 0x425   :  { %13530 = vmatpush1.bf16.msra.mxu0 %v13507_v26  ;;  %v18308_v39 = vpop.permute.xlu1 %14710  ;;  %v18310_v1 = vpop.permute.xlu0 %14695  ;;  %v18313_v54 = vpack.c.bf16 %v2564_v48, %v17614_v40  ;;  %v14673_v26 = vunpack.i.h.bf16 %v18255_v7  ;;  %v2563_v48 = vsel %vm169_vm2, %v14702_v13, %v14703_v53 }
 0x426   :  { %13532 = vmatprep.subr.bf16.mxu0 %v13531_v4  ;;  %v14712_v7 = vunpack.i.l.bf16 %v18308_v39  ;;  %v2758_v4 = vsel %vm2752_vm13, %v18280_v45, %v18253_v9  ;;  %v14713_v56 = vunpack.i.h.bf16 %v18308_v39  ;;  %v2950_v39 = vsel %vm22951_vm6, %v14687_v2, %v14688_v36 }
 0x427   :  { %13544 = vmatprep.subr.bf16.mxu1 %v18313_v54 }
 0x428   :  { %13546 = vmatpush1.bf16.msra.mxu1 %v13545_v10  ;;  %v2693_v16 = vsel %vm2687_vm0, %v14673_v26, %v14712_v7 }
 0x429   :  { %13534 = vmatpush1.bf16.msra.mxu0 %v13511_v43  ;;  %v18324_v40 = vpop.permute.xlu1 %2679  ;;  %v18326_v58 = vpop.permute.xlu0 %2551  ;;  %v2694_v43 = vsel %vm2687_vm0, %v14672_v0, %v14673_v26 }
 0x42a   :  { %13536 = vmatprep.subr.bf16.mxu0 %v13535_v35  ;;  %v13549_v47 = vpack.c.bf16 %v2694_v43, %v2629_v17  ;;  %v2562_v59 = vsel %vm169_vm2, %v14703_v53, %v18326_v58  ;;  %v2691_v35 = vsel %vm2687_vm0, %v14713_v56, %v18324_v40  ;;  %v14698_v43 = vunpack.i.h.bf16 %v18310_v1 }
 0x42b   :  { %v18389_v26 = vpack.c.bf16 %v2562_v59, %v17666_v20  ;;  %v18405_v20 = vpack.c.bf16 %v2563_v48, %v17635_v38  ;;  %v14697_v38 = vunpack.i.l.bf16 %v18310_v1  ;;  %v14693_v53 = vunpack.i.h.bf16 %v18289_v19 }
 0x42d   :  { %13538 = vmatpush1.bf16.msra.mxu0 %v18250_v46  ;;  %v18341_v31 = vpop.permute.xlu1 %2742  ;;  %v14706_v21 = vpop.permute.xlu0 %14705  ;;  %v2822_v46 = vsel %vm22949_vm10, %v14677_v57, %v14678_v27  ;;  %vm22958_vm10 = vmmov %vm22952_vm8 }
 0x42e   :  { %v14707_v23 = vunpack.i.l.bf16 %v14706_v21  ;;  %13540 = vmatprep.subr.bf16.mxu0 %v13539_v11  ;;  %v14708_v41 = vunpack.i.h.bf16 %v14706_v21  ;;  %v18380_v10 = vpack.c.bf16 %v2822_v46, %v2758_v4  ;;  %v2692_v21 = vsel %vm2687_vm0, %v14712_v7, %v14713_v56 }
 0x42f   :  { %v18465_v59 = vsel %vm2752_vm13, %v18253_v9, %v18341_v31 }
 0x430   :  { %v2628_v24 = vsel %vm299_vm4, %v14668_v8, %v14707_v23  ;;  %v2627_v8 = vsel %vm299_vm4, %v14707_v23, %v14708_v41  ;;  %v14692_v23 = vunpack.i.l.bf16 %v18289_v19 }
 0x431   :  { %13542 = vmatpush1.bf16.msra.mxu0 %v18267_v28  ;;  %v14716_v3 = vpop.permute.xlu1 %14715  ;;  %v18364_v52 = vpop.permute.xlu0 %2615  ;;  %v18366_v18 = vpack.c.bf16 %v2693_v16, %v2628_v24  ;;  %v18457_v16 = vld [vmem:[%s22551_s3 + $0x8] sm:$0xff] }
 0x432   :  { %v14717_v0 = vunpack.i.l.bf16 %v14716_v3  ;;  %3871 = vmatprep.subr.mxu0 %v2760_v22  ;;  %v2626_v28 = vsel %vm299_vm4, %v14708_v41, %v18364_v52  ;;  %v3015_v9 = vsel %vm3009_vm11, %v14692_v23, %v14693_v53 }
 0x433   :  { %13548 = vmatprep.subr.bf16.mxu1 %v18366_v18  ;;  %v18411_v37 = vpack.c.bf16 %v2691_v35, %v2626_v28 }
 0x434   :  { %v2823_v13 = vsel %vm22950_vm5, %v14717_v0, %v14677_v57  ;;  %13550 = vmatpush1.bf16.msra.mxu1 %v13549_v47  ;;  %v14718_v57 = vunpack.i.h.bf16 %v14716_v3  ;;  %v18432_v47 = vpack.c.bf16 %v2692_v21, %v2627_v8  ;;  %vm22959_vm5 = vmmov %vm22951_vm6 }
 0x435   :  { %3872 = vmatpush1.msra.mxu0 %v18275_v62  ;;  %v14721_v14 = vpop.permute.xlu1 %14720  ;;  %v18401_v45 = vpop.permute.xlu0 %2744  ;;  %13552 = vmatprep.subr.bf16.mxu1 %v18380_v10  ;;  %v13553_v55 = vpack.c.bf16 %v2823_v13, %v2759_v61  ;;  %v2886_v62 = vsel %vm22952_vm8, %v14682_v44, %v14683_v33  ;;  %vm22960_vm6 = vmmov %vm22952_vm8 }
 0x436   :  { %3888 = vmatmul.mubr.f32.vlgmr.msra.gmra.mrb[12].mxu0 %v18051_v42  ;;  %13592 = vmatprep.subr.bf16.mxu0 %v18389_v26  ;;  %v18422_v11 = vpack.c.bf16 %v2950_v39, %v2886_v62  ;;  %v14722_v17 = vunpack.i.l.bf16 %v14721_v14  ;;  %v2821_v7 = vsel %vm22953_vm3, %v14678_v27, %v14718_v57  ;;  %v18442_v46 = vsel %vm2752_vm13, %v18341_v31, %v18401_v45  ;;  %vm22961_vm8 = vmmov %vm22953_vm3 }
 0x437   :  { %13594 = vmatpush1.bf16.msra.mxu0 %v18405_v20  ;;  %10484 = vmatprep.mubr.msk.f32.mxu0 %vm1795_vm1, %v18071_v50  ;;  %v3080_v27 = vsel %vm3074_vm14, %v14697_v38, %v14698_v43  ;;  %v13571_v56 = vpack.c.bf16 %v2821_v7, %v18465_v59  ;;  %vm22962_vm3 = vmmov %vm22960_vm6 }
 0x438   :  { %13596 = vmatprep.subr.bf16.mxu0 %v18411_v37  ;;  %13554 = vmatpush1.bf16.msra.mxu1 %v13553_v55  ;;  %v2887_v41 = vsel %vm22955_vm15, %v14722_v17, %v14682_v44  ;;  %v18479_v31 = vpack.c.bf16 %v3080_v27, %v3015_v9  ;;  %v14723_v44 = vunpack.i.h.bf16 %v14721_v14  ;;  %vm22964_vm15 = vmmov %vm22961_vm8 }
 0x439   :  { %v14726_v22 = vpop.permute.xlu1 %14725  ;;  %v18429_v1 = vpop.permute.xlu0 %2809  ;;  %13556 = vmatprep.subr.bf16.mxu1 %v18422_v11 }
 0x43a   :  { %v14727_v24 = vunpack.i.l.bf16 %v14726_v22  ;;  %v2820_v19 = vsel %vm22954_vm12, %v14718_v57, %v18429_v1  ;;  %3893 = vmatmul.mubr.f32.gmra.mrb[14].mxu0 %v18090_v49  ;;  %v14728_v4 = vunpack.i.h.bf16 %v14726_v22  ;;  %v2885_v8 = vsel %vm22960_vm6, %v14683_v33, %v14723_v44  ;;  %vm22963_vm12 = vmmov %vm22959_vm5 }
 0x43b   :  { %13598 = vmatpush1.bf16.msra.mxu0 %v18432_v47  ;;  %v18450_v60 = vpack.c.bf16 %v2820_v19, %v18442_v46  ;;  %10487 = vmatprep.mubr.msk.f32.mxu0 %vm1795_vm1, %v18457_v16  ;;  %vm22968_vm6 = vmmov %vm22961_vm8 }
 0x43c   :  { %v2951_v3 = vsel %vm22956_vm7, %v14727_v24, %v14687_v2  ;;  %v2949_v2 = vsel %vm22957_vm9, %v14688_v36, %v14728_v4  ;;  %vm22965_vm7 = vmmov %vm22962_vm3 }
 0x43d   :  { %v14731_v48 = vpop.permute.xlu1 %14730  ;;  %v18473_v0 = vpop.permute.xlu0 %2873  ;;  %13600 = vmatprep.subr.bf16.mxu0 %v18450_v60  ;;  %v13557_v28 = vpack.c.bf16 %v2951_v3, %v2887_v41  ;;  %v13575_v62 = vpack.c.bf16 %v2949_v2, %v2885_v8  ;;  %vm22966_vm9 = vmmov %vm22959_vm5 }
 0x43e   :  { %v14732_v61 = vunpack.i.l.bf16 %v14731_v48  ;;  %v2884_v35 = vsel %vm22958_vm10, %v14723_v44, %v18473_v0  ;;  %v14733_v15 = vunpack.i.h.bf16 %v14731_v48  ;;  %vm22967_vm10 = vmmov %vm22962_vm3 }
 0x43f   :  { %13602 = vmatpush1.bf16.msra.mxu0 %v13571_v56  ;;  %13558 = vmatpush1.bf16.msra.mxu1 %v13557_v28 }
 0x440   :  { %13560 = vmatprep.subr.bf16.mxu1 %v18479_v31  ;;  %v3016_v30 = vsel %vm3009_vm11, %v14732_v61, %v14692_v23  ;;  %v3014_v41 = vsel %vm3009_vm11, %v14693_v53, %v14733_v15 }
 0x441   :  { %v14736_v13 = vpop.permute.xlu1 %14735  ;;  %v2938_v39 = vpop.permute.xlu0 %2937 }
 0x442   :  { %v14737_v55 = vunpack.i.l.bf16 %v14736_v13  ;;  %v2948_v14 = vsel %vm22959_vm5, %v14728_v4, %v2938_v39  ;;  %v14738_v21 = vunpack.i.h.bf16 %v14736_v13 }
 0x443   :  { %v18495_v57 = vpack.c.bf16 %v2948_v14, %v2884_v35 }
 0x444   :  { %v3081_v36 = vsel %vm3074_vm14, %v14737_v55, %v14697_v38  ;;  %v3079_v33 = vsel %vm3074_vm14, %v14698_v43, %v14738_v21 }
 0x445   :  { %v2554_v17 = vpop.permute.xlu1 %2553  ;;  %v3002_v22 = vpop.permute.xlu0 %3001  ;;  %13604 = vmatprep.subr.bf16.mxu0 %v18495_v57  ;;  %v13561_v7 = vpack.c.bf16 %v3081_v36, %v3016_v30  ;;  %v13579_v43 = vpack.c.bf16 %v3079_v33, %v3014_v41 }
 0x446   :  { %13606 = vmatpush1.bf16.msra.mxu0 %v13575_v62  ;;  %v2561_v38 = vsel %vm169_vm2, %v18326_v58, %v2554_v17  ;;  %v3013_v19 = vsel %vm3009_vm11, %v14733_v15, %v3002_v22 }
 0x447   :  { %13562 = vmatpush1.bf16.msra.mxu1 %v13561_v7  ;;  %v13611_v58 = vpack.c.bf16 %v2561_v38, %v17706_v51 }
 0x448   :  { %13564 = vmatprep.subr.bf16.mxu1 %v18405_v20 }
 0x449   :  { %v2682_v24 = vpop.permute.xlu1 %2681  ;;  %v3067_v23 = vpop.permute.xlu0 %3066 }
 0x44a   :  { %v3078_v27 = vsel %vm3074_vm14, %v14738_v21, %v3067_v23 }
 0x44b   :  { %13566 = vmatpush1.bf16.msra.mxu1 %v18313_v54  ;;  %v13607_v3 = vpack.c.bf16 %v3078_v27, %v3013_v19  ;;  %v2690_v54 = vsel %vm2687_vm0, %v18324_v40, %v2682_v24 }
 0x44c   :  { %13568 = vmatprep.subr.bf16.mxu1 %v18432_v47 }
 0x44d   :  { %v18516_v4 = vpop.permute.xlu1 %2811  ;;  %v2618_v48 = vpop.permute.xlu0 %2617  ;;  %13608 = vmatprep.subr.bf16.mxu0 %v13607_v3 }
 0x44e   :  { %v2625_v28 = vsel %vm299_vm4, %v18364_v52, %v2618_v48  ;;  %13610 = vmatpush1.bf16.msra.mxu0 %v13579_v43  ;;  %v2819_v52 = vsel %vm22961_vm8, %v18429_v1, %v18516_v4  ;;  %vm4365_vm8 = vcmask 130048  }
 0x44f   :  { %13570 = vmatpush1.bf16.msra.mxu1 %v18366_v18  ;;  %13612 = vmatprep.subr.bf16.mxu0 %v13611_v58  ;;  %v13615_v9 = vpack.c.bf16 %v2690_v54, %v2625_v28 }
 0x450   :  { %13572 = vmatprep.subr.bf16.mxu1 %v13571_v56 }
 0x451   :  { %v2747_v53 = vpop.permute.xlu0 %2746  ;;  %v18530_v51 = vpop.permute.xlu1 %2939 }
 0x452   :  { %v2755_v44 = vsel %vm2752_vm13, %v18401_v45, %v2747_v53  ;;  %13614 = vmatpush1.bf16.msra.mxu0 %v18389_v26 }
 0x453   :  { %13574 = vmatpush1.bf16.msra.mxu1 %v18380_v10  ;;  %13616 = vmatprep.subr.bf16.mxu0 %v13615_v9  ;;  %v18539_v18 = vpack.c.bf16 %v2819_v52, %v2755_v44  ;;  %v2947_v10 = vsel %vm22963_vm12, %v2938_v39, %v18530_v51 }
 0x454   :  { %13576 = vmatprep.subr.bf16.mxu1 %v13575_v62 }
 0x455   :  { %v18537_v40 = vpop.permute.xlu0 %2875  ;;  %v18551_v1 = vpop.permute.xlu1 %3068 }
 0x456   :  { %v2883_v45 = vsel %vm22962_vm3, %v18473_v0, %v18537_v40  ;;  %13618 = vmatpush1.bf16.msra.mxu0 %v18411_v37 }
 0x457   :  { %13578 = vmatpush1.bf16.msra.mxu1 %v18422_v11  ;;  %13620 = vmatprep.subr.bf16.mxu0 %v18539_v18  ;;  %v18555_v61 = vpack.c.bf16 %v2947_v10, %v2883_v45  ;;  %v3077_v11 = vsel %vm3074_vm14, %v3067_v23, %v18551_v1 }
 0x458   :  { %13580 = vmatprep.subr.bf16.mxu1 %v13579_v43 }
 0x459   :  { %v18553_v56 = vpop.permute.xlu0 %3003 }
 0x45a   :  { %v3012_v0 = vsel %vm3009_vm11, %v3002_v22, %v18553_v56  ;;  %13622 = vmatpush1.bf16.msra.mxu0 %v18450_v60  ;;  %v18575_v60 = vpop.permute.xlu1 %2619 }
 0x45b   :  { %13582 = vmatpush1.bf16.msra.mxu1 %v18479_v31  ;;  %13624 = vmatprep.subr.bf16.mxu0 %v18555_v61  ;;  %v13627_v13 = vpack.c.bf16 %v3077_v11, %v3012_v0 }
 0x45c   :  { %13584 = vmatprep.subr.bf16.mxu1 %v18389_v26 }
 0x45d   :  { %v18567_v2 = vpop.permute.xlu0 %2555 }
 0x45e   :  { %v2560_v39 = vsel %vm169_vm2, %v2554_v17, %v18567_v2  ;;  %13626 = vmatpush1.bf16.msra.mxu0 %v18495_v57 }
 0x45f   :  { %13586 = vmatpush1.bf16.msra.mxu1 %v18405_v20  ;;  %13628 = vmatprep.subr.bf16.mxu0 %v13627_v13  ;;  %v18580_v26 = vpack.c.bf16 %v2560_v39, %v17905_v6  ;;  %v2624_v20 = vsel %vm299_vm4, %v2618_v48, %v18575_v60  ;;  %v18593_v6 = vpop.permute.xlu1 %2748 }
 0x460   :  { %13588 = vmatprep.subr.bf16.mxu1 %v18411_v37 }
 0x461   :  { %v18577_v31 = vpop.permute.xlu0 %2683 }
 0x462   :  { %v2689_v35 = vsel %vm2687_vm0, %v2682_v24, %v18577_v31  ;;  %13630 = vmatpush1.bf16.msra.mxu0 %v13607_v3 }
 0x463   :  { %13590 = vmatpush1.bf16.msra.mxu1 %v18432_v47  ;;  %13632 = vmatprep.subr.bf16.mxu0 %v18580_v26  ;;  %v18591_v37 = vpack.c.bf16 %v2689_v35, %v2624_v20  ;;  %v2754_v47 = vsel %vm2752_vm13, %v2747_v53, %v18593_v6 }
 0x464   :  { %3946 = vmatprep.subr.mxu1 %v18442_v46 }
 0x466   :  { %13634 = vmatpush1.bf16.msra.mxu0 %v13611_v58 }
 0x467   :  { %3947 = vmatpush1.msra.mxu1 %v18465_v59  ;;  %13636 = vmatprep.subr.bf16.mxu0 %v18591_v37 }
 0x468   :  { %3963 = vmatmul.mubr.f32.vlgmr.msra.gmra.mrb[12].mxu1 %v18051_v42  ;;  %13640 = vmatprep.subr.bf16.mxu1 %v18580_v26 }
 0x469   :  { %13642 = vmatpush1.bf16.msra.mxu1 %v13611_v58  ;;  %10486 = vmatprep.mubr.msk.f32.mxu1 %vm1795_vm1, %v18071_v50 }
 0x46a   :  { %13638 = vmatpush1.bf16.msra.mxu0 %v13615_v9  ;;  %13644 = vmatprep.subr.bf16.mxu1 %v18591_v37 }
 0x46b   :  { %4023 = vmatprep.subr.mxu0 %v2754_v47 }
 0x46c   :  { %3969 = vmatmul.mubr.f32.gmra.mrb[14].mxu1 %v18090_v49 }
 0x46d   :  { %13646 = vmatpush1.bf16.msra.mxu1 %v13615_v9  ;;  %10489 = vmatprep.mubr.msk.f32.mxu1 %vm1795_vm1, %v18457_v16 }
 0x46e   :  { %v18608_v46 = vpop.permute.xlu1 %3660  ;;  %4024 = vmatpush1.msra.mxu0 %v2755_v44 }
 0x46f   :  { %4040 = vmatmul.mubr.f32.vlgmr.msra.gmra.mrb[16].mxu0 %v18051_v42 }
 0x470   :  { %10488 = vmatprep.mubr.msk.f32.mxu0 %vm1795_vm1, %v18071_v50 }
 0x472   :  { %v18613_v59 = vpop.permute.xlu1 %14741  ;;  %v18615_v55 = vpop.permute.xlu0 %3655 }
 0x473   :  { %v14743_v14 = vunpack.i.l.bf16 %v18613_v59  ;;  %4046 = vmatmul.mubr.f32.gmra.mrb[18].mxu0 %v18090_v49 }
 0x475   :  { %v2818_v16 = vsel %vm22964_vm15, %v18516_v4, %v14743_v14 }
 0x476   :  { %v14752_v8 = vpop.permute.xlu1 %14751  ;;  %v14747_v57 = vpop.permute.xlu0 %14746  ;;  %v18624_v42 = vpack.c.bf16 %v2818_v16, %v2754_v47 }
 0x477   :  { %v14754_v30 = vunpack.i.h.bf16 %v14752_v8  ;;  %v14753_v50 = vunpack.i.l.bf16 %v14752_v8  ;;  %v14749_v36 = vunpack.i.h.bf16 %v14747_v57  ;;  %v14748_v62 = vunpack.i.l.bf16 %v14747_v57 }
 0x478   :  { %13648 = vmatprep.subr.bf16.mxu1 %v18624_v42 }
 0x479   :  { %13650 = vmatpush1.bf16.msra.mxu1 %v18539_v18  ;;  %v2882_v49 = vsel %vm22965_vm7, %v18537_v40, %v14748_v62  ;;  %v2946_v21 = vsel %vm22966_vm9, %v18530_v51, %v14753_v50  ;;  %v18636_v17 = vsel %vm22967_vm10, %v14748_v62, %v14749_v36  ;;  %v18640_v22 = vsel %vm22959_vm5, %v14753_v50, %v14754_v30 }
 0x47a   :  { %v18642_v7 = vpop.permute.xlu1 %3070  ;;  %v18644_v15 = vpop.permute.xlu0 %3005  ;;  %v18646_v33 = vpack.c.bf16 %v2946_v21, %v2882_v49  ;;  %v13671_v24 = vpack.c.bf16 %v18640_v22, %v18636_v17 }
 0x47b   :  { %v3076_v23 = vsel %vm3074_vm14, %v18551_v1, %v18642_v7  ;;  %v3011_v38 = vsel %vm3009_vm11, %v18553_v56, %v18644_v15 }
 0x47c   :  { %13652 = vmatprep.subr.bf16.mxu1 %v18646_v33  ;;  %v18659_v19 = vpack.c.bf16 %v3076_v23, %v3011_v38 }
 0x47d   :  { %13654 = vmatpush1.bf16.msra.mxu1 %v18555_v61 }
 0x47e   :  { %13656 = vmatprep.subr.bf16.mxu1 %v18659_v19  ;;  %v18705_v35 = vpop.permute.xlu0 %2685  ;;  %v18707_v20 = vpop.permute.xlu1 %2621 }
 0x47f   :  { %v2623_v8 = vsel %vm299_vm4, %v18575_v60, %v18707_v20  ;;  %v2688_v57 = vsel %vm2687_vm0, %v18577_v31, %v18705_v35  ;;  %v14744_v60 = vunpack.i.h.bf16 %v18613_v59 }
 0x480   :  { %v18734_v21 = vpack.c.bf16 %v2688_v57, %v2623_v8 }
 0x481   :  { %13658 = vmatpush1.bf16.msra.mxu1 %v13627_v13 }
 0x482   :  { %v18725_v50 = vpop.permute.xlu1 %2750 }
 0x4bd   :  { %v3735_v27 = vpop.f32.mrb[8].mxu0 }
 0x4be   :  { %v18664_v41 = vadd.f32 %v3735_v27, %v18615_v55  ;;  %v3737_v3 = vpop.f32.mrb[9].mxu0 }
 0x4bf   :  { %v18667_v43 = vadd.f32 %v3737_v3, %v18615_v55  ;;  %v2817_v3 = vsel %vm22968_vm6, %v14743_v14, %v14744_v60 }
 0x4c0   :  { %v4127_v4 = vmax.f32 %v18664_v41, 0.0 }
 0x4c1   :  { %v3741_v48 = vpop.f32.mrb[10].mxu0  ;;  %v4128_v28 = vmax.f32 %v18667_v43, 0.0 }
 0x4c2   :  { %v14755_v58 = vpack.i.bf16 %v4127_v4, %v18105_v32  ;;  %v18675_v54 = vadd.f32 %v3741_v48, %v18608_v46  ;;  %v3743_v53 = vpop.f32.mrb[11].mxu0 }
 0x4c3   :  { %v18685_v51 = vadd.f32 %v3743_v53, %v18608_v46 }
 0x4c4   :  { %v4137_v9 = vmax.f32 %v18675_v54, 0.0  ;;  %14756 = vrot.lane.b32.xlu0 %v14755_v58, %s15098_s30 }
 0x4c5   :  { %v4138_v45 = vmax.f32 %v18685_v51, 0.0 }
 0x4c6   :  { %v14760_v44 = vpack.i.bf16 %v4128_v28, %v4137_v9 }
 0x4c8   :  { %14761 = vrot.lane.b32.xlu0 %v14760_v44, %s15098_s30 }
 0x4e0   :  { %v3812_v52 = vpop.f32.mrb[8].mxu1 }
 0x4e1   :  { %v18688_v40 = vadd.f32 %v3812_v52, %v18615_v55  ;;  %v18690_v18 = vpop.f32.mrb[9].mxu1 }
 0x4e3   :  { %v4129_v10 = vmax.f32 %v18688_v40, 0.0  ;;  %v4318_v40 = vld [vmem:[%s22553_s5] sm:$0xff] }
 0x4e4   :  { %v3818_v1 = vpop.f32.mrb[10].mxu1 }
 0x4e5   :  { %v14765_v56 = vpack.i.bf16 %v4129_v10, %v4138_v45  ;;  %v18698_v61 = vpop.f32.mrb[11].mxu1  ;;  %v18728_v36 = vadd.f32 %v3818_v1, %v18608_v46 }
 0x4e7   :  { %14766 = vrot.lane.b32.xlu1 %v14765_v56, %s15098_s30 }
 0x509   :  { %v18701_v0 = vpop.f32.mrb[12].mxu0 }
 0x50a   :  { %v3891_v11 = vpop.f32.mrb[13].mxu0 }
 0x50d   :  { %v18703_v13 = vpop.f32.mrb[14].mxu0 }
 0x50e   :  { %v3896_v39 = vpop.f32.mrb[15].mxu0 }
 0x536   :  { %v18709_v47 = vpop.permute.xlu0 %14756 }
 0x537   :  { %v14758_v16 = vunpack.i.l.bf16 %v18709_v47  ;;  %v22686_v22 = vunpack.i.h.bf16 %v18709_v47 }
 0x539   :  { %v2559_v30 = vsel %vm169_vm2, %v18567_v2, %v14758_v16  ;;  %v18744_v2 = vsel %vm2752_vm13, %v18593_v6, %v18725_v50 }
 0x53a   :  { %v18731_v62 = vpack.c.bf16 %v2559_v30, %v18031_v29  ;;  %v4139_v29 = vmax.f32 %v18728_v36, 0.0  ;;  %v13667_v6 = vpack.c.bf16 %v2817_v3, %v18744_v2 }
 0x53b   :  { %v3964_v49 = vpop.f32.mrb[12].mxu1 }
 0x53c   :  { %v18737_v31 = vadd.f32 %v3964_v49, %v18615_v55  ;;  %v3966_v23 = vpop.f32.mrb[13].mxu1  ;;  %13660 = vmatprep.subr.bf16.mxu1 %v18731_v62 }
 0x53d   :  { %13662 = vmatpush1.bf16.msra.mxu1 %v18580_v26  ;;  %v18750_v27 = vadd.f32 %v3966_v23, %v18615_v55 }
 0x53e   :  { %v4132_v38 = vmax.f32 %v18737_v31, 0.0  ;;  %13664 = vmatprep.subr.bf16.mxu1 %v18734_v21 }
 0x53f   :  { %v3970_v48 = vpop.f32.mrb[14].mxu1  ;;  %v4133_v59 = vmax.f32 %v18750_v27, 0.0 }
 0x540   :  { %v14770_v26 = vpack.i.bf16 %v4132_v38, %v4139_v29  ;;  %v3971_v58 = vadd.f32 %v3970_v48, %v18608_v46  ;;  %v3972_v53 = vpop.f32.mrb[15].mxu1 }
 0x541   :  { %v3973_v44 = vadd.f32 %v3972_v53, %v18608_v46  ;;  %13666 = vmatpush1.bf16.msra.mxu1 %v18591_v37 }
 0x542   :  { %v4142_v52 = vmax.f32 %v3971_v58, 0.0  ;;  %v4041_v1 = vpop.f32.mrb[16].mxu0  ;;  %14771 = vrot.lane.b32.xlu0 %v14770_v26, %s15098_s30  ;;  %13668 = vmatprep.subr.bf16.mxu1 %v13667_v6 }
 0x543   :  { %v18768_v14 = vadd.f32 %v4041_v1, %v18615_v55  ;;  %v18770_v56 = vpop.f32.mrb[17].mxu0  ;;  %v4143_v39 = vmax.f32 %v3973_v44, 0.0 }
 0x544   :  { %v14775_v11 = vpack.i.bf16 %v4133_v59, %v4142_v52 }
 0x545   :  { %v4134_v8 = vmax.f32 %v18768_v14, 0.0  ;;  %13670 = vmatpush1.bf16.msra.mxu1 %v18624_v42  ;;  %v18795_v42 = vpop.permute.xlu0 %14761 }
 0x546   :  { %v4047_v57 = vpop.f32.mrb[18].mxu0  ;;  %14776 = vrot.lane.b32.xlu1 %v14775_v11, %s15098_s30  ;;  %13672 = vmatprep.subr.bf16.mxu1 %v13671_v24  ;;  %v14764_v17 = vunpack.i.h.bf16 %v18795_v42 }
 0x547   :  { %v14780_v37 = vpack.i.bf16 %v4134_v8, %v4143_v39  ;;  %v18781_v30 = vadd.f32 %v4047_v57, %v18608_v46  ;;  %v18783_v60 = vpop.f32.mrb[19].mxu0 }
 0x548   :  { %v4203_v23 = vsel %vm169_vm2, %v22686_v22, %v14764_v17 }
 0x549   :  { %v4144_v49 = vmax.f32 %v18781_v30, 0.0  ;;  %14781 = vrot.lane.b32.xlu0 %v14780_v37, %s15098_s30  ;;  %13674 = vmatpush1.bf16.msra.mxu1 %v18646_v33  ;;  %v22687_v33 = vunpack.i.l.bf16 %v18795_v42  ;;  %v18813_v48 = vmax.f32 %v4127_v4, %v4203_v23 }
 0x54b   :  { %4177 = vrot.lane.b32.xlu1 %v4144_v49, %s15098_s30 }
 0x54d   :  { %3007 = vrot.lane.b32.xlu0 %v18105_v32, %s15120_s21 }
 0x54f   :  { %3072 = vrot.lane.b32.xlu1 %v18105_v32, %s15119_s23  ;;  %s15129_s23 = smov 113  }
 0x559   :  { %v18799_v24 = vpop.permute.xlu1 %14766 }
 0x55a   :  { %v14768_v27 = vunpack.i.l.bf16 %v18799_v24  ;;  %v14769_v58 = vunpack.i.h.bf16 %v18799_v24 }
 0x55c   :  { %v4204_v3 = vsel %vm169_vm2, %v22687_v33, %v14768_v27  ;;  %v4201_v41 = vsel %vm169_vm2, %v14764_v17, %v14769_v58 }
 0x55d   :  { %v18817_v6 = vmax.f32 %v4137_v9, %v4204_v3  ;;  %v18836_v9 = vmax.f32 %v4128_v28, %v4201_v41 }
 0x55f   :  { %v14785_v26 = vpack.i.bf16 %v18817_v6, %v18813_v48 }
 0x561   :  { %14786 = vrot.lane.b32.xlu0 %v14785_v26, %s22741_s19 }
 0x5b4   :  { %v18823_v53 = vpop.permute.xlu0 %14771 }
 0x5b5   :  { %v14773_v4 = vunpack.i.l.bf16 %v18823_v53  ;;  %v22688_v57 = vunpack.i.h.bf16 %v18823_v53 }
 0x5b7   :  { %v4202_v54 = vsel %vm169_vm2, %v14768_v27, %v14773_v4 }
 0x5b8   :  { %v18840_v44 = vmax.f32 %v4138_v45, %v4202_v54  ;;  %v18842_v1 = vpop.permute.xlu1 %14776 }
 0x5b9   :  { %v14779_v11 = vunpack.i.h.bf16 %v18842_v1  ;;  %v22689_v23 = vunpack.i.l.bf16 %v18842_v1 }
 0x5ba   :  { %v14790_v37 = vpack.i.bf16 %v18840_v44, %v18836_v9 }
 0x5bb   :  { %v18848_v17 = vpop.permute.xlu0 %14781  ;;  %v4193_v43 = vsel %vm169_vm2, %v22688_v57, %v14779_v11 }
 0x5bc   :  { %v14784_v28 = vunpack.i.h.bf16 %v18848_v17  ;;  %v14783_v51 = vunpack.i.l.bf16 %v18848_v17  ;;  %14791 = vrot.lane.b32.xlu1 %v14790_v37, %s22741_s19  ;;  %v18873_v41 = vmax.f32 %v4132_v38, %v4193_v43 }
 0x5bd   :  { %v18858_v45 = vpop.permute.xlu1 %4177 }
 0x5be   :  { %v4191_v27 = vsel %vm169_vm2, %v14779_v11, %v14784_v28  ;;  %v4194_v3 = vsel %vm169_vm2, %v22689_v23, %v14783_v51  ;;  %v4192_v26 = vsel %vm169_vm2, %v14783_v51, %v18858_v45 }
 0x5bf   :  { %v18875_v54 = vmax.f32 %v4142_v52, %v4194_v3  ;;  %v18877_v37 = vmax.f32 %v4133_v59, %v4191_v27  ;;  %v18879_v22 = vmax.f32 %v4143_v39, %v4192_v26  ;;  %v3008_v11 = vpop.permute.xlu0 %3007  ;;  %v22969_v59 = vunpack.i.l.bf16 %v17690_v63 }
 0x5c0   :  { %v3010_v31 = vsel %vm3009_vm11, %v18644_v15, %v3008_v11  ;;  %v22970_v15 = vunpack.i.l.bf16 %v17695_v25  ;;  %v22971_v63 = vunpack.i.l.bf16 %v17716_v5  ;;  %v2768_v25 = vsel %vm2752_vm13, %v18725_v50, %v17618_v34  ;;  %v15094_v5 = vld [vmem:[%s22551_s3] sm:$0xff] }
 0x5c1   :  { %v14800_v33 = vpack.i.bf16 %v18879_v22, %v18877_v37  ;;  %v3073_v57 = vpop.permute.xlu1 %3072  ;;  %v14795_v23 = vpack.i.bf16 %v18875_v54, %v18873_v41  ;;  %v2574_v52 = vsel %vm169_vm2, %v14758_v16, %v22969_v59  ;;  %v18969_v26 = vadd.f32 %v18690_v18, %v18615_v55 }
 0x5c2   :  { %v3075_v38 = vsel %vm3074_vm14, %v18642_v7, %v3073_v57  ;;  %v13679_v43 = vpack.c.bf16 %v2574_v52, %v18105_v32  ;;  %v2638_v7 = vsel %vm299_vm4, %v18707_v20, %v22970_v15  ;;  %v2703_v16 = vsel %vm2687_vm0, %v18705_v35, %v22971_v63  ;;  %v15095_v32 = vld [vmem:[%s22551_s3 + $0x18] sm:$0xff] }
 0x5c3   :  { %v13675_v39 = vpack.c.bf16 %v3075_v38, %v3010_v31  ;;  %14801 = vrot.lane.b32.xlu1 %v14800_v33, %s22741_s19  ;;  %14796 = vrot.lane.b32.xlu0 %v14795_v23, %s22741_s19  ;;  %v13683_v33 = vpack.c.bf16 %v2703_v16, %v2638_v7  ;;  %v18942_v57 = vadd.f32 %v18770_v56, %v18615_v55  ;;  %v15121_v15 = vmov 0.0|0.0  }
 0x5c4   :  { %v18984_v18 = vadd.f32 %v18698_v61, %v18608_v46  ;;  %13687 = vmatprep.subr.bf16.mxu0 %v15121_v15  ;;  %v22694_v16 = vmax.f32 %v18969_v26, 0.0  ;;  %vm15122_vm14 = vmmov 0   ;;  %vm4315_vm11 = vcmask 7168  }
 0x5c5   :  { %13676 = vmatprep.subr.bf16.mxu1 %v13675_v39  ;;  %v22696_v11 = vmax.f32 %v18942_v57, 0.0 }
 0x5c6   :  { %13678 = vmatpush1.bf16.msra.mxu1 %v18659_v19  ;;  %v15096_v19 = vld [vmem:[%s22551_s3 + $0x10] sm:$0xff]  ;;  %s15124_s3 = smov 1  }
 0x5c7   :  { %13680 = vmatprep.subr.bf16.mxu1 %v13679_v43 }
 0x5ca   :  { %13682 = vmatpush1.bf16.msra.mxu1 %v18731_v62 }
 0x5cb   :  { %13684 = vmatprep.subr.bf16.mxu1 %v13683_v33  ;;  %v22695_v33 = vmax.f32 %v18984_v18, 0.0 }
 0x5ce   :  { %13686 = vmatpush1.bf16.msra.mxu1 %v18734_v21 }
 0x5cf   :  { %4100 = vmatprep.subr.mxu1 %v2768_v25 }
 0x5d2   :  { %4101 = vmatpush1.msra.mxu1 %v18744_v2  ;;  %v18938_v2 = vadd.f32 %v18783_v60, %v18608_v46 }
 0x5d3   :  { %4117 = vmatmul.mubr.f32.vlgmr.msra.gmra.mrb[16].mxu1 %v15094_v5  ;;  %v18928_v34 = vpop.permute.xlu0 %14786  ;;  %13798 = vmatprep.subr.bf16.mxu1 %v15121_v15  ;;  %v15123_v5 = vmov 0.0  }
 0x5d4   :  { %10490 = vmatprep.mubr.msk.f32.mxu1 %vm1795_vm1, %v15095_v32  ;;  %v22693_v20 = vunpack.i.h.bf16 %v18928_v34  ;;  %v22692_v50 = vunpack.i.l.bf16 %v18928_v34  ;;  %vm22972_vm1 = vmmov %vm22968_vm6  ;;  %v4145_v27 = vmax.f32 %v18938_v2, 0.0  ;;  %11706 = vmatprep.mubr.msk.f32.mxu0 %vm15122_vm14, %v15123_v5  ;;  %v10596_v2 = vld [vmem:[%s22553_s5 + $0x1e0] sm:$0xff] }
 0x5d5   :  { %vm22973_vm4 = vmmov %vm22972_vm1 }
 0x5d6   :  { %v14815_v39 = vpack.i.bf16 %v4145_v27, %v22696_v11  ;;  %vm22974_vm0 = vmmov %vm22972_vm1 }
 0x5d7   :  { %4122 = vmatmul.mubr.f32.gmra.mrb[18].mxu1 %v15096_v19  ;;  %vm22975_vm13 = vmmov %vm22974_vm0 }
 0x5d8   :  { %11748 = vmatprep.mubr.msk.f32.mxu1 %vm15122_vm14, %v15123_v5  ;;  %vm22976_vm3 = vmmov %vm22974_vm0 }
 0x5d9   :  { %vm22977_vm12 = vmmov %vm22974_vm0 }
 0x5da   :  { %vm22978_vm15 = vmmov %vm22974_vm0 }
 0x5db   :  { %vm22979_vm7 = vmmov %vm22974_vm0 }
 0x5dc   :  { %vm22983_vm9 = vmmov %vm22974_vm0 }
 0x5dd   :  { %vm22984_vm10 = vmmov %vm22974_vm0 }
 0x5de   :  { %vm22987_vm5 = vmmov %vm22974_vm0 }
 0x5df   :  { %vm22989_vm6 = vmmov %vm22974_vm0 }
 0x62e   :  { %v18930_v35 = vpop.permute.xlu1 %14791 }
 0x62f   :  { %v14794_v62 = vunpack.i.h.bf16 %v18930_v35  ;;  %v14793_v21 = vunpack.i.l.bf16 %v18930_v35 }
 0x631   :  { %v4283_v23 = vsel %vm22972_vm1, %v22692_v50, %v14793_v21  ;;  %v4284_v51 = vsel %vm22973_vm4, %v22693_v20, %v14794_v62  ;;  %vm22999_vm1 = vmmov %vm22974_vm0 }
 0x632   :  { %v18957_v60 = vmax.f32 %v18813_v48, %v4283_v23  ;;  %v18960_v56 = vmax.f32 %v18817_v6, %v4284_v51  ;;  %vm23000_vm4 = vmmov %vm22974_vm0 }
 0x634   :  { %v18965_v3 = vpack.i.bf16 %v18960_v56, %v18957_v60 }
 0x635   :  { %v18972_v31 = vpop.permute.xlu1 %14801  ;;  %v18974_v38 = vpop.permute.xlu0 %14796 }
 0x636   :  { %v14804_v48 = vunpack.i.h.bf16 %v18972_v31  ;;  %v14803_v6 = vunpack.i.l.bf16 %v18972_v31  ;;  %v22691_v59 = vunpack.i.h.bf16 %v18974_v38  ;;  %v22690_v52 = vunpack.i.l.bf16 %v18974_v38  ;;  %14806 = vrot.lane.b32.xlu0 %v18965_v3, %s15100_s13 }
 0x637   :  { %v19404_v31 = vadd.f32 %v18701_v0, %v18615_v55  ;;  %v10566_v0 = vld [vmem:[%s22553_s5 + $0x168] sm:$0xff] }
 0x638   :  { %v4274_v43 = vsel %vm22974_vm0, %v22691_v59, %v14804_v48  ;;  %v4273_v61 = vsel %vm22975_vm13, %v22690_v52, %v14803_v6  ;;  %vm23003_vm13 = vmmov %vm22974_vm0 }
 0x639   :  { %v4302_v7 = vmax.f32 %v18875_v54, %v4274_v43  ;;  %v4292_v63 = vmax.f32 %v18873_v41, %v4273_v61  ;;  %v14820_v41 = vpack.i.bf16 %v22695_v33, %v22694_v16 }
 0x63a   :  { %14816 = vrot.lane.b32.xlu0 %v14815_v39, %s15098_s30 }
 0x63b   :  { %v19009_v25 = vpack.i.bf16 %v4302_v7, %v4292_v63 }
 0x63d   :  { %14811 = vrot.lane.b32.xlu1 %v19009_v25, %s15099_s12 }
 0x63e   :  { %14831 = vrot.lane.b32.xlu0 %v19009_v25, %s15124_s3 }
 0x641   :  { %14821 = vrot.lane.b32.xlu1 %v14820_v41, %s15098_s30 }
 0x642   :  { %14836 = vrot.lane.b32.xlu0 %v19009_v25, %s15125_s24 }
 0x645   :  { %14826 = vrot.lane.b32.xlu1 %v18965_v3, %s15117_s1 }
 0x646   :  { %14846 = vrot.lane.b32.xlu0 %v18965_v3, %s15126_s20 }
 0x6a6   :  { %v4118_v54 = vpop.f32.mrb[16].mxu1 }
 0x6a7   :  { %v4120_v32 = vpop.f32.mrb[17].mxu1 }
 0x6a8   :  { %v14807_v19 = vpop.permute.xlu0 %14806 }
 0x6a9   :  { %v14809_v7 = vunpack.i.h.bf16 %v14807_v19  ;;  %v14808_v63 = vunpack.i.l.bf16 %v14807_v19 }
 0x6aa   :  { %v4123_v23 = vpop.f32.mrb[18].mxu1 }
 0x6ab   :  { %v4125_v51 = vpop.f32.mrb[19].mxu1 }
 0x6ac   :  { %v19030_v39 = vpop.permute.xlu0 %14816 }
 0x6ad   :  { %v14819_v43 = vunpack.i.h.bf16 %v19030_v39  ;;  %v14818_v61 = vunpack.i.l.bf16 %v19030_v39 }
 0x6af   :  { %v4190_v41 = vsel %vm169_vm2, %v18858_v45, %v14819_v43  ;;  %v4189_v32 = vsel %vm169_vm2, %v14784_v28, %v14818_v61  ;;  %v14812_v51 = vpop.permute.xlu1 %14811 }
 0x6b0   :  { %v19047_v52 = vmax.f32 %v4144_v49, %v4190_v41  ;;  %v19051_v19 = vmax.f32 %v4134_v8, %v4189_v32  ;;  %v14814_v59 = vunpack.i.h.bf16 %v14812_v51  ;;  %v14813_v50 = vunpack.i.l.bf16 %v14812_v51  ;;  %v14832_v20 = vpop.permute.xlu0 %14831 }
 0x6b1   :  { %v14834_v45 = vunpack.i.h.bf16 %v14832_v20  ;;  %v14833_v16 = vunpack.i.l.bf16 %v14832_v20 }
 0x6b2   :  { %v4347_v33 = vsel %vm4315_vm11, %v14808_v63, %v14813_v50  ;;  %v4348_v17 = vsel %vm4315_vm11, %v14809_v7, %v14814_v59  ;;  %v14840_v28 = vpack.i.bf16 %v19047_v52, %v19051_v19  ;;  %v10505_v59 = vld [vmem:[%s22553_s5 + $0xe8] sm:$0xff] }
 0x6b3   :  { %v13688_v11 = vpack.c.bf16 %v4348_v17, %v4347_v33  ;;  %v19057_v30 = vpop.permute.xlu1 %14821  ;;  %v4317_v14 = vsel %vm4315_vm11, %v18960_v56, %v14834_v45  ;;  %v4316_v8 = vsel %vm4315_vm11, %v18957_v60, %v14833_v16  ;;  %v19070_v33 = vadd.f32 %v4123_v23, %v18608_v46  ;;  %v10492_v45 = vld [vmem:[%s22553_s5 + $0x80] sm:$0xff] }
 0x6b4   :  { %v14824_v49 = vunpack.i.h.bf16 %v19057_v30  ;;  %v14823_v20 = vunpack.i.l.bf16 %v19057_v30  ;;  %14841 = vrot.lane.b32.xlu1 %v14840_v28, %s22741_s19  ;;  %v14837_v50 = vpop.permute.xlu0 %14836  ;;  %v19090_v16 = vadd.f32 %v4118_v54, %v18615_v55  ;;  %v13691_v23 = vpack.c.bf16 %v4317_v14, %v4316_v8  ;;  %v4319_v28 = vld [vmem:[%s22553_s5 + $0x8] sm:$0xff]  ;;  %v4320_v8 = vld [vmem:[%s22553_s5 + $0x10] sm:$0xff] }
 0x6b5   :  { %13689 = vmatpush3.bf16.msra.mxu0 %v13688_v11  ;;  %13799 = vmatpush3.bf16.msra.mxu1 %v13688_v11  ;;  %v10491_v11 = vld [vmem:[%s22553_s5 + $0x78] sm:$0xff]  ;;  %v14839_v7 = vunpack.i.h.bf16 %v14837_v50  ;;  %v14838_v63 = vunpack.i.l.bf16 %v14837_v50 }
 0x6b6   :  { %v4200_v60 = vsel %vm169_vm2, %v14773_v4, %v14824_v49  ;;  %v4199_v56 = vsel %vm169_vm2, %v14769_v58, %v14823_v20  ;;  %13690 = vmatprep.subr.bf16.mxu1 %v15121_v15  ;;  %13693 = vmatprep.subr.bf16.mxu0 %v15121_v15  ;;  %v22697_v17 = vmax.f32 %v19090_v16, 0.0  ;;  %v4321_v50 = vld [vmem:[%s22553_s5 + $0x18] sm:$0xff] }
 0x6b7   :  { %v19094_v4 = vmax.f32 %v4139_v29, %v4200_v60  ;;  %v19098_v24 = vmax.f32 %v4129_v10, %v4199_v56  ;;  %v14827_v58 = vpop.permute.xlu1 %14826  ;;  %v22698_v10 = vmax.f32 %v19070_v33, 0.0  ;;  %v4322_v60 = vld [vmem:[%s22553_s5 + $0x20] sm:$0xff] }
 0x6b8   :  { %v14829_v41 = vunpack.i.h.bf16 %v14827_v58  ;;  %v14828_v32 = vunpack.i.l.bf16 %v14827_v58  ;;  %14856 = vrot.lane.b32.xlu1 %v19009_v25, %s15127_s0  ;;  %11749 = vmatmul.mubr.msk.f32.vlgmr.msra.gmra.mrb[20].mxu1 %vm4365_vm8, %v10505_v59  ;;  %v10495_v59 = vld [vmem:[%s22553_s5 + $0x98] sm:$0xff]  ;;  %v10496_v56 = vld [vmem:[%s22553_s5 + $0xa0] sm:$0xff]  ;;  %v4324_v58 = vld [vmem:[%s22553_s5 + $0x30] sm:$0xff] }
 0x6b9   :  { %13692 = vmatpush3.bf16.msra.mxu1 %v13691_v23  ;;  %v14850_v36 = vpack.i.bf16 %v19094_v4, %v19098_v24  ;;  %11707 = vmatmul.mubr.msk.f32.vlgmr.msra.gmra.mrb[20].mxu0 %vm4365_vm8, %v10491_v11  ;;  %v14870_v14 = vpack.i.bf16 %v22698_v10, %v22697_v17  ;;  %v4323_v11 = vld [vmem:[%s22553_s5 + $0x28] sm:$0xff] }
 0x6ba   :  { %v4748_v29 = vsel %vm4315_vm11, %v14828_v32, %v14838_v63  ;;  %v4749_v54 = vsel %vm4315_vm11, %v14829_v41, %v14839_v7  ;;  %11709 = vmatprep.mubr.msk.f32.mxu0 %vm15122_vm14, %v15123_v5  ;;  %11755 = vmatprep.mubr.msk.f32.mxu1 %vm15122_vm14, %v15123_v5  ;;  %v10497_v23 = vld [vmem:[%s22553_s5 + $0xa8] sm:$0xff]  ;;  %v10498_v7 = vld [vmem:[%s22553_s5 + $0xb0] sm:$0xff]  ;;  %v4325_v63 = vld [vmem:[%s22553_s5 + $0x38] sm:$0xff] }
 0x6bb   :  { %v13694_v51 = vpack.c.bf16 %v4749_v54, %v4748_v29  ;;  %14851 = vrot.lane.b32.xlu0 %v14850_v36, %s22741_s19  ;;  %13696 = vmatprep.subr.bf16.mxu1 %v15121_v15  ;;  %v10499_v41 = vld [vmem:[%s22553_s5 + $0xb8] sm:$0xff]  ;;  %v4326_v32 = vld [vmem:[%s22553_s5 + $0x40] sm:$0xff]  ;;  %v10501_v29 = vld [vmem:[%s22553_s5 + $0xc8] sm:$0xff] }
 0x6bc   :  { %14861 = vrot.lane.b32.xlu1 %v18965_v3, %s15128_s25  ;;  %11756 = vmatmul.mubr.msk.f32.vlgmr.msra.gmra.mrb[22].mxu1 %vm4365_vm8, %v4318_v40  ;;  %v10493_v3 = vld [vmem:[%s22553_s5 + $0x88] sm:$0xff]  ;;  %v10500_v36 = vld [vmem:[%s22553_s5 + $0xc0] sm:$0xff]  ;;  %v4328_v54 = vld [vmem:[%s22553_s5 + $0x50] sm:$0xff] }
 0x6bd   :  { %13695 = vmatpush3.bf16.msra.mxu0 %v13694_v51  ;;  %11758 = vmatprep.mubr.msk.f32.mxu1 %vm15122_vm14, %v15123_v5  ;;  %v4327_v40 = vld [vmem:[%s22553_s5 + $0x48] sm:$0xff]  ;;  %v10502_v51 = vld [vmem:[%s22553_s5 + $0xd0] sm:$0xff] }
 0x6be   :  { %11710 = vmatmul.mubr.msk.f32.gmra.mrb[22].mxu0 %vm4365_vm8, %v10492_v45  ;;  %13699 = vmatprep.subr.bf16.mxu0 %v15121_v15  ;;  %v4329_v45 = vld [vmem:[%s22553_s5 + $0x58] sm:$0xff] }
 0x6bf   :  { %14866 = vrot.lane.b32.xlu0 %v19009_v25, %s15129_s23  ;;  %11712 = vmatprep.mubr.msk.f32.mxu0 %vm15122_vm14, %v15123_v5  ;;  %v10494_v25 = vld [vmem:[%s22553_s5 + $0x90] sm:$0xff] }
 0x6c0   :  { %14871 = vrot.lane.b32.xlu1 %v14870_v14, %s15098_s30  ;;  %11759 = vmatmul.mubr.msk.f32.gmra.mrb[24].mxu1 %vm4365_vm8, %v4319_v28  ;;  %v10503_v28 = vld [vmem:[%s22553_s5 + $0xd8] sm:$0xff]  ;;  %v4330_v14 = vld [vmem:[%s22553_s5 + $0x60] sm:$0xff] }
 0x6c1   :  { %11761 = vmatprep.mubr.msk.f32.mxu1 %vm15122_vm14, %v15123_v5 }
 0x6c2   :  { %11713 = vmatmul.mubr.msk.f32.gmra.mrb[24].mxu0 %vm4365_vm8, %v10493_v3  ;;  %v10504_v3 = vld [vmem:[%s22553_s5 + $0xe0] sm:$0xff] }
 0x6c3   :  { %11715 = vmatprep.mubr.msk.f32.mxu0 %vm15122_vm14, %v15123_v5 }
 0x6c4   :  { %11762 = vmatmul.mubr.msk.f32.gmra.mrb[26].mxu1 %vm4365_vm8, %v4320_v8  ;;  %v4331_v8 = vld [vmem:[%s22553_s5 + $0x68] sm:$0xff] }
 0x6c5   :  { %11764 = vmatprep.mubr.msk.f32.mxu1 %vm15122_vm14, %v15123_v5 }
 0x6c6   :  { %11716 = vmatmul.mubr.msk.f32.gmra.mrb[26].mxu0 %vm4365_vm8, %v10494_v25  ;;  %v10536_v25 = vld [vmem:[%s22553_s5 + $0xf0] sm:$0xff] }
 0x6c7   :  { %11718 = vmatprep.mubr.msk.f32.mxu0 %vm15122_vm14, %v15123_v5 }
 0x6c8   :  { %11765 = vmatmul.mubr.msk.f32.gmra.mrb[28].mxu1 %vm4365_vm8, %v4321_v50  ;;  %v4332_v50 = vld [vmem:[%s22553_s5 + $0x70] sm:$0xff] }
 0x6c9   :  { %11767 = vmatprep.mubr.msk.f32.mxu1 %vm15122_vm14, %v15123_v5 }
 0x6ca   :  { %11719 = vmatmul.mubr.msk.f32.gmra.mrb[28].mxu0 %vm4365_vm8, %v10495_v59  ;;  %v10537_v59 = vld [vmem:[%s22553_s5 + $0xf8] sm:$0xff] }
 0x6cb   :  { %11721 = vmatprep.mubr.msk.f32.mxu0 %vm15122_vm14, %v15123_v5 }
 0x6cc   :  { %11768 = vmatmul.mubr.msk.f32.gmra.mrb[30].mxu1 %vm4365_vm8, %v4322_v60  ;;  %v10538_v60 = vld [vmem:[%s22553_s5 + $0x100] sm:$0xff] }
 0x6cd   :  { %11770 = vmatprep.mubr.msk.f32.mxu1 %vm15122_vm14, %v15123_v5 }
 0x6ce   :  { %11722 = vmatmul.mubr.msk.f32.gmra.mrb[30].mxu0 %vm4365_vm8, %v10496_v56  ;;  %v10539_v56 = vld [vmem:[%s22553_s5 + $0x108] sm:$0xff] }
 0x6cf   :  { %11724 = vmatprep.mubr.msk.f32.mxu0 %vm15122_vm14, %v15123_v5 }
 0x6d0   :  { %11771 = vmatmul.mubr.msk.f32.gmra.mrb[32].mxu1 %vm4365_vm8, %v4323_v11  ;;  %v10540_v11 = vld [vmem:[%s22553_s5 + $0x110] sm:$0xff] }
 0x6d1   :  { %11773 = vmatprep.mubr.msk.f32.mxu1 %vm15122_vm14, %v15123_v5 }
 0x6d2   :  { %11725 = vmatmul.mubr.msk.f32.gmra.mrb[32].mxu0 %vm4365_vm8, %v10497_v23  ;;  %v10541_v23 = vld [vmem:[%s22553_s5 + $0x118] sm:$0xff] }
 0x6d3   :  { %11727 = vmatprep.mubr.msk.f32.mxu0 %vm15122_vm14, %v15123_v5 }
 0x6d4   :  { %11774 = vmatmul.mubr.msk.f32.gmra.mrb[34].mxu1 %vm4365_vm8, %v4324_v58  ;;  %v10542_v58 = vld [vmem:[%s22553_s5 + $0x120] sm:$0xff] }
 0x6d5   :  { %11776 = vmatprep.mubr.msk.f32.mxu1 %vm15122_vm14, %v15123_v5 }
 0x6d6   :  { %11728 = vmatmul.mubr.msk.f32.gmra.mrb[34].mxu0 %vm4365_vm8, %v10498_v7  ;;  %v10543_v7 = vld [vmem:[%s22553_s5 + $0x128] sm:$0xff] }
 0x6d7   :  { %11730 = vmatprep.mubr.msk.f32.mxu0 %vm15122_vm14, %v15123_v5 }
 0x6d8   :  { %11777 = vmatmul.mubr.msk.f32.gmra.mrb[36].mxu1 %vm4365_vm8, %v4325_v63  ;;  %v10544_v63 = vld [vmem:[%s22553_s5 + $0x130] sm:$0xff] }
 0x6d9   :  { %11779 = vmatprep.mubr.msk.f32.mxu1 %vm15122_vm14, %v15123_v5 }
 0x6da   :  { %11731 = vmatmul.mubr.msk.f32.gmra.mrb[36].mxu0 %vm4365_vm8, %v10499_v41  ;;  %v10545_v41 = vld [vmem:[%s22553_s5 + $0x138] sm:$0xff] }
 0x6db   :  { %11733 = vmatprep.mubr.msk.f32.mxu0 %vm15122_vm14, %v15123_v5 }
 0x6dc   :  { %11780 = vmatmul.mubr.msk.f32.gmra.mrb[38].mxu1 %vm4365_vm8, %v4326_v32  ;;  %v10546_v32 = vld [vmem:[%s22553_s5 + $0x140] sm:$0xff] }
 0x6dd   :  { %11782 = vmatprep.mubr.msk.f32.mxu1 %vm15122_vm14, %v15123_v5 }
 0x6de   :  { %11734 = vmatmul.mubr.msk.f32.gmra.mrb[38].mxu0 %vm4365_vm8, %v10500_v36  ;;  %v10547_v36 = vld [vmem:[%s22553_s5 + $0x148] sm:$0xff] }
 0x6df   :  { %11736 = vmatprep.mubr.msk.f32.mxu0 %vm15122_vm14, %v15123_v5 }
 0x6e0   :  { %11783 = vmatmul.mubr.msk.f32.gmra.mrb[40].mxu1 %vm4365_vm8, %v4327_v40  ;;  %v10548_v40 = vld [vmem:[%s22553_s5 + $0x150] sm:$0xff] }
 0x6e1   :  { %11785 = vmatprep.mubr.msk.f32.mxu1 %vm15122_vm14, %v15123_v5 }
 0x6e2   :  { %11737 = vmatmul.mubr.msk.f32.gmra.mrb[40].mxu0 %vm4365_vm8, %v10501_v29  ;;  %v10549_v29 = vld [vmem:[%s22553_s5 + $0x158] sm:$0xff] }
 0x6e3   :  { %11739 = vmatprep.mubr.msk.f32.mxu0 %vm15122_vm14, %v15123_v5 }
 0x6e4   :  { %11786 = vmatmul.mubr.msk.f32.gmra.mrb[42].mxu1 %vm4365_vm8, %v4328_v54 }
 0x6e5   :  { %11788 = vmatprep.mubr.msk.f32.mxu1 %vm15122_vm14, %v15123_v5 }
 0x6e6   :  { %11740 = vmatmul.mubr.msk.f32.gmra.mrb[42].mxu0 %vm4365_vm8, %v10502_v51 }
 0x6e7   :  { %11742 = vmatprep.mubr.msk.f32.mxu0 %vm15122_vm14, %v15123_v5 }
 0x6e8   :  { %11789 = vmatmul.mubr.msk.f32.gmra.mrb[44].mxu1 %vm4365_vm8, %v4329_v45 }
 0x6e9   :  { %11791 = vmatprep.mubr.msk.f32.mxu1 %vm15122_vm14, %v15123_v5 }
 0x6ea   :  { %11743 = vmatmul.mubr.msk.f32.gmra.mrb[44].mxu0 %vm4365_vm8, %v10503_v28  ;;  %v10550_v28 = vld [vmem:[%s22553_s5 + $0x160] sm:$0xff] }
 0x6eb   :  { %11745 = vmatprep.mubr.msk.f32.mxu0 %vm15122_vm14, %v15123_v5 }
 0x6ec   :  { %11792 = vmatmul.mubr.msk.f32.gmra.mrb[46].mxu1 %vm4365_vm8, %v4330_v14  ;;  %v14847_v14 = vpop.permute.xlu0 %14846 }
 0x6ed   :  { %11794 = vmatprep.mubr.msk.f32.mxu1 %vm15122_vm14, %v15123_v5 }
 0x6ee   :  { %11746 = vmatmul.mubr.msk.f32.gmra.mrb[46].mxu0 %vm4365_vm8, %v10504_v3 }
 0x6ef   :  { %11804 = vmatprep.mubr.msk.f32.mxu0 %vm15122_vm14, %v15123_v5 }
 0x6f0   :  { %11795 = vmatmul.mubr.msk.f32.gmra.mrb[48].mxu1 %vm4365_vm8, %v4331_v8 }
 0x6f1   :  { %11797 = vmatprep.mubr.msk.f32.mxu1 %vm15122_vm14, %v15123_v5 }
 0x6f2   :  { %11805 = vmatmul.mubr.msk.f32.vlgmr.msra.gmra.mrb[48].mxu0 %vm4365_vm8, %v10536_v25 }
 0x6f3   :  { %11807 = vmatprep.mubr.msk.f32.mxu0 %vm15122_vm14, %v15123_v5 }
 0x6f4   :  { %11798 = vmatmul.mubr.msk.f32.gmra.mrb[50].mxu1 %vm4365_vm8, %v4332_v50 }
 0x6f5   :  { %11853 = vmatprep.mubr.msk.f32.mxu1 %vm15122_vm14, %v15123_v5 }
 0x6f6   :  { %11808 = vmatmul.mubr.msk.f32.gmra.mrb[50].mxu0 %vm4365_vm8, %v10537_v59 }
 0x6f7   :  { %11810 = vmatprep.mubr.msk.f32.mxu0 %vm15122_vm14, %v15123_v5 }
 0x6fa   :  { %11811 = vmatmul.mubr.msk.f32.gmra.mrb[52].mxu0 %vm4365_vm8, %v10538_v60  ;;  %v14849_v60 = vunpack.i.h.bf16 %v14847_v14 }
 0x6fb   :  { %11813 = vmatprep.mubr.msk.f32.mxu0 %vm15122_vm14, %v15123_v5 }
 0x6fe   :  { %11814 = vmatmul.mubr.msk.f32.gmra.mrb[54].mxu0 %vm4365_vm8, %v10539_v56  ;;  %v14848_v56 = vunpack.i.l.bf16 %v14847_v14 }
 0x6ff   :  { %11816 = vmatprep.mubr.msk.f32.mxu0 %vm15122_vm14, %v15123_v5 }
 0x702   :  { %11817 = vmatmul.mubr.msk.f32.gmra.mrb[56].mxu0 %vm4365_vm8, %v10540_v11 }
 0x703   :  { %11819 = vmatprep.mubr.msk.f32.mxu0 %vm15122_vm14, %v15123_v5 }
 0x706   :  { %11820 = vmatmul.mubr.msk.f32.gmra.mrb[58].mxu0 %vm4365_vm8, %v10541_v23 }
 0x707   :  { %11822 = vmatprep.mubr.msk.f32.mxu0 %vm15122_vm14, %v15123_v5 }
 0x70a   :  { %11823 = vmatmul.mubr.msk.f32.gmra.mrb[60].mxu0 %vm4365_vm8, %v10542_v58 }
 0x70b   :  { %11825 = vmatprep.mubr.msk.f32.mxu0 %vm15122_vm14, %v15123_v5 }
 0x70e   :  { %11826 = vmatmul.mubr.msk.f32.gmra.mrb[62].mxu0 %vm4365_vm8, %v10543_v7 }
 0x70f   :  { %11828 = vmatprep.mubr.msk.f32.mxu0 %vm15122_vm14, %v15123_v5 }
 0x712   :  { %11829 = vmatmul.mubr.msk.f32.gmra.mrb[64].mxu0 %vm4365_vm8, %v10544_v63 }
 0x713   :  { %11831 = vmatprep.mubr.msk.f32.mxu0 %vm15122_vm14, %v15123_v5 }
 0x716   :  { %11832 = vmatmul.mubr.msk.f32.gmra.mrb[66].mxu0 %vm4365_vm8, %v10545_v41 }
 0x717   :  { %11834 = vmatprep.mubr.msk.f32.mxu0 %vm15122_vm14, %v15123_v5 }
 0x71a   :  { %11835 = vmatmul.mubr.msk.f32.gmra.mrb[68].mxu0 %vm4365_vm8, %v10546_v32 }
 0x71b   :  { %11837 = vmatprep.mubr.msk.f32.mxu0 %vm15122_vm14, %v15123_v5 }
 0x71e   :  { %11838 = vmatmul.mubr.msk.f32.gmra.mrb[70].mxu0 %vm4365_vm8, %v10547_v36 }
 0x71f   :  { %11840 = vmatprep.mubr.msk.f32.mxu0 %vm15122_vm14, %v15123_v5 }
 0x722   :  { %11841 = vmatmul.mubr.msk.f32.gmra.mrb[72].mxu0 %vm4365_vm8, %v10548_v40 }
 0x723   :  { %11843 = vmatprep.mubr.msk.f32.mxu0 %vm15122_vm14, %v15123_v5 }
 0x726   :  { %v19375_v54 = vpop.permute.xlu1 %14841  ;;  %11844 = vmatmul.mubr.msk.f32.gmra.mrb[74].mxu0 %vm4365_vm8, %v10549_v29 }
 0x727   :  { %v14844_v51 = vunpack.i.h.bf16 %v19375_v54  ;;  %v14843_v45 = vunpack.i.l.bf16 %v19375_v54  ;;  %11846 = vmatprep.mubr.msk.f32.mxu0 %vm15122_vm14, %v15123_v5  ;;  %v10657_v54 = vld [vmem:[%s22553_s5 + $0x2d8] sm:$0xff] }
 0x729   :  { %v4272_v3 = vsel %vm22976_vm3, %v14804_v48, %v14844_v51  ;;  %v4271_v8 = vsel %vm22977_vm12, %v14803_v6, %v14843_v45  ;;  %vm23005_vm3 = vmmov %vm22974_vm0 }
 0x72a   :  { %v4303_v25 = vmax.f32 %v18879_v22, %v4272_v3  ;;  %v4293_v50 = vmax.f32 %v18877_v37, %v4271_v8  ;;  %v14857_v59 = vpop.permute.xlu1 %14856  ;;  %11847 = vmatmul.mubr.msk.f32.gmra.mrb[76].mxu0 %vm4365_vm8, %v10550_v28  ;;  %v19410_v22 = vadd.f32 %v18703_v13, %v18608_v46  ;;  %v22699_v13 = vmax.f32 %v19404_v31, 0.0  ;;  %vm23007_vm12 = vmmov %vm22974_vm0 }
 0x72b   :  { %v14859_v11 = vunpack.i.h.bf16 %v14857_v59  ;;  %v14858_v23 = vunpack.i.l.bf16 %v14857_v59  ;;  %11902 = vmatprep.mubr.msk.f32.mxu0 %vm15122_vm14, %v15123_v5  ;;  %v10567_v59 = vld [vmem:[%s22553_s5 + $0x170] sm:$0xff] }
 0x72c   :  { %v19406_v48 = vpack.i.bf16 %v4303_v25, %v4293_v50  ;;  %v22700_v36 = vmax.f32 %v19410_v22, 0.0 }
 0x72d   :  { %v4979_v37 = vsel %vm4315_vm11, %v14849_v60, %v14859_v11  ;;  %v4978_v6 = vsel %vm4315_vm11, %v14848_v56, %v14858_v23  ;;  %v19414_v58 = vpop.permute.xlu0 %14851 }
 0x72e   :  { %v13697_v7 = vpack.c.bf16 %v4979_v37, %v4978_v6  ;;  %v14854_v63 = vunpack.i.h.bf16 %v19414_v58  ;;  %v22703_v41 = vunpack.i.l.bf16 %v19414_v58  ;;  %v14862_v32 = vpop.permute.xlu1 %14861  ;;  %14881 = vrot.lane.b32.xlu0 %v19406_v48, %s15124_s3  ;;  %v22980_v37 = vmax.f32 %v18942_v57, 0.0  ;;  %v10568_v57 = vld [vmem:[%s22553_s5 + $0x178] sm:$0xff] }
 0x72f   :  { %v14864_v35 = vunpack.i.h.bf16 %v14862_v32  ;;  %v14890_v39 = vpack.i.bf16 %v22700_v36, %v22699_v13 }
 0x730   :  { %v4282_v46 = vsel %vm22978_vm15, %v14794_v62, %v14854_v63  ;;  %v4281_v55 = vsel %vm22979_vm7, %v14793_v21, %v22703_v41  ;;  %13698 = vmatpush3.bf16.msra.mxu1 %v13697_v7  ;;  %v14863_v21 = vunpack.i.l.bf16 %v14862_v32  ;;  %v10598_v7 = vld [vmem:[%s22553_s5 + $0x1f0] sm:$0xff]  ;;  %v10570_v32 = vld [vmem:[%s22553_s5 + $0x188] sm:$0xff]  ;;  %vm23009_vm15 = vmmov %vm22974_vm0  ;;  %vm10465_vm7 = vcmask 9216  }
 0x731   :  { %v19438_v40 = vmax.f32 %v18840_v44, %v4282_v46  ;;  %v19441_v62 = vmax.f32 %v18836_v9, %v4281_v55  ;;  %v14867_v29 = vpop.permute.xlu0 %14866  ;;  %13702 = vmatprep.subr.bf16.mxu1 %v15121_v15  ;;  %v10599_v46 = vld [vmem:[%s22553_s5 + $0x1f8] sm:$0xff]  ;;  %v10571_v55 = vld [vmem:[%s22553_s5 + $0x190] sm:$0xff] }
 0x732   :  { %v14869_v28 = vunpack.i.h.bf16 %v14867_v29  ;;  %v14868_v14 = vunpack.i.l.bf16 %v14867_v29  ;;  %14886 = vrot.lane.b32.xlu0 %v19406_v48, %s15099_s12  ;;  %v19446_v3 = vpop.permute.xlu1 %14871  ;;  %v10572_v29 = vld [vmem:[%s22553_s5 + $0x198] sm:$0xff] }
 0x733   :  { %v22702_v8 = vunpack.i.h.bf16 %v19446_v3  ;;  %v22701_v44 = vunpack.i.l.bf16 %v19446_v3  ;;  %v14875_v9 = vpack.i.bf16 %v19438_v40, %v19441_v62  ;;  %11854 = vmatmul.mubr.msk.f32.vlgmr.msra.gmra.mrb[52].mxu1 %vm4365_vm8, %v10566_v0  ;;  %v10600_v0 = vld [vmem:[%s22553_s5 + $0x200] sm:$0xff] }
 0x734   :  { %v5208_v25 = vsel %vm4315_vm11, %v14863_v21, %v14868_v14  ;;  %v5209_v50 = vsel %vm4315_vm11, %v14864_v35, %v14869_v28  ;;  %11856 = vmatprep.mubr.msk.f32.mxu1 %vm15122_vm14, %v15123_v5  ;;  %v10601_v35 = vld [vmem:[%s22553_s5 + $0x208] sm:$0xff]  ;;  %v10573_v21 = vld [vmem:[%s22553_s5 + $0x1a0] sm:$0xff]  ;;  %v10602_v28 = vld [vmem:[%s22553_s5 + $0x210] sm:$0xff] }
 0x735   :  { %v13700_v60 = vpack.c.bf16 %v5209_v50, %v5208_v25  ;;  %v4188_v56 = vsel %vm169_vm2, %v14819_v43, %v22702_v8  ;;  %v4187_v11 = vsel %vm169_vm2, %v14818_v61, %v22701_v44  ;;  %14876 = vrot.lane.b32.xlu1 %v14875_v9, %s15100_s13  ;;  %v10597_v43 = vld [vmem:[%s22553_s5 + $0x1e8] sm:$0xff]  ;;  %v10569_v61 = vld [vmem:[%s22553_s5 + $0x180] sm:$0xff]  ;;  %v10575_v25 = vld [vmem:[%s22553_s5 + $0x1b0] sm:$0xff]  ;;  %v22981_v44 = vmax.f32 %v18984_v18, 0.0 }
 0x736   :  { %v19475_v23 = vmax.f32 %v4145_v27, %v4188_v56  ;;  %v19479_v6 = vmax.f32 %v22980_v37, %v4187_v11  ;;  %14896 = vrot.lane.b32.xlu0 %v14875_v9, %s15117_s1  ;;  %v10574_v14 = vld [vmem:[%s22553_s5 + $0x1a8] sm:$0xff]  ;;  %v10604_v50 = vld [vmem:[%s22553_s5 + $0x220] sm:$0xff]  ;;  %v10606_v11 = vld [vmem:[%s22553_s5 + $0x230] sm:$0xff]  ;;  %v22982_v8 = vmax.f32 %v18969_v26, 0.0 }
 0x737   :  { %13701 = vmatpush3.bf16.msra.mxu0 %v13700_v60  ;;  %11857 = vmatmul.mubr.msk.f32.gmra.mrb[54].mxu1 %vm4365_vm8, %v10567_v59  ;;  %v10576_v59 = vld [vmem:[%s22553_s5 + $0x1b8] sm:$0xff]  ;;  %v10605_v60 = vld [vmem:[%s22553_s5 + $0x228] sm:$0xff]  ;;  %v10577_v56 = vld [vmem:[%s22553_s5 + $0x1c0] sm:$0xff] }
 0x738   :  { %v14900_v27 = vpack.i.bf16 %v19475_v23, %v19479_v6  ;;  %11859 = vmatprep.mubr.msk.f32.mxu1 %vm15122_vm14, %v15123_v5  ;;  %13705 = vmatprep.subr.bf16.mxu0 %v15121_v15  ;;  %v10578_v37 = vld [vmem:[%s22553_s5 + $0x1c8] sm:$0xff] }
 0x739   :  { %14891 = vrot.lane.b32.xlu1 %v14890_v39, %s15098_s30  ;;  %v10607_v39 = vld [vmem:[%s22553_s5 + $0x238] sm:$0xff] }
 0x73a   :  { %14901 = vrot.lane.b32.xlu0 %v14900_v27, %s22741_s19  ;;  %11903 = vmatmul.mubr.msk.f32.vlgmr.msra.gmra.mrb[78].mxu0 %vm4365_vm8, %v10596_v2  ;;  %v10579_v2 = vld [vmem:[%s22553_s5 + $0x1d0] sm:$0xff]  ;;  %v10608_v27 = vld [vmem:[%s22553_s5 + $0x240] sm:$0xff] }
 0x73b   :  { %11860 = vmatmul.mubr.msk.f32.gmra.mrb[56].mxu1 %vm4365_vm8, %v10568_v57  ;;  %11905 = vmatprep.mubr.msk.f32.mxu0 %vm15122_vm14, %v15123_v5  ;;  %v10580_v57 = vld [vmem:[%s22553_s5 + $0x1d8] sm:$0xff] }
 0x73c   :  { %11862 = vmatprep.mubr.msk.f32.mxu1 %vm15122_vm14, %v15123_v5 }
 0x73d   :  { %14906 = vrot.lane.b32.xlu1 %v19406_v48, %s15125_s24 }
 0x73e   :  { %14916 = vrot.lane.b32.xlu0 %v19406_v48, %s15127_s0  ;;  %11906 = vmatmul.mubr.msk.f32.gmra.mrb[80].mxu0 %vm4365_vm8, %v10597_v43  ;;  %v10609_v43 = vld [vmem:[%s22553_s5 + $0x248] sm:$0xff] }
 0x73f   :  { %11863 = vmatmul.mubr.msk.f32.gmra.mrb[58].mxu1 %vm4365_vm8, %v10569_v61  ;;  %11908 = vmatprep.mubr.msk.f32.mxu0 %vm15122_vm14, %v15123_v5  ;;  %v10610_v61 = vld [vmem:[%s22553_s5 + $0x250] sm:$0xff] }
 0x740   :  { %11865 = vmatprep.mubr.msk.f32.mxu1 %vm15122_vm14, %v15123_v5 }
 0x741   :  { %14911 = vrot.lane.b32.xlu1 %v14875_v9, %s15126_s20 }
 0x742   :  { %14926 = vrot.lane.b32.xlu0 %v14875_v9, %s15128_s25  ;;  %11909 = vmatmul.mubr.msk.f32.gmra.mrb[82].mxu0 %vm4365_vm8, %v10598_v7  ;;  %v10603_v9 = vld [vmem:[%s22553_s5 + $0x218] sm:$0xff] }
 0x743   :  { %11866 = vmatmul.mubr.msk.f32.gmra.mrb[60].mxu1 %vm4365_vm8, %v10570_v32  ;;  %11911 = vmatprep.mubr.msk.f32.mxu0 %vm15122_vm14, %v15123_v5 }
 0x744   :  { %11868 = vmatprep.mubr.msk.f32.mxu1 %vm15122_vm14, %v15123_v5 }
 0x746   :  { %11912 = vmatmul.mubr.msk.f32.gmra.mrb[84].mxu0 %vm4365_vm8, %v10599_v46 }
 0x747   :  { %11869 = vmatmul.mubr.msk.f32.gmra.mrb[62].mxu1 %vm4365_vm8, %v10571_v55  ;;  %11914 = vmatprep.mubr.msk.f32.mxu0 %vm15122_vm14, %v15123_v5 }
 0x748   :  { %11871 = vmatprep.mubr.msk.f32.mxu1 %vm15122_vm14, %v15123_v5 }
 0x74a   :  { %11915 = vmatmul.mubr.msk.f32.gmra.mrb[86].mxu0 %vm4365_vm8, %v10600_v0 }
 0x74b   :  { %11872 = vmatmul.mubr.msk.f32.gmra.mrb[64].mxu1 %vm4365_vm8, %v10572_v29  ;;  %11917 = vmatprep.mubr.msk.f32.mxu0 %vm15122_vm14, %v15123_v5 }
 0x74c   :  { %11874 = vmatprep.mubr.msk.f32.mxu1 %vm15122_vm14, %v15123_v5 }
 0x74e   :  { %11918 = vmatmul.mubr.msk.f32.gmra.mrb[88].mxu0 %vm4365_vm8, %v10601_v35 }
 0x74f   :  { %11875 = vmatmul.mubr.msk.f32.gmra.mrb[66].mxu1 %vm4365_vm8, %v10573_v21  ;;  %11920 = vmatprep.mubr.msk.f32.mxu0 %vm15122_vm14, %v15123_v5 }
 0x750   :  { %11877 = vmatprep.mubr.msk.f32.mxu1 %vm15122_vm14, %v15123_v5 }
 0x752   :  { %11921 = vmatmul.mubr.msk.f32.gmra.mrb[90].mxu0 %vm4365_vm8, %v10602_v28 }
 0x753   :  { %11878 = vmatmul.mubr.msk.f32.gmra.mrb[68].mxu1 %vm4365_vm8, %v10574_v14  ;;  %11923 = vmatprep.mubr.msk.f32.mxu0 %vm15122_vm14, %v15123_v5 }
 0x754   :  { %11880 = vmatprep.mubr.msk.f32.mxu1 %vm15122_vm14, %v15123_v5 }
 0x756   :  { %11924 = vmatmul.mubr.msk.f32.gmra.mrb[92].mxu0 %vm4365_vm8, %v10603_v9 }
 0x757   :  { %11881 = vmatmul.mubr.msk.f32.gmra.mrb[70].mxu1 %vm4365_vm8, %v10575_v25  ;;  %11926 = vmatprep.mubr.msk.f32.mxu0 %vm15122_vm14, %v15123_v5 }
 0x758   :  { %11883 = vmatprep.mubr.msk.f32.mxu1 %vm15122_vm14, %v15123_v5 }
 0x75a   :  { %11927 = vmatmul.mubr.msk.f32.gmra.mrb[94].mxu0 %vm4365_vm8, %v10604_v50 }
 0x75b   :  { %11884 = vmatmul.mubr.msk.f32.gmra.mrb[72].mxu1 %vm4365_vm8, %v10576_v59  ;;  %11929 = vmatprep.mubr.msk.f32.mxu0 %vm15122_vm14, %v15123_v5 }
 0x75c   :  { %11886 = vmatprep.mubr.msk.f32.mxu1 %vm15122_vm14, %v15123_v5 }
 0x75e   :  { %11930 = vmatmul.mubr.msk.f32.gmra.mrb[96].mxu0 %vm4365_vm8, %v10605_v60 }
 0x75f   :  { %11887 = vmatmul.mubr.msk.f32.gmra.mrb[74].mxu1 %vm4365_vm8, %v10577_v56  ;;  %11932 = vmatprep.mubr.msk.f32.mxu0 %vm15122_vm14, %v15123_v5 }
 0x760   :  { %11889 = vmatprep.mubr.msk.f32.mxu1 %vm15122_vm14, %v15123_v5 }
 0x762   :  { %11933 = vmatmul.mubr.msk.f32.gmra.mrb[98].mxu0 %vm4365_vm8, %v10606_v11 }
 0x763   :  { %11890 = vmatmul.mubr.msk.f32.gmra.mrb[76].mxu1 %vm4365_vm8, %v10578_v37  ;;  %11935 = vmatprep.mubr.msk.f32.mxu0 %vm15122_vm14, %v15123_v5 }
 0x764   :  { %11892 = vmatprep.mubr.msk.f32.mxu1 %vm15122_vm14, %v15123_v5 }
 0x766   :  { %11936 = vmatmul.mubr.msk.f32.gmra.mrb[100].mxu0 %vm4365_vm8, %v10607_v39 }
 0x767   :  { %11893 = vmatmul.mubr.msk.f32.gmra.mrb[78].mxu1 %vm4365_vm8, %v10579_v2  ;;  %11938 = vmatprep.mubr.msk.f32.mxu0 %vm15122_vm14, %v15123_v5 }
 0x768   :  { %11895 = vmatprep.mubr.msk.f32.mxu1 %vm15122_vm14, %v15123_v5 }
 0x76a   :  { %11939 = vmatmul.mubr.msk.f32.gmra.mrb[102].mxu0 %vm4365_vm8, %v10608_v27 }
 0x76b   :  { %11896 = vmatmul.mubr.msk.f32.gmra.mrb[80].mxu1 %vm4365_vm8, %v10580_v57  ;;  %11941 = vmatprep.mubr.msk.f32.mxu0 %vm15122_vm14, %v15123_v5 }
 0x76c   :  { %11951 = vmatprep.mubr.msk.f32.mxu1 %vm15122_vm14, %v15123_v5 }
 0x76e   :  { %11942 = vmatmul.mubr.msk.f32.gmra.mrb[104].mxu0 %vm4365_vm8, %v10609_v43 }
 0x76f   :  { %11944 = vmatprep.mubr.msk.f32.mxu0 %vm15122_vm14, %v15123_v5 }
 0x772   :  { %11945 = vmatmul.mubr.msk.f32.gmra.mrb[106].mxu0 %vm4365_vm8, %v10610_v61 }
 0x773   :  { %12000 = vmatprep.mubr.msk.f32.mxu0 %vm15122_vm14, %v15123_v5 }
 0x78b   :  { %v19668_v32 = vpop.f32.mrb[20].mxu1 }
 0x78c   :  { %v4477_v7 = vpop.f32.mrb[20].mxu0  ;;  %v11750_v55 = vpop.f32.mrb[21].mxu1 }
 0x78d   :  { %v11708_v46 = vpop.f32.mrb[21].mxu0 }
 0x78f   :  { %v4662_v0 = vpop.f32.mrb[22].mxu1 }
 0x790   :  { %v11757_v29 = vpop.f32.mrb[23].mxu1 }
 0x791   :  { %v4482_v35 = vpop.f32.mrb[22].mxu0 }
 0x792   :  { %v11711_v21 = vpop.f32.mrb[23].mxu0 }
 0x793   :  { %v4667_v28 = vpop.f32.mrb[24].mxu1 }
 0x794   :  { %v11760_v14 = vpop.f32.mrb[25].mxu1 }
 0x795   :  { %v19670_v9 = vpop.f32.mrb[24].mxu0 }
 0x796   :  { %v11714_v25 = vpop.f32.mrb[25].mxu0 }
 0x797   :  { %v19672_v50 = vpop.f32.mrb[26].mxu1 }
 0x798   :  { %v11763_v59 = vpop.f32.mrb[27].mxu1 }
 0x799   :  { %v19674_v60 = vpop.f32.mrb[26].mxu0 }
 0x79a   :  { %v11717_v56 = vpop.f32.mrb[27].mxu0 }
 0x79b   :  { %v19676_v11 = vpop.f32.mrb[28].mxu1 }
 0x79c   :  { %v11766_v37 = vpop.f32.mrb[29].mxu1 }
 0x79d   :  { %v19678_v39 = vpop.f32.mrb[28].mxu0 }
 0x79e   :  { %v11720_v2 = vpop.f32.mrb[29].mxu0 }
 0x79f   :  { %v19680_v27 = vpop.f32.mrb[30].mxu1 }
 0x7a0   :  { %v14882_v57 = vpop.permute.xlu0 %14881  ;;  %v11769_v43 = vpop.f32.mrb[31].mxu1 }
 0x7a1   :  { %v14884_v61 = vunpack.i.h.bf16 %v14882_v57  ;;  %v14883_v46 = vunpack.i.l.bf16 %v14882_v57  ;;  %v19682_v55 = vpop.f32.mrb[30].mxu0  ;;  %v10626_v57 = vld [vmem:[%s22553_s5 + $0x258] sm:$0xff] }
 0x7a2   :  { %v11723_v29 = vpop.f32.mrb[31].mxu0 }
 0x7a3   :  { %v5435_v21 = vsel %vm4315_vm11, %v19438_v40, %v14884_v61  ;;  %v5434_v14 = vsel %vm4315_vm11, %v19441_v62, %v14883_v46  ;;  %v19688_v25 = vpop.f32.mrb[32].mxu1 }
 0x7a4   :  { %v13703_v59 = vpack.c.bf16 %v5435_v21, %v5434_v14  ;;  %v14887_v56 = vpop.permute.xlu0 %14886  ;;  %v11772_v37 = vpop.f32.mrb[33].mxu1 }
 0x7a5   :  { %v19690_v2 = vpop.f32.mrb[32].mxu0  ;;  %v14889_v61 = vunpack.i.h.bf16 %v14887_v56  ;;  %v14888_v62 = vunpack.i.l.bf16 %v14887_v56  ;;  %v10627_v56 = vld [vmem:[%s22553_s5 + $0x260] sm:$0xff] }
 0x7a6   :  { %13704 = vmatpush3.bf16.msra.mxu1 %v13703_v59  ;;  %v11726_v43 = vpop.f32.mrb[33].mxu0  ;;  %v19701_v59 = vadd.f32 %v4662_v0, %v4477_v7 }
 0x7a7   :  { %v14877_v29 = vpop.permute.xlu1 %14876  ;;  %13708 = vmatprep.subr.bf16.mxu1 %v15121_v15  ;;  %v19696_v40 = vpop.f32.mrb[34].mxu1 }
 0x7a8   :  { %v14879_v46 = vunpack.i.h.bf16 %v14877_v29  ;;  %v14878_v17 = vunpack.i.l.bf16 %v14877_v29  ;;  %v14897_v21 = vpop.permute.xlu0 %14896  ;;  %v11775_v14 = vpop.f32.mrb[35].mxu1 }
 0x7a9   :  { %11952 = vmatmul.mubr.msk.f32.vlgmr.msra.gmra.mrb[82].mxu1 %vm4365_vm8, %v10626_v57  ;;  %v19699_v37 = vpop.f32.mrb[34].mxu0  ;;  %v14898_v36 = vunpack.i.l.bf16 %v14897_v21 }
 0x7aa   :  { %v5667_v10 = vsel %vm4315_vm11, %v14879_v46, %v14889_v61  ;;  %v5666_v43 = vsel %vm4315_vm11, %v14878_v17, %v14888_v62  ;;  %11954 = vmatprep.mubr.msk.f32.mxu1 %vm15122_vm14, %v15123_v5  ;;  %v11729_v29 = vpop.f32.mrb[35].mxu0 }
 0x7ab   :  { %v13706_v13 = vpack.c.bf16 %v5667_v10, %v5666_v43  ;;  %v19710_v14 = vpop.permute.xlu1 %14891  ;;  %v19712_v57 = vpop.f32.mrb[36].mxu1  ;;  %v10656_v10 = vld [vmem:[%s22553_s5 + $0x2d0] sm:$0xff]  ;;  %v19726_v29 = vadd.f32 %v4667_v28, %v4482_v35  ;;  %v10628_v35 = vld [vmem:[%s22553_s5 + $0x268] sm:$0xff] }
 0x7ac   :  { %v14894_v7 = vunpack.i.h.bf16 %v19710_v14  ;;  %v14893_v0 = vunpack.i.l.bf16 %v19710_v14  ;;  %v19716_v61 = vpop.permute.xlu0 %14901  ;;  %v11778_v17 = vpop.f32.mrb[37].mxu1 }
 0x7ad   :  { %v22704_v62 = vunpack.i.h.bf16 %v19716_v61  ;;  %v14903_v46 = vunpack.i.l.bf16 %v19716_v61  ;;  %11955 = vmatmul.mubr.msk.f32.gmra.mrb[84].mxu1 %vm4365_vm8, %v10627_v56  ;;  %13707 = vmatpush3.bf16.msra.mxu0 %v13706_v13  ;;  %v19724_v43 = vpop.f32.mrb[36].mxu0  ;;  %v14899_v56 = vunpack.i.h.bf16 %v14897_v21 }
 0x7ae   :  { %v4198_v17 = vsel %vm169_vm2, %v14824_v49, %v14894_v7  ;;  %v4197_v13 = vsel %vm169_vm2, %v14823_v20, %v14893_v0  ;;  %11957 = vmatprep.mubr.msk.f32.mxu1 %vm15122_vm14, %v15123_v5  ;;  %v11732_v28 = vpop.f32.mrb[37].mxu0  ;;  %13711 = vmatprep.subr.bf16.mxu0 %v15121_v15 }
 0x7af   :  { %v19747_v49 = vmax.f32 %v22981_v44, %v4198_v17  ;;  %v19751_v30 = vmax.f32 %v22982_v8, %v4197_v13  ;;  %v14907_v41 = vpop.permute.xlu1 %14906  ;;  %v19754_v20 = vpop.f32.mrb[38].mxu1  ;;  %v4270_v21 = vsel %vm22983_vm9, %v14844_v51, %v22704_v62  ;;  %v4269_v26 = vsel %vm22984_vm10, %v14843_v45, %v14903_v46 }
 0x7b0   :  { %v14909_v18 = vunpack.i.h.bf16 %v14907_v41  ;;  %v14908_v8 = vunpack.i.l.bf16 %v14907_v41  ;;  %12001 = vmatmul.mubr.msk.f32.vlgmr.msra.gmra.mrb[108].mxu0 %vm4365_vm8, %v10656_v10  ;;  %v14917_v44 = vpop.permute.xlu0 %14916  ;;  %v11781_v17 = vpop.f32.mrb[39].mxu1  ;;  %v4304_v13 = vmax.f32 %v19047_v52, %v4270_v21  ;;  %v4294_v28 = vmax.f32 %v19051_v19, %v4269_v26  ;;  %v10629_v19 = vld [vmem:[%s22553_s5 + $0x270] sm:$0xff] }
 0x7b1   :  { %11958 = vmatmul.mubr.msk.f32.gmra.mrb[86].mxu1 %vm4365_vm8, %v10628_v35  ;;  %12003 = vmatprep.mubr.msk.f32.mxu0 %vm15122_vm14, %v15123_v5  ;;  %v19777_v51 = vpop.f32.mrb[38].mxu0  ;;  %v14920_v52 = vpack.i.bf16 %v19747_v49, %v19751_v30  ;;  %v14919_v21 = vunpack.i.h.bf16 %v14917_v44  ;;  %v14918_v26 = vunpack.i.l.bf16 %v14917_v44  ;;  %v10658_v44 = vld [vmem:[%s22553_s5 + $0x2e0] sm:$0xff] }
 0x7b2   :  { %v5897_v45 = vsel %vm4315_vm11, %v14899_v56, %v14909_v18  ;;  %v5896_v41 = vsel %vm4315_vm11, %v14898_v36, %v14908_v8  ;;  %11960 = vmatprep.mubr.msk.f32.mxu1 %vm15122_vm14, %v15123_v5  ;;  %v11735_v10 = vpop.f32.mrb[39].mxu0  ;;  %v19788_v62 = vpack.i.bf16 %v4304_v13, %v4294_v28  ;;  %v19804_v28 = vadd.f32 %v19672_v50, %v19670_v9 }
 0x7b3   :  { %v13709_v35 = vpack.c.bf16 %v5897_v45, %v5896_v41  ;;  %v14912_v17 = vpop.permute.xlu1 %14911  ;;  %v19790_v56 = vpop.f32.mrb[40].mxu1  ;;  %14921 = vrot.lane.b32.xlu1 %v14920_v52, %s22741_s19  ;;  %v19808_v45 = vadd.f32 %v19676_v11, %v19674_v60  ;;  %v10630_v52 = vld [vmem:[%s22553_s5 + $0x278] sm:$0xff]  ;;  %v10659_v60 = vld [vmem:[%s22553_s5 + $0x2e8] sm:$0xff] }
 0x7b4   :  { %v14914_v36 = vunpack.i.h.bf16 %v14912_v17  ;;  %v14913_v18 = vunpack.i.l.bf16 %v14912_v17  ;;  %12004 = vmatmul.mubr.msk.f32.gmra.mrb[110].mxu0 %vm4365_vm8, %v10657_v54  ;;  %v11784_v8 = vpop.f32.mrb[41].mxu1  ;;  %14936 = vrot.lane.b32.xlu0 %v19788_v62, %s15124_s3 }
 0x7b5   :  { %11961 = vmatmul.mubr.msk.f32.gmra.mrb[88].mxu1 %vm4365_vm8, %v10629_v19  ;;  %v19800_v13 = vpop.f32.mrb[40].mxu0  ;;  %12006 = vmatprep.mubr.msk.f32.mxu0 %vm15122_vm14, %v15123_v5 }
 0x7b6   :  { %v6126_v54 = vsel %vm4315_vm11, %v14913_v18, %v14918_v26  ;;  %v6127_v41 = vsel %vm4315_vm11, %v14914_v36, %v14919_v21  ;;  %13710 = vmatpush3.bf16.msra.mxu1 %v13709_v35  ;;  %v11738_v19 = vpop.f32.mrb[41].mxu0  ;;  %11963 = vmatprep.mubr.msk.f32.mxu1 %vm15122_vm14, %v15123_v5  ;;  %v19835_v35 = vadd.f32 %v19680_v27, %v19678_v39  ;;  %v10660_v39 = vld [vmem:[%s22553_s5 + $0x2f0] sm:$0xff]  ;;  %v10632_v18 = vld [vmem:[%s22553_s5 + $0x288] sm:$0xff] }
 0x7b7   :  { %v13712_v10 = vpack.c.bf16 %v6127_v41, %v6126_v54  ;;  %13714 = vmatprep.subr.bf16.mxu1 %v15121_v15  ;;  %v19820_v9 = vpop.f32.mrb[42].mxu1  ;;  %14931 = vrot.lane.b32.xlu1 %v19406_v48, %s15129_s23  ;;  %v10631_v48 = vld [vmem:[%s22553_s5 + $0x280] sm:$0xff]  ;;  %v19854_v36 = vadd.f32 %v19688_v25, %v19682_v55  ;;  %v10661_v55 = vld [vmem:[%s22553_s5 + $0x2f8] sm:$0xff]  ;;  %v19872_v41 = vadd.f32 %v19696_v40, %v19690_v2 }
 0x7b8   :  { %12007 = vmatmul.mubr.msk.f32.gmra.mrb[112].mxu0 %vm4365_vm8, %v10658_v44  ;;  %v11787_v50 = vpop.f32.mrb[43].mxu1  ;;  %14951 = vrot.lane.b32.xlu0 %v19788_v62, %s15099_s12  ;;  %v10662_v2 = vld [vmem:[%s22553_s5 + $0x300] sm:$0xff] }
 0x7b9   :  { %11964 = vmatmul.mubr.msk.f32.gmra.mrb[90].mxu1 %vm4365_vm8, %v10630_v52  ;;  %v19831_v11 = vpop.f32.mrb[42].mxu0  ;;  %13713 = vmatpush3.bf16.msra.mxu0 %v13712_v10  ;;  %v10633_v52 = vld [vmem:[%s22553_s5 + $0x290] sm:$0xff] }
 0x7ba   :  { %12009 = vmatprep.mubr.msk.f32.mxu0 %vm15122_vm14, %v15123_v5  ;;  %v11741_v21 = vpop.f32.mrb[43].mxu0  ;;  %11966 = vmatprep.mubr.msk.f32.mxu1 %vm15122_vm14, %v15123_v5 }
 0x7bb   :  { %13717 = vmatprep.subr.bf16.mxu0 %v15121_v15  ;;  %v4717_v26 = vpop.f32.mrb[44].mxu1 }
 0x7bc   :  { %12010 = vmatmul.mubr.msk.f32.gmra.mrb[114].mxu0 %vm4365_vm8, %v10659_v60  ;;  %v11790_v17 = vpop.f32.mrb[45].mxu1  ;;  %14956 = vrot.lane.b32.xlu0 %v19788_v62, %s15125_s24  ;;  %v19888_v60 = vadd.f32 %v19712_v57, %v19699_v37  ;;  %v10663_v57 = vld [vmem:[%s22553_s5 + $0x308] sm:$0xff] }
 0x7bd   :  { %11967 = vmatmul.mubr.msk.f32.gmra.mrb[92].mxu1 %vm4365_vm8, %v10631_v48  ;;  %v4537_v27 = vpop.f32.mrb[44].mxu0  ;;  %12012 = vmatprep.mubr.msk.f32.mxu0 %vm15122_vm14, %v15123_v5  ;;  %v10634_v48 = vld [vmem:[%s22553_s5 + $0x298] sm:$0xff] }
 0x7be   :  { %11969 = vmatprep.mubr.msk.f32.mxu1 %vm15122_vm14, %v15123_v5  ;;  %v11744_v8 = vpop.f32.mrb[45].mxu0 }
 0x7bf   :  { %v4722_v44 = vpop.f32.mrb[46].mxu1  ;;  %v10635_v8 = vld [vmem:[%s22553_s5 + $0x2a0] sm:$0xff] }
 0x7c0   :  { %12013 = vmatmul.mubr.msk.f32.gmra.mrb[116].mxu0 %vm4365_vm8, %v10660_v39  ;;  %v11793_v54 = vpop.f32.mrb[47].mxu1 }
 0x7c1   :  { %11970 = vmatmul.mubr.msk.f32.gmra.mrb[94].mxu1 %vm4365_vm8, %v10632_v18  ;;  %12015 = vmatprep.mubr.msk.f32.mxu0 %vm15122_vm14, %v15123_v5  ;;  %v4542_v25 = vpop.f32.mrb[46].mxu0  ;;  %v19901_v18 = vadd.f32 %v19754_v20, %v19724_v43  ;;  %v19919_v54 = vadd.f32 %v19790_v56, %v19777_v51  ;;  %v10636_v51 = vld [vmem:[%s22553_s5 + $0x2a8] sm:$0xff] }
 0x7c2   :  { %11972 = vmatprep.mubr.msk.f32.mxu1 %vm15122_vm14, %v15123_v5  ;;  %v11747_v19 = vpop.f32.mrb[47].mxu0 }
 0x7c3   :  { %v4727_v10 = vpop.f32.mrb[48].mxu1  ;;  %v19944_v19 = vadd.f32 %v4722_v44, %v4537_v27 }
 0x7c4   :  { %12016 = vmatmul.mubr.msk.f32.gmra.mrb[118].mxu0 %vm4365_vm8, %v10661_v55  ;;  %v11796_v50 = vpop.f32.mrb[49].mxu1  ;;  %v19924_v55 = vadd.f32 %v19820_v9, %v19800_v13  ;;  %v19941_v9 = vadd.f32 %v4717_v26, %v19831_v11  ;;  %v19960_v27 = vadd.f32 %v4727_v10, %v4542_v25  ;;  %v10667_v10 = vld [vmem:[%s22553_s5 + $0x328] sm:$0xff] }
 0x7c5   :  { %11973 = vmatmul.mubr.msk.f32.gmra.mrb[96].mxu1 %vm4365_vm8, %v10633_v52  ;;  %12018 = vmatprep.mubr.msk.f32.mxu0 %vm15122_vm14, %v15123_v5  ;;  %v4877_v40 = vpop.f32.mrb[48].mxu0  ;;  %v10665_v50 = vld [vmem:[%s22553_s5 + $0x318] sm:$0xff] }
 0x7c6   :  { %11975 = vmatprep.mubr.msk.f32.mxu1 %vm15122_vm14, %v15123_v5  ;;  %v19896_v21 = vadd.f32 %v4877_v40, %v19701_v59  ;;  %v11806_v17 = vpop.f32.mrb[49].mxu0  ;;  %v10666_v40 = vld [vmem:[%s22553_s5 + $0x320] sm:$0xff] }
 0x7c7   :  { %v4732_v39 = vpop.f32.mrb[50].mxu1 }
 0x7c8   :  { %12019 = vmatmul.mubr.msk.f32.gmra.mrb[120].mxu0 %vm4365_vm8, %v10662_v2  ;;  %v11799_v37 = vpop.f32.mrb[51].mxu1  ;;  %v19964_v44 = vadd.f32 %v4732_v39, %v19668_v32 }
 0x7c9   :  { %11976 = vmatmul.mubr.msk.f32.gmra.mrb[98].mxu1 %vm4365_vm8, %v10634_v48  ;;  %12021 = vmatprep.mubr.msk.f32.mxu0 %vm15122_vm14, %v15123_v5  ;;  %v4882_v59 = vpop.f32.mrb[50].mxu0 }
 0x7ca   :  { %11978 = vmatprep.mubr.msk.f32.mxu1 %vm15122_vm14, %v15123_v5  ;;  %v19915_v43 = vadd.f32 %v4882_v59, %v19726_v29  ;;  %v11809_v20 = vpop.f32.mrb[51].mxu0  ;;  %v10664_v29 = vld [vmem:[%s22553_s5 + $0x310] sm:$0xff] }
 0x7cc   :  { %12022 = vmatmul.mubr.msk.f32.gmra.mrb[122].mxu0 %vm4365_vm8, %v10663_v57  ;;  %v10668_v57 = vld [vmem:[%s22553_s5 + $0x330] sm:$0xff] }
 0x7cd   :  { %11979 = vmatmul.mubr.msk.f32.gmra.mrb[100].mxu1 %vm4365_vm8, %v10635_v8  ;;  %12024 = vmatprep.mubr.msk.f32.mxu0 %vm15122_vm14, %v15123_v5  ;;  %v4887_v52 = vpop.f32.mrb[52].mxu0 }
 0x7ce   :  { %11981 = vmatprep.mubr.msk.f32.mxu1 %vm15122_vm14, %v15123_v5  ;;  %v19938_v56 = vadd.f32 %v4887_v52, %v19804_v28  ;;  %v11812_v13 = vpop.f32.mrb[53].mxu0  ;;  %v10637_v28 = vld [vmem:[%s22553_s5 + $0x2b0] sm:$0xff] }
 0x7d0   :  { %12025 = vmatmul.mubr.msk.f32.gmra.mrb[124].mxu0 %vm4365_vm8, %v10664_v29  ;;  %v10669_v29 = vld [vmem:[%s22553_s5 + $0x338] sm:$0xff] }
 0x7d1   :  { %11982 = vmatmul.mubr.msk.f32.gmra.mrb[102].mxu1 %vm4365_vm8, %v10636_v51  ;;  %12027 = vmatprep.mubr.msk.f32.mxu0 %vm15122_vm14, %v15123_v5  ;;  %v4892_v2 = vpop.f32.mrb[54].mxu0 }
 0x7d2   :  { %11984 = vmatprep.mubr.msk.f32.mxu1 %vm15122_vm14, %v15123_v5  ;;  %v19958_v11 = vadd.f32 %v4892_v2, %v19808_v45  ;;  %v11815_v26 = vpop.f32.mrb[55].mxu0  ;;  %v10638_v45 = vld [vmem:[%s22553_s5 + $0x2b8] sm:$0xff] }
 0x7d4   :  { %12028 = vmatmul.mubr.msk.f32.gmra.mrb[126].mxu0 %vm4365_vm8, %v10665_v50  ;;  %v10670_v50 = vld [vmem:[%s22553_s5 + $0x340] sm:$0xff] }
 0x7d5   :  { %11985 = vmatmul.mubr.msk.f32.gmra.mrb[104].mxu1 %vm4365_vm8, %v10637_v28  ;;  %12030 = vmatprep.mubr.msk.f32.mxu0 %vm15122_vm14, %v15123_v5  ;;  %v4897_v48 = vpop.f32.mrb[56].mxu0 }
 0x7d6   :  { %11987 = vmatprep.mubr.msk.f32.mxu1 %vm15122_vm14, %v15123_v5  ;;  %v19978_v32 = vadd.f32 %v4897_v48, %v19835_v35  ;;  %v11818_v25 = vpop.f32.mrb[57].mxu0  ;;  %v10639_v35 = vld [vmem:[%s22553_s5 + $0x2c0] sm:$0xff] }
 0x7d8   :  { %12031 = vmatmul.mubr.msk.f32.gmra.mrb[128].mxu0 %vm4365_vm8, %v10666_v40  ;;  %v10716_v40 = vld [vmem:[%s22553_s5 + $0x3c0] sm:$0xff] }
 0x7d9   :  { %11988 = vmatmul.mubr.msk.f32.gmra.mrb[106].mxu1 %vm4365_vm8, %v10638_v45  ;;  %12033 = vmatprep.mubr.msk.f32.mxu0 %vm15122_vm14, %v15123_v5  ;;  %v4902_v17 = vpop.f32.mrb[58].mxu0 }
 0x7da   :  { %11990 = vmatprep.mubr.msk.f32.mxu1 %vm15122_vm14, %v15123_v5  ;;  %v19993_v39 = vadd.f32 %v4902_v17, %v19854_v36  ;;  %v11821_v37 = vpop.f32.mrb[59].mxu0  ;;  %v10640_v36 = vld [vmem:[%s22553_s5 + $0x2c8] sm:$0xff] }
 0x7dc   :  { %12034 = vmatmul.mubr.msk.f32.gmra.mrb[130].mxu0 %vm4365_vm8, %v10667_v10  ;;  %v10717_v10 = vld [vmem:[%s22553_s5 + $0x3c8] sm:$0xff] }
 0x7dd   :  { %11991 = vmatmul.mubr.msk.f32.gmra.mrb[108].mxu1 %vm4365_vm8, %v10639_v35  ;;  %12036 = vmatprep.mubr.msk.f32.mxu0 %vm15122_vm14, %v15123_v5  ;;  %v4907_v59 = vpop.f32.mrb[60].mxu0 }
 0x7de   :  { %11993 = vmatprep.mubr.msk.f32.mxu1 %vm15122_vm14, %v15123_v5  ;;  %v20008_v8 = vadd.f32 %v4907_v59, %v19872_v41  ;;  %v11824_v20 = vpop.f32.mrb[61].mxu0  ;;  %v10686_v41 = vld [vmem:[%s22553_s5 + $0x348] sm:$0xff] }
 0x7e0   :  { %12037 = vmatmul.mubr.msk.f32.gmra.mrb[132].mxu0 %vm4365_vm8, %v10668_v57  ;;  %v10718_v57 = vld [vmem:[%s22553_s5 + $0x3d0] sm:$0xff] }
 0x7e1   :  { %11994 = vmatmul.mubr.msk.f32.gmra.mrb[110].mxu1 %vm4365_vm8, %v10640_v36  ;;  %12039 = vmatprep.mubr.msk.f32.mxu0 %vm15122_vm14, %v15123_v5  ;;  %v4912_v52 = vpop.f32.mrb[62].mxu0 }
 0x7e2   :  { %12049 = vmatprep.mubr.msk.f32.mxu1 %vm15122_vm14, %v15123_v5  ;;  %v20023_v51 = vadd.f32 %v4912_v52, %v19888_v60  ;;  %v11827_v13 = vpop.f32.mrb[63].mxu0  ;;  %v10687_v60 = vld [vmem:[%s22553_s5 + $0x350] sm:$0xff] }
 0x7e4   :  { %12040 = vmatmul.mubr.msk.f32.gmra.mrb[134].mxu0 %vm4365_vm8, %v10669_v29  ;;  %v10719_v29 = vld [vmem:[%s22553_s5 + $0x3d8] sm:$0xff] }
 0x7e5   :  { %12050 = vmatmul.mubr.msk.f32.vlgmr.msra.gmra.mrb[112].mxu1 %vm4365_vm8, %v10686_v41  ;;  %12042 = vmatprep.mubr.msk.f32.mxu0 %vm15122_vm14, %v15123_v5  ;;  %v4917_v2 = vpop.f32.mrb[64].mxu0 }
 0x7e6   :  { %12052 = vmatprep.mubr.msk.f32.mxu1 %vm15122_vm14, %v15123_v5  ;;  %v20038_v28 = vadd.f32 %v4917_v2, %v19901_v18  ;;  %v11830_v26 = vpop.f32.mrb[65].mxu0  ;;  %v10688_v18 = vld [vmem:[%s22553_s5 + $0x358] sm:$0xff] }
 0x7e8   :  { %12043 = vmatmul.mubr.msk.f32.gmra.mrb[136].mxu0 %vm4365_vm8, %v10670_v50  ;;  %v10720_v50 = vld [vmem:[%s22553_s5 + $0x3e0] sm:$0xff] }
 0x7e9   :  { %12053 = vmatmul.mubr.msk.f32.gmra.mrb[114].mxu1 %vm4365_vm8, %v10687_v60  ;;  %12098 = vmatprep.mubr.msk.f32.mxu0 %vm15122_vm14, %v15123_v5  ;;  %v4922_v48 = vpop.f32.mrb[66].mxu0 }
 0x7ea   :  { %12055 = vmatprep.mubr.msk.f32.mxu1 %vm15122_vm14, %v15123_v5  ;;  %v20053_v45 = vadd.f32 %v4922_v48, %v19919_v54  ;;  %v11833_v25 = vpop.f32.mrb[67].mxu0  ;;  %v10689_v54 = vld [vmem:[%s22553_s5 + $0x360] sm:$0xff] }
 0x7ec   :  { %12099 = vmatmul.mubr.msk.f32.vlgmr.msra.gmra.mrb[138].mxu0 %vm4365_vm8, %v10716_v40  ;;  %v10721_v40 = vld [vmem:[%s22553_s5 + $0x3e8] sm:$0xff] }
 0x7ed   :  { %12056 = vmatmul.mubr.msk.f32.gmra.mrb[116].mxu1 %vm4365_vm8, %v10688_v18  ;;  %12101 = vmatprep.mubr.msk.f32.mxu0 %vm15122_vm14, %v15123_v5  ;;  %v4927_v17 = vpop.f32.mrb[68].mxu0 }
 0x7ee   :  { %12058 = vmatprep.mubr.msk.f32.mxu1 %vm15122_vm14, %v15123_v5  ;;  %v20068_v35 = vadd.f32 %v4927_v17, %v19924_v55  ;;  %v11836_v37 = vpop.f32.mrb[69].mxu0  ;;  %v10690_v55 = vld [vmem:[%s22553_s5 + $0x368] sm:$0xff]  ;;  %v10723_v17 = vld [vmem:[%s22553_s5 + $0x3f8] sm:$0xff] }
 0x7f0   :  { %12102 = vmatmul.mubr.msk.f32.gmra.mrb[140].mxu0 %vm4365_vm8, %v10717_v10  ;;  %v10722_v10 = vld [vmem:[%s22553_s5 + $0x3f0] sm:$0xff] }
 0x7f1   :  { %12059 = vmatmul.mubr.msk.f32.gmra.mrb[118].mxu1 %vm4365_vm8, %v10689_v54  ;;  %12104 = vmatprep.mubr.msk.f32.mxu0 %vm15122_vm14, %v15123_v5  ;;  %v4932_v59 = vpop.f32.mrb[70].mxu0  ;;  %v10695_v54 = vld [vmem:[%s22553_s5 + $0x390] sm:$0xff] }
 0x7f2   :  { %12061 = vmatprep.mubr.msk.f32.mxu1 %vm15122_vm14, %v15123_v5  ;;  %v20083_v36 = vadd.f32 %v4932_v59, %v19941_v9  ;;  %v11839_v20 = vpop.f32.mrb[71].mxu0  ;;  %v10691_v9 = vld [vmem:[%s22553_s5 + $0x370] sm:$0xff] }
 0x7f3   :  { %v10696_v20 = vld [vmem:[%s22553_s5 + $0x398] sm:$0xff] }
 0x7f4   :  { %12105 = vmatmul.mubr.msk.f32.gmra.mrb[142].mxu0 %vm4365_vm8, %v10718_v57 }
 0x7f5   :  { %12062 = vmatmul.mubr.msk.f32.gmra.mrb[120].mxu1 %vm4365_vm8, %v10690_v55  ;;  %12107 = vmatprep.mubr.msk.f32.mxu0 %vm15122_vm14, %v15123_v5  ;;  %v4937_v52 = vpop.f32.mrb[72].mxu0  ;;  %v10724_v55 = vld [vmem:[%s22553_s5 + $0x400] sm:$0xff] }
 0x7f6   :  { %12064 = vmatprep.mubr.msk.f32.mxu1 %vm15122_vm14, %v15123_v5  ;;  %v20098_v41 = vadd.f32 %v4937_v52, %v19944_v19  ;;  %v11842_v13 = vpop.f32.mrb[73].mxu0  ;;  %v10692_v19 = vld [vmem:[%s22553_s5 + $0x378] sm:$0xff] }
 0x7f8   :  { %12108 = vmatmul.mubr.msk.f32.gmra.mrb[144].mxu0 %vm4365_vm8, %v10719_v29 }
 0x7f9   :  { %12065 = vmatmul.mubr.msk.f32.gmra.mrb[122].mxu1 %vm4365_vm8, %v10691_v9  ;;  %12110 = vmatprep.mubr.msk.f32.mxu0 %vm15122_vm14, %v15123_v5  ;;  %v4942_v2 = vpop.f32.mrb[74].mxu0  ;;  %v10725_v9 = vld [vmem:[%s22553_s5 + $0x408] sm:$0xff] }
 0x7fa   :  { %12067 = vmatprep.mubr.msk.f32.mxu1 %vm15122_vm14, %v15123_v5  ;;  %v20113_v60 = vadd.f32 %v4942_v2, %v19960_v27  ;;  %v11845_v26 = vpop.f32.mrb[75].mxu0  ;;  %v10693_v27 = vld [vmem:[%s22553_s5 + $0x380] sm:$0xff] }
 0x7fc   :  { %12111 = vmatmul.mubr.msk.f32.gmra.mrb[146].mxu0 %vm4365_vm8, %v10720_v50 }
 0x7fd   :  { %12068 = vmatmul.mubr.msk.f32.gmra.mrb[124].mxu1 %vm4365_vm8, %v10692_v19  ;;  %12113 = vmatprep.mubr.msk.f32.mxu0 %vm15122_vm14, %v15123_v5  ;;  %v4947_v48 = vpop.f32.mrb[76].mxu0 }
 0x7fe   :  { %12070 = vmatprep.mubr.msk.f32.mxu1 %vm15122_vm14, %v15123_v5  ;;  %v20128_v18 = vadd.f32 %v4947_v48, %v19964_v44  ;;  %v11848_v25 = vpop.f32.mrb[77].mxu0  ;;  %v10694_v44 = vld [vmem:[%s22553_s5 + $0x388] sm:$0xff]  ;;  %v10726_v48 = vld [vmem:[%s22553_s5 + $0x410] sm:$0xff] }
 0x800   :  { %12114 = vmatmul.mubr.msk.f32.gmra.mrb[148].mxu0 %vm4365_vm8, %v10721_v40 }
 0x801   :  { %12071 = vmatmul.mubr.msk.f32.gmra.mrb[126].mxu1 %vm4365_vm8, %v10693_v27  ;;  %12116 = vmatprep.mubr.msk.f32.mxu0 %vm15122_vm14, %v15123_v5 }
 0x802   :  { %12073 = vmatprep.mubr.msk.f32.mxu1 %vm15122_vm14, %v15123_v5 }
 0x804   :  { %12117 = vmatmul.mubr.msk.f32.gmra.mrb[150].mxu0 %vm4365_vm8, %v10722_v10 }
 0x805   :  { %12074 = vmatmul.mubr.msk.f32.gmra.mrb[128].mxu1 %vm4365_vm8, %v10694_v44  ;;  %12119 = vmatprep.mubr.msk.f32.mxu0 %vm15122_vm14, %v15123_v5 }
 0x806   :  { %12076 = vmatprep.mubr.msk.f32.mxu1 %vm15122_vm14, %v15123_v5  ;;  %v5107_v37 = vpop.f32.mrb[52].mxu1 }
 0x807   :  { %v5181_v57 = vadd.f32 %v5107_v37, %v19896_v21  ;;  %v11855_v59 = vpop.f32.mrb[53].mxu1  ;;  %v10727_v37 = vld [vmem:[%s22553_s5 + $0x418] sm:$0xff] }
 0x808   :  { %12120 = vmatmul.mubr.msk.f32.gmra.mrb[152].mxu0 %vm4365_vm8, %v10723_v17 }
 0x809   :  { %12077 = vmatmul.mubr.msk.f32.gmra.mrb[130].mxu1 %vm4365_vm8, %v10695_v54  ;;  %12122 = vmatprep.mubr.msk.f32.mxu0 %vm15122_vm14, %v15123_v5 }
 0x80a   :  { %12079 = vmatprep.mubr.msk.f32.mxu1 %vm15122_vm14, %v15123_v5  ;;  %v5112_v21 = vpop.f32.mrb[54].mxu1 }
 0x80b   :  { %v5182_v29 = vadd.f32 %v5112_v21, %v19915_v43  ;;  %v11858_v52 = vpop.f32.mrb[55].mxu1  ;;  %v10697_v43 = vld [vmem:[%s22553_s5 + $0x3a0] sm:$0xff] }
 0x80c   :  { %12123 = vmatmul.mubr.msk.f32.gmra.mrb[154].mxu0 %vm4365_vm8, %v10724_v55  ;;  %v10728_v52 = vld [vmem:[%s22553_s5 + $0x420] sm:$0xff] }
 0x80d   :  { %12080 = vmatmul.mubr.msk.f32.gmra.mrb[132].mxu1 %vm4365_vm8, %v10696_v20  ;;  %12125 = vmatprep.mubr.msk.f32.mxu0 %vm15122_vm14, %v15123_v5  ;;  %v5337_v13 = vpop.f32.mrb[78].mxu0 }
 0x80e   :  { %12082 = vmatprep.mubr.msk.f32.mxu1 %vm15122_vm14, %v15123_v5  ;;  %v20180_v50 = vadd.f32 %v5337_v13, %v5181_v57  ;;  %v11904_v2 = vpop.f32.mrb[79].mxu0  ;;  %v5117_v19 = vpop.f32.mrb[56].mxu1 }
 0x80f   :  { %v5183_v26 = vadd.f32 %v5117_v19, %v19938_v56  ;;  %v11861_v40 = vpop.f32.mrb[57].mxu1  ;;  %v10698_v56 = vld [vmem:[%s22553_s5 + $0x3a8] sm:$0xff] }
 0x810   :  { %12126 = vmatmul.mubr.msk.f32.gmra.mrb[156].mxu0 %vm4365_vm8, %v10725_v9  ;;  %v10729_v40 = vld [vmem:[%s22553_s5 + $0x428] sm:$0xff] }
 0x811   :  { %12083 = vmatmul.mubr.msk.f32.gmra.mrb[134].mxu1 %vm4365_vm8, %v10697_v43  ;;  %12128 = vmatprep.mubr.msk.f32.mxu0 %vm15122_vm14, %v15123_v5  ;;  %v5342_v27 = vpop.f32.mrb[80].mxu0 }
 0x812   :  { %12085 = vmatprep.mubr.msk.f32.mxu1 %vm15122_vm14, %v15123_v5  ;;  %v20195_v25 = vadd.f32 %v5342_v27, %v5182_v29  ;;  %v11907_v10 = vpop.f32.mrb[81].mxu0  ;;  %v5122_v44 = vpop.f32.mrb[58].mxu1 }
 0x813   :  { %v5184_v17 = vadd.f32 %v5122_v44, %v19958_v11  ;;  %v11864_v54 = vpop.f32.mrb[59].mxu1  ;;  %v10699_v11 = vld [vmem:[%s22553_s5 + $0x3b0] sm:$0xff] }
 0x814   :  { %12129 = vmatmul.mubr.msk.f32.gmra.mrb[158].mxu0 %vm4365_vm8, %v10726_v48 }
 0x815   :  { %12086 = vmatmul.mubr.msk.f32.gmra.mrb[136].mxu1 %vm4365_vm8, %v10698_v56  ;;  %12131 = vmatprep.mubr.msk.f32.mxu0 %vm15122_vm14, %v15123_v5  ;;  %v5347_v57 = vpop.f32.mrb[82].mxu0 }
 0x816   :  { %12088 = vmatprep.mubr.msk.f32.mxu1 %vm15122_vm14, %v15123_v5  ;;  %v20210_v59 = vadd.f32 %v5347_v57, %v5183_v26  ;;  %v11910_v55 = vpop.f32.mrb[83].mxu0  ;;  %v5127_v20 = vpop.f32.mrb[60].mxu1 }
 0x817   :  { %v5185_v21 = vadd.f32 %v5127_v20, %v19978_v32  ;;  %v11867_v29 = vpop.f32.mrb[61].mxu1  ;;  %v10700_v32 = vld [vmem:[%s22553_s5 + $0x3b8] sm:$0xff]  ;;  %v14927_v55 = vpop.permute.xlu0 %14926 }
 0x818   :  { %12132 = vmatmul.mubr.msk.f32.gmra.mrb[160].mxu0 %vm4365_vm8, %v10727_v37 }
 0x819   :  { %12089 = vmatmul.mubr.msk.f32.gmra.mrb[138].mxu1 %vm4365_vm8, %v10699_v11  ;;  %12134 = vmatprep.mubr.msk.f32.mxu0 %vm15122_vm14, %v15123_v5  ;;  %v5352_v9 = vpop.f32.mrb[84].mxu0 }
 0x81a   :  { %12091 = vmatprep.mubr.msk.f32.mxu1 %vm15122_vm14, %v15123_v5  ;;  %v20225_v13 = vadd.f32 %v5352_v9, %v5184_v17  ;;  %v5132_v43 = vpop.f32.mrb[62].mxu1  ;;  %v11913_v2 = vpop.f32.mrb[85].mxu0  ;;  %v10730_v17 = vld [vmem:[%s22553_s5 + $0x430] sm:$0xff] }
 0x81b   :  { %v5186_v19 = vadd.f32 %v5132_v43, %v19993_v39  ;;  %v11870_v26 = vpop.f32.mrb[63].mxu1 }
 0x81c   :  { %12135 = vmatmul.mubr.msk.f32.gmra.mrb[162].mxu0 %vm4365_vm8, %v10728_v52  ;;  %v22985_v26 = vunpack.i.l.bf16 %v18842_v1 }
 0x81d   :  { %12092 = vmatmul.mubr.msk.f32.gmra.mrb[140].mxu1 %vm4365_vm8, %v10700_v32  ;;  %12137 = vmatprep.mubr.msk.f32.mxu0 %vm15122_vm14, %v15123_v5  ;;  %v5357_v48 = vpop.f32.mrb[86].mxu0 }
 0x81e   :  { %12147 = vmatprep.mubr.msk.f32.mxu1 %vm15122_vm14, %v15123_v5  ;;  %v5137_v27 = vpop.f32.mrb[64].mxu1  ;;  %v20237_v56 = vadd.f32 %v5357_v48, %v5185_v21  ;;  %v11916_v39 = vpop.f32.mrb[87].mxu0  ;;  %v22986_v48 = vunpack.i.h.bf16 %v18823_v53 }
 0x81f   :  { %v5187_v10 = vadd.f32 %v5137_v27, %v20008_v8  ;;  %v11873_v44 = vpop.f32.mrb[65].mxu1 }
 0x820   :  { %12138 = vmatmul.mubr.msk.f32.gmra.mrb[164].mxu0 %vm4365_vm8, %v10729_v40  ;;  %v4196_v40 = vsel %vm169_vm2, %v14894_v7, %v22985_v26  ;;  %v4195_v27 = vsel %vm169_vm2, %v14893_v0, %v22986_v48  ;;  %v22988_v7 = vunpack.i.l.bf16 %v19414_v58  ;;  %v22991_v26 = vunpack.i.h.bf16 %v19446_v3 }
 0x821   :  { %12140 = vmatprep.mubr.msk.f32.mxu0 %vm15122_vm14, %v15123_v5  ;;  %v5362_v54 = vpop.f32.mrb[88].mxu0 }
 0x822   :  { %v5142_v37 = vpop.f32.mrb[66].mxu1  ;;  %v20246_v57 = vadd.f32 %v5362_v54, %v5186_v19  ;;  %v11919_v11 = vpop.f32.mrb[89].mxu0 }
 0x823   :  { %v5188_v20 = vadd.f32 %v5142_v37, %v20023_v51  ;;  %v11876_v21 = vpop.f32.mrb[67].mxu1 }
 0x824   :  { %12141 = vmatmul.mubr.msk.f32.gmra.mrb[166].mxu0 %vm4365_vm8, %v10730_v17  ;;  %v14928_v21 = vunpack.i.l.bf16 %v14927_v55 }
 0x825   :  { %12196 = vmatprep.mubr.msk.f32.mxu0 %vm15122_vm14, %v15123_v5  ;;  %v5367_v8 = vpop.f32.mrb[90].mxu0  ;;  %v20252_v29 = vpop.permute.xlu1 %14921 }
 0x826   :  { %v5147_v52 = vpop.f32.mrb[68].mxu1  ;;  %v20254_v9 = vadd.f32 %v5367_v8, %v5187_v10  ;;  %v14924_v32 = vunpack.i.h.bf16 %v20252_v29  ;;  %v14923_v43 = vunpack.i.l.bf16 %v20252_v29  ;;  %v14937_v2 = vpop.permute.xlu0 %14936  ;;  %v14929_v10 = vunpack.i.h.bf16 %v14927_v55  ;;  %v10807_v29 = vld [vmem:[%s22553_s5 + $0x530] sm:$0xff] }
 0x827   :  { %v5189_v19 = vadd.f32 %v5147_v52, %v20038_v28  ;;  %v11879_v51 = vpop.f32.mrb[69].mxu1  ;;  %v11922_v39 = vpop.f32.mrb[91].mxu0  ;;  %v14939_v14 = vunpack.i.h.bf16 %v14937_v2  ;;  %v14938_v17 = vunpack.i.l.bf16 %v14937_v2  ;;  %v22993_v2 = vunpack.i.l.bf16 %v19446_v3 }
 0x828   :  { %v4280_v1 = vsel %vm22987_vm5, %v14854_v63, %v14924_v32  ;;  %v4279_v53 = vsel %vm22989_vm6, %v22988_v7, %v14923_v43  ;;  %v22990_v51 = vunpack.i.l.bf16 %v18795_v42  ;;  %v22995_v3 = vmax.f32 %v19404_v31, 0.0  ;;  %v10746_v31 = vld [vmem:[%s22553_s5 + $0x438] sm:$0xff] }
 0x829   :  { %v5372_v28 = vpop.f32.mrb[92].mxu0  ;;  %v4299_v0 = vmax.f32 %v19094_v4, %v4280_v1  ;;  %v4289_v44 = vmax.f32 %v19098_v24, %v4279_v53  ;;  %v14932_v54 = vpop.permute.xlu1 %14931  ;;  %v22992_v24 = vunpack.i.h.bf16 %v18709_v47  ;;  %v22994_v47 = vmax.f32 %v19410_v22, 0.0 }
 0x82a   :  { %v5152_v37 = vpop.f32.mrb[70].mxu1  ;;  %v20285_v11 = vadd.f32 %v5372_v28, %v5188_v20  ;;  %v14934_v63 = vunpack.i.h.bf16 %v14932_v54  ;;  %v14933_v8 = vunpack.i.l.bf16 %v14932_v54  ;;  %v4206_v4 = vsel %vm169_vm2, %v22991_v26, %v22990_v51 }
 0x82b   :  { %v5190_v52 = vadd.f32 %v5152_v37, %v20053_v45  ;;  %v11882_v58 = vpop.f32.mrb[71].mxu1  ;;  %v4205_v20 = vsel %vm169_vm2, %v22993_v2, %v22992_v24  ;;  %v6583_v55 = vsel %vm4315_vm11, %v4299_v0, %v14939_v14  ;;  %v6582_v48 = vsel %vm4315_vm11, %v4289_v44, %v14938_v17  ;;  %v11925_v45 = vpop.f32.mrb[93].mxu0  ;;  %vm22998_vm2 = vmmov %vm22974_vm0 }
 0x82c   :  { %v13718_v39 = vpack.c.bf16 %v6583_v55, %v6582_v48  ;;  %v6356_v42 = vsel %vm4315_vm11, %v14928_v21, %v14933_v8  ;;  %v6357_v1 = vsel %vm4315_vm11, %v14929_v10, %v14934_v63  ;;  %v20304_v7 = vpack.i.bf16 %v4299_v0, %v4289_v44  ;;  %v10776_v10 = vld [vmem:[%s22553_s5 + $0x4b0] sm:$0xff]  ;;  %v10778_v55 = vld [vmem:[%s22553_s5 + $0x4c0] sm:$0xff] }
 0x82d   :  { %v5377_v53 = vpop.f32.mrb[94].mxu0  ;;  %v20308_v28 = vmax.f32 %v22994_v47, %v4196_v40  ;;  %v20312_v54 = vmax.f32 %v22995_v3, %v4195_v27  ;;  %v13715_v14 = vpack.c.bf16 %v6357_v1, %v6356_v42  ;;  %v22996_v27 = vmax.f32 %v19070_v33, 0.0  ;;  %v10779_v47 = vld [vmem:[%s22553_s5 + $0x4c8] sm:$0xff] }
 0x82e   :  { %v5157_v37 = vpop.f32.mrb[72].mxu1  ;;  %v11928_v17 = vpop.f32.mrb[95].mxu0  ;;  %14941 = vrot.lane.b32.xlu1 %v20304_v7, %s15100_s13  ;;  %13719 = vmatpush3.bf16.msra.mxu0 %v13718_v39  ;;  %v20320_v40 = vadd.f32 %v5377_v53, %v5189_v19  ;;  %v22997_v21 = vmax.f32 %v19090_v16, 0.0  ;;  %v10777_v16 = vld [vmem:[%s22553_s5 + $0x4b8] sm:$0xff]  ;;  %v10748_v39 = vld [vmem:[%s22553_s5 + $0x448] sm:$0xff] }
 0x82f   :  { %v5191_v0 = vadd.f32 %v5157_v37, %v20068_v35  ;;  %v11885_v22 = vpop.f32.mrb[73].mxu1  ;;  %14966 = vrot.lane.b32.xlu0 %v20304_v7, %s15126_s20  ;;  %13716 = vmatpush3.bf16.msra.mxu1 %v13715_v14  ;;  %v20329_v44 = vmax.f32 %v22996_v27, %v4206_v4  ;;  %v14970_v19 = vpack.i.bf16 %v20308_v28, %v20312_v54  ;;  %v10749_v37 = vld [vmem:[%s22553_s5 + $0x450] sm:$0xff]  ;;  %v10750_v27 = vld [vmem:[%s22553_s5 + $0x458] sm:$0xff] }
 0x830   :  { %v20333_v63 = vmax.f32 %v22997_v21, %v4205_v20  ;;  %13720 = vmatprep.subr.bf16.mxu1 %v15121_v15  ;;  %13723 = vmatprep.subr.bf16.mxu0 %v15121_v15 }
 0x831   :  { %v5382_v35 = vpop.f32.mrb[96].mxu0  ;;  %12197 = vmatmul.mubr.msk.f32.vlgmr.msra.gmra.mrb[168].mxu0 %vm4365_vm8, %v10776_v10 }
 0x832   :  { %v5162_v8 = vpop.f32.mrb[74].mxu1  ;;  %v20340_v58 = vadd.f32 %v5382_v35, %v5190_v52  ;;  %v11931_v33 = vpop.f32.mrb[97].mxu0  ;;  %14946 = vrot.lane.b32.xlu1 %v20304_v7, %s15117_s1  ;;  %12148 = vmatmul.mubr.msk.f32.vlgmr.msra.gmra.mrb[142].mxu1 %vm4365_vm8, %v10746_v31  ;;  %v10747_v52 = vld [vmem:[%s22553_s5 + $0x440] sm:$0xff]  ;;  %v14960_v4 = vpack.i.bf16 %v20329_v44, %v20333_v63 }
 0x833   :  { %v5192_v51 = vadd.f32 %v5162_v8, %v20083_v36  ;;  %v11888_v26 = vpop.f32.mrb[75].mxu1  ;;  %14971 = vrot.lane.b32.xlu0 %v14970_v19, %s22741_s19  ;;  %12150 = vmatprep.mubr.msk.f32.mxu1 %vm15122_vm14, %v15123_v5  ;;  %v10751_v19 = vld [vmem:[%s22553_s5 + $0x460] sm:$0xff] }
 0x834   :  { %12199 = vmatprep.mubr.msk.f32.mxu0 %vm15122_vm14, %v15123_v5  ;;  %v10752_v26 = vld [vmem:[%s22553_s5 + $0x468] sm:$0xff] }
 0x835   :  { %v5387_v24 = vpop.f32.mrb[98].mxu0  ;;  %12200 = vmatmul.mubr.msk.f32.gmra.mrb[170].mxu0 %vm4365_vm8, %v10777_v16 }
 0x836   :  { %v5167_v36 = vpop.f32.mrb[76].mxu1  ;;  %v20360_v2 = vadd.f32 %v5387_v24, %v5191_v0  ;;  %v11934_v20 = vpop.f32.mrb[99].mxu0  ;;  %14961 = vrot.lane.b32.xlu1 %v14960_v4, %s22741_s19  ;;  %12151 = vmatmul.mubr.msk.f32.gmra.mrb[144].mxu1 %vm4365_vm8, %v10747_v52  ;;  %v10783_v52 = vld [vmem:[%s22553_s5 + $0x4e8] sm:$0xff]  ;;  %v10753_v4 = vld [vmem:[%s22553_s5 + $0x470] sm:$0xff] }
 0x837   :  { %v5193_v48 = vadd.f32 %v5167_v36, %v20098_v41  ;;  %v11891_v45 = vpop.f32.mrb[77].mxu1  ;;  %14986 = vrot.lane.b32.xlu0 %v19788_v62, %s15129_s23  ;;  %12153 = vmatprep.mubr.msk.f32.mxu1 %vm15122_vm14, %v15123_v5  ;;  %v10784_v24 = vld [vmem:[%s22553_s5 + $0x4f0] sm:$0xff]  ;;  %v10754_v36 = vld [vmem:[%s22553_s5 + $0x478] sm:$0xff] }
 0x838   :  { %12202 = vmatprep.mubr.msk.f32.mxu0 %vm15122_vm14, %v15123_v5  ;;  %v10785_v20 = vld [vmem:[%s22553_s5 + $0x4f8] sm:$0xff]  ;;  %v10756_v45 = vld [vmem:[%s22553_s5 + $0x488] sm:$0xff] }
 0x839   :  { %v5392_v42 = vpop.f32.mrb[100].mxu0  ;;  %12203 = vmatmul.mubr.msk.f32.gmra.mrb[172].mxu0 %vm4365_vm8, %v10778_v55  ;;  %v10755_v55 = vld [vmem:[%s22553_s5 + $0x480] sm:$0xff] }
 0x83a   :  { %v5172_v1 = vpop.f32.mrb[78].mxu1  ;;  %v20378_v53 = vadd.f32 %v5392_v42, %v5192_v51  ;;  %v11937_v41 = vpop.f32.mrb[101].mxu0  ;;  %14976 = vrot.lane.b32.xlu1 %v19788_v62, %s15127_s0  ;;  %12154 = vmatmul.mubr.msk.f32.gmra.mrb[146].mxu1 %vm4365_vm8, %v10748_v39  ;;  %v10782_v51 = vld [vmem:[%s22553_s5 + $0x4e0] sm:$0xff]  ;;  %v10787_v39 = vld [vmem:[%s22553_s5 + $0x508] sm:$0xff]  ;;  %v10757_v42 = vld [vmem:[%s22553_s5 + $0x490] sm:$0xff] }
 0x83b   :  { %v5194_v3 = vadd.f32 %v5172_v1, %v20113_v60  ;;  %v11894_v14 = vpop.f32.mrb[79].mxu1  ;;  %12156 = vmatprep.mubr.msk.f32.mxu1 %vm15122_vm14, %v15123_v5  ;;  %12205 = vmatprep.mubr.msk.f32.mxu0 %vm15122_vm14, %v15123_v5  ;;  %v10780_v60 = vld [vmem:[%s22553_s5 + $0x4d0] sm:$0xff]  ;;  %v10758_v41 = vld [vmem:[%s22553_s5 + $0x498] sm:$0xff] }
 0x83c   :  { %v10788_v1 = vld [vmem:[%s22553_s5 + $0x510] sm:$0xff]  ;;  %v10790_v14 = vld [vmem:[%s22553_s5 + $0x520] sm:$0xff] }
 0x83d   :  { %v5397_v62 = vpop.f32.mrb[102].mxu0  ;;  %12206 = vmatmul.mubr.msk.f32.gmra.mrb[174].mxu0 %vm4365_vm8, %v10779_v47  ;;  %v10789_v47 = vld [vmem:[%s22553_s5 + $0x518] sm:$0xff] }
 0x83e   :  { %v5177_v17 = vpop.f32.mrb[80].mxu1  ;;  %v20395_v10 = vadd.f32 %v5397_v62, %v5193_v48  ;;  %v11940_v0 = vpop.f32.mrb[103].mxu0  ;;  %14981 = vrot.lane.b32.xlu1 %v20304_v7, %s15128_s25  ;;  %12157 = vmatmul.mubr.msk.f32.gmra.mrb[148].mxu1 %vm4365_vm8, %v10749_v37  ;;  %v10786_v48 = vld [vmem:[%s22553_s5 + $0x500] sm:$0xff]  ;;  %v10760_v37 = vld [vmem:[%s22553_s5 + $0x4a8] sm:$0xff] }
 0x83f   :  { %v5195_v22 = vadd.f32 %v5177_v17, %v20128_v18  ;;  %v11897_v31 = vpop.f32.mrb[81].mxu1  ;;  %12159 = vmatprep.mubr.msk.f32.mxu1 %vm15122_vm14, %v15123_v5  ;;  %12208 = vmatprep.mubr.msk.f32.mxu0 %vm15122_vm14, %v15123_v5  ;;  %v10781_v18 = vld [vmem:[%s22553_s5 + $0x4d8] sm:$0xff] }
 0x841   :  { %v5402_v7 = vpop.f32.mrb[104].mxu0  ;;  %12209 = vmatmul.mubr.msk.f32.gmra.mrb[176].mxu0 %vm4365_vm8, %v10780_v60 }
 0x842   :  { %v20412_v21 = vadd.f32 %v5402_v7, %v5194_v3  ;;  %v11943_v35 = vpop.f32.mrb[105].mxu0  ;;  %12160 = vmatmul.mubr.msk.f32.gmra.mrb[150].mxu1 %vm4365_vm8, %v10750_v27  ;;  %12211 = vmatprep.mubr.msk.f32.mxu0 %vm15122_vm14, %v15123_v5  ;;  %v10759_v3 = vld [vmem:[%s22553_s5 + $0x4a0] sm:$0xff] }
 0x843   :  { %12162 = vmatprep.mubr.msk.f32.mxu1 %vm15122_vm14, %v15123_v5 }
 0x845   :  { %v5407_v8 = vpop.f32.mrb[106].mxu0  ;;  %12212 = vmatmul.mubr.msk.f32.gmra.mrb[178].mxu0 %vm4365_vm8, %v10781_v18 }
 0x846   :  { %v20426_v33 = vadd.f32 %v5407_v8, %v5195_v22  ;;  %v11946_v16 = vpop.f32.mrb[107].mxu0  ;;  %12163 = vmatmul.mubr.msk.f32.gmra.mrb[152].mxu1 %vm4365_vm8, %v10751_v19  ;;  %12214 = vmatprep.mubr.msk.f32.mxu0 %vm15122_vm14, %v15123_v5 }
 0x847   :  { %12165 = vmatprep.mubr.msk.f32.mxu1 %vm15122_vm14, %v15123_v5 }
 0x849   :  { %12215 = vmatmul.mubr.msk.f32.gmra.mrb[180].mxu0 %vm4365_vm8, %v10782_v51 }
 0x84a   :  { %12166 = vmatmul.mubr.msk.f32.gmra.mrb[154].mxu1 %vm4365_vm8, %v10752_v26  ;;  %12217 = vmatprep.mubr.msk.f32.mxu0 %vm15122_vm14, %v15123_v5 }
 0x84b   :  { %12168 = vmatprep.mubr.msk.f32.mxu1 %vm15122_vm14, %v15123_v5 }
 0x84d   :  { %12218 = vmatmul.mubr.msk.f32.gmra.mrb[182].mxu0 %vm4365_vm8, %v10783_v52 }
 0x84e   :  { %12169 = vmatmul.mubr.msk.f32.gmra.mrb[156].mxu1 %vm4365_vm8, %v10753_v4  ;;  %12220 = vmatprep.mubr.msk.f32.mxu0 %vm15122_vm14, %v15123_v5 }
 0x84f   :  { %12171 = vmatprep.mubr.msk.f32.mxu1 %vm15122_vm14, %v15123_v5 }
 0x851   :  { %12221 = vmatmul.mubr.msk.f32.gmra.mrb[184].mxu0 %vm4365_vm8, %v10784_v24 }
 0x852   :  { %12172 = vmatmul.mubr.msk.f32.gmra.mrb[158].mxu1 %vm4365_vm8, %v10754_v36  ;;  %12223 = vmatprep.mubr.msk.f32.mxu0 %vm15122_vm14, %v15123_v5 }
 0x853   :  { %12174 = vmatprep.mubr.msk.f32.mxu1 %vm15122_vm14, %v15123_v5 }
 0x855   :  { %12224 = vmatmul.mubr.msk.f32.gmra.mrb[186].mxu0 %vm4365_vm8, %v10785_v20 }
 0x856   :  { %12175 = vmatmul.mubr.msk.f32.gmra.mrb[160].mxu1 %vm4365_vm8, %v10755_v55  ;;  %12226 = vmatprep.mubr.msk.f32.mxu0 %vm15122_vm14, %v15123_v5 }
 0x857   :  { %12177 = vmatprep.mubr.msk.f32.mxu1 %vm15122_vm14, %v15123_v5 }
 0x859   :  { %12227 = vmatmul.mubr.msk.f32.gmra.mrb[188].mxu0 %vm4365_vm8, %v10786_v48 }
 0x85a   :  { %12178 = vmatmul.mubr.msk.f32.gmra.mrb[162].mxu1 %vm4365_vm8, %v10756_v45  ;;  %12229 = vmatprep.mubr.msk.f32.mxu0 %vm15122_vm14, %v15123_v5 }
 0x85b   :  { %12180 = vmatprep.mubr.msk.f32.mxu1 %vm15122_vm14, %v15123_v5 }
 0x85d   :  { %12230 = vmatmul.mubr.msk.f32.gmra.mrb[190].mxu0 %vm4365_vm8, %v10787_v39 }
 0x85e   :  { %12181 = vmatmul.mubr.msk.f32.gmra.mrb[164].mxu1 %vm4365_vm8, %v10757_v42  ;;  %12232 = vmatprep.mubr.msk.f32.mxu0 %vm15122_vm14, %v15123_v5 }
 0x85f   :  { %12183 = vmatprep.mubr.msk.f32.mxu1 %vm15122_vm14, %v15123_v5 }
 0x861   :  { %12233 = vmatmul.mubr.msk.f32.gmra.mrb[192].mxu0 %vm4365_vm8, %v10788_v1 }
 0x862   :  { %12184 = vmatmul.mubr.msk.f32.gmra.mrb[166].mxu1 %vm4365_vm8, %v10758_v41  ;;  %12235 = vmatprep.mubr.msk.f32.mxu0 %vm15122_vm14, %v15123_v5 }
 0x863   :  { %12186 = vmatprep.mubr.msk.f32.mxu1 %vm15122_vm14, %v15123_v5 }
 0x865   :  { %12236 = vmatmul.mubr.msk.f32.gmra.mrb[194].mxu0 %vm4365_vm8, %v10789_v47 }
 0x866   :  { %12187 = vmatmul.mubr.msk.f32.gmra.mrb[168].mxu1 %vm4365_vm8, %v10759_v3  ;;  %12238 = vmatprep.mubr.msk.f32.mxu0 %vm15122_vm14, %v15123_v5 }
 0x867   :  { %12189 = vmatprep.mubr.msk.f32.mxu1 %vm15122_vm14, %v15123_v5 }
 0x869   :  { %12239 = vmatmul.mubr.msk.f32.gmra.mrb[196].mxu0 %vm4365_vm8, %v10790_v14 }
 0x86a   :  { %12190 = vmatmul.mubr.msk.f32.gmra.mrb[170].mxu1 %vm4365_vm8, %v10760_v37  ;;  %12294 = vmatprep.mubr.msk.f32.mxu0 %vm15122_vm14, %v15123_v5 }
 0x86b   :  { %12245 = vmatprep.mubr.msk.f32.mxu1 %vm15122_vm14, %v15123_v5 }
 0x87c   :  { %v5563_v62 = vpop.f32.mrb[82].mxu1 }
 0x87d   :  { %v5637_v17 = vadd.f32 %v5563_v62, %v20180_v50  ;;  %v11953_v0 = vpop.f32.mrb[83].mxu1 }
 0x880   :  { %v5568_v60 = vpop.f32.mrb[84].mxu1 }
 0x881   :  { %v5638_v22 = vadd.f32 %v5568_v60, %v20195_v25  ;;  %v11956_v31 = vpop.f32.mrb[85].mxu1 }
 0x883   :  { %v5795_v27 = vpop.f32.mrb[108].mxu0 }
 0x884   :  { %v20543_v7 = vadd.f32 %v5795_v27, %v5637_v17  ;;  %v5573_v35 = vpop.f32.mrb[86].mxu1  ;;  %v12002_v18 = vpop.f32.mrb[109].mxu0 }
 0x885   :  { %v5639_v19 = vadd.f32 %v5573_v35, %v20210_v59  ;;  %v11959_v8 = vpop.f32.mrb[87].mxu1  ;;  %v14952_v17 = vpop.permute.xlu0 %14951 }
 0x887   :  { %v5800_v16 = vpop.f32.mrb[110].mxu0 }
 0x888   :  { %v20546_v51 = vadd.f32 %v5800_v16, %v5638_v22  ;;  %v5578_v26 = vpop.f32.mrb[88].mxu1  ;;  %v12005_v52 = vpop.f32.mrb[111].mxu0 }
 0x889   :  { %v5640_v50 = vadd.f32 %v5578_v26, %v20225_v13  ;;  %v11962_v4 = vpop.f32.mrb[89].mxu1  ;;  %v14957_v26 = vpop.permute.xlu0 %14956 }
 0x88b   :  { %v5805_v24 = vpop.f32.mrb[112].mxu0 }
 0x88c   :  { %v20549_v36 = vadd.f32 %v5805_v24, %v5639_v19  ;;  %v5583_v25 = vpop.f32.mrb[90].mxu1  ;;  %v12008_v20 = vpop.f32.mrb[113].mxu0 }
 0x88d   :  { %v5641_v55 = vadd.f32 %v5583_v25, %v20237_v56  ;;  %v11965_v48 = vpop.f32.mrb[91].mxu1 }
 0x88f   :  { %v5810_v45 = vpop.f32.mrb[114].mxu0 }
 0x890   :  { %v20552_v39 = vadd.f32 %v5810_v45, %v5640_v50  ;;  %v5588_v59 = vpop.f32.mrb[92].mxu1  ;;  %v12011_v42 = vpop.f32.mrb[115].mxu0 }
 0x891   :  { %v5642_v1 = vadd.f32 %v5588_v59, %v20246_v57  ;;  %v11968_v41 = vpop.f32.mrb[93].mxu1 }
 0x893   :  { %v5815_v47 = vpop.f32.mrb[116].mxu0 }
 0x894   :  { %v20555_v3 = vadd.f32 %v5815_v47, %v5641_v55  ;;  %v5593_v13 = vpop.f32.mrb[94].mxu1  ;;  %v12014_v14 = vpop.f32.mrb[117].mxu0  ;;  %v14953_v55 = vunpack.i.l.bf16 %v14952_v17 }
 0x895   :  { %v5643_v37 = vadd.f32 %v5593_v13, %v20254_v9  ;;  %v11971_v62 = vpop.f32.mrb[95].mxu1 }
 0x897   :  { %v5820_v0 = vpop.f32.mrb[118].mxu0 }
 0x898   :  { %v20558_v56 = vadd.f32 %v5820_v0, %v5642_v1  ;;  %v5598_v60 = vpop.f32.mrb[96].mxu1  ;;  %v12017_v22 = vpop.f32.mrb[119].mxu0  ;;  %v14959_v0 = vunpack.i.h.bf16 %v14957_v26 }
 0x899   :  { %v5644_v31 = vadd.f32 %v5598_v60, %v20285_v11  ;;  %v11974_v27 = vpop.f32.mrb[97].mxu1  ;;  %v14954_v11 = vunpack.i.h.bf16 %v14952_v17  ;;  %v14958_v17 = vunpack.i.l.bf16 %v14957_v26 }
 0x89b   :  { %v5825_v35 = vpop.f32.mrb[120].mxu0 }
 0x89c   :  { %v20561_v57 = vadd.f32 %v5825_v35, %v5643_v37  ;;  %v5603_v18 = vpop.f32.mrb[98].mxu1  ;;  %v12020_v19 = vpop.f32.mrb[121].mxu0 }
 0x89d   :  { %v5645_v8 = vadd.f32 %v5603_v18, %v20320_v40  ;;  %v11977_v16 = vpop.f32.mrb[99].mxu1  ;;  %v10806_v19 = vld [vmem:[%s22553_s5 + $0x528] sm:$0xff] }
 0x89f   :  { %v5830_v9 = vpop.f32.mrb[122].mxu0 }
 0x8a0   :  { %v20564_v52 = vadd.f32 %v5830_v9, %v5644_v31  ;;  %v5608_v50 = vpop.f32.mrb[100].mxu1  ;;  %v12023_v4 = vpop.f32.mrb[123].mxu0 }
 0x8a1   :  { %v14942_v24 = vpop.permute.xlu1 %14941  ;;  %v5646_v25 = vadd.f32 %v5608_v50, %v20340_v58  ;;  %v11980_v20 = vpop.f32.mrb[101].mxu1 }
 0x8a2   :  { %v14944_v48 = vunpack.i.h.bf16 %v14942_v24  ;;  %v14943_v45 = vunpack.i.l.bf16 %v14942_v24  ;;  %v20567_v59 = vpop.permute.xlu0 %14966 }
 0x8a3   :  { %v5835_v42 = vpop.f32.mrb[124].mxu0 }
 0x8a4   :  { %v6814_v40 = vsel %vm4315_vm11, %v14943_v45, %v14953_v55  ;;  %v6815_v1 = vsel %vm4315_vm11, %v14944_v48, %v14954_v11  ;;  %v20571_v41 = vadd.f32 %v5835_v42, %v5645_v8  ;;  %v5613_v47 = vpop.f32.mrb[102].mxu1  ;;  %v12026_v13 = vpop.f32.mrb[125].mxu0 }
 0x8a5   :  { %v13721_v14 = vpack.c.bf16 %v6815_v1, %v6814_v40  ;;  %v14947_v37 = vpop.permute.xlu1 %14946  ;;  %v5647_v58 = vadd.f32 %v5613_v47, %v20360_v2  ;;  %v11983_v62 = vpop.f32.mrb[103].mxu1 }
 0x8a6   :  { %v14949_v60 = vunpack.i.h.bf16 %v14947_v37  ;;  %v14948_v22 = vunpack.i.l.bf16 %v14947_v37  ;;  %v20574_v31 = vpop.permute.xlu0 %14971  ;;  %v14969_v37 = vunpack.i.h.bf16 %v20567_v59 }
 0x8a7   :  { %v14974_v27 = vunpack.i.h.bf16 %v20574_v31  ;;  %v14973_v35 = vunpack.i.l.bf16 %v20574_v31  ;;  %13722 = vmatpush3.bf16.msra.mxu1 %v13721_v14  ;;  %v5840_v18 = vpop.f32.mrb[126].mxu0 }
 0x8a8   :  { %v7044_v8 = vsel %vm4315_vm11, %v14948_v22, %v14958_v17  ;;  %v7045_v2 = vsel %vm4315_vm11, %v14949_v60, %v14959_v0  ;;  %v20583_v16 = vadd.f32 %v5840_v18, %v5646_v25  ;;  %v5618_v26 = vpop.f32.mrb[104].mxu1  ;;  %v12029_v9 = vpop.f32.mrb[127].mxu0  ;;  %13726 = vmatprep.subr.bf16.mxu1 %v15121_v15 }
 0x8a9   :  { %v13724_v50 = vpack.c.bf16 %v7045_v2, %v7044_v8  ;;  %v4278_v4 = vsel %vm22998_vm2, %v14924_v32, %v14974_v27  ;;  %v20592_v24 = vpop.permute.xlu1 %14961  ;;  %v11986_v20 = vpop.f32.mrb[105].mxu1  ;;  %v4277_v25 = vsel %vm22999_vm1, %v14923_v43, %v14973_v35  ;;  %v5648_v43 = vadd.f32 %v5618_v26, %v20378_v53 }
 0x8aa   :  { %12246 = vmatmul.mubr.msk.f32.vlgmr.msra.gmra.mrb[172].mxu1 %vm4365_vm8, %v10806_v19  ;;  %v20602_v11 = vmax.f32 %v19747_v49, %v4278_v4  ;;  %v20605_v55 = vmax.f32 %v19751_v30, %v4277_v25  ;;  %v14964_v32 = vunpack.i.h.bf16 %v20592_v24  ;;  %v14963_v48 = vunpack.i.l.bf16 %v20592_v24  ;;  %v10836_v30 = vld [vmem:[%s22553_s5 + $0x5a0] sm:$0xff]  ;;  %v14987_v17 = vpop.permute.xlu0 %14986 }
 0x8ab   :  { %13725 = vmatpush3.bf16.msra.mxu0 %v13724_v50  ;;  %v5845_v45 = vpop.f32.mrb[128].mxu0  ;;  %12248 = vmatprep.mubr.msk.f32.mxu1 %vm15122_vm14, %v15123_v5  ;;  %v23001_v53 = vunpack.i.h.bf16 %v19716_v61  ;;  %v14989_v2 = vunpack.i.h.bf16 %v14987_v17  ;;  %v14988_v25 = vunpack.i.l.bf16 %v14987_v17 }
 0x8ac   :  { %v20615_v49 = vadd.f32 %v5845_v45, %v5647_v58  ;;  %v5623_v42 = vpop.f32.mrb[106].mxu1  ;;  %v12032_v40 = vpop.f32.mrb[129].mxu0  ;;  %13729 = vmatprep.subr.bf16.mxu0 %v15121_v15  ;;  %v4267_v1 = vsel %vm23000_vm4, %v14903_v46, %v14963_v48  ;;  %v14968_v58 = vunpack.i.l.bf16 %v20567_v59  ;;  %v20640_v61 = vpack.i.bf16 %v20602_v11, %v20605_v55 }
 0x8ad   :  { %v4268_v47 = vsel %vm22974_vm0, %v23001_v53, %v14964_v32  ;;  %v14977_v13 = vpop.permute.xlu1 %14976  ;;  %v11989_v14 = vpop.f32.mrb[107].mxu1  ;;  %v4295_v62 = vmax.f32 %v19479_v6, %v4267_v1  ;;  %v5649_v22 = vadd.f32 %v5623_v42, %v20395_v10  ;;  %v10837_v10 = vld [vmem:[%s22553_s5 + $0x5a8] sm:$0xff] }
 0x8ae   :  { %v4305_v0 = vmax.f32 %v19475_v23, %v4268_v47  ;;  %12249 = vmatmul.mubr.msk.f32.gmra.mrb[174].mxu1 %vm4365_vm8, %v10807_v29  ;;  %v14979_v46 = vunpack.i.h.bf16 %v14977_v13  ;;  %v14978_v60 = vunpack.i.l.bf16 %v14977_v13  ;;  %12295 = vmatmul.mubr.msk.f32.vlgmr.msra.gmra.mrb[198].mxu0 %vm4365_vm8, %v10836_v30  ;;  %v10808_v23 = vld [vmem:[%s22553_s5 + $0x538] sm:$0xff]  ;;  %v10838_v47 = vld [vmem:[%s22553_s5 + $0x5b0] sm:$0xff] }
 0x8af   :  { %v5850_v18 = vpop.f32.mrb[130].mxu0  ;;  %12251 = vmatprep.mubr.msk.f32.mxu1 %vm15122_vm14, %v15123_v5  ;;  %12297 = vmatprep.mubr.msk.f32.mxu0 %vm15122_vm14, %v15123_v5 }
 0x8b0   :  { %v20649_v6 = vadd.f32 %v5850_v18, %v5648_v43  ;;  %v20653_v59 = vpack.i.bf16 %v4305_v0, %v4295_v62  ;;  %v5628_v19 = vpop.f32.mrb[108].mxu1  ;;  %v12035_v8 = vpop.f32.mrb[131].mxu0  ;;  %v7274_v26 = vsel %vm4315_vm11, %v14968_v58, %v14978_v60  ;;  %v7275_v9 = vsel %vm4315_vm11, %v14969_v37, %v14979_v46  ;;  %14991 = vrot.lane.b32.xlu0 %v20640_v61, %s15100_s13  ;;  %v10839_v18 = vld [vmem:[%s22553_s5 + $0x5b8] sm:$0xff] }
 0x8b1   :  { %v14982_v50 = vpop.permute.xlu1 %14981  ;;  %v5650_v4 = vadd.f32 %v5628_v19, %v20412_v21  ;;  %v11992_v20 = vpop.f32.mrb[109].mxu1  ;;  %v13727_v45 = vpack.c.bf16 %v7275_v9, %v7274_v26  ;;  %v10809_v21 = vld [vmem:[%s22553_s5 + $0x540] sm:$0xff]  ;;  %v23002_v62 = vunpack.i.h.bf16 %v18928_v34  ;;  %v23004_v46 = vunpack.i.l.bf16 %v18928_v34 }
 0x8b2   :  { %v14984_v29 = vunpack.i.h.bf16 %v14982_v50  ;;  %v14983_v43 = vunpack.i.l.bf16 %v14982_v50  ;;  %14996 = vrot.lane.b32.xlu1 %v20653_v59, %s15124_s3  ;;  %12252 = vmatmul.mubr.msk.f32.gmra.mrb[176].mxu1 %vm4365_vm8, %v10808_v23  ;;  %v23006_v26 = vunpack.i.h.bf16 %v18974_v38  ;;  %v23008_v50 = vunpack.i.l.bf16 %v18974_v38 }
 0x8b3   :  { %12298 = vmatmul.mubr.msk.f32.gmra.mrb[200].mxu0 %vm4365_vm8, %v10837_v10  ;;  %v5855_v42 = vpop.f32.mrb[132].mxu0  ;;  %12254 = vmatprep.mubr.msk.f32.mxu1 %vm15122_vm14, %v15123_v5  ;;  %v4286_v0 = vsel %vm23003_vm13, %v14964_v32, %v23002_v62  ;;  %v4285_v60 = vsel %vm23005_vm3, %v14963_v48, %v23004_v46  ;;  %v10815_v46 = vld [vmem:[%s22553_s5 + $0x570] sm:$0xff] }
 0x8b4   :  { %v7504_v30 = vsel %vm4315_vm11, %v14983_v43, %v14988_v25  ;;  %v7505_v40 = vsel %vm4315_vm11, %v14984_v29, %v14989_v2  ;;  %13728 = vmatpush3.bf16.msra.mxu1 %v13727_v45  ;;  %v20674_v1 = vadd.f32 %v5855_v42, %v5649_v22  ;;  %12300 = vmatprep.mubr.msk.f32.mxu0 %vm15122_vm14, %v15123_v5  ;;  %v5633_v53 = vpop.f32.mrb[110].mxu1  ;;  %v12038_v13 = vpop.f32.mrb[133].mxu0  ;;  %v10813_v42 = vld [vmem:[%s22553_s5 + $0x560] sm:$0xff] }
 0x8b5   :  { %v13730_v14 = vpack.c.bf16 %v7505_v40, %v7504_v30  ;;  %15006 = vrot.lane.b32.xlu0 %v20640_v61, %s15117_s1  ;;  %v5651_v37 = vadd.f32 %v5633_v53, %v20426_v33  ;;  %v11995_v58 = vpop.f32.mrb[111].mxu1  ;;  %v10810_v33 = vld [vmem:[%s22553_s5 + $0x548] sm:$0xff]  ;;  %13732 = vmatprep.subr.bf16.mxu1 %v15121_v15  ;;  %v4306_v48 = vmax.f32 %v20329_v44, %v4286_v0  ;;  %v10840_v44 = vld [vmem:[%s22553_s5 + $0x5c0] sm:$0xff]  ;;  %v10842_v30 = vld [vmem:[%s22553_s5 + $0x5d0] sm:$0xff] }
 0x8b6   :  { %15001 = vrot.lane.b32.xlu1 %v20653_v59, %s15099_s12  ;;  %12255 = vmatmul.mubr.msk.f32.gmra.mrb[178].mxu1 %vm4365_vm8, %v10809_v21  ;;  %v4296_v19 = vmax.f32 %v20333_v63, %v4285_v60  ;;  %v4276_v9 = vsel %vm23007_vm12, %v14974_v27, %v23006_v26  ;;  %v10843_v58 = vld [vmem:[%s22553_s5 + $0x5d8] sm:$0xff] }
 0x8b7   :  { %12301 = vmatmul.mubr.msk.f32.gmra.mrb[202].mxu0 %vm4365_vm8, %v10838_v47  ;;  %v5860_v17 = vpop.f32.mrb[134].mxu0  ;;  %12257 = vmatprep.mubr.msk.f32.mxu1 %vm15122_vm14, %v15123_v5 }
 0x8b8   :  { %13731 = vmatpush3.bf16.msra.mxu0 %v13730_v14  ;;  %v20705_v22 = vadd.f32 %v5860_v17, %v5650_v4  ;;  %12303 = vmatprep.mubr.msk.f32.mxu0 %vm15122_vm14, %v15123_v5  ;;  %v6025_v32 = vpop.f32.mrb[112].mxu1  ;;  %v12041_v23 = vpop.f32.mrb[135].mxu0  ;;  %v4275_v4 = vsel %vm23009_vm15, %v14973_v35, %v23008_v50  ;;  %v20753_v45 = vpack.i.bf16 %v4306_v48, %v4296_v19  ;;  %v10814_v14 = vld [vmem:[%s22553_s5 + $0x568] sm:$0xff]  ;;  %v10816_v48 = vld [vmem:[%s22553_s5 + $0x578] sm:$0xff] }
 0x8b9   :  { %15011 = vrot.lane.b32.xlu0 %v20640_v61, %s15126_s20  ;;  %v6099_v34 = vadd.f32 %v6025_v32, %v20543_v7  ;;  %v12051_v24 = vpop.f32.mrb[113].mxu1  ;;  %v10811_v7 = vld [vmem:[%s22553_s5 + $0x550] sm:$0xff]  ;;  %13735 = vmatprep.subr.bf16.mxu0 %v15121_v15  ;;  %v20765_v31 = vmax.f32 %v20312_v54, %v4275_v4  ;;  %v10844_v32 = vld [vmem:[%s22553_s5 + $0x5e0] sm:$0xff] }
 0x8ba   :  { %15016 = vrot.lane.b32.xlu1 %v20653_v59, %s15125_s24  ;;  %12258 = vmatmul.mubr.msk.f32.gmra.mrb[180].mxu1 %vm4365_vm8, %v10810_v33  ;;  %v10846_v4 = vld [vmem:[%s22553_s5 + $0x5f0] sm:$0xff] }
 0x8bb   :  { %12304 = vmatmul.mubr.msk.f32.gmra.mrb[204].mxu0 %vm4365_vm8, %v10839_v18  ;;  %v5865_v10 = vpop.f32.mrb[136].mxu0  ;;  %12260 = vmatprep.mubr.msk.f32.mxu1 %vm15122_vm14, %v15123_v5 }
 0x8bc   :  { %v20727_v8 = vadd.f32 %v5865_v10, %v5651_v37  ;;  %12306 = vmatprep.mubr.msk.f32.mxu0 %vm15122_vm14, %v15123_v5  ;;  %v6030_v2 = vpop.f32.mrb[114].mxu1  ;;  %v12044_v63 = vpop.f32.mrb[137].mxu0 }
 0x8bd   :  { %15026 = vrot.lane.b32.xlu0 %v20640_v61, %s15128_s25  ;;  %v6100_v20 = vadd.f32 %v6030_v2, %v20546_v51  ;;  %v12054_v25 = vpop.f32.mrb[115].mxu1  ;;  %v20762_v51 = vmax.f32 %v20308_v28, %v4276_v9  ;;  %v10841_v61 = vld [vmem:[%s22553_s5 + $0x5c8] sm:$0xff]  ;;  %v10018_v9 = vld [vmem:[%s22554_s6] sm:$0xff] }
 0x8be   :  { %15021 = vrot.lane.b32.xlu1 %v20653_v59, %s15127_s0  ;;  %12261 = vmatmul.mubr.msk.f32.gmra.mrb[182].mxu1 %vm4365_vm8, %v10811_v7  ;;  %v10019_v63 = vld [vmem:[%s22554_s6 + $0x8] sm:$0xff] }
 0x8bf   :  { %12307 = vmatmul.mubr.msk.f32.gmra.mrb[206].mxu0 %vm4365_vm8, %v10840_v44  ;;  %v6255_v38 = vpop.f32.mrb[138].mxu0  ;;  %12263 = vmatprep.mubr.msk.f32.mxu1 %vm15122_vm14, %v15123_v5 }
 0x8c0   :  { %v20767_v27 = vadd.f32 %v6255_v38, %v6099_v34  ;;  %12309 = vmatprep.mubr.msk.f32.mxu0 %vm15122_vm14, %v15123_v5  ;;  %v6035_v35 = vpop.f32.mrb[116].mxu1  ;;  %v12100_v29 = vpop.f32.mrb[139].mxu0 }
 0x8c1   :  { %15036 = vrot.lane.b32.xlu0 %v20753_v45, %s15124_s3  ;;  %v6101_v28 = vadd.f32 %v6035_v35, %v20549_v36  ;;  %v12057_v43 = vpop.f32.mrb[117].mxu1  ;;  %v15040_v36 = vpack.i.bf16 %v20762_v51, %v20765_v31 }
 0x8c2   :  { %15031 = vrot.lane.b32.xlu1 %v20653_v59, %s15129_s23  ;;  %12264 = vmatmul.mubr.msk.f32.gmra.mrb[184].mxu1 %vm4365_vm8, %v10812_v12  ;;  %v10021_v12 = vld [vmem:[%s22554_s6 + $0x18] sm:$0xff] }
 0x8c3   :  { %12310 = vmatmul.mubr.msk.f32.gmra.mrb[208].mxu0 %vm4365_vm8, %v10841_v61  ;;  %v6260_v54 = vpop.f32.mrb[140].mxu0  ;;  %12266 = vmatprep.mubr.msk.f32.mxu1 %vm15122_vm14, %v15123_v5  ;;  %v10020_v61 = vld [vmem:[%s22554_s6 + $0x10] sm:$0xff] }
 0x8c4   :  { %v20786_v21 = vadd.f32 %v6260_v54, %v6100_v20  ;;  %12312 = vmatprep.mubr.msk.f32.mxu0 %vm15122_vm14, %v15123_v5  ;;  %v6040_v59 = vpop.f32.mrb[118].mxu1  ;;  %v12103_v40 = vpop.f32.mrb[141].mxu0 }
 0x8c5   :  { %15051 = vrot.lane.b32.xlu0 %v20753_v45, %s15099_s12  ;;  %v6102_v53 = vadd.f32 %v6040_v59, %v20552_v39  ;;  %v12060_v47 = vpop.f32.mrb[119].mxu1  ;;  %v10023_v59 = vld [vmem:[%s22554_s6 + $0x28] sm:$0xff]  ;;  %v10022_v40 = vld [vmem:[%s22554_s6 + $0x20] sm:$0xff] }
 0x8c6   :  { %15041 = vrot.lane.b32.xlu1 %v15040_v36, %s15100_s13  ;;  %12267 = vmatmul.mubr.msk.f32.gmra.mrb[186].mxu1 %vm4365_vm8, %v10813_v42 }
 0x8c7   :  { %12313 = vmatmul.mubr.msk.f32.gmra.mrb[210].mxu0 %vm4365_vm8, %v10842_v30  ;;  %v6265_v13 = vpop.f32.mrb[142].mxu0  ;;  %12269 = vmatprep.mubr.msk.f32.mxu1 %vm15122_vm14, %v15123_v5 }
 0x8c8   :  { %v20806_v37 = vadd.f32 %v6265_v13, %v6101_v28  ;;  %12315 = vmatprep.mubr.msk.f32.mxu0 %vm15122_vm14, %v15123_v5  ;;  %v6045_v39 = vpop.f32.mrb[120].mxu1  ;;  %v12106_v62 = vpop.f32.mrb[143].mxu0  ;;  %v10847_v28 = vld [vmem:[%s22553_s5 + $0x5f8] sm:$0xff]  ;;  %v10848_v13 = vld [vmem:[%s22553_s5 + $0x600] sm:$0xff] }
 0x8c9   :  { %15056 = vrot.lane.b32.xlu0 %v20753_v45, %s15125_s24  ;;  %v6103_v0 = vadd.f32 %v6045_v39, %v20555_v3  ;;  %v12063_v17 = vpop.f32.mrb[121].mxu1  ;;  %v10025_v62 = vld [vmem:[%s22554_s6 + $0x38] sm:$0xff] }
 0x8ca   :  { %15046 = vrot.lane.b32.xlu1 %v15040_v36, %s15117_s1  ;;  %12270 = vmatmul.mubr.msk.f32.gmra.mrb[188].mxu1 %vm4365_vm8, %v10814_v14  ;;  %v10024_v17 = vld [vmem:[%s22554_s6 + $0x30] sm:$0xff] }
 0x8cb   :  { %12316 = vmatmul.mubr.msk.f32.gmra.mrb[212].mxu0 %vm4365_vm8, %v10843_v58  ;;  %v6270_v33 = vpop.f32.mrb[144].mxu0  ;;  %12272 = vmatprep.mubr.msk.f32.mxu1 %vm15122_vm14, %v15123_v5 }
 0x8cc   :  { %v20824_v60 = vadd.f32 %v6270_v33, %v6102_v53  ;;  %12318 = vmatprep.mubr.msk.f32.mxu0 %vm15122_vm14, %v15123_v5  ;;  %v6050_v3 = vpop.f32.mrb[122].mxu1  ;;  %v12109_v18 = vpop.f32.mrb[145].mxu0 }
 0x8cd   :  { %15071 = vrot.lane.b32.xlu0 %v20753_v45, %s15127_s0  ;;  %v6104_v23 = vadd.f32 %v6050_v3, %v20558_v56  ;;  %v12066_v34 = vpop.f32.mrb[123].mxu1  ;;  %v10845_v56 = vld [vmem:[%s22553_s5 + $0x5e8] sm:$0xff] }
 0x8ce   :  { %15061 = vrot.lane.b32.xlu1 %v15040_v36, %s15126_s20  ;;  %12273 = vmatmul.mubr.msk.f32.gmra.mrb[190].mxu1 %vm4365_vm8, %v10815_v46  ;;  %v10849_v3 = vld [vmem:[%s22553_s5 + $0x608] sm:$0xff] }
 0x8cf   :  { %12319 = vmatmul.mubr.msk.f32.gmra.mrb[214].mxu0 %vm4365_vm8, %v10844_v32  ;;  %v6275_v24 = vpop.f32.mrb[146].mxu0  ;;  %12275 = vmatprep.mubr.msk.f32.mxu1 %vm15122_vm14, %v15123_v5  ;;  %v10027_v34 = vld [vmem:[%s22554_s6 + $0x48] sm:$0xff] }
 0x8d0   :  { %12321 = vmatprep.mubr.msk.f32.mxu0 %vm15122_vm14, %v15123_v5  ;;  %v6055_v19 = vpop.f32.mrb[124].mxu1  ;;  %v12112_v10 = vpop.f32.mrb[147].mxu0  ;;  %v20847_v7 = vadd.f32 %v6275_v24, %v6103_v0 }
 0x8d1   :  { %15076 = vrot.lane.b32.xlu0 %v20753_v45, %s15129_s23  ;;  %v6105_v2 = vadd.f32 %v6055_v19, %v20561_v57  ;;  %v12069_v44 = vpop.f32.mrb[125].mxu1  ;;  %v10817_v57 = vld [vmem:[%s22553_s5 + $0x580] sm:$0xff]  ;;  %v10850_v10 = vld [vmem:[%s22553_s5 + $0x610] sm:$0xff] }
 0x8d2   :  { %15066 = vrot.lane.b32.xlu1 %v15040_v36, %s15128_s25  ;;  %12276 = vmatmul.mubr.msk.f32.gmra.mrb[192].mxu1 %vm4365_vm8, %v10816_v48  ;;  %v10026_v48 = vld [vmem:[%s22554_s6 + $0x40] sm:$0xff] }
 0x8d3   :  { %12322 = vmatmul.mubr.msk.f32.gmra.mrb[216].mxu0 %vm4365_vm8, %v10845_v56  ;;  %v6280_v26 = vpop.f32.mrb[148].mxu0  ;;  %12278 = vmatprep.mubr.msk.f32.mxu1 %vm15122_vm14, %v15123_v5 }
 0x8d4   :  { %12324 = vmatprep.mubr.msk.f32.mxu0 %vm15122_vm14, %v15123_v5  ;;  %v6060_v50 = vpop.f32.mrb[126].mxu1  ;;  %v12115_v20 = vpop.f32.mrb[149].mxu0  ;;  %v20871_v25 = vadd.f32 %v6280_v26, %v6104_v23  ;;  %v10029_v26 = vld [vmem:[%s22554_s6 + $0x58] sm:$0xff] }
 0x8d5   :  { %10040 = vperm.xlu0 %14739, %v10019_v63   ;;  %v12072_v45 = vpop.f32.mrb[127].mxu1  ;;  %v6106_v38 = vadd.f32 %v6060_v50, %v20564_v52  ;;  %v10818_v52 = vld [vmem:[%s22553_s5 + $0x588] sm:$0xff]  ;;  %v10896_v20 = vld [vmem:[%s22553_s5 + $0x690] sm:$0xff] }
 0x8d6   :  { %10035 = vperm.xlu1 %14498, %v10018_v9   ;;  %12279 = vmatmul.mubr.msk.f32.gmra.mrb[194].mxu1 %vm4365_vm8, %v10817_v57  ;;  %v10028_v57 = vld [vmem:[%s22554_s6 + $0x50] sm:$0xff] }
 0x8d7   :  { %12325 = vmatmul.mubr.msk.f32.gmra.mrb[218].mxu0 %vm4365_vm8, %v10846_v4  ;;  %v6285_v35 = vpop.f32.mrb[150].mxu0  ;;  %12281 = vmatprep.mubr.msk.f32.mxu1 %vm15122_vm14, %v15123_v5 }
 0x8d8   :  { %12327 = vmatprep.mubr.msk.f32.mxu0 %vm15122_vm14, %v15123_v5  ;;  %v6065_v29 = vpop.f32.mrb[128].mxu1  ;;  %v12118_v43 = vpop.f32.mrb[151].mxu0  ;;  %v20892_v54 = vadd.f32 %v6285_v35, %v6105_v2  ;;  %v10031_v35 = vld [vmem:[%s22554_s6 + $0x68] sm:$0xff] }
 0x8d9   :  { %10050 = vperm.xlu0 %14739, %v10021_v12   ;;  %v12075_v42 = vpop.f32.mrb[129].mxu1  ;;  %v6107_v36 = vadd.f32 %v6065_v29, %v20571_v41  ;;  %v10819_v41 = vld [vmem:[%s22553_s5 + $0x590] sm:$0xff]  ;;  %v10897_v43 = vld [vmem:[%s22553_s5 + $0x698] sm:$0xff] }
 0x8da   :  { %10045 = vperm.xlu1 %14498, %v10020_v61   ;;  %12282 = vmatmul.mubr.msk.f32.gmra.mrb[196].mxu1 %vm4365_vm8, %v10818_v52  ;;  %v10030_v52 = vld [vmem:[%s22554_s6 + $0x60] sm:$0xff] }
 0x8db   :  { %12328 = vmatmul.mubr.msk.f32.gmra.mrb[220].mxu0 %vm4365_vm8, %v10847_v28  ;;  %v6290_v30 = vpop.f32.mrb[152].mxu0  ;;  %12284 = vmatprep.mubr.msk.f32.mxu1 %vm15122_vm14, %v15123_v5 }
 0x8dc   :  { %v20908_v53 = vadd.f32 %v6290_v30, %v6106_v38  ;;  %12330 = vmatprep.mubr.msk.f32.mxu0 %vm15122_vm14, %v15123_v5  ;;  %v6070_v47 = vpop.f32.mrb[130].mxu1  ;;  %v12121_v14 = vpop.f32.mrb[153].mxu0  ;;  %v10149_v30 = vld [vmem:[%s22555_s8] sm:$0xff] }
 0x8dd   :  { %10060 = vperm.xlu0 %14739, %v10023_v59   ;;  %v12078_v39 = vpop.f32.mrb[131].mxu1  ;;  %v6108_v58 = vadd.f32 %v6070_v47, %v20583_v16  ;;  %v10820_v16 = vld [vmem:[%s22553_s5 + $0x598] sm:$0xff]  ;;  %v10898_v14 = vld [vmem:[%s22553_s5 + $0x6a0] sm:$0xff] }
 0x8de   :  { %10055 = vperm.xlu1 %14498, %v10022_v40   ;;  %12285 = vmatmul.mubr.msk.f32.gmra.mrb[198].mxu1 %vm4365_vm8, %v10819_v41  ;;  %v10032_v41 = vld [vmem:[%s22554_s6 + $0x70] sm:$0xff] }
 0x8df   :  { %12331 = vmatmul.mubr.msk.f32.gmra.mrb[222].mxu0 %vm4365_vm8, %v10848_v13  ;;  %v6295_v0 = vpop.f32.mrb[154].mxu0  ;;  %12287 = vmatprep.mubr.msk.f32.mxu1 %vm15122_vm14, %v15123_v5 }
 0x8e0   :  { %v20929_v33 = vadd.f32 %v6295_v0, %v6107_v36  ;;  %12333 = vmatprep.mubr.msk.f32.mxu0 %vm15122_vm14, %v15123_v5  ;;  %v6075_v46 = vpop.f32.mrb[132].mxu1  ;;  %v12124_v32 = vpop.f32.mrb[155].mxu0  ;;  %v10151_v0 = vld [vmem:[%s22555_s8 + $0x10] sm:$0xff] }
 0x8e1   :  { %10070 = vperm.xlu0 %14739, %v10025_v62   ;;  %v12081_v18 = vpop.f32.mrb[133].mxu1  ;;  %v6109_v23 = vadd.f32 %v6075_v46, %v20615_v49  ;;  %v10866_v49 = vld [vmem:[%s22553_s5 + $0x618] sm:$0xff] }
 0x8e2   :  { %10065 = vperm.xlu1 %14498, %v10024_v17   ;;  %12288 = vmatmul.mubr.msk.f32.gmra.mrb[200].mxu1 %vm4365_vm8, %v10820_v16  ;;  %v10150_v16 = vld [vmem:[%s22555_s8 + $0x8] sm:$0xff]  ;;  %v10153_v18 = vld [vmem:[%s22555_s8 + $0x20] sm:$0xff] }
 0x8e3   :  { %12334 = vmatmul.mubr.msk.f32.gmra.mrb[224].mxu0 %vm4365_vm8, %v10849_v3  ;;  %v6300_v24 = vpop.f32.mrb[156].mxu0  ;;  %12343 = vmatprep.mubr.msk.f32.mxu1 %vm15122_vm14, %v15123_v5  ;;  %v10899_v3 = vld [vmem:[%s22553_s5 + $0x6a8] sm:$0xff] }
 0x8e4   :  { %v20950_v19 = vadd.f32 %v6300_v24, %v6108_v58  ;;  %12336 = vmatprep.mubr.msk.f32.mxu0 %vm15122_vm14, %v15123_v5  ;;  %v6080_v56 = vpop.f32.mrb[134].mxu1  ;;  %v12127_v2 = vpop.f32.mrb[157].mxu0  ;;  %v10871_v24 = vld [vmem:[%s22553_s5 + $0x640] sm:$0xff] }
 0x8e5   :  { %10080 = vperm.xlu0 %14739, %v10027_v34   ;;  %v12084_v44 = vpop.f32.mrb[135].mxu1  ;;  %v6110_v63 = vadd.f32 %v6080_v56, %v20649_v6  ;;  %v10867_v6 = vld [vmem:[%s22553_s5 + $0x620] sm:$0xff]  ;;  %v10152_v34 = vld [vmem:[%s22555_s8 + $0x18] sm:$0xff]  ;;  %v10154_v2 = vld [vmem:[%s22555_s8 + $0x28] sm:$0xff] }
 0x8e6   :  { %10075 = vperm.xlu1 %14498, %v10026_v48   ;;  %12344 = vmatmul.mubr.msk.f32.vlgmr.msra.gmra.mrb[202].mxu1 %vm4365_vm8, %v10866_v49  ;;  %v10900_v49 = vld [vmem:[%s22553_s5 + $0x6b0] sm:$0xff]  ;;  %v10872_v44 = vld [vmem:[%s22553_s5 + $0x648] sm:$0xff] }
 0x8e7   :  { %12337 = vmatmul.mubr.msk.f32.gmra.mrb[226].mxu0 %vm4365_vm8, %v10850_v10  ;;  %v6305_v9 = vpop.f32.mrb[158].mxu0  ;;  %12346 = vmatprep.mubr.msk.f32.mxu1 %vm15122_vm14, %v15123_v5  ;;  %v10155_v10 = vld [vmem:[%s22555_s8 + $0x30] sm:$0xff] }
 0x8e8   :  { %v20971_v50 = vadd.f32 %v6305_v9, %v6109_v23  ;;  %12392 = vmatprep.mubr.msk.f32.mxu0 %vm15122_vm14, %v15123_v5  ;;  %v6085_v4 = vpop.f32.mrb[136].mxu1  ;;  %v12130_v45 = vpop.f32.mrb[159].mxu0  ;;  %v10156_v9 = vld [vmem:[%s22555_s8 + $0x38] sm:$0xff] }
 0x8e9   :  { %10090 = vperm.xlu0 %14739, %v10029_v26   ;;  %v12087_v38 = vpop.f32.mrb[137].mxu1  ;;  %v6111_v12 = vadd.f32 %v6085_v4, %v20674_v1  ;;  %v10868_v1 = vld [vmem:[%s22553_s5 + $0x628] sm:$0xff]  ;;  %v10157_v26 = vld [vmem:[%s22555_s8 + $0x40] sm:$0xff]  ;;  %v10159_v4 = vld [vmem:[%s22555_s8 + $0x50] sm:$0xf] }
 0x8ea   :  { %10085 = vperm.xlu1 %14498, %v10028_v57   ;;  %12347 = vmatmul.mubr.msk.f32.gmra.mrb[204].mxu1 %vm4365_vm8, %v10867_v6  ;;  %v10873_v57 = vld [vmem:[%s22553_s5 + $0x650] sm:$0xff]  ;;  %v10902_v6 = vld [vmem:[%s22553_s5 + $0x6c0] sm:$0xff]  ;;  %v10874_v45 = vld [vmem:[%s22553_s5 + $0x658] sm:$0xff] }
 0x8eb   :  { %12393 = vmatmul.mubr.msk.f32.vlgmr.msra.gmra.mrb[228].mxu0 %vm4365_vm8, %v10896_v20  ;;  %v6310_v61 = vpop.f32.mrb[160].mxu0  ;;  %12349 = vmatprep.mubr.msk.f32.mxu1 %vm15122_vm14, %v15123_v5  ;;  %v10158_v20 = vld [vmem:[%s22555_s8 + $0x48] sm:$0xff] }
 0x8ec   :  { %v20992_v29 = vadd.f32 %v6310_v61, %v6110_v63  ;;  %12395 = vmatprep.mubr.msk.f32.mxu0 %vm15122_vm14, %v15123_v5  ;;  %v6090_v28 = vpop.f32.mrb[138].mxu1  ;;  %v12133_v42 = vpop.f32.mrb[161].mxu0  ;;  %v10901_v63 = vld [vmem:[%s22553_s5 + $0x6b8] sm:$0xff]  ;;  %v10903_v38 = vld [vmem:[%s22553_s5 + $0x6c8] sm:$0xff] }
 0x8ed   :  { %10100 = vperm.xlu0 %14739, %v10031_v35   ;;  %v12090_v36 = vpop.f32.mrb[139].mxu1  ;;  %v6112_v59 = vadd.f32 %v6090_v28, %v20705_v22  ;;  %v10869_v22 = vld [vmem:[%s22553_s5 + $0x630] sm:$0xff] }
 0x8ee   :  { %10095 = vperm.xlu1 %14498, %v10030_v52   ;;  %12350 = vmatmul.mubr.msk.f32.gmra.mrb[206].mxu1 %vm4365_vm8, %v10868_v1  ;;  %v10381_v1 = vld [vmem:[%s22556_s10] sm:$0x3]  ;;  %v10904_v42 = vld [vmem:[%s22553_s5 + $0x6d0] sm:$0xff] }
 0x8ef   :  { %12396 = vmatmul.mubr.msk.f32.gmra.mrb[230].mxu0 %vm4365_vm8, %v10897_v43  ;;  %v6315_v40 = vpop.f32.mrb[162].mxu0  ;;  %12352 = vmatprep.mubr.msk.f32.mxu1 %vm15122_vm14, %v15123_v5  ;;  %v10875_v43 = vld [vmem:[%s22553_s5 + $0x660] sm:$0xff] }
 0x8f0   :  { %v21013_v47 = vadd.f32 %v6315_v40, %v6111_v12  ;;  %12398 = vmatprep.mubr.msk.f32.mxu0 %vm15122_vm14, %v15123_v5  ;;  %v6095_v13 = vpop.f32.mrb[140].mxu1  ;;  %v12136_v39 = vpop.f32.mrb[163].mxu0 }
 0x8f1   :  { %10162 = vperm.xlu0 %14739, %v10149_v30   ;;  %v6113_v58 = vadd.f32 %v6095_v13, %v20727_v8  ;;  %v12093_v62 = vpop.f32.mrb[141].mxu1  ;;  %v10870_v8 = vld [vmem:[%s22553_s5 + $0x638] sm:$0xff] }
 0x8f2   :  { %10105 = vperm.xlu1 %14498, %v10032_v41   ;;  %12353 = vmatmul.mubr.msk.f32.gmra.mrb[208].mxu1 %vm4365_vm8, %v10869_v22  ;;  %v10876_v22 = vld [vmem:[%s22553_s5 + $0x668] sm:$0xff]  ;;  %v10905_v13 = vld [vmem:[%s22553_s5 + $0x6d8] sm:$0xff] }
 0x8f3   :  { %12399 = vmatmul.mubr.msk.f32.gmra.mrb[232].mxu0 %vm4365_vm8, %v10898_v14  ;;  %v6320_v17 = vpop.f32.mrb[164].mxu0  ;;  %12355 = vmatprep.mubr.msk.f32.mxu1 %vm15122_vm14, %v15123_v5 }
 0x8f4   :  { %v21034_v46 = vadd.f32 %v6320_v17, %v6112_v59  ;;  %12401 = vmatprep.mubr.msk.f32.mxu0 %vm15122_vm14, %v15123_v5  ;;  %v12139_v32 = vpop.f32.mrb[165].mxu0  ;;  %v10877_v17 = vld [vmem:[%s22553_s5 + $0x670] sm:$0xff] }
 0x8f5   :  { %10172 = vperm.xlu0 %14739, %v10151_v0  }
 0x8f6   :  { %10167 = vperm.xlu1 %14498, %v10150_v16   ;;  %12356 = vmatmul.mubr.msk.f32.gmra.mrb[210].mxu1 %vm4365_vm8, %v10870_v8  ;;  %v10906_v16 = vld [vmem:[%s22553_s5 + $0x6e0] sm:$0xff] }
 0x8f7   :  { %12402 = vmatmul.mubr.msk.f32.gmra.mrb[234].mxu0 %vm4365_vm8, %v10899_v3  ;;  %v6325_v23 = vpop.f32.mrb[166].mxu0  ;;  %12358 = vmatprep.mubr.msk.f32.mxu1 %vm15122_vm14, %v15123_v5 }
 0x8f8   :  { %v21054_v48 = vadd.f32 %v6325_v23, %v6113_v58  ;;  %12404 = vmatprep.mubr.msk.f32.mxu0 %vm15122_vm14, %v15123_v5  ;;  %v12142_v56 = vpop.f32.mrb[167].mxu0 }
 0x8f9   :  { %10182 = vperm.xlu0 %14739, %v10153_v18  }
 0x8fa   :  { %10177 = vperm.xlu1 %14498, %v10152_v34   ;;  %12359 = vmatmul.mubr.msk.f32.gmra.mrb[212].mxu1 %vm4365_vm8, %v10871_v24  ;;  %v10878_v34 = vld [vmem:[%s22553_s5 + $0x678] sm:$0xff]  ;;  %v10907_v24 = vld [vmem:[%s22553_s5 + $0x6e8] sm:$0xff] }
 0x8fb   :  { %12405 = vmatmul.mubr.msk.f32.gmra.mrb[236].mxu0 %vm4365_vm8, %v10900_v49  ;;  %12361 = vmatprep.mubr.msk.f32.mxu1 %vm15122_vm14, %v15123_v5 }
 0x8fc   :  { %12407 = vmatprep.mubr.msk.f32.mxu0 %vm15122_vm14, %v15123_v5 }
 0x8fd   :  { %10192 = vperm.xlu0 %14739, %v10155_v10  }
 0x8fe   :  { %10187 = vperm.xlu1 %14498, %v10154_v2   ;;  %12362 = vmatmul.mubr.msk.f32.gmra.mrb[214].mxu1 %vm4365_vm8, %v10872_v44 }
 0x8ff   :  { %12408 = vmatmul.mubr.msk.f32.gmra.mrb[238].mxu0 %vm4365_vm8, %v10901_v63  ;;  %12364 = vmatprep.mubr.msk.f32.mxu1 %vm15122_vm14, %v15123_v5  ;;  %v10879_v63 = vld [vmem:[%s22553_s5 + $0x680] sm:$0xff] }
 0x900   :  { %12410 = vmatprep.mubr.msk.f32.mxu0 %vm15122_vm14, %v15123_v5 }
 0x901   :  { %10202 = vperm.xlu0 %14739, %v10157_v26   ;;  %v10908_v26 = vld [vmem:[%s22553_s5 + $0x6f0] sm:$0xff] }
 0x902   :  { %10197 = vperm.xlu1 %14498, %v10156_v9   ;;  %12365 = vmatmul.mubr.msk.f32.gmra.mrb[216].mxu1 %vm4365_vm8, %v10873_v57 }
 0x903   :  { %12411 = vmatmul.mubr.msk.f32.gmra.mrb[240].mxu0 %vm4365_vm8, %v10902_v6  ;;  %12367 = vmatprep.mubr.msk.f32.mxu1 %vm15122_vm14, %v15123_v5 }
 0x904   :  { %12413 = vmatprep.mubr.msk.f32.mxu0 %vm15122_vm14, %v15123_v5  ;;  %v6711_v12 = vpop.f32.mrb[168].mxu0 }
 0x905   :  { %10212 = vperm.xlu0 %14739, %v10159_v4   ;;  %v6485_v35 = vpop.f32.mrb[142].mxu1  ;;  %v12198_v61 = vpop.f32.mrb[169].mxu0 }
 0x906   :  { %10207 = vperm.xlu1 %14498, %v10158_v20   ;;  %12368 = vmatmul.mubr.msk.f32.gmra.mrb[218].mxu1 %vm4365_vm8, %v10874_v45  ;;  %v6559_v52 = vadd.f32 %v6485_v35, %v20767_v27  ;;  %v12149_v28 = vpop.f32.mrb[143].mxu1  ;;  %v10880_v45 = vld [vmem:[%s22553_s5 + $0x688] sm:$0xff] }
 0x907   :  { %12414 = vmatmul.mubr.msk.f32.gmra.mrb[242].mxu0 %vm4365_vm8, %v10903_v38  ;;  %12370 = vmatprep.mubr.msk.f32.mxu1 %vm15122_vm14, %v15123_v5  ;;  %v10909_v38 = vld [vmem:[%s22553_s5 + $0x6f8] sm:$0xff]  ;;  %v10910_v28 = vld [vmem:[%s22553_s5 + $0x700] sm:$0xff] }
 0x908   :  { %12416 = vmatprep.mubr.msk.f32.mxu0 %vm15122_vm14, %v15123_v5  ;;  %v21131_v27 = vadd.f32 %v6711_v12, %v6559_v52  ;;  %v6716_v36 = vpop.f32.mrb[170].mxu0 }
 0x909   :  { %v6490_v59 = vpop.f32.mrb[144].mxu1  ;;  %v12201_v30 = vpop.f32.mrb[171].mxu0 }
 0x90a   :  { %10384 = vperm.xlu1 %14498, %v10381_v1   ;;  %12371 = vmatmul.mubr.msk.f32.gmra.mrb[220].mxu1 %vm4365_vm8, %v10875_v43  ;;  %v6560_v40 = vadd.f32 %v6490_v59, %v20786_v21  ;;  %v12152_v41 = vpop.f32.mrb[145].mxu1 }
 0x90b   :  { %12417 = vmatmul.mubr.msk.f32.gmra.mrb[244].mxu0 %vm4365_vm8, %v10904_v42  ;;  %12373 = vmatprep.mubr.msk.f32.mxu1 %vm15122_vm14, %v15123_v5 }
 0x90c   :  { %12419 = vmatprep.mubr.msk.f32.mxu0 %vm15122_vm14, %v15123_v5  ;;  %v21146_v14 = vadd.f32 %v6716_v36, %v6560_v40  ;;  %v6721_v39 = vpop.f32.mrb[172].mxu0 }
 0x90d   :  { %v6495_v21 = vpop.f32.mrb[146].mxu1  ;;  %v12204_v58 = vpop.f32.mrb[173].mxu0 }
 0x90e   :  { %12374 = vmatmul.mubr.msk.f32.gmra.mrb[222].mxu1 %vm4365_vm8, %v10876_v22  ;;  %v6561_v62 = vadd.f32 %v6495_v21, %v20806_v37  ;;  %v12155_v0 = vpop.f32.mrb[147].mxu1 }
 0x90f   :  { %12420 = vmatmul.mubr.msk.f32.gmra.mrb[246].mxu0 %vm4365_vm8, %v10905_v13  ;;  %12376 = vmatprep.mubr.msk.f32.mxu1 %vm15122_vm14, %v15123_v5 }
 0x910   :  { %12422 = vmatprep.mubr.msk.f32.mxu0 %vm15122_vm14, %v15123_v5  ;;  %v21161_v8 = vadd.f32 %v6721_v39, %v6561_v62  ;;  %v6726_v3 = vpop.f32.mrb[174].mxu0 }
 0x911   :  { %v6500_v37 = vpop.f32.mrb[148].mxu1  ;;  %v12207_v32 = vpop.f32.mrb[175].mxu0 }
 0x912   :  { %12377 = vmatmul.mubr.msk.f32.gmra.mrb[224].mxu1 %vm4365_vm8, %v10877_v17  ;;  %v6562_v18 = vadd.f32 %v6500_v37, %v20824_v60  ;;  %v12158_v23 = vpop.f32.mrb[149].mxu1 }
 0x913   :  { %12423 = vmatmul.mubr.msk.f32.gmra.mrb[248].mxu0 %vm4365_vm8, %v10906_v16  ;;  %12379 = vmatprep.mubr.msk.f32.mxu1 %vm15122_vm14, %v15123_v5 }
 0x914   :  { %12425 = vmatprep.mubr.msk.f32.mxu0 %vm15122_vm14, %v15123_v5  ;;  %v21176_v49 = vadd.f32 %v6726_v3, %v6562_v18  ;;  %v6731_v56 = vpop.f32.mrb[176].mxu0 }
 0x915   :  { %v6505_v60 = vpop.f32.mrb[150].mxu1  ;;  %v12210_v10 = vpop.f32.mrb[177].mxu0 }
 0x916   :  { %12380 = vmatmul.mubr.msk.f32.gmra.mrb[226].mxu1 %vm4365_vm8, %v10878_v34  ;;  %v6563_v2 = vadd.f32 %v6505_v60, %v20847_v7  ;;  %v12161_v44 = vpop.f32.mrb[151].mxu1 }
 0x917   :  { %12426 = vmatmul.mubr.msk.f32.gmra.mrb[250].mxu0 %vm4365_vm8, %v10907_v24  ;;  %12382 = vmatprep.mubr.msk.f32.mxu1 %vm15122_vm14, %v15123_v5 }
 0x918   :  { %12428 = vmatprep.mubr.msk.f32.mxu0 %vm15122_vm14, %v15123_v5  ;;  %v21191_v9 = vadd.f32 %v6731_v56, %v6563_v2  ;;  %v6736_v57 = vpop.f32.mrb[178].mxu0 }
 0x919   :  { %v6510_v7 = vpop.f32.mrb[152].mxu1  ;;  %v12213_v6 = vpop.f32.mrb[179].mxu0 }
 0x91a   :  { %12383 = vmatmul.mubr.msk.f32.gmra.mrb[228].mxu1 %vm4365_vm8, %v10879_v63  ;;  %v6564_v4 = vadd.f32 %v6510_v7, %v20871_v25  ;;  %v12164_v20 = vpop.f32.mrb[153].mxu1 }
 0x91b   :  { %12429 = vmatmul.mubr.msk.f32.gmra.mrb[252].mxu0 %vm4365_vm8, %v10908_v26  ;;  %12385 = vmatprep.mubr.msk.f32.mxu1 %vm15122_vm14, %v15123_v5 }
 0x91c   :  { %12431 = vmatprep.mubr.msk.f32.mxu0 %vm15122_vm14, %v15123_v5  ;;  %v21206_v12 = vadd.f32 %v6736_v57, %v6564_v4  ;;  %v6741_v35 = vpop.f32.mrb[180].mxu0 }
 0x91d   :  { %v6515_v25 = vpop.f32.mrb[154].mxu1  ;;  %v12216_v61 = vpop.f32.mrb[181].mxu0 }
 0x91e   :  { %12386 = vmatmul.mubr.msk.f32.gmra.mrb[230].mxu1 %vm4365_vm8, %v10880_v45  ;;  %v6565_v52 = vadd.f32 %v6515_v25, %v20892_v54  ;;  %v12167_v1 = vpop.f32.mrb[155].mxu1  ;;  %v10956_v61 = vld [vmem:[%s22553_s5 + $0x780] sm:$0xff] }
 0x91f   :  { %12432 = vmatmul.mubr.msk.f32.gmra.mrb[254].mxu0 %vm4365_vm8, %v10909_v38  ;;  %12441 = vmatprep.mubr.msk.f32.mxu1 %vm15122_vm14, %v15123_v5 }
 0x920   :  { %12434 = vmatprep.mubr.msk.f32.mxu0 %vm15122_vm14, %v15123_v5  ;;  %v21218_v43 = vadd.f32 %v6741_v35, %v6565_v52  ;;  %v6746_v42 = vpop.f32.mrb[182].mxu0 }
 0x921   :  { %v6520_v36 = vpop.f32.mrb[156].mxu1  ;;  %v12219_v59 = vpop.f32.mrb[183].mxu0 }
 0x922   :  { %v14992_v30 = vpop.permute.xlu0 %14991  ;;  %v6566_v54 = vadd.f32 %v6520_v36, %v20908_v53  ;;  %v12170_v40 = vpop.f32.mrb[157].mxu1 }
 0x923   :  { %12435 = vmatmul.mubr.msk.f32.gmra.mrb[0].mxu0 %vm4365_vm8, %v10910_v28  ;;  %v14994_v37 = vunpack.i.h.bf16 %v14992_v30  ;;  %v14993_v23 = vunpack.i.l.bf16 %v14992_v30 }
 0x924   :  { %v14997_v41 = vpop.permute.xlu1 %14996  ;;  %12490 = vmatprep.mubr.msk.f32.mxu0 %vm15122_vm14, %v15123_v5  ;;  %v21224_v39 = vadd.f32 %v6746_v42, %v6566_v54  ;;  %v6751_v21 = vpop.f32.mrb[184].mxu0 }
 0x925   :  { %v14999_v22 = vunpack.i.h.bf16 %v14997_v41  ;;  %v14998_v13 = vunpack.i.l.bf16 %v14997_v41  ;;  %v6525_v58 = vpop.f32.mrb[158].mxu1  ;;  %v12222_v62 = vpop.f32.mrb[185].mxu0 }
 0x926   :  { %v6567_v53 = vadd.f32 %v6525_v58, %v20929_v33  ;;  %v12173_v3 = vpop.f32.mrb[159].mxu1  ;;  %v10957_v62 = vld [vmem:[%s22553_s5 + $0x788] sm:$0xff] }
 0x927   :  { %v15007_v0 = vpop.permute.xlu0 %15006  ;;  %v7731_v17 = vsel %vm4315_vm11, %v20602_v11, %v14999_v22  ;;  %v7730_v16 = vsel %vm4315_vm11, %v20605_v55, %v14998_v13  ;;  %v10926_v11 = vld [vmem:[%s22553_s5 + $0x708] sm:$0xff] }
 0x928   :  { %v13733_v32 = vpack.c.bf16 %v7731_v17, %v7730_v16  ;;  %v15002_v18 = vpop.permute.xlu1 %15001  ;;  %v21231_v56 = vadd.f32 %v6751_v21, %v6567_v53  ;;  %v6756_v60 = vpop.f32.mrb[186].mxu0  ;;  %v15009_v26 = vunpack.i.h.bf16 %v15007_v0  ;;  %v15008_v6 = vunpack.i.l.bf16 %v15007_v0 }
 0x929   :  { %v15004_v34 = vunpack.i.h.bf16 %v15002_v18  ;;  %v15003_v24 = vunpack.i.l.bf16 %v15002_v18  ;;  %v6530_v10 = vpop.f32.mrb[160].mxu1  ;;  %v12225_v2 = vpop.f32.mrb[187].mxu0 }
 0x92a   :  { %13734 = vmatpush3.bf16.msra.mxu1 %v13733_v32  ;;  %v6568_v44 = vadd.f32 %v6530_v10, %v20950_v19  ;;  %v12176_v63 = vpop.f32.mrb[161].mxu1  ;;  %v10927_v19 = vld [vmem:[%s22553_s5 + $0x710] sm:$0xff] }
 0x92b   :  { %v7963_v55 = vsel %vm4315_vm11, %v14994_v37, %v15004_v34  ;;  %v7962_v33 = vsel %vm4315_vm11, %v14993_v23, %v15003_v24  ;;  %13738 = vmatprep.subr.bf16.mxu1 %v15121_v15  ;;  %v15012_v4 = vpop.permute.xlu0 %15011  ;;  %v10958_v34 = vld [vmem:[%s22553_s5 + $0x790] sm:$0xff] }
 0x92c   :  { %v13736_v57 = vpack.c.bf16 %v7963_v55, %v7962_v33  ;;  %v15017_v7 = vpop.permute.xlu1 %15016  ;;  %v21241_v38 = vadd.f32 %v6756_v60, %v6568_v44  ;;  %v6761_v35 = vpop.f32.mrb[188].mxu0  ;;  %v15014_v59 = vunpack.i.h.bf16 %v15012_v4  ;;  %v15013_v40 = vunpack.i.l.bf16 %v15012_v4  ;;  %v10959_v33 = vld [vmem:[%s22553_s5 + $0x798] sm:$0xff]  ;;  %v10931_v4 = vld [vmem:[%s22553_s5 + $0x730] sm:$0xff] }
 0x92d   :  { %v15019_v20 = vunpack.i.h.bf16 %v15017_v7  ;;  %v15018_v45 = vunpack.i.l.bf16 %v15017_v7  ;;  %12442 = vmatmul.mubr.msk.f32.vlgmr.msra.gmra.mrb[232].mxu1 %vm4365_vm8, %v10926_v11  ;;  %v6535_v25 = vpop.f32.mrb[162].mxu1  ;;  %v12228_v52 = vpop.f32.mrb[189].mxu0 }
 0x92e   :  { %13737 = vmatpush3.bf16.msra.mxu0 %v13736_v57  ;;  %12444 = vmatprep.mubr.msk.f32.mxu1 %vm15122_vm14, %v15123_v5  ;;  %v6569_v42 = vadd.f32 %v6535_v25, %v20971_v50  ;;  %v12179_v36 = vpop.f32.mrb[163].mxu1  ;;  %v10928_v50 = vld [vmem:[%s22553_s5 + $0x718] sm:$0xff]  ;;  %v10962_v52 = vld [vmem:[%s22553_s5 + $0x7b0] sm:$0xff] }
 0x92f   :  { %v8193_v1 = vsel %vm4315_vm11, %v15009_v26, %v15019_v20  ;;  %v8192_v28 = vsel %vm4315_vm11, %v15008_v6, %v15018_v45  ;;  %13741 = vmatprep.subr.bf16.mxu0 %v15121_v15  ;;  %v10964_v36 = vld [vmem:[%s22553_s5 + $0x7c0] sm:$0xff] }
 0x930   :  { %v13739_v30 = vpack.c.bf16 %v8193_v1, %v8192_v28  ;;  %v15022_v54 = vpop.permute.xlu1 %15021  ;;  %v21257_v13 = vadd.f32 %v6761_v35, %v6569_v42  ;;  %v6766_v21 = vpop.f32.mrb[190].mxu0  ;;  %v10934_v1 = vld [vmem:[%s22553_s5 + $0x748] sm:$0xff]  ;;  %v10963_v28 = vld [vmem:[%s22553_s5 + $0x7b8] sm:$0xff]  ;;  %v10935_v42 = vld [vmem:[%s22553_s5 + $0x750] sm:$0xff] }
 0x931   :  { %v15024_v41 = vunpack.i.h.bf16 %v15022_v54  ;;  %v15023_v22 = vunpack.i.l.bf16 %v15022_v54  ;;  %12445 = vmatmul.mubr.msk.f32.gmra.mrb[234].mxu1 %vm4365_vm8, %v10927_v19  ;;  %12491 = vmatmul.mubr.msk.f32.vlgmr.msra.gmra.mrb[2].mxu0 %vm4365_vm8, %v10956_v61  ;;  %v6540_v58 = vpop.f32.mrb[164].mxu1  ;;  %v12231_v0 = vpop.f32.mrb[191].mxu0  ;;  %v10932_v19 = vld [vmem:[%s22553_s5 + $0x738] sm:$0xff]  ;;  %v10933_v61 = vld [vmem:[%s22553_s5 + $0x740] sm:$0xff] }
 0x932   :  { %13740 = vmatpush3.bf16.msra.mxu1 %v13739_v30  ;;  %12447 = vmatprep.mubr.msk.f32.mxu1 %vm15122_vm14, %v15123_v5  ;;  %v6570_v53 = vadd.f32 %v6540_v58, %v20992_v29  ;;  %v12182_v3 = vpop.f32.mrb[165].mxu1  ;;  %v10929_v29 = vld [vmem:[%s22553_s5 + $0x720] sm:$0xff]  ;;  %v10965_v30 = vld [vmem:[%s22553_s5 + $0x7c8] sm:$0xff] }
 0x933   :  { %v8423_v17 = vsel %vm4315_vm11, %v15014_v59, %v15024_v41  ;;  %v8422_v16 = vsel %vm4315_vm11, %v15013_v40, %v15023_v22  ;;  %12493 = vmatprep.mubr.msk.f32.mxu0 %vm15122_vm14, %v15123_v5  ;;  %13744 = vmatprep.subr.bf16.mxu1 %v15121_v15  ;;  %v10936_v59 = vld [vmem:[%s22553_s5 + $0x758] sm:$0xff]  ;;  %v10937_v54 = vld [vmem:[%s22553_s5 + $0x760] sm:$0xff]  ;;  %v10966_v40 = vld [vmem:[%s22553_s5 + $0x7d0] sm:$0xff] }
 0x934   :  { %v13742_v37 = vpack.c.bf16 %v8423_v17, %v8422_v16  ;;  %v21275_v32 = vadd.f32 %v6766_v21, %v6570_v53  ;;  %v6771_v18 = vpop.f32.mrb[192].mxu0  ;;  %v10938_v41 = vld [vmem:[%s22553_s5 + $0x768] sm:$0xff]  ;;  %v10967_v22 = vld [vmem:[%s22553_s5 + $0x7d8] sm:$0xff]  ;;  %v15027_v21 = vpop.permute.xlu0 %15026 }
 0x935   :  { %12448 = vmatmul.mubr.msk.f32.gmra.mrb[236].mxu1 %vm4365_vm8, %v10928_v50  ;;  %12494 = vmatmul.mubr.msk.f32.gmra.mrb[4].mxu0 %vm4365_vm8, %v10957_v62  ;;  %v6545_v23 = vpop.f32.mrb[166].mxu1  ;;  %v12234_v24 = vpop.f32.mrb[193].mxu0  ;;  %v10939_v50 = vld [vmem:[%s22553_s5 + $0x770] sm:$0xff]  ;;  %v10968_v62 = vld [vmem:[%s22553_s5 + $0x7e0] sm:$0xff]  ;;  %v10940_v53 = vld [vmem:[%s22553_s5 + $0x778] sm:$0xff] }
 0x936   :  { %13743 = vmatpush3.bf16.msra.mxu0 %v13742_v37  ;;  %12450 = vmatprep.mubr.msk.f32.mxu1 %vm15122_vm14, %v15123_v5  ;;  %v6571_v60 = vadd.f32 %v6545_v23, %v21013_v47  ;;  %v12185_v10 = vpop.f32.mrb[167].mxu1  ;;  %v10930_v47 = vld [vmem:[%s22553_s5 + $0x728] sm:$0xff]  ;;  %v15032_v58 = vpop.permute.xlu1 %15031  ;;  %v15029_v37 = vunpack.i.h.bf16 %v15027_v21 }
 0x937   :  { %12496 = vmatprep.mubr.msk.f32.mxu0 %vm15122_vm14, %v15123_v5  ;;  %13747 = vmatprep.subr.bf16.mxu0 %v15121_v15  ;;  %v15034_v0 = vunpack.i.h.bf16 %v15032_v58  ;;  %v15033_v17 = vunpack.i.l.bf16 %v15032_v58  ;;  %v10969_v3 = vld [vmem:[%s22553_s5 + $0x7e8] sm:$0xff]  ;;  %v10986_v10 = vld [vmem:[%s22553_s5 + $0x7f8] sm:$0xff] }
 0x938   :  { %v21291_v11 = vadd.f32 %v6771_v18, %v6571_v60  ;;  %v6776_v2 = vpop.f32.mrb[194].mxu0  ;;  %v15037_v16 = vpop.permute.xlu0 %15036  ;;  %v15028_v18 = vunpack.i.l.bf16 %v15027_v21  ;;  %v10970_v60 = vld [vmem:[%s22553_s5 + $0x7f0] sm:$0xff]  ;;  %v11023_v21 = vld [vmem:[%s22553_s5 + $0x8a8] sm:$0xff] }
 0x939   :  { %12451 = vmatmul.mubr.msk.f32.gmra.mrb[238].mxu1 %vm4365_vm8, %v10929_v29  ;;  %12497 = vmatmul.mubr.msk.f32.gmra.mrb[6].mxu0 %vm4365_vm8, %v10958_v34  ;;  %v6550_v55 = vpop.f32.mrb[168].mxu1  ;;  %v12237_v44 = vpop.f32.mrb[195].mxu0  ;;  %v15039_v23 = vunpack.i.h.bf16 %v15037_v16  ;;  %v15038_v29 = vunpack.i.l.bf16 %v15037_v16  ;;  %v8653_v34 = vsel %vm4315_vm11, %v15029_v37, %v15034_v0  ;;  %v10995_v16 = vld [vmem:[%s22553_s5 + $0x840] sm:$0xff] }
 0x93a   :  { %12453 = vmatprep.mubr.msk.f32.mxu1 %vm15122_vm14, %v15123_v5  ;;  %12499 = vmatprep.mubr.msk.f32.mxu0 %vm15122_vm14, %v15123_v5  ;;  %v6572_v63 = vadd.f32 %v6550_v55, %v21034_v46  ;;  %v12188_v26 = vpop.f32.mrb[169].mxu1  ;;  %v10960_v46 = vld [vmem:[%s22553_s5 + $0x7a0] sm:$0xff]  ;;  %v8652_v24 = vsel %vm4315_vm11, %v15028_v18, %v15033_v17  ;;  %v11016_v44 = vld [vmem:[%s22553_s5 + $0x870] sm:$0xff] }
 0x93b   :  { %v8879_v55 = vsel %vm4315_vm11, %v20762_v51, %v15039_v23  ;;  %v10989_v26 = vld [vmem:[%s22553_s5 + $0x810] sm:$0xff] }
 0x93c   :  { %v21306_v57 = vadd.f32 %v6776_v2, %v6572_v63  ;;  %v6781_v7 = vpop.f32.mrb[196].mxu0  ;;  %v13745_v2 = vpack.c.bf16 %v8653_v34, %v8652_v24  ;;  %v11017_v63 = vld [vmem:[%s22553_s5 + $0x878] sm:$0xff]  ;;  %v10996_v34 = vld [vmem:[%s22553_s5 + $0x848] sm:$0xff] }
 0x93d   :  { %12454 = vmatmul.mubr.msk.f32.gmra.mrb[240].mxu1 %vm4365_vm8, %v10930_v47  ;;  %12500 = vmatmul.mubr.msk.f32.gmra.mrb[8].mxu0 %vm4365_vm8, %v10959_v33  ;;  %v6555_v6 = vpop.f32.mrb[170].mxu1  ;;  %v12240_v20 = vpop.f32.mrb[197].mxu0  ;;  %v8878_v47 = vsel %vm4315_vm11, %v20765_v31, %v15038_v29  ;;  %v10987_v33 = vld [vmem:[%s22553_s5 + $0x800] sm:$0xff]  ;;  %v10988_v31 = vld [vmem:[%s22553_s5 + $0x808] sm:$0xff]  ;;  %v11025_v24 = vld [vmem:[%s22553_s5 + $0x8b8] sm:$0xff] }
 0x93e   :  { %12456 = vmatprep.mubr.msk.f32.mxu1 %vm15122_vm14, %v15123_v5  ;;  %12502 = vmatprep.mubr.msk.f32.mxu0 %vm15122_vm14, %v15123_v5  ;;  %v6573_v45 = vadd.f32 %v6555_v6, %v21054_v48  ;;  %v12191_v35 = vpop.f32.mrb[171].mxu1  ;;  %v10961_v48 = vld [vmem:[%s22553_s5 + $0x7a8] sm:$0xff]  ;;  %v13748_v51 = vpack.c.bf16 %v8879_v55, %v8878_v47  ;;  %v10990_v6 = vld [vmem:[%s22553_s5 + $0x818] sm:$0xff]  ;;  %v11020_v20 = vld [vmem:[%s22553_s5 + $0x890] sm:$0xff] }
 0x940   :  { %v21321_v25 = vadd.f32 %v6781_v7, %v6573_v45  ;;  %v11018_v7 = vld [vmem:[%s22553_s5 + $0x880] sm:$0xff] }
 0x941   :  { %12457 = vmatmul.mubr.msk.f32.gmra.mrb[242].mxu1 %vm4365_vm8, %v10931_v4  ;;  %12503 = vmatmul.mubr.msk.f32.gmra.mrb[10].mxu0 %vm4365_vm8, %v10960_v46  ;;  %v11019_v4 = vld [vmem:[%s22553_s5 + $0x888] sm:$0xff]  ;;  %v10991_v46 = vld [vmem:[%s22553_s5 + $0x820] sm:$0xff] }
 0x942   :  { %12459 = vmatprep.mubr.msk.f32.mxu1 %vm15122_vm14, %v15123_v5  ;;  %12505 = vmatprep.mubr.msk.f32.mxu0 %vm15122_vm14, %v15123_v5 }
 0x945   :  { %12460 = vmatmul.mubr.msk.f32.gmra.mrb[244].mxu1 %vm4365_vm8, %v10932_v19  ;;  %12506 = vmatmul.mubr.msk.f32.gmra.mrb[12].mxu0 %vm4365_vm8, %v10961_v48  ;;  %v10992_v48 = vld [vmem:[%s22553_s5 + $0x828] sm:$0xff] }
 0x946   :  { %12462 = vmatprep.mubr.msk.f32.mxu1 %vm15122_vm14, %v15123_v5  ;;  %12508 = vmatprep.mubr.msk.f32.mxu0 %vm15122_vm14, %v15123_v5 }
 0x949   :  { %12463 = vmatmul.mubr.msk.f32.gmra.mrb[246].mxu1 %vm4365_vm8, %v10933_v61  ;;  %12509 = vmatmul.mubr.msk.f32.gmra.mrb[14].mxu0 %vm4365_vm8, %v10962_v52  ;;  %v11021_v61 = vld [vmem:[%s22553_s5 + $0x898] sm:$0xff] }
 0x94a   :  { %12465 = vmatprep.mubr.msk.f32.mxu1 %vm15122_vm14, %v15123_v5  ;;  %12511 = vmatprep.mubr.msk.f32.mxu0 %vm15122_vm14, %v15123_v5 }
 0x94d   :  { %12466 = vmatmul.mubr.msk.f32.gmra.mrb[248].mxu1 %vm4365_vm8, %v10934_v1  ;;  %12512 = vmatmul.mubr.msk.f32.gmra.mrb[16].mxu0 %vm4365_vm8, %v10963_v28 }
 0x94e   :  { %12468 = vmatprep.mubr.msk.f32.mxu1 %vm15122_vm14, %v15123_v5  ;;  %12514 = vmatprep.mubr.msk.f32.mxu0 %vm15122_vm14, %v15123_v5 }
 0x951   :  { %12469 = vmatmul.mubr.msk.f32.gmra.mrb[250].mxu1 %vm4365_vm8, %v10935_v42  ;;  %12515 = vmatmul.mubr.msk.f32.gmra.mrb[18].mxu0 %vm4365_vm8, %v10964_v36  ;;  %v10993_v42 = vld [vmem:[%s22553_s5 + $0x830] sm:$0xff]  ;;  %v11022_v36 = vld [vmem:[%s22553_s5 + $0x8a0] sm:$0xff] }
 0x952   :  { %12471 = vmatprep.mubr.msk.f32.mxu1 %vm15122_vm14, %v15123_v5  ;;  %12517 = vmatprep.mubr.msk.f32.mxu0 %vm15122_vm14, %v15123_v5 }
 0x955   :  { %12472 = vmatmul.mubr.msk.f32.gmra.mrb[252].mxu1 %vm4365_vm8, %v10936_v59  ;;  %12518 = vmatmul.mubr.msk.f32.gmra.mrb[20].mxu0 %vm4365_vm8, %v10965_v30 }
 0x956   :  { %12474 = vmatprep.mubr.msk.f32.mxu1 %vm15122_vm14, %v15123_v5  ;;  %12520 = vmatprep.mubr.msk.f32.mxu0 %vm15122_vm14, %v15123_v5 }
 0x959   :  { %12475 = vmatmul.mubr.msk.f32.gmra.mrb[254].mxu1 %vm4365_vm8, %v10937_v54  ;;  %12521 = vmatmul.mubr.msk.f32.gmra.mrb[22].mxu0 %vm4365_vm8, %v10966_v40 }
 0x95a   :  { %12477 = vmatprep.mubr.msk.f32.mxu1 %vm15122_vm14, %v15123_v5  ;;  %12523 = vmatprep.mubr.msk.f32.mxu0 %vm15122_vm14, %v15123_v5 }
 0x95d   :  { %12478 = vmatmul.mubr.msk.f32.gmra.mrb[0].mxu1 %vm4365_vm8, %v10938_v41  ;;  %12524 = vmatmul.mubr.msk.f32.gmra.mrb[24].mxu0 %vm4365_vm8, %v10967_v22  ;;  %v10994_v22 = vld [vmem:[%s22553_s5 + $0x838] sm:$0xff] }
 0x95e   :  { %12480 = vmatprep.mubr.msk.f32.mxu1 %vm15122_vm14, %v15123_v5  ;;  %12526 = vmatprep.mubr.msk.f32.mxu0 %vm15122_vm14, %v15123_v5 }
 0x961   :  { %12481 = vmatmul.mubr.msk.f32.gmra.mrb[2].mxu1 %vm4365_vm8, %v10939_v50  ;;  %12527 = vmatmul.mubr.msk.f32.gmra.mrb[26].mxu0 %vm4365_vm8, %v10968_v62 }
 0x962   :  { %12483 = vmatprep.mubr.msk.f32.mxu1 %vm15122_vm14, %v15123_v5  ;;  %12529 = vmatprep.mubr.msk.f32.mxu0 %vm15122_vm14, %v15123_v5 }
 0x965   :  { %12484 = vmatmul.mubr.msk.f32.gmra.mrb[4].mxu1 %vm4365_vm8, %v10940_v53  ;;  %12530 = vmatmul.mubr.msk.f32.gmra.mrb[28].mxu0 %vm4365_vm8, %v10969_v3  ;;  %v11024_v53 = vld [vmem:[%s22553_s5 + $0x8b0] sm:$0xff] }
 0x966   :  { %12532 = vmatprep.mubr.msk.f32.mxu0 %vm15122_vm14, %v15123_v5  ;;  %12539 = vmatprep.mubr.msk.f32.mxu1 %vm15122_vm14, %v15123_v5 }
 0x969   :  { %12533 = vmatmul.mubr.msk.f32.gmra.mrb[30].mxu0 %vm4365_vm8, %v10970_v60  ;;  %12540 = vmatmul.mubr.msk.f32.vlgmr.msra.gmra.mrb[6].mxu1 %vm4365_vm8, %v10986_v10 }
 0x96a   :  { %13746 = vmatpush3.bf16.msra.mxu1 %v13745_v2  ;;  %12542 = vmatprep.mubr.msk.f32.mxu1 %vm15122_vm14, %v15123_v5 }
 0x96b   :  { %12588 = vmatprep.mubr.msk.f32.mxu0 %vm15122_vm14, %v15123_v5  ;;  %13750 = vmatprep.subr.bf16.mxu1 %v15121_v15 }
 0x96d   :  { %12543 = vmatmul.mubr.msk.f32.gmra.mrb[8].mxu1 %vm4365_vm8, %v10987_v33  ;;  %12589 = vmatmul.mubr.msk.f32.vlgmr.msra.gmra.mrb[32].mxu0 %vm4365_vm8, %v11016_v44  ;;  %v10997_v33 = vld [vmem:[%s22553_s5 + $0x850] sm:$0xff]  ;;  %v11026_v44 = vld [vmem:[%s22553_s5 + $0x8c0] sm:$0xff] }
 0x96e   :  { %13749 = vmatpush3.bf16.msra.mxu0 %v13748_v51  ;;  %12545 = vmatprep.mubr.msk.f32.mxu1 %vm15122_vm14, %v15123_v5 }
 0x96f   :  { %12591 = vmatprep.mubr.msk.f32.mxu0 %vm15122_vm14, %v15123_v5  ;;  %13753 = vmatprep.subr.bf16.mxu0 %v15121_v15 }
 0x971   :  { %12546 = vmatmul.mubr.msk.f32.gmra.mrb[10].mxu1 %vm4365_vm8, %v10988_v31  ;;  %12592 = vmatmul.mubr.msk.f32.gmra.mrb[34].mxu0 %vm4365_vm8, %v11017_v63 }
 0x972   :  { %12548 = vmatprep.mubr.msk.f32.mxu1 %vm15122_vm14, %v15123_v5  ;;  %12594 = vmatprep.mubr.msk.f32.mxu0 %vm15122_vm14, %v15123_v5 }
 0x975   :  { %12549 = vmatmul.mubr.msk.f32.gmra.mrb[12].mxu1 %vm4365_vm8, %v10989_v26  ;;  %12595 = vmatmul.mubr.msk.f32.gmra.mrb[36].mxu0 %vm4365_vm8, %v11018_v7 }
 0x976   :  { %12551 = vmatprep.mubr.msk.f32.mxu1 %vm15122_vm14, %v15123_v5  ;;  %12597 = vmatprep.mubr.msk.f32.mxu0 %vm15122_vm14, %v15123_v5 }
 0x979   :  { %12552 = vmatmul.mubr.msk.f32.gmra.mrb[14].mxu1 %vm4365_vm8, %v10990_v6  ;;  %12598 = vmatmul.mubr.msk.f32.gmra.mrb[38].mxu0 %vm4365_vm8, %v11019_v4  ;;  %v10998_v6 = vld [vmem:[%s22553_s5 + $0x858] sm:$0xff]  ;;  %v11027_v4 = vld [vmem:[%s22553_s5 + $0x8c8] sm:$0xff] }
 0x97a   :  { %12554 = vmatprep.mubr.msk.f32.mxu1 %vm15122_vm14, %v15123_v5  ;;  %12600 = vmatprep.mubr.msk.f32.mxu0 %vm15122_vm14, %v15123_v5 }
 0x97d   :  { %12555 = vmatmul.mubr.msk.f32.gmra.mrb[16].mxu1 %vm4365_vm8, %v10991_v46  ;;  %12601 = vmatmul.mubr.msk.f32.gmra.mrb[40].mxu0 %vm4365_vm8, %v11020_v20  ;;  %v6943_v45 = vpop.f32.mrb[172].mxu1  ;;  %v15042_v46 = vpop.permute.xlu1 %15041 }
 0x97e   :  { %v7017_v35 = vadd.f32 %v6943_v45, %v21131_v27  ;;  %12557 = vmatprep.mubr.msk.f32.mxu1 %vm15122_vm14, %v15123_v5  ;;  %12603 = vmatprep.mubr.msk.f32.mxu0 %vm15122_vm14, %v15123_v5  ;;  %v12247_v19 = vpop.f32.mrb[173].mxu1  ;;  %v15052_v45 = vpop.permute.xlu0 %15051 }
 0x981   :  { %12558 = vmatmul.mubr.msk.f32.gmra.mrb[18].mxu1 %vm4365_vm8, %v10992_v48  ;;  %12604 = vmatmul.mubr.msk.f32.gmra.mrb[42].mxu0 %vm4365_vm8, %v11021_v61  ;;  %v6948_v27 = vpop.f32.mrb[174].mxu1  ;;  %v7173_v1 = vpop.f32.mrb[198].mxu0 }
 0x982   :  { %v7018_v52 = vadd.f32 %v6948_v27, %v21146_v14  ;;  %12560 = vmatprep.mubr.msk.f32.mxu1 %vm15122_vm14, %v15123_v5  ;;  %12606 = vmatprep.mubr.msk.f32.mxu0 %vm15122_vm14, %v15123_v5  ;;  %v12250_v28 = vpop.f32.mrb[175].mxu1  ;;  %v21535_v59 = vadd.f32 %v7173_v1, %v7017_v35  ;;  %v12296_v30 = vpop.f32.mrb[199].mxu0  ;;  %v10999_v27 = vld [vmem:[%s22553_s5 + $0x860] sm:$0xff] }
 0x985   :  { %12561 = vmatmul.mubr.msk.f32.gmra.mrb[20].mxu1 %vm4365_vm8, %v10993_v42  ;;  %12607 = vmatmul.mubr.msk.f32.gmra.mrb[44].mxu0 %vm4365_vm8, %v11022_v36  ;;  %v6953_v14 = vpop.f32.mrb[176].mxu1  ;;  %v15043_v42 = vunpack.i.l.bf16 %v15042_v46  ;;  %v15047_v36 = vpop.permute.xlu1 %15046 }
 0x986   :  { %v7019_v54 = vadd.f32 %v6953_v14, %v21161_v8  ;;  %v7178_v40 = vpop.f32.mrb[200].mxu0  ;;  %12563 = vmatprep.mubr.msk.f32.mxu1 %vm15122_vm14, %v15123_v5  ;;  %12609 = vmatprep.mubr.msk.f32.mxu0 %vm15122_vm14, %v15123_v5  ;;  %v12253_v41 = vpop.f32.mrb[177].mxu1 }
 0x987   :  { %v21550_v58 = vadd.f32 %v7178_v40, %v7018_v52  ;;  %v12299_v50 = vpop.f32.mrb[201].mxu0  ;;  %v11028_v52 = vld [vmem:[%s22553_s5 + $0x8d0] sm:$0xff]  ;;  %v11000_v41 = vld [vmem:[%s22553_s5 + $0x868] sm:$0xff] }
 0x988   :  { %v15053_v50 = vunpack.i.l.bf16 %v15052_v45 }
 0x989   :  { %12564 = vmatmul.mubr.msk.f32.gmra.mrb[22].mxu1 %vm4365_vm8, %v10994_v22  ;;  %12610 = vmatmul.mubr.msk.f32.gmra.mrb[46].mxu0 %vm4365_vm8, %v11023_v21  ;;  %v6958_v8 = vpop.f32.mrb[178].mxu1  ;;  %v11029_v22 = vld [vmem:[%s22553_s5 + $0x8d8] sm:$0xff]  ;;  %v15054_v21 = vunpack.i.h.bf16 %v15052_v45 }
 0x98a   :  { %v7020_v62 = vadd.f32 %v6958_v8, %v21176_v49  ;;  %v7183_v0 = vpop.f32.mrb[202].mxu0  ;;  %12566 = vmatprep.mubr.msk.f32.mxu1 %vm15122_vm14, %v15123_v5  ;;  %12612 = vmatprep.mubr.msk.f32.mxu0 %vm15122_vm14, %v15123_v5  ;;  %v12256_v17 = vpop.f32.mrb[179].mxu1 }
 0x98b   :  { %v21565_v3 = vadd.f32 %v7183_v0, %v7019_v54  ;;  %v12302_v37 = vpop.f32.mrb[203].mxu0  ;;  %v9110_v17 = vsel %vm4315_vm11, %v15043_v42, %v15053_v50  ;;  %v11078_v42 = vld [vmem:[%s22553_s5 + $0x970] sm:$0xff] }
 0x98d   :  { %12567 = vmatmul.mubr.msk.f32.gmra.mrb[24].mxu1 %vm4365_vm8, %v10995_v16  ;;  %12613 = vmatmul.mubr.msk.f32.gmra.mrb[48].mxu0 %vm4365_vm8, %v11024_v53  ;;  %v6963_v49 = vpop.f32.mrb[180].mxu1  ;;  %v15049_v16 = vunpack.i.h.bf16 %v15047_v36  ;;  %v15048_v53 = vunpack.i.l.bf16 %v15047_v36 }
 0x98e   :  { %v7021_v18 = vadd.f32 %v6963_v49, %v21191_v9  ;;  %v7188_v23 = vpop.f32.mrb[204].mxu0  ;;  %12569 = vmatprep.mubr.msk.f32.mxu1 %vm15122_vm14, %v15123_v5  ;;  %12615 = vmatprep.mubr.msk.f32.mxu0 %vm15122_vm14, %v15123_v5  ;;  %v12259_v29 = vpop.f32.mrb[181].mxu1 }
 0x98f   :  { %v21580_v60 = vadd.f32 %v7188_v23, %v7020_v62  ;;  %v12305_v10 = vpop.f32.mrb[205].mxu0  ;;  %v15057_v62 = vpop.permute.xlu0 %15056  ;;  %v11030_v29 = vld [vmem:[%s22553_s5 + $0x8e0] sm:$0xff] }
 0x990   :  { %v15058_v10 = vunpack.i.l.bf16 %v15057_v62 }
 0x991   :  { %12570 = vmatmul.mubr.msk.f32.gmra.mrb[26].mxu1 %vm4365_vm8, %v10996_v34  ;;  %12616 = vmatmul.mubr.msk.f32.gmra.mrb[50].mxu0 %vm4365_vm8, %v11025_v24  ;;  %v6968_v9 = vpop.f32.mrb[182].mxu1  ;;  %v11046_v34 = vld [vmem:[%s22553_s5 + $0x8e8] sm:$0xff]  ;;  %v15059_v24 = vunpack.i.h.bf16 %v15057_v62 }
 0x992   :  { %v7022_v2 = vadd.f32 %v6968_v9, %v21206_v12  ;;  %v7193_v55 = vpop.f32.mrb[206].mxu0  ;;  %12572 = vmatprep.mubr.msk.f32.mxu1 %vm15122_vm14, %v15123_v5  ;;  %12618 = vmatprep.mubr.msk.f32.mxu0 %vm15122_vm14, %v15123_v5  ;;  %v12262_v47 = vpop.f32.mrb[183].mxu1 }
 0x993   :  { %v21595_v51 = vadd.f32 %v7193_v55, %v7021_v18  ;;  %v12308_v31 = vpop.f32.mrb[207].mxu0  ;;  %v9341_v55 = vsel %vm4315_vm11, %v15049_v16, %v15059_v24  ;;  %v9340_v47 = vsel %vm4315_vm11, %v15048_v53, %v15058_v10  ;;  %v11080_v16 = vld [vmem:[%s22553_s5 + $0x980] sm:$0xff] }
 0x995   :  { %12573 = vmatmul.mubr.msk.f32.gmra.mrb[28].mxu1 %vm4365_vm8, %v10997_v33  ;;  %12619 = vmatmul.mubr.msk.f32.gmra.mrb[52].mxu0 %vm4365_vm8, %v11026_v44  ;;  %v6973_v12 = vpop.f32.mrb[184].mxu1 }
 0x996   :  { %v7023_v63 = vadd.f32 %v6973_v12, %v21218_v43  ;;  %v7198_v26 = vpop.f32.mrb[208].mxu0  ;;  %12575 = vmatprep.mubr.msk.f32.mxu1 %vm15122_vm14, %v15123_v5  ;;  %12621 = vmatprep.mubr.msk.f32.mxu0 %vm15122_vm14, %v15123_v5  ;;  %v12265_v7 = vpop.f32.mrb[185].mxu1 }
 0x997   :  { %v21610_v20 = vadd.f32 %v7198_v26, %v7022_v2  ;;  %v12311_v43 = vpop.f32.mrb[209].mxu0  ;;  %v11076_v26 = vld [vmem:[%s22553_s5 + $0x960] sm:$0xff] }
 0x999   :  { %12576 = vmatmul.mubr.msk.f32.gmra.mrb[30].mxu1 %vm4365_vm8, %v10998_v6  ;;  %12622 = vmatmul.mubr.msk.f32.gmra.mrb[54].mxu0 %vm4365_vm8, %v11027_v4  ;;  %v6978_v35 = vpop.f32.mrb[186].mxu1 }
 0x99a   :  { %v7024_v19 = vadd.f32 %v6978_v35, %v21224_v39  ;;  %v7203_v48 = vpop.f32.mrb[210].mxu0  ;;  %12578 = vmatprep.mubr.msk.f32.mxu1 %vm15122_vm14, %v15123_v5  ;;  %12624 = vmatprep.mubr.msk.f32.mxu0 %vm15122_vm14, %v15123_v5  ;;  %v12268_v61 = vpop.f32.mrb[187].mxu1  ;;  %v15044_v39 = vunpack.i.h.bf16 %v15042_v46  ;;  %v11048_v35 = vld [vmem:[%s22553_s5 + $0x8f8] sm:$0xff] }
 0x99b   :  { %v21625_v1 = vadd.f32 %v7203_v48, %v7023_v63  ;;  %v12314_v28 = vpop.f32.mrb[211].mxu0  ;;  %v11047_v63 = vld [vmem:[%s22553_s5 + $0x8f0] sm:$0xff] }
 0x99c   :  { %v9111_v0 = vsel %vm4315_vm11, %v15044_v39, %v15054_v21  ;;  %v11049_v39 = vld [vmem:[%s22553_s5 + $0x900] sm:$0xff] }
 0x99d   :  { %12579 = vmatmul.mubr.msk.f32.gmra.mrb[32].mxu1 %vm4365_vm8, %v10999_v27  ;;  %12625 = vmatmul.mubr.msk.f32.gmra.mrb[56].mxu0 %vm4365_vm8, %v11028_v52  ;;  %v6983_v30 = vpop.f32.mrb[188].mxu1  ;;  %v13751_v2 = vpack.c.bf16 %v9111_v0, %v9110_v17  ;;  %v11051_v17 = vld [vmem:[%s22553_s5 + $0x910] sm:$0xff] }
 0x99e   :  { %v7025_v14 = vadd.f32 %v6983_v30, %v21231_v56  ;;  %v7208_v54 = vpop.f32.mrb[212].mxu0  ;;  %12581 = vmatprep.mubr.msk.f32.mxu1 %vm15122_vm14, %v15123_v5  ;;  %12627 = vmatprep.mubr.msk.f32.mxu0 %vm15122_vm14, %v15123_v5  ;;  %v12271_v40 = vpop.f32.mrb[189].mxu1 }
 0x99f   :  { %v21640_v8 = vadd.f32 %v7208_v54, %v7024_v19  ;;  %v12317_v56 = vpop.f32.mrb[213].mxu0  ;;  %v11077_v19 = vld [vmem:[%s22553_s5 + $0x968] sm:$0xff] }
 0x9a1   :  { %12582 = vmatmul.mubr.msk.f32.gmra.mrb[34].mxu1 %vm4365_vm8, %v11000_v41  ;;  %12628 = vmatmul.mubr.msk.f32.gmra.mrb[58].mxu0 %vm4365_vm8, %v11029_v22  ;;  %v6988_v37 = vpop.f32.mrb[190].mxu1  ;;  %v11050_v41 = vld [vmem:[%s22553_s5 + $0x908] sm:$0xff]  ;;  %v11079_v22 = vld [vmem:[%s22553_s5 + $0x978] sm:$0xff] }
 0x9a2   :  { %v7026_v49 = vadd.f32 %v6988_v37, %v21241_v38  ;;  %v7213_v18 = vpop.f32.mrb[214].mxu0  ;;  %12630 = vmatprep.mubr.msk.f32.mxu0 %vm15122_vm14, %v15123_v5  ;;  %12637 = vmatprep.mubr.msk.f32.mxu1 %vm15122_vm14, %v15123_v5  ;;  %v12274_v23 = vpop.f32.mrb[191].mxu1 }
 0x9a3   :  { %v21657_v9 = vadd.f32 %v7213_v18, %v7025_v14  ;;  %v12320_v38 = vpop.f32.mrb[215].mxu0 }
 0x9a5   :  { %12631 = vmatmul.mubr.msk.f32.gmra.mrb[60].mxu0 %vm4365_vm8, %v11030_v29  ;;  %12638 = vmatmul.mubr.msk.f32.vlgmr.msra.gmra.mrb[36].mxu1 %vm4365_vm8, %v11046_v34  ;;  %v6993_v33 = vpop.f32.mrb[192].mxu1  ;;  %v11052_v29 = vld [vmem:[%s22553_s5 + $0x918] sm:$0xff]  ;;  %v11081_v34 = vld [vmem:[%s22553_s5 + $0x988] sm:$0xff] }
 0x9a6   :  { %13752 = vmatpush3.bf16.msra.mxu1 %v13751_v2  ;;  %v7027_v44 = vadd.f32 %v6993_v33, %v21257_v13  ;;  %v7218_v31 = vpop.f32.mrb[216].mxu0  ;;  %12640 = vmatprep.mubr.msk.f32.mxu1 %vm15122_vm14, %v15123_v5  ;;  %v12277_v12 = vpop.f32.mrb[193].mxu1  ;;  %v13754_v13 = vpack.c.bf16 %v9341_v55, %v9340_v47  ;;  %v11053_v47 = vld [vmem:[%s22553_s5 + $0x920] sm:$0xff]  ;;  %v11082_v33 = vld [vmem:[%s22553_s5 + $0x990] sm:$0xff] }
 0x9a7   :  { %v21672_v7 = vadd.f32 %v7218_v31, %v7026_v49  ;;  %12686 = vmatprep.mubr.msk.f32.mxu0 %vm15122_vm14, %v15123_v5  ;;  %v12323_v6 = vpop.f32.mrb[217].mxu0  ;;  %13756 = vmatprep.subr.bf16.mxu1 %v15121_v15 }
 0x9a8   :  { %v11054_v6 = vld [vmem:[%s22553_s5 + $0x928] sm:$0xff] }
 0x9a9   :  { %12641 = vmatmul.mubr.msk.f32.gmra.mrb[38].mxu1 %vm4365_vm8, %v11047_v63  ;;  %12687 = vmatmul.mubr.msk.f32.vlgmr.msra.gmra.mrb[62].mxu0 %vm4365_vm8, %v11076_v26  ;;  %v6998_v4 = vpop.f32.mrb[194].mxu1 }
 0x9aa   :  { %13755 = vmatpush3.bf16.msra.mxu0 %v13754_v13  ;;  %v7028_v46 = vadd.f32 %v6998_v4, %v21275_v32  ;;  %v7223_v43 = vpop.f32.mrb[218].mxu0  ;;  %12643 = vmatprep.mubr.msk.f32.mxu1 %vm15122_vm14, %v15123_v5  ;;  %v12280_v45 = vpop.f32.mrb[195].mxu1  ;;  %v11083_v13 = vld [vmem:[%s22553_s5 + $0x998] sm:$0xff] }
 0x9ab   :  { %v21688_v48 = vadd.f32 %v7223_v43, %v7027_v44  ;;  %12689 = vmatprep.mubr.msk.f32.mxu0 %vm15122_vm14, %v15123_v5  ;;  %v12326_v61 = vpop.f32.mrb[219].mxu0  ;;  %13759 = vmatprep.subr.bf16.mxu0 %v15121_v15 }
 0x9ac   :  { %v11084_v61 = vld [vmem:[%s22553_s5 + $0x9a0] sm:$0xff] }
 0x9ad   :  { %12644 = vmatmul.mubr.msk.f32.gmra.mrb[40].mxu1 %vm4365_vm8, %v11048_v35  ;;  %12690 = vmatmul.mubr.msk.f32.gmra.mrb[64].mxu0 %vm4365_vm8, %v11077_v19  ;;  %v7003_v32 = vpop.f32.mrb[196].mxu1  ;;  %v11055_v19 = vld [vmem:[%s22553_s5 + $0x930] sm:$0xff] }
 0x9ae   :  { %v7029_v27 = vadd.f32 %v7003_v32, %v21291_v11  ;;  %v7228_v52 = vpop.f32.mrb[220].mxu0  ;;  %12646 = vmatprep.mubr.msk.f32.mxu1 %vm15122_vm14, %v15123_v5  ;;  %12692 = vmatprep.mubr.msk.f32.mxu0 %vm15122_vm14, %v15123_v5  ;;  %v12283_v28 = vpop.f32.mrb[197].mxu1 }
 0x9af   :  { %v21706_v36 = vadd.f32 %v7228_v52, %v7028_v46  ;;  %v12329_v30 = vpop.f32.mrb[221].mxu0 }
 0x9b0   :  { %v11085_v30 = vld [vmem:[%s22553_s5 + $0x9a8] sm:$0xff] }
 0x9b1   :  { %12647 = vmatmul.mubr.msk.f32.gmra.mrb[42].mxu1 %vm4365_vm8, %v11049_v39  ;;  %12693 = vmatmul.mubr.msk.f32.gmra.mrb[66].mxu0 %vm4365_vm8, %v11078_v42  ;;  %v7008_v11 = vpop.f32.mrb[198].mxu1  ;;  %v11056_v42 = vld [vmem:[%s22553_s5 + $0x938] sm:$0xff] }
 0x9b2   :  { %v7030_v14 = vadd.f32 %v7008_v11, %v21306_v57  ;;  %v7233_v54 = vpop.f32.mrb[222].mxu0  ;;  %12649 = vmatprep.mubr.msk.f32.mxu1 %vm15122_vm14, %v15123_v5  ;;  %12695 = vmatprep.mubr.msk.f32.mxu0 %vm15122_vm14, %v15123_v5  ;;  %v12286_v40 = vpop.f32.mrb[199].mxu1 }
 0x9b3   :  { %v21721_v21 = vadd.f32 %v7233_v54, %v7029_v27  ;;  %v12332_v50 = vpop.f32.mrb[223].mxu0 }
 0x9b4   :  { %v11086_v50 = vld [vmem:[%s22553_s5 + $0x9b0] sm:$0xff] }
 0x9b5   :  { %12650 = vmatmul.mubr.msk.f32.gmra.mrb[44].mxu1 %vm4365_vm8, %v11050_v41  ;;  %12696 = vmatmul.mubr.msk.f32.gmra.mrb[68].mxu0 %vm4365_vm8, %v11079_v22  ;;  %v7013_v57 = vpop.f32.mrb[200].mxu1  ;;  %v11057_v22 = vld [vmem:[%s22553_s5 + $0x940] sm:$0xff] }
 0x9b6   :  { %v7031_v56 = vadd.f32 %v7013_v57, %v21321_v25  ;;  %v7238_v62 = vpop.f32.mrb[224].mxu0  ;;  %12652 = vmatprep.mubr.msk.f32.mxu1 %vm15122_vm14, %v15123_v5  ;;  %12698 = vmatprep.mubr.msk.f32.mxu0 %vm15122_vm14, %v15123_v5  ;;  %v12289_v0 = vpop.f32.mrb[201].mxu1 }
 0x9b7   :  { %v21736_v53 = vadd.f32 %v7238_v62, %v7030_v14  ;;  %v12335_v37 = vpop.f32.mrb[225].mxu0 }
 0x9b8   :  { %v11087_v37 = vld [vmem:[%s22553_s5 + $0x9b8] sm:$0xff] }
 0x9b9   :  { %12653 = vmatmul.mubr.msk.f32.gmra.mrb[46].mxu1 %vm4365_vm8, %v11051_v17  ;;  %12699 = vmatmul.mubr.msk.f32.gmra.mrb[70].mxu0 %vm4365_vm8, %v11080_v16  ;;  %v7403_v25 = vpop.f32.mrb[202].mxu1  ;;  %v11058_v16 = vld [vmem:[%s22553_s5 + $0x948] sm:$0xff] }
 0x9ba   :  { %v7243_v49 = vpop.f32.mrb[226].mxu0  ;;  %v7477_v18 = vadd.f32 %v7403_v25, %v21535_v59  ;;  %12655 = vmatprep.mubr.msk.f32.mxu1 %vm15122_vm14, %v15123_v5  ;;  %12701 = vmatprep.mubr.msk.f32.mxu0 %vm15122_vm14, %v15123_v5  ;;  %v12345_v23 = vpop.f32.mrb[203].mxu1 }
 0x9bb   :  { %v21751_v24 = vadd.f32 %v7243_v49, %v7031_v56  ;;  %v12338_v10 = vpop.f32.mrb[227].mxu0  ;;  %v15062_v25 = vpop.permute.xlu1 %15061 }
 0x9bd   :  { %12656 = vmatmul.mubr.msk.f32.gmra.mrb[48].mxu1 %vm4365_vm8, %v11052_v29  ;;  %12702 = vmatmul.mubr.msk.f32.gmra.mrb[72].mxu0 %vm4365_vm8, %v11081_v34  ;;  %v7408_v59 = vpop.f32.mrb[204].mxu1 }
 0x9be   :  { %v7478_v38 = vadd.f32 %v7408_v59, %v21550_v58  ;;  %v7633_v2 = vpop.f32.mrb[228].mxu0  ;;  %12658 = vmatprep.mubr.msk.f32.mxu1 %vm15122_vm14, %v15123_v5  ;;  %12704 = vmatprep.mubr.msk.f32.mxu0 %vm15122_vm14, %v15123_v5  ;;  %v12348_v55 = vpop.f32.mrb[205].mxu1  ;;  %v11059_v59 = vld [vmem:[%s22553_s5 + $0x950] sm:$0xff] }
 0x9bf   :  { %v21766_v44 = vadd.f32 %v7633_v2, %v7477_v18  ;;  %v12394_v31 = vpop.f32.mrb[229].mxu0  ;;  %v15072_v18 = vpop.permute.xlu0 %15071 }
 0x9c1   :  { %12659 = vmatmul.mubr.msk.f32.gmra.mrb[50].mxu1 %vm4365_vm8, %v11053_v47  ;;  %12705 = vmatmul.mubr.msk.f32.gmra.mrb[74].mxu0 %vm4365_vm8, %v11082_v33  ;;  %v7413_v58 = vpop.f32.mrb[206].mxu1  ;;  %v15063_v47 = vunpack.i.l.bf16 %v15062_v25  ;;  %v15067_v33 = vpop.permute.xlu1 %15066 }
 0x9c2   :  { %v7479_v12 = vadd.f32 %v7413_v58, %v21565_v3  ;;  %v7638_v63 = vpop.f32.mrb[230].mxu0  ;;  %12661 = vmatprep.mubr.msk.f32.mxu1 %vm15122_vm14, %v15123_v5  ;;  %12707 = vmatprep.mubr.msk.f32.mxu0 %vm15122_vm14, %v15123_v5  ;;  %v12351_v26 = vpop.f32.mrb[207].mxu1 }
 0x9c3   :  { %v21781_v4 = vadd.f32 %v7638_v63, %v7478_v38  ;;  %v12397_v46 = vpop.f32.mrb[231].mxu0  ;;  %v11088_v38 = vld [vmem:[%s22553_s5 + $0x9c0] sm:$0xff]  ;;  %v11060_v26 = vld [vmem:[%s22553_s5 + $0x958] sm:$0xff] }
 0x9c4   :  { %v15073_v46 = vunpack.i.l.bf16 %v15072_v18 }
 0x9c5   :  { %12662 = vmatmul.mubr.msk.f32.gmra.mrb[52].mxu1 %vm4365_vm8, %v11054_v6  ;;  %12708 = vmatmul.mubr.msk.f32.gmra.mrb[76].mxu0 %vm4365_vm8, %v11083_v13  ;;  %v7418_v3 = vpop.f32.mrb[208].mxu1  ;;  %v11089_v6 = vld [vmem:[%s22553_s5 + $0x9c8] sm:$0xff]  ;;  %v15074_v13 = vunpack.i.h.bf16 %v15072_v18 }
 0x9c6   :  { %v7480_v43 = vadd.f32 %v7418_v3, %v21580_v60  ;;  %v7643_v45 = vpop.f32.mrb[232].mxu0  ;;  %12664 = vmatprep.mubr.msk.f32.mxu1 %vm15122_vm14, %v15123_v5  ;;  %12710 = vmatprep.mubr.msk.f32.mxu0 %vm15122_vm14, %v15123_v5  ;;  %v12354_v35 = vpop.f32.mrb[209].mxu1 }
 0x9c7   :  { %v21796_v32 = vadd.f32 %v7643_v45, %v7479_v12  ;;  %v12400_v27 = vpop.f32.mrb[233].mxu0  ;;  %v9570_v35 = vsel %vm4315_vm11, %v15063_v47, %v15073_v46  ;;  %v11138_v47 = vld [vmem:[%s22553_s5 + $0xa60] sm:$0xff] }
 0x9c9   :  { %12665 = vmatmul.mubr.msk.f32.gmra.mrb[54].mxu1 %vm4365_vm8, %v11055_v19  ;;  %12711 = vmatmul.mubr.msk.f32.gmra.mrb[78].mxu0 %vm4365_vm8, %v11084_v61  ;;  %v7423_v60 = vpop.f32.mrb[210].mxu1  ;;  %v15069_v19 = vunpack.i.h.bf16 %v15067_v33  ;;  %v15068_v61 = vunpack.i.l.bf16 %v15067_v33 }
 0x9ca   :  { %v7481_v52 = vadd.f32 %v7423_v60, %v21595_v51  ;;  %v7648_v28 = vpop.f32.mrb[234].mxu0  ;;  %12667 = vmatprep.mubr.msk.f32.mxu1 %vm15122_vm14, %v15123_v5  ;;  %12713 = vmatprep.mubr.msk.f32.mxu0 %vm15122_vm14, %v15123_v5  ;;  %v12357_v39 = vpop.f32.mrb[211].mxu1 }
 0x9cb   :  { %v21811_v11 = vadd.f32 %v7648_v28, %v7480_v43  ;;  %v12403_v14 = vpop.f32.mrb[235].mxu0  ;;  %v15077_v43 = vpop.permute.xlu0 %15076  ;;  %v11090_v39 = vld [vmem:[%s22553_s5 + $0x9d0] sm:$0xff] }
 0x9cc   :  { %v15078_v14 = vunpack.i.l.bf16 %v15077_v43 }
 0x9cd   :  { %12668 = vmatmul.mubr.msk.f32.gmra.mrb[56].mxu1 %vm4365_vm8, %v11056_v42  ;;  %12714 = vmatmul.mubr.msk.f32.gmra.mrb[80].mxu0 %vm4365_vm8, %v11085_v30  ;;  %v7428_v51 = vpop.f32.mrb[212].mxu1  ;;  %v11106_v42 = vld [vmem:[%s22553_s5 + $0x9d8] sm:$0xff]  ;;  %v15079_v30 = vunpack.i.h.bf16 %v15077_v43 }
 0x9ce   :  { %v7482_v54 = vadd.f32 %v7428_v51, %v21610_v20  ;;  %v7653_v40 = vpop.f32.mrb[236].mxu0  ;;  %12670 = vmatprep.mubr.msk.f32.mxu1 %vm15122_vm14, %v15123_v5  ;;  %12716 = vmatprep.mubr.msk.f32.mxu0 %vm15122_vm14, %v15123_v5  ;;  %v12360_v41 = vpop.f32.mrb[213].mxu1 }
 0x9cf   :  { %v21826_v57 = vadd.f32 %v7653_v40, %v7481_v52  ;;  %v12406_v56 = vpop.f32.mrb[237].mxu0  ;;  %v9801_v40 = vsel %vm4315_vm11, %v15069_v19, %v15079_v30  ;;  %v9800_v41 = vsel %vm4315_vm11, %v15068_v61, %v15078_v14  ;;  %v11142_v30 = vld [vmem:[%s22553_s5 + $0xa80] sm:$0xff]  ;;  %v11114_v14 = vld [vmem:[%s22553_s5 + $0xa18] sm:$0xff] }
 0x9d1   :  { %12671 = vmatmul.mubr.msk.f32.gmra.mrb[58].mxu1 %vm4365_vm8, %v11057_v22  ;;  %12717 = vmatmul.mubr.msk.f32.gmra.mrb[82].mxu0 %vm4365_vm8, %v11086_v50  ;;  %v7433_v20 = vpop.f32.mrb[214].mxu1 }
 0x9d2   :  { %v7483_v62 = vadd.f32 %v7433_v20, %v21625_v1  ;;  %v7658_v0 = vpop.f32.mrb[238].mxu0  ;;  %12673 = vmatprep.mubr.msk.f32.mxu1 %vm15122_vm14, %v15123_v5  ;;  %12719 = vmatprep.mubr.msk.f32.mxu0 %vm15122_vm14, %v15123_v5  ;;  %v12363_v17 = vpop.f32.mrb[215].mxu1 }
 0x9d3   :  { %v21841_v49 = vadd.f32 %v7658_v0, %v7482_v54  ;;  %v12409_v1 = vpop.f32.mrb[239].mxu0  ;;  %v11136_v0 = vld [vmem:[%s22553_s5 + $0xa50] sm:$0xff] }
 0x9d5   :  { %12674 = vmatmul.mubr.msk.f32.gmra.mrb[60].mxu1 %vm4365_vm8, %v11058_v16  ;;  %12720 = vmatmul.mubr.msk.f32.gmra.mrb[84].mxu0 %vm4365_vm8, %v11087_v37  ;;  %v7438_v23 = vpop.f32.mrb[216].mxu1 }
 0x9d6   :  { %v7484_v29 = vadd.f32 %v7438_v23, %v21640_v8  ;;  %v7663_v34 = vpop.f32.mrb[240].mxu0  ;;  %12676 = vmatprep.mubr.msk.f32.mxu1 %vm15122_vm14, %v15123_v5  ;;  %12722 = vmatprep.mubr.msk.f32.mxu0 %vm15122_vm14, %v15123_v5  ;;  %v12366_v10 = vpop.f32.mrb[217].mxu1  ;;  %v15064_v8 = vunpack.i.h.bf16 %v15062_v25  ;;  %v11108_v23 = vld [vmem:[%s22553_s5 + $0x9e8] sm:$0xff] }
 0x9d7   :  { %v21856_v2 = vadd.f32 %v7663_v34, %v7483_v62  ;;  %v12412_v55 = vpop.f32.mrb[241].mxu0  ;;  %v11107_v62 = vld [vmem:[%s22553_s5 + $0x9e0] sm:$0xff] }
 0x9d8   :  { %v9571_v45 = vsel %vm4315_vm11, %v15064_v8, %v15074_v13  ;;  %v11109_v8 = vld [vmem:[%s22553_s5 + $0x9f0] sm:$0xff]  ;;  %vm10215_vm11 = vcmask 982016  }
 0x9d9   :  { %12677 = vmatmul.mubr.msk.f32.gmra.mrb[62].mxu1 %vm4365_vm8, %v11059_v59  ;;  %12723 = vmatmul.mubr.msk.f32.gmra.mrb[86].mxu0 %vm4365_vm8, %v11088_v38  ;;  %v7443_v31 = vpop.f32.mrb[218].mxu1  ;;  %v13757_v54 = vpack.c.bf16 %v9571_v45, %v9570_v35  ;;  %v11111_v45 = vld [vmem:[%s22553_s5 + $0xa00] sm:$0xff]  ;;  %v11140_v35 = vld [vmem:[%s22553_s5 + $0xa70] sm:$0xff] }
 0x9da   :  { %v7485_v58 = vadd.f32 %v7443_v31, %v21657_v9  ;;  %v7668_v12 = vpop.f32.mrb[242].mxu0  ;;  %12679 = vmatprep.mubr.msk.f32.mxu1 %vm15122_vm14, %v15123_v5  ;;  %12725 = vmatprep.mubr.msk.f32.mxu0 %vm15122_vm14, %v15123_v5  ;;  %v12369_v63 = vpop.f32.mrb[219].mxu1 }
 0x9db   :  { %v21871_v3 = vadd.f32 %v7668_v12, %v7484_v29  ;;  %v12415_v9 = vpop.f32.mrb[243].mxu0  ;;  %v11137_v29 = vld [vmem:[%s22553_s5 + $0xa58] sm:$0xff] }
 0x9dd   :  { %12680 = vmatmul.mubr.msk.f32.gmra.mrb[64].mxu1 %vm4365_vm8, %v11060_v26  ;;  %12726 = vmatmul.mubr.msk.f32.gmra.mrb[88].mxu0 %vm4365_vm8, %v11089_v6  ;;  %v7448_v27 = vpop.f32.mrb[220].mxu1  ;;  %v11110_v26 = vld [vmem:[%s22553_s5 + $0x9f8] sm:$0xff]  ;;  %v11139_v6 = vld [vmem:[%s22553_s5 + $0xa68] sm:$0xff] }
 0x9de   :  { %v7486_v60 = vadd.f32 %v7448_v27, %v21672_v7  ;;  %v7673_v52 = vpop.f32.mrb[244].mxu0  ;;  %12728 = vmatprep.mubr.msk.f32.mxu0 %vm15122_vm14, %v15123_v5  ;;  %12735 = vmatprep.mubr.msk.f32.mxu1 %vm15122_vm14, %v15123_v5  ;;  %v12372_v28 = vpop.f32.mrb[221].mxu1 }
 0x9df   :  { %v21888_v51 = vadd.f32 %v7673_v52, %v7485_v58  ;;  %v12418_v7 = vpop.f32.mrb[245].mxu0  ;;  %v11141_v52 = vld [vmem:[%s22553_s5 + $0xa78] sm:$0xff] }
 0x9e0   :  { %v11143_v7 = vld [vmem:[%s22553_s5 + $0xa88] sm:$0xff] }
 0x9e1   :  { %12729 = vmatmul.mubr.msk.f32.gmra.mrb[90].mxu0 %vm4365_vm8, %v11090_v39  ;;  %12736 = vmatmul.mubr.msk.f32.vlgmr.msra.gmra.mrb[66].mxu1 %vm4365_vm8, %v11106_v42  ;;  %v7453_v22 = vpop.f32.mrb[222].mxu1  ;;  %v11113_v42 = vld [vmem:[%s22553_s5 + $0xa10] sm:$0xff] }
 0x9e2   :  { %13758 = vmatpush3.bf16.msra.mxu1 %v13757_v54  ;;  %v7487_v50 = vadd.f32 %v7453_v22, %v21688_v48  ;;  %v7678_v56 = vpop.f32.mrb[246].mxu0  ;;  %12738 = vmatprep.mubr.msk.f32.mxu1 %vm15122_vm14, %v15123_v5  ;;  %v12375_v20 = vpop.f32.mrb[223].mxu1  ;;  %v13760_v48 = vpack.c.bf16 %v9801_v40, %v9800_v41  ;;  %v11115_v22 = vld [vmem:[%s22553_s5 + $0xa20] sm:$0xff] }
 0x9e3   :  { %v21903_v17 = vadd.f32 %v7678_v56, %v7486_v60  ;;  %12784 = vmatprep.mubr.msk.f32.mxu0 %vm15122_vm14, %v15123_v5  ;;  %v12421_v16 = vpop.f32.mrb[247].mxu0  ;;  %13762 = vmatprep.subr.bf16.mxu1 %v15121_v15  ;;  %v11112_v60 = vld [vmem:[%s22553_s5 + $0xa08] sm:$0xff] }
 0x9e5   :  { %12739 = vmatmul.mubr.msk.f32.gmra.mrb[68].mxu1 %vm4365_vm8, %v11107_v62  ;;  %12785 = vmatmul.mubr.msk.f32.vlgmr.msra.gmra.mrb[92].mxu0 %vm4365_vm8, %v11136_v0  ;;  %v7458_v37 = vpop.f32.mrb[224].mxu1 }
 0x9e6   :  { %13761 = vmatpush3.bf16.msra.mxu0 %v13760_v48  ;;  %v7488_v25 = vadd.f32 %v7458_v37, %v21706_v36  ;;  %v7683_v1 = vpop.f32.mrb[248].mxu0  ;;  %12741 = vmatprep.mubr.msk.f32.mxu1 %vm15122_vm14, %v15123_v5  ;;  %v12378_v18 = vpop.f32.mrb[225].mxu1  ;;  %v11116_v48 = vld [vmem:[%s22553_s5 + $0xa28] sm:$0xff] }
 0x9e7   :  { %v21919_v34 = vadd.f32 %v7683_v1, %v7487_v50  ;;  %12787 = vmatprep.mubr.msk.f32.mxu0 %vm15122_vm14, %v15123_v5  ;;  %v12424_v10 = vpop.f32.mrb[249].mxu0  ;;  %v11144_v50 = vld [vmem:[%s22553_s5 + $0xa90] sm:$0xff] }
 0x9e8   :  { %v11117_v10 = vld [vmem:[%s22553_s5 + $0xa30] sm:$0xff] }
 0x9e9   :  { %12742 = vmatmul.mubr.msk.f32.gmra.mrb[70].mxu1 %vm4365_vm8, %v11108_v23  ;;  %12788 = vmatmul.mubr.msk.f32.gmra.mrb[94].mxu0 %vm4365_vm8, %v11137_v29  ;;  %v7463_v36 = vpop.f32.mrb[226].mxu1 }
 0x9ea   :  { %v7489_v59 = vadd.f32 %v7463_v36, %v21721_v21  ;;  %v7688_v38 = vpop.f32.mrb[250].mxu0  ;;  %12744 = vmatprep.mubr.msk.f32.mxu1 %vm15122_vm14, %v15123_v5  ;;  %12790 = vmatprep.mubr.msk.f32.mxu0 %vm15122_vm14, %v15123_v5  ;;  %v12381_v55 = vpop.f32.mrb[227].mxu1 }
 0x9eb   :  { %v21936_v33 = vadd.f32 %v7688_v38, %v7488_v25  ;;  %v12427_v31 = vpop.f32.mrb[251].mxu0 }
 0x9ec   :  { %v11118_v31 = vld [vmem:[%s22553_s5 + $0xa38] sm:$0xff] }
 0x9ed   :  { %12745 = vmatmul.mubr.msk.f32.gmra.mrb[72].mxu1 %vm4365_vm8, %v11109_v8  ;;  %12791 = vmatmul.mubr.msk.f32.gmra.mrb[96].mxu0 %vm4365_vm8, %v11138_v47  ;;  %v7468_v21 = vpop.f32.mrb[228].mxu1 }
 0x9ee   :  { %v7490_v58 = vadd.f32 %v7468_v21, %v21736_v53  ;;  %v7693_v12 = vpop.f32.mrb[252].mxu0  ;;  %12747 = vmatprep.mubr.msk.f32.mxu1 %vm15122_vm14, %v15123_v5  ;;  %12793 = vmatprep.mubr.msk.f32.mxu0 %vm15122_vm14, %v15123_v5  ;;  %v12384_v63 = vpop.f32.mrb[229].mxu1 }
 0x9ef   :  { %v21951_v13 = vadd.f32 %v7693_v12, %v7489_v59  ;;  %v12430_v46 = vpop.f32.mrb[253].mxu0 }
 0x9f0   :  { %v11119_v46 = vld [vmem:[%s22553_s5 + $0xa40] sm:$0xff] }
 0x9f1   :  { %12748 = vmatmul.mubr.msk.f32.gmra.mrb[74].mxu1 %vm4365_vm8, %v11110_v26  ;;  %12794 = vmatmul.mubr.msk.f32.gmra.mrb[98].mxu0 %vm4365_vm8, %v11139_v6  ;;  %v7473_v53 = vpop.f32.mrb[230].mxu1 }
 0x9f2   :  { %v7491_v9 = vadd.f32 %v7473_v53, %v21751_v24  ;;  %v7698_v43 = vpop.f32.mrb[254].mxu0  ;;  %12750 = vmatprep.mubr.msk.f32.mxu1 %vm15122_vm14, %v15123_v5  ;;  %12796 = vmatprep.mubr.msk.f32.mxu0 %vm15122_vm14, %v15123_v5  ;;  %v12387_v19 = vpop.f32.mrb[231].mxu1 }
 0x9f3   :  { %v21966_v61 = vadd.f32 %v7698_v43, %v7490_v58  ;;  %v12433_v27 = vpop.f32.mrb[255].mxu0 }
 0x9f4   :  { %v11120_v27 = vld [vmem:[%s22553_s5 + $0xa48] sm:$0xff] }
 0x9f5   :  { %12751 = vmatmul.mubr.msk.f32.gmra.mrb[76].mxu1 %vm4365_vm8, %v11111_v45  ;;  %12797 = vmatmul.mubr.msk.f32.gmra.mrb[100].mxu0 %vm4365_vm8, %v11140_v35 }
 0x9f6   :  { %v7703_v24 = vpop.f32.mrb[0].mxu0  ;;  %12753 = vmatprep.mubr.msk.f32.mxu1 %vm15122_vm14, %v15123_v5  ;;  %12799 = vmatprep.mubr.msk.f32.mxu0 %vm15122_vm14, %v15123_v5 }
 0x9f7   :  { %v21980_v28 = vadd.f32 %v7703_v24, %v7491_v9  ;;  %v12436_v39 = vpop.f32.mrb[1].mxu0 }
 0x9f9   :  { %12754 = vmatmul.mubr.msk.f32.gmra.mrb[78].mxu1 %vm4365_vm8, %v11112_v60  ;;  %12800 = vmatmul.mubr.msk.f32.gmra.mrb[102].mxu0 %vm4365_vm8, %v11141_v52 }
 0x9fa   :  { %12756 = vmatprep.mubr.msk.f32.mxu1 %vm15122_vm14, %v15123_v5  ;;  %12802 = vmatprep.mubr.msk.f32.mxu0 %vm15122_vm14, %v15123_v5 }
 0x9fd   :  { %12757 = vmatmul.mubr.msk.f32.gmra.mrb[80].mxu1 %vm4365_vm8, %v11113_v42  ;;  %12803 = vmatmul.mubr.msk.f32.gmra.mrb[104].mxu0 %vm4365_vm8, %v11142_v30 }
 0x9fe   :  { %12759 = vmatprep.mubr.msk.f32.mxu1 %vm15122_vm14, %v15123_v5  ;;  %12805 = vmatprep.mubr.msk.f32.mxu0 %vm15122_vm14, %v15123_v5 }
 0xa00   :  { %v7859_v54 = vpop.f32.mrb[232].mxu1 }
 0xa01   :  { %v7933_v40 = vadd.f32 %v7859_v54, %v21766_v44  ;;  %12760 = vmatmul.mubr.msk.f32.gmra.mrb[82].mxu1 %vm4365_vm8, %v11114_v14  ;;  %12806 = vmatmul.mubr.msk.f32.gmra.mrb[106].mxu0 %vm4365_vm8, %v11143_v7  ;;  %v12443_v41 = vpop.f32.mrb[233].mxu1  ;;  %v11150_v14 = vld [vmem:[%s22553_s5 + $0xac0] sm:$0xff] }
 0xa02   :  { %12762 = vmatprep.mubr.msk.f32.mxu1 %vm15122_vm14, %v15123_v5  ;;  %12808 = vmatprep.mubr.msk.f32.mxu0 %vm15122_vm14, %v15123_v5 }
 0xa04   :  { %v7864_v44 = vpop.f32.mrb[234].mxu1  ;;  %v8091_v56 = vpop.f32.mrb[2].mxu0 }
 0xa05   :  { %v7934_v20 = vadd.f32 %v7864_v44, %v21781_v4  ;;  %v22020_v62 = vadd.f32 %v8091_v56, %v7933_v40  ;;  %12763 = vmatmul.mubr.msk.f32.gmra.mrb[84].mxu1 %vm4365_vm8, %v11115_v22  ;;  %12809 = vmatmul.mubr.msk.f32.gmra.mrb[108].mxu0 %vm4365_vm8, %v11144_v50  ;;  %v12446_v0 = vpop.f32.mrb[235].mxu1  ;;  %v12492_v16 = vpop.f32.mrb[3].mxu0  ;;  %v11145_v4 = vld [vmem:[%s22553_s5 + $0xa98] sm:$0xff]  ;;  %v11167_v44 = vld [vmem:[%s22553_s5 + $0xad0] sm:$0xff] }
 0xa06   :  { %12765 = vmatprep.mubr.msk.f32.mxu1 %vm15122_vm14, %v15123_v5  ;;  %12811 = vmatprep.mubr.msk.f32.mxu0 %vm15122_vm14, %v15123_v5 }
 0xa08   :  { %v7869_v37 = vpop.f32.mrb[236].mxu1  ;;  %v8096_v25 = vpop.f32.mrb[4].mxu0 }
 0xa09   :  { %v7935_v1 = vadd.f32 %v7869_v37, %v21796_v32  ;;  %v22035_v18 = vadd.f32 %v8096_v25, %v7934_v20  ;;  %12766 = vmatmul.mubr.msk.f32.gmra.mrb[86].mxu1 %vm4365_vm8, %v11116_v48  ;;  %12812 = vmatmul.mubr.msk.f32.gmra.mrb[110].mxu0 %vm4365_vm8, %v11145_v4  ;;  %v12449_v23 = vpop.f32.mrb[237].mxu1  ;;  %v12495_v29 = vpop.f32.mrb[5].mxu0  ;;  %v11146_v32 = vld [vmem:[%s22553_s5 + $0xaa0] sm:$0xff]  ;;  %v11168_v37 = vld [vmem:[%s22553_s5 + $0xad8] sm:$0xff] }
 0xa0a   :  { %12768 = vmatprep.mubr.msk.f32.mxu1 %vm15122_vm14, %v15123_v5  ;;  %12814 = vmatprep.mubr.msk.f32.mxu0 %vm15122_vm14, %v15123_v5 }
 0xa0c   :  { %v7874_v36 = vpop.f32.mrb[238].mxu1  ;;  %v8101_v59 = vpop.f32.mrb[6].mxu0 }
 0xa0d   :  { %v7936_v38 = vadd.f32 %v7874_v36, %v21811_v11  ;;  %v22050_v55 = vadd.f32 %v8101_v59, %v7935_v1  ;;  %12769 = vmatmul.mubr.msk.f32.gmra.mrb[88].mxu1 %vm4365_vm8, %v11117_v10  ;;  %12815 = vmatmul.mubr.msk.f32.gmra.mrb[112].mxu0 %vm4365_vm8, %v11146_v32  ;;  %v12452_v8 = vpop.f32.mrb[239].mxu1  ;;  %v12498_v47 = vpop.f32.mrb[7].mxu0  ;;  %v11147_v11 = vld [vmem:[%s22553_s5 + $0xaa8] sm:$0xff]  ;;  %v11169_v36 = vld [vmem:[%s22553_s5 + $0xae0] sm:$0xff] }
 0xa0e   :  { %12771 = vmatprep.mubr.msk.f32.mxu1 %vm15122_vm14, %v15123_v5  ;;  %12817 = vmatprep.mubr.msk.f32.mxu0 %vm15122_vm14, %v15123_v5 }
 0xa10   :  { %v7879_v21 = vpop.f32.mrb[240].mxu1  ;;  %v8106_v58 = vpop.f32.mrb[8].mxu0 }
 0xa11   :  { %v7937_v12 = vadd.f32 %v7879_v21, %v21826_v57  ;;  %v22065_v63 = vadd.f32 %v8106_v58, %v7936_v38  ;;  %12772 = vmatmul.mubr.msk.f32.gmra.mrb[90].mxu1 %vm4365_vm8, %v11118_v31  ;;  %12818 = vmatmul.mubr.msk.f32.gmra.mrb[114].mxu0 %vm4365_vm8, %v11147_v11  ;;  %v12455_v26 = vpop.f32.mrb[241].mxu1  ;;  %v12501_v6 = vpop.f32.mrb[9].mxu0  ;;  %v11148_v57 = vld [vmem:[%s22553_s5 + $0xab0] sm:$0xff]  ;;  %v11170_v21 = vld [vmem:[%s22553_s5 + $0xae8] sm:$0xff] }
 0xa12   :  { %12774 = vmatprep.mubr.msk.f32.mxu1 %vm15122_vm14, %v15123_v5  ;;  %12820 = vmatprep.mubr.msk.f32.mxu0 %vm15122_vm14, %v15123_v5 }
 0xa14   :  { %v7884_v53 = vpop.f32.mrb[242].mxu1  ;;  %v8111_v9 = vpop.f32.mrb[10].mxu0 }
 0xa15   :  { %v7938_v43 = vadd.f32 %v7884_v53, %v21841_v49  ;;  %v22080_v45 = vadd.f32 %v8111_v9, %v7937_v12  ;;  %12775 = vmatmul.mubr.msk.f32.gmra.mrb[92].mxu1 %vm4365_vm8, %v11119_v46  ;;  %12821 = vmatmul.mubr.msk.f32.gmra.mrb[116].mxu0 %vm4365_vm8, %v11148_v57  ;;  %v12458_v35 = vpop.f32.mrb[243].mxu1  ;;  %v12504_v19 = vpop.f32.mrb[11].mxu0  ;;  %v11149_v49 = vld [vmem:[%s22553_s5 + $0xab8] sm:$0xff]  ;;  %v11171_v53 = vld [vmem:[%s22553_s5 + $0xaf0] sm:$0xff] }
 0xa16   :  { %12777 = vmatprep.mubr.msk.f32.mxu1 %vm15122_vm14, %v15123_v5  ;;  %12823 = vmatprep.mubr.msk.f32.mxu0 %vm15122_vm14, %v15123_v5 }
 0xa18   :  { %v7889_v24 = vpop.f32.mrb[244].mxu1  ;;  %v8116_v60 = vpop.f32.mrb[12].mxu0 }
 0xa19   :  { %v7939_v52 = vadd.f32 %v7889_v24, %v21856_v2  ;;  %v22095_v39 = vadd.f32 %v8116_v60, %v7938_v43  ;;  %12778 = vmatmul.mubr.msk.f32.gmra.mrb[94].mxu1 %vm4365_vm8, %v11120_v27  ;;  %12824 = vmatmul.mubr.msk.f32.gmra.mrb[118].mxu0 %vm4365_vm8, %v11149_v49  ;;  %v12461_v42 = vpop.f32.mrb[245].mxu1  ;;  %v12507_v30 = vpop.f32.mrb[13].mxu0  ;;  %v11166_v2 = vld [vmem:[%s22553_s5 + $0xac8] sm:$0xff]  ;;  %v11172_v24 = vld [vmem:[%s22553_s5 + $0xaf8] sm:$0xff] }
 0xa1a   :  { %12826 = vmatprep.mubr.msk.f32.mxu0 %vm15122_vm14, %v15123_v5  ;;  %12833 = vmatprep.mubr.msk.f32.mxu1 %vm15122_vm14, %v15123_v5 }
 0xa1c   :  { %v7894_v7 = vpop.f32.mrb[246].mxu1  ;;  %v8121_v54 = vpop.f32.mrb[14].mxu0 }
 0xa1d   :  { %v7940_v40 = vadd.f32 %v7894_v7, %v21871_v3  ;;  %v22110_v41 = vadd.f32 %v8121_v54, %v7939_v52  ;;  %12827 = vmatmul.mubr.msk.f32.gmra.mrb[120].mxu0 %vm4365_vm8, %v11150_v14  ;;  %12834 = vmatmul.mubr.msk.f32.vlgmr.msra.gmra.mrb[96].mxu1 %vm4365_vm8, %v11166_v2  ;;  %v12464_v22 = vpop.f32.mrb[247].mxu1  ;;  %v12510_v50 = vpop.f32.mrb[15].mxu0  ;;  %v11196_v3 = vld [vmem:[%s22553_s5 + $0xb40] sm:$0xff] }
 0xa1e   :  { %12836 = vmatprep.mubr.msk.f32.mxu1 %vm15122_vm14, %v15123_v5  ;;  %12882 = vmatprep.mubr.msk.f32.mxu0 %vm15122_vm14, %v15123_v5  ;;  %v11173_v7 = vld [vmem:[%s22553_s5 + $0xb00] sm:$0xff] }
 0xa20   :  { %v7899_v56 = vpop.f32.mrb[248].mxu1  ;;  %v8126_v20 = vpop.f32.mrb[16].mxu0 }
 0xa21   :  { %v7941_v0 = vadd.f32 %v7899_v56, %v21888_v51  ;;  %v22125_v16 = vadd.f32 %v8126_v20, %v7940_v40  ;;  %12837 = vmatmul.mubr.msk.f32.gmra.mrb[98].mxu1 %vm4365_vm8, %v11167_v44  ;;  %12883 = vmatmul.mubr.msk.f32.vlgmr.msra.gmra.mrb[122].mxu0 %vm4365_vm8, %v11196_v3  ;;  %v12467_v48 = vpop.f32.mrb[249].mxu1  ;;  %v12513_v4 = vpop.f32.mrb[17].mxu0  ;;  %v11197_v51 = vld [vmem:[%s22553_s5 + $0xb48] sm:$0xff] }
 0xa22   :  { %12839 = vmatprep.mubr.msk.f32.mxu1 %vm15122_vm14, %v15123_v5  ;;  %12885 = vmatprep.mubr.msk.f32.mxu0 %vm15122_vm14, %v15123_v5  ;;  %v11174_v56 = vld [vmem:[%s22553_s5 + $0xb08] sm:$0xff] }
 0xa24   :  { %v7904_v25 = vpop.f32.mrb[250].mxu1  ;;  %v8131_v1 = vpop.f32.mrb[18].mxu0 }
 0xa25   :  { %v7942_v23 = vadd.f32 %v7904_v25, %v21903_v17  ;;  %v22140_v29 = vadd.f32 %v8131_v1, %v7941_v0  ;;  %12840 = vmatmul.mubr.msk.f32.gmra.mrb[100].mxu1 %vm4365_vm8, %v11168_v37  ;;  %12886 = vmatmul.mubr.msk.f32.gmra.mrb[124].mxu0 %vm4365_vm8, %v11197_v51  ;;  %v12470_v10 = vpop.f32.mrb[251].mxu1  ;;  %v12516_v32 = vpop.f32.mrb[19].mxu0  ;;  %v11198_v17 = vld [vmem:[%s22553_s5 + $0xb50] sm:$0xff] }
 0xa26   :  { %12842 = vmatprep.mubr.msk.f32.mxu1 %vm15122_vm14, %v15123_v5  ;;  %12888 = vmatprep.mubr.msk.f32.mxu0 %vm15122_vm14, %v15123_v5  ;;  %v11175_v25 = vld [vmem:[%s22553_s5 + $0xb10] sm:$0xff] }
 0xa28   :  { %v7909_v59 = vpop.f32.mrb[252].mxu1  ;;  %v8136_v38 = vpop.f32.mrb[20].mxu0 }
 0xa29   :  { %v7943_v8 = vadd.f32 %v7909_v59, %v21919_v34  ;;  %v22155_v47 = vadd.f32 %v8136_v38, %v7942_v23  ;;  %12843 = vmatmul.mubr.msk.f32.gmra.mrb[102].mxu1 %vm4365_vm8, %v11169_v36  ;;  %12889 = vmatmul.mubr.msk.f32.gmra.mrb[126].mxu0 %vm4365_vm8, %v11198_v17  ;;  %v12473_v31 = vpop.f32.mrb[253].mxu1  ;;  %v12519_v11 = vpop.f32.mrb[21].mxu0  ;;  %v11199_v34 = vld [vmem:[%s22553_s5 + $0xb58] sm:$0xff] }
 0xa2a   :  { %12845 = vmatprep.mubr.msk.f32.mxu1 %vm15122_vm14, %v15123_v5  ;;  %12891 = vmatprep.mubr.msk.f32.mxu0 %vm15122_vm14, %v15123_v5  ;;  %v11176_v59 = vld [vmem:[%s22553_s5 + $0xb18] sm:$0xff] }
 0xa2c   :  { %v7914_v58 = vpop.f32.mrb[254].mxu1  ;;  %v8141_v12 = vpop.f32.mrb[22].mxu0 }
 0xa2d   :  { %v7944_v26 = vadd.f32 %v7914_v58, %v21936_v33  ;;  %v22170_v6 = vadd.f32 %v8141_v12, %v7943_v8  ;;  %12846 = vmatmul.mubr.msk.f32.gmra.mrb[104].mxu1 %vm4365_vm8, %v11170_v21  ;;  %12892 = vmatmul.mubr.msk.f32.gmra.mrb[128].mxu0 %vm4365_vm8, %v11199_v34  ;;  %v12476_v46 = vpop.f32.mrb[255].mxu1  ;;  %v12522_v57 = vpop.f32.mrb[23].mxu0  ;;  %v11200_v33 = vld [vmem:[%s22553_s5 + $0xb60] sm:$0xff] }
 0xa2e   :  { %12848 = vmatprep.mubr.msk.f32.mxu1 %vm15122_vm14, %v15123_v5  ;;  %12894 = vmatprep.mubr.msk.f32.mxu0 %vm15122_vm14, %v15123_v5  ;;  %v11177_v58 = vld [vmem:[%s22553_s5 + $0xb20] sm:$0xff] }
 0xa30   :  { %v7919_v9 = vpop.f32.mrb[0].mxu1  ;;  %v8146_v43 = vpop.f32.mrb[24].mxu0 }
 0xa31   :  { %v7945_v35 = vadd.f32 %v7919_v9, %v21951_v13  ;;  %v22185_v19 = vadd.f32 %v8146_v43, %v7944_v26  ;;  %12849 = vmatmul.mubr.msk.f32.gmra.mrb[106].mxu1 %vm4365_vm8, %v11171_v53  ;;  %12895 = vmatmul.mubr.msk.f32.gmra.mrb[130].mxu0 %vm4365_vm8, %v11200_v33  ;;  %v12479_v27 = vpop.f32.mrb[1].mxu1  ;;  %v12525_v49 = vpop.f32.mrb[25].mxu0  ;;  %v11201_v13 = vld [vmem:[%s22553_s5 + $0xb68] sm:$0xff] }
 0xa32   :  { %12851 = vmatprep.mubr.msk.f32.mxu1 %vm15122_vm14, %v15123_v5  ;;  %12897 = vmatprep.mubr.msk.f32.mxu0 %vm15122_vm14, %v15123_v5  ;;  %v11178_v9 = vld [vmem:[%s22553_s5 + $0xb28] sm:$0xff] }
 0xa34   :  { %v7924_v60 = vpop.f32.mrb[2].mxu1  ;;  %v8151_v52 = vpop.f32.mrb[26].mxu0 }
 0xa35   :  { %v7946_v42 = vadd.f32 %v7924_v60, %v21966_v61  ;;  %v22200_v30 = vadd.f32 %v8151_v52, %v7945_v35  ;;  %12852 = vmatmul.mubr.msk.f32.gmra.mrb[108].mxu1 %vm4365_vm8, %v11172_v24  ;;  %12898 = vmatmul.mubr.msk.f32.gmra.mrb[132].mxu0 %vm4365_vm8, %v11201_v13  ;;  %v12482_v14 = vpop.f32.mrb[3].mxu1  ;;  %v12528_v2 = vpop.f32.mrb[27].mxu0  ;;  %v11202_v61 = vld [vmem:[%s22553_s5 + $0xb70] sm:$0xff] }
 0xa36   :  { %12854 = vmatprep.mubr.msk.f32.mxu1 %vm15122_vm14, %v15123_v5  ;;  %12900 = vmatprep.mubr.msk.f32.mxu0 %vm15122_vm14, %v15123_v5  ;;  %v11179_v60 = vld [vmem:[%s22553_s5 + $0xb30] sm:$0xff] }
 0xa38   :  { %v7929_v54 = vpop.f32.mrb[4].mxu1  ;;  %v8156_v40 = vpop.f32.mrb[28].mxu0 }
 0xa39   :  { %v7947_v22 = vadd.f32 %v7929_v54, %v21980_v28  ;;  %v22215_v50 = vadd.f32 %v8156_v40, %v7946_v42  ;;  %12855 = vmatmul.mubr.msk.f32.gmra.mrb[110].mxu1 %vm4365_vm8, %v11173_v7  ;;  %12901 = vmatmul.mubr.msk.f32.gmra.mrb[134].mxu0 %vm4365_vm8, %v11202_v61  ;;  %v12485_v44 = vpop.f32.mrb[5].mxu1  ;;  %v12531_v3 = vpop.f32.mrb[29].mxu0  ;;  %v11203_v28 = vld [vmem:[%s22553_s5 + $0xb78] sm:$0xff] }
 0xa3a   :  { %12857 = vmatprep.mubr.msk.f32.mxu1 %vm15122_vm14, %v15123_v5  ;;  %12903 = vmatprep.mubr.msk.f32.mxu0 %vm15122_vm14, %v15123_v5  ;;  %v11180_v54 = vld [vmem:[%s22553_s5 + $0xb38] sm:$0xff] }
 0xa3c   :  { %v8161_v20 = vpop.f32.mrb[30].mxu0  ;;  %v8321_v0 = vpop.f32.mrb[6].mxu1 }
 0xa3d   :  { %v22229_v48 = vadd.f32 %v8161_v20, %v7947_v22  ;;  %v8395_v4 = vadd.f32 %v8321_v0, %v22020_v62  ;;  %12858 = vmatmul.mubr.msk.f32.gmra.mrb[112].mxu1 %vm4365_vm8, %v11174_v56  ;;  %12904 = vmatmul.mubr.msk.f32.gmra.mrb[136].mxu0 %vm4365_vm8, %v11203_v28  ;;  %v12534_v37 = vpop.f32.mrb[31].mxu0  ;;  %v12541_v51 = vpop.f32.mrb[7].mxu1  ;;  %v11204_v62 = vld [vmem:[%s22553_s5 + $0xb80] sm:$0xff]  ;;  %v11210_v20 = vld [vmem:[%s22553_s5 + $0xbb0] sm:$0xff] }
 0xa3e   :  { %12860 = vmatprep.mubr.msk.f32.mxu1 %vm15122_vm14, %v15123_v5  ;;  %12906 = vmatprep.mubr.msk.f32.mxu0 %vm15122_vm14, %v15123_v5 }
 0xa40   :  { %v8326_v1 = vpop.f32.mrb[8].mxu1  ;;  %v8551_v23 = vpop.f32.mrb[32].mxu0 }
 0xa41   :  { %v8396_v10 = vadd.f32 %v8326_v1, %v22035_v18  ;;  %v22245_v32 = vadd.f32 %v8551_v23, %v8395_v4  ;;  %12861 = vmatmul.mubr.msk.f32.gmra.mrb[114].mxu1 %vm4365_vm8, %v11175_v25  ;;  %12907 = vmatmul.mubr.msk.f32.gmra.mrb[138].mxu0 %vm4365_vm8, %v11204_v62  ;;  %v12544_v36 = vpop.f32.mrb[9].mxu1  ;;  %v12590_v17 = vpop.f32.mrb[33].mxu0  ;;  %v11205_v18 = vld [vmem:[%s22553_s5 + $0xb88] sm:$0xff] }
 0xa42   :  { %12863 = vmatprep.mubr.msk.f32.mxu1 %vm15122_vm14, %v15123_v5  ;;  %12909 = vmatprep.mubr.msk.f32.mxu0 %vm15122_vm14, %v15123_v5 }
 0xa44   :  { %v8331_v38 = vpop.f32.mrb[10].mxu1  ;;  %v8556_v8 = vpop.f32.mrb[34].mxu0 }
 0xa45   :  { %v8397_v31 = vadd.f32 %v8331_v38, %v22050_v55  ;;  %v22260_v11 = vadd.f32 %v8556_v8, %v8396_v10  ;;  %12864 = vmatmul.mubr.msk.f32.gmra.mrb[116].mxu1 %vm4365_vm8, %v11176_v59  ;;  %12910 = vmatmul.mubr.msk.f32.gmra.mrb[140].mxu0 %vm4365_vm8, %v11205_v18  ;;  %v12547_v21 = vpop.f32.mrb[11].mxu1  ;;  %v12593_v34 = vpop.f32.mrb[35].mxu0  ;;  %v11206_v55 = vld [vmem:[%s22553_s5 + $0xb90] sm:$0xff] }
 0xa46   :  { %12866 = vmatprep.mubr.msk.f32.mxu1 %vm15122_vm14, %v15123_v5  ;;  %12912 = vmatprep.mubr.msk.f32.mxu0 %vm15122_vm14, %v15123_v5 }
 0xa48   :  { %v8336_v12 = vpop.f32.mrb[12].mxu1  ;;  %v8561_v26 = vpop.f32.mrb[36].mxu0 }
 0xa49   :  { %v8398_v46 = vadd.f32 %v8336_v12, %v22065_v63  ;;  %v22275_v57 = vadd.f32 %v8561_v26, %v8397_v31  ;;  %12867 = vmatmul.mubr.msk.f32.gmra.mrb[118].mxu1 %vm4365_vm8, %v11177_v58  ;;  %12913 = vmatmul.mubr.msk.f32.gmra.mrb[142].mxu0 %vm4365_vm8, %v11206_v55  ;;  %v12550_v53 = vpop.f32.mrb[13].mxu1  ;;  %v12596_v33 = vpop.f32.mrb[37].mxu0  ;;  %v11207_v63 = vld [vmem:[%s22553_s5 + $0xb98] sm:$0xff] }
 0xa4a   :  { %12869 = vmatprep.mubr.msk.f32.mxu1 %vm15122_vm14, %v15123_v5  ;;  %12915 = vmatprep.mubr.msk.f32.mxu0 %vm15122_vm14, %v15123_v5 }
 0xa4c   :  { %v8341_v43 = vpop.f32.mrb[14].mxu1  ;;  %v8566_v35 = vpop.f32.mrb[38].mxu0 }
 0xa4d   :  { %v8399_v27 = vadd.f32 %v8341_v43, %v22080_v45  ;;  %v22290_v49 = vadd.f32 %v8566_v35, %v8398_v46  ;;  %12870 = vmatmul.mubr.msk.f32.gmra.mrb[120].mxu1 %vm4365_vm8, %v11178_v9  ;;  %12916 = vmatmul.mubr.msk.f32.gmra.mrb[144].mxu0 %vm4365_vm8, %v11207_v63  ;;  %v12553_v24 = vpop.f32.mrb[15].mxu1  ;;  %v12599_v13 = vpop.f32.mrb[39].mxu0  ;;  %v11208_v45 = vld [vmem:[%s22553_s5 + $0xba0] sm:$0xff] }
 0xa4e   :  { %12872 = vmatprep.mubr.msk.f32.mxu1 %vm15122_vm14, %v15123_v5  ;;  %12918 = vmatprep.mubr.msk.f32.mxu0 %vm15122_vm14, %v15123_v5 }
 0xa50   :  { %v8346_v52 = vpop.f32.mrb[16].mxu1  ;;  %v8571_v42 = vpop.f32.mrb[40].mxu0 }
 0xa51   :  { %v8400_v14 = vadd.f32 %v8346_v52, %v22095_v39  ;;  %v22305_v2 = vadd.f32 %v8571_v42, %v8399_v27  ;;  %12873 = vmatmul.mubr.msk.f32.gmra.mrb[122].mxu1 %vm4365_vm8, %v11179_v60  ;;  %12919 = vmatmul.mubr.msk.f32.gmra.mrb[146].mxu0 %vm4365_vm8, %v11208_v45  ;;  %v12556_v7 = vpop.f32.mrb[17].mxu1  ;;  %v12602_v61 = vpop.f32.mrb[41].mxu0  ;;  %v11209_v39 = vld [vmem:[%s22553_s5 + $0xba8] sm:$0xff] }
 0xa52   :  { %12875 = vmatprep.mubr.msk.f32.mxu1 %vm15122_vm14, %v15123_v5  ;;  %12921 = vmatprep.mubr.msk.f32.mxu0 %vm15122_vm14, %v15123_v5 }
 0xa54   :  { %v8351_v40 = vpop.f32.mrb[18].mxu1  ;;  %v8576_v22 = vpop.f32.mrb[42].mxu0 }
 0xa55   :  { %v8401_v44 = vadd.f32 %v8351_v40, %v22110_v41  ;;  %v22320_v3 = vadd.f32 %v8576_v22, %v8400_v14  ;;  %12876 = vmatmul.mubr.msk.f32.gmra.mrb[124].mxu1 %vm4365_vm8, %v11180_v54  ;;  %12922 = vmatmul.mubr.msk.f32.gmra.mrb[148].mxu0 %vm4365_vm8, %v11209_v39  ;;  %v12559_v56 = vpop.f32.mrb[19].mxu1  ;;  %v12605_v28 = vpop.f32.mrb[43].mxu0 }
 0xa56   :  { %12924 = vmatprep.mubr.msk.f32.mxu0 %vm15122_vm14, %v15123_v5  ;;  %12957 = vmatprep.mubr.msk.f32.mxu1 %vm15122_vm14, %v15123_v5 }
 0xa58   :  { %v8356_v0 = vpop.f32.mrb[20].mxu1  ;;  %v8581_v41 = vpop.f32.mrb[44].mxu0 }
 0xa59   :  { %v8402_v4 = vadd.f32 %v8356_v0, %v22125_v16  ;;  %v22332_v37 = vadd.f32 %v8581_v41, %v8401_v44  ;;  %12925 = vmatmul.mubr.msk.f32.gmra.mrb[150].mxu0 %vm4365_vm8, %v11210_v20  ;;  %v12562_v51 = vpop.f32.mrb[21].mxu1  ;;  %v12608_v25 = vpop.f32.mrb[45].mxu0  ;;  %vm10387_vm8 = vcmask 687104  }
 0xa5c   :  { %v8361_v62 = vpop.f32.mrb[22].mxu1  ;;  %v8586_v1 = vpop.f32.mrb[46].mxu0 }
 0xa5d   :  { %v8403_v23 = vadd.f32 %v8361_v62, %v22140_v29  ;;  %v22336_v10 = vadd.f32 %v8586_v1, %v8402_v4  ;;  %v12565_v36 = vpop.f32.mrb[23].mxu1  ;;  %v12611_v17 = vpop.f32.mrb[47].mxu0 }
 0xa60   :  { %v8366_v59 = vpop.f32.mrb[24].mxu1  ;;  %v8591_v18 = vpop.f32.mrb[48].mxu0 }
 0xa61   :  { %v8404_v38 = vadd.f32 %v8366_v59, %v22155_v47  ;;  %v22339_v8 = vadd.f32 %v8591_v18, %v8403_v23  ;;  %v12568_v16 = vpop.f32.mrb[25].mxu1  ;;  %v12614_v31 = vpop.f32.mrb[49].mxu0 }
 0xa64   :  { %v8371_v21 = vpop.f32.mrb[26].mxu1  ;;  %v8596_v34 = vpop.f32.mrb[50].mxu0 }
 0xa65   :  { %v8405_v58 = vadd.f32 %v8371_v21, %v22170_v6  ;;  %v22342_v55 = vadd.f32 %v8596_v34, %v8404_v38  ;;  %v12571_v12 = vpop.f32.mrb[27].mxu1  ;;  %v12617_v29 = vpop.f32.mrb[51].mxu0 }
 0xa68   :  { %v8376_v26 = vpop.f32.mrb[28].mxu1  ;;  %v8601_v46 = vpop.f32.mrb[52].mxu0 }
 0xa69   :  { %v8406_v53 = vadd.f32 %v8376_v26, %v22185_v19  ;;  %v22345_v33 = vadd.f32 %v8601_v46, %v8405_v58  ;;  %v12574_v9 = vpop.f32.mrb[29].mxu1  ;;  %v12620_v47 = vpop.f32.mrb[53].mxu0 }
 0xa6c   :  { %v8381_v63 = vpop.f32.mrb[30].mxu1  ;;  %v8606_v43 = vpop.f32.mrb[54].mxu0 }
 0xa6d   :  { %v8407_v35 = vadd.f32 %v8381_v63, %v22200_v30  ;;  %v22348_v27 = vadd.f32 %v8606_v43, %v8406_v53  ;;  %v12577_v24 = vpop.f32.mrb[31].mxu1  ;;  %v12623_v6 = vpop.f32.mrb[55].mxu0 }
 0xa70   :  { %v8386_v13 = vpop.f32.mrb[32].mxu1  ;;  %v8611_v60 = vpop.f32.mrb[56].mxu0 }
 0xa71   :  { %v8408_v45 = vadd.f32 %v8386_v13, %v22215_v50  ;;  %v22351_v52 = vadd.f32 %v8611_v60, %v8407_v35  ;;  %v12580_v42 = vpop.f32.mrb[33].mxu1  ;;  %v12626_v19 = vpop.f32.mrb[57].mxu0 }
 0xa74   :  { %v8391_v14 = vpop.f32.mrb[34].mxu1  ;;  %v8616_v7 = vpop.f32.mrb[58].mxu0 }
 0xa75   :  { %v8409_v61 = vadd.f32 %v8391_v14, %v22229_v48  ;;  %v22354_v54 = vadd.f32 %v8616_v7, %v8408_v45  ;;  %v12583_v39 = vpop.f32.mrb[35].mxu1  ;;  %v12629_v30 = vpop.f32.mrb[59].mxu0 }
 0xa78   :  { %v8621_v40 = vpop.f32.mrb[60].mxu0  ;;  %v8781_v22 = vpop.f32.mrb[36].mxu1 }
 0xa79   :  { %v22356_v44 = vadd.f32 %v8621_v40, %v8409_v61  ;;  %v8855_v56 = vadd.f32 %v8781_v22, %v22245_v32  ;;  %v12632_v28 = vpop.f32.mrb[61].mxu0  ;;  %v12639_v50 = vpop.f32.mrb[37].mxu1 }
 0xa7c   :  { %v8786_v20 = vpop.f32.mrb[38].mxu1  ;;  %v9007_v0 = vpop.f32.mrb[62].mxu0 }
 0xa7d   :  { %v8856_v41 = vadd.f32 %v8786_v20, %v22260_v11  ;;  %v22360_v4 = vadd.f32 %v9007_v0, %v8855_v56  ;;  %v12642_v51 = vpop.f32.mrb[39].mxu1  ;;  %v12688_v48 = vpop.f32.mrb[63].mxu0 }
 0xa80   :  { %v8791_v25 = vpop.f32.mrb[40].mxu1  ;;  %v9012_v62 = vpop.f32.mrb[64].mxu0 }
 0xa81   :  { %v8857_v1 = vadd.f32 %v8791_v25, %v22275_v57  ;;  %v22363_v23 = vadd.f32 %v9012_v62, %v8856_v41  ;;  %v12645_v36 = vpop.f32.mrb[41].mxu1  ;;  %v12691_v17 = vpop.f32.mrb[65].mxu0 }
 0xa84   :  { %v8796_v59 = vpop.f32.mrb[42].mxu1  ;;  %v9017_v32 = vpop.f32.mrb[66].mxu0 }
 0xa85   :  { %v8858_v18 = vadd.f32 %v8796_v59, %v22290_v49  ;;  %v22366_v38 = vadd.f32 %v9017_v32, %v8857_v1  ;;  %v12648_v16 = vpop.f32.mrb[43].mxu1  ;;  %v12694_v11 = vpop.f32.mrb[67].mxu0 }
 0xa88   :  { %v8801_v31 = vpop.f32.mrb[44].mxu1  ;;  %v9022_v21 = vpop.f32.mrb[68].mxu0 }
 0xa89   :  { %v8859_v34 = vadd.f32 %v8801_v31, %v22305_v2  ;;  %v22369_v58 = vadd.f32 %v9022_v21, %v8858_v18  ;;  %v12651_v12 = vpop.f32.mrb[45].mxu1  ;;  %v12697_v57 = vpop.f32.mrb[69].mxu0 }
 0xa8c   :  { %v8806_v29 = vpop.f32.mrb[46].mxu1  ;;  %v9027_v26 = vpop.f32.mrb[70].mxu0 }
 0xa8d   :  { %v8860_v46 = vadd.f32 %v8806_v29, %v22320_v3  ;;  %v22372_v53 = vadd.f32 %v9027_v26, %v8859_v34  ;;  %v12654_v9 = vpop.f32.mrb[47].mxu1  ;;  %v12700_v49 = vpop.f32.mrb[71].mxu0 }
 0xa90   :  { %v8811_v47 = vpop.f32.mrb[48].mxu1  ;;  %v9032_v63 = vpop.f32.mrb[72].mxu0 }
 0xa91   :  { %v8861_v43 = vadd.f32 %v8811_v47, %v22332_v37  ;;  %v22375_v35 = vadd.f32 %v9032_v63, %v8860_v46  ;;  %v12657_v24 = vpop.f32.mrb[49].mxu1  ;;  %v12703_v2 = vpop.f32.mrb[73].mxu0 }
 0xa94   :  { %v8816_v6 = vpop.f32.mrb[50].mxu1  ;;  %v9037_v13 = vpop.f32.mrb[74].mxu0 }
 0xa95   :  { %v8862_v60 = vadd.f32 %v8816_v6, %v22336_v10  ;;  %v22378_v45 = vadd.f32 %v9037_v13, %v8861_v43  ;;  %v12660_v42 = vpop.f32.mrb[51].mxu1  ;;  %v12706_v3 = vpop.f32.mrb[75].mxu0 }
 0xa98   :  { %v8821_v19 = vpop.f32.mrb[52].mxu1  ;;  %v9042_v14 = vpop.f32.mrb[76].mxu0 }
 0xa99   :  { %v8863_v7 = vadd.f32 %v8821_v19, %v22339_v8  ;;  %v22381_v61 = vadd.f32 %v9042_v14, %v8862_v60  ;;  %v12663_v39 = vpop.f32.mrb[53].mxu1  ;;  %v12709_v37 = vpop.f32.mrb[77].mxu0 }
 0xa9c   :  { %v8826_v30 = vpop.f32.mrb[54].mxu1  ;;  %v9047_v40 = vpop.f32.mrb[78].mxu0 }
 0xa9d   :  { %v8864_v22 = vadd.f32 %v8826_v30, %v22342_v55  ;;  %v22384_v56 = vadd.f32 %v9047_v40, %v8863_v7  ;;  %v12666_v28 = vpop.f32.mrb[55].mxu1  ;;  %v12712_v10 = vpop.f32.mrb[79].mxu0 }
 0xaa0   :  { %v8831_v50 = vpop.f32.mrb[56].mxu1  ;;  %v9052_v20 = vpop.f32.mrb[80].mxu0 }
 0xaa1   :  { %v8865_v0 = vadd.f32 %v8831_v50, %v22345_v33  ;;  %v22387_v41 = vadd.f32 %v9052_v20, %v8864_v22  ;;  %v12669_v51 = vpop.f32.mrb[57].mxu1  ;;  %v12715_v8 = vpop.f32.mrb[81].mxu0 }
 0xaa4   :  { %v8836_v48 = vpop.f32.mrb[58].mxu1  ;;  %v9057_v25 = vpop.f32.mrb[82].mxu0 }
 0xaa5   :  { %v8866_v62 = vadd.f32 %v8836_v48, %v22348_v27  ;;  %v22390_v1 = vadd.f32 %v9057_v25, %v8865_v0  ;;  %v12672_v36 = vpop.f32.mrb[59].mxu1  ;;  %v12718_v55 = vpop.f32.mrb[83].mxu0 }
 0xaa8   :  { %v8841_v17 = vpop.f32.mrb[60].mxu1  ;;  %v9062_v59 = vpop.f32.mrb[84].mxu0 }
 0xaa9   :  { %v8867_v32 = vadd.f32 %v8841_v17, %v22351_v52  ;;  %v22393_v18 = vadd.f32 %v9062_v59, %v8866_v62  ;;  %v12675_v16 = vpop.f32.mrb[61].mxu1  ;;  %v12721_v33 = vpop.f32.mrb[85].mxu0 }
 0xaac   :  { %v8846_v11 = vpop.f32.mrb[62].mxu1  ;;  %v9067_v31 = vpop.f32.mrb[86].mxu0 }
 0xaad   :  { %v8868_v21 = vadd.f32 %v8846_v11, %v22354_v54  ;;  %v22396_v34 = vadd.f32 %v9067_v31, %v8867_v32  ;;  %v12678_v12 = vpop.f32.mrb[63].mxu1  ;;  %v12724_v27 = vpop.f32.mrb[87].mxu0 }
 0xab0   :  { %v8851_v57 = vpop.f32.mrb[64].mxu1  ;;  %v9072_v29 = vpop.f32.mrb[88].mxu0 }
 0xab1   :  { %v8869_v26 = vadd.f32 %v8851_v57, %v22356_v44  ;;  %v22399_v46 = vadd.f32 %v9072_v29, %v8868_v21  ;;  %v12681_v9 = vpop.f32.mrb[65].mxu1  ;;  %v12727_v52 = vpop.f32.mrb[89].mxu0 }
 0xab4   :  { %v9077_v49 = vpop.f32.mrb[90].mxu0  ;;  %v9239_v47 = vpop.f32.mrb[66].mxu1 }
 0xab5   :  { %v22401_v63 = vadd.f32 %v9077_v49, %v8869_v26  ;;  %v9313_v43 = vadd.f32 %v9239_v47, %v22360_v4  ;;  %v12730_v24 = vpop.f32.mrb[91].mxu0  ;;  %v12737_v54 = vpop.f32.mrb[67].mxu1 }
 0xab8   :  { %v9244_v2 = vpop.f32.mrb[68].mxu1  ;;  %v9469_v6 = vpop.f32.mrb[92].mxu0 }
 0xab9   :  { %v9314_v13 = vadd.f32 %v9244_v2, %v22363_v23  ;;  %v22405_v60 = vadd.f32 %v9469_v6, %v9313_v43  ;;  %v12740_v42 = vpop.f32.mrb[69].mxu1  ;;  %v12786_v44 = vpop.f32.mrb[93].mxu0 }
 0xabc   :  { %v9249_v3 = vpop.f32.mrb[70].mxu1  ;;  %v9474_v19 = vpop.f32.mrb[94].mxu0 }
 0xabd   :  { %v9315_v14 = vadd.f32 %v9249_v3, %v22366_v38  ;;  %v22408_v7 = vadd.f32 %v9474_v19, %v9314_v13  ;;  %v12743_v39 = vpop.f32.mrb[71].mxu1  ;;  %v12789_v37 = vpop.f32.mrb[95].mxu0 }
 0xac0   :  { %v9254_v30 = vpop.f32.mrb[72].mxu1  ;;  %v9479_v4 = vpop.f32.mrb[96].mxu0 }
 0xac1   :  { %v9316_v40 = vadd.f32 %v9254_v30, %v22369_v58  ;;  %v22411_v22 = vadd.f32 %v9479_v4, %v9315_v14  ;;  %v12746_v28 = vpop.f32.mrb[73].mxu1  ;;  %v12792_v23 = vpop.f32.mrb[97].mxu0 }
 0xac4   :  { %v9259_v10 = vpop.f32.mrb[74].mxu1  ;;  %v9484_v50 = vpop.f32.mrb[98].mxu0 }
 0xac5   :  { %v9317_v20 = vadd.f32 %v9259_v10, %v22372_v53  ;;  %v22414_v0 = vadd.f32 %v9484_v50, %v9316_v40  ;;  %v12749_v51 = vpop.f32.mrb[75].mxu1  ;;  %v12795_v38 = vpop.f32.mrb[99].mxu0 }
 0xac8   :  { %v9264_v8 = vpop.f32.mrb[76].mxu1  ;;  %v9489_v48 = vpop.f32.mrb[100].mxu0 }
 0xac9   :  { %v9318_v25 = vadd.f32 %v9264_v8, %v22375_v35  ;;  %v22417_v62 = vadd.f32 %v9489_v48, %v9317_v20  ;;  %v12752_v36 = vpop.f32.mrb[77].mxu1  ;;  %v12798_v58 = vpop.f32.mrb[101].mxu0 }
 0xacc   :  { %v9269_v55 = vpop.f32.mrb[78].mxu1  ;;  %v9494_v17 = vpop.f32.mrb[102].mxu0 }
 0xacd   :  { %v9319_v59 = vadd.f32 %v9269_v55, %v22378_v45  ;;  %v22420_v32 = vadd.f32 %v9494_v17, %v9318_v25  ;;  %v12755_v16 = vpop.f32.mrb[79].mxu1  ;;  %v12801_v53 = vpop.f32.mrb[103].mxu0 }
 0xad0   :  { %v9274_v33 = vpop.f32.mrb[80].mxu1  ;;  %v9499_v11 = vpop.f32.mrb[104].mxu0 }
 0xad1   :  { %v9320_v31 = vadd.f32 %v9274_v33, %v22381_v61  ;;  %v22423_v21 = vadd.f32 %v9499_v11, %v9319_v59  ;;  %v12758_v12 = vpop.f32.mrb[81].mxu1  ;;  %v12804_v35 = vpop.f32.mrb[105].mxu0 }
 0xad4   :  { %v9279_v27 = vpop.f32.mrb[82].mxu1  ;;  %v9504_v57 = vpop.f32.mrb[106].mxu0 }
 0xad5   :  { %v9321_v29 = vadd.f32 %v9279_v27, %v22384_v56  ;;  %v22426_v26 = vadd.f32 %v9504_v57, %v9320_v31  ;;  %v12761_v9 = vpop.f32.mrb[83].mxu1  ;;  %v12807_v45 = vpop.f32.mrb[107].mxu0 }
 0xad8   :  { %v9284_v52 = vpop.f32.mrb[84].mxu1  ;;  %v9509_v49 = vpop.f32.mrb[108].mxu0 }
 0xad9   :  { %v9322_v47 = vadd.f32 %v9284_v52, %v22387_v41  ;;  %v22429_v43 = vadd.f32 %v9509_v49, %v9321_v29  ;;  %v12764_v24 = vpop.f32.mrb[85].mxu1  ;;  %v12810_v61 = vpop.f32.mrb[109].mxu0 }
 0xadc   :  { %v9289_v54 = vpop.f32.mrb[86].mxu1  ;;  %v9514_v2 = vpop.f32.mrb[110].mxu0 }
 0xadd   :  { %v9323_v6 = vadd.f32 %v9289_v54, %v22390_v1  ;;  %v22432_v13 = vadd.f32 %v9514_v2, %v9322_v47  ;;  %v12767_v42 = vpop.f32.mrb[87].mxu1  ;;  %v12813_v56 = vpop.f32.mrb[111].mxu0 }
 0xade   :  { %v10041_v47 = vpop.permute.xlu0 %10040 }
 0xae0   :  { %v9294_v44 = vpop.f32.mrb[88].mxu1  ;;  %v9519_v3 = vpop.f32.mrb[112].mxu0 }
 0xae1   :  { %v9324_v19 = vadd.f32 %v9294_v44, %v22393_v18  ;;  %v22435_v14 = vadd.f32 %v9519_v3, %v9323_v6  ;;  %v12770_v39 = vpop.f32.mrb[89].mxu1  ;;  %v12816_v41 = vpop.f32.mrb[113].mxu0 }
 0xae4   :  { %v9299_v37 = vpop.f32.mrb[90].mxu1  ;;  %v9524_v30 = vpop.f32.mrb[114].mxu0 }
 0xae5   :  { %v9325_v4 = vadd.f32 %v9299_v37, %v22396_v34  ;;  %v22438_v40 = vadd.f32 %v9524_v30, %v9324_v19  ;;  %v12773_v28 = vpop.f32.mrb[91].mxu1  ;;  %v12819_v1 = vpop.f32.mrb[115].mxu0 }
 0xae6   :  { %v10051_v28 = vpop.permute.xlu0 %10050 }
 0xae8   :  { %v9304_v23 = vpop.f32.mrb[92].mxu1  ;;  %v9529_v10 = vpop.f32.mrb[116].mxu0 }
 0xae9   :  { %v9326_v50 = vadd.f32 %v9304_v23, %v22399_v46  ;;  %v22441_v20 = vadd.f32 %v9529_v10, %v9325_v4  ;;  %v12776_v51 = vpop.f32.mrb[93].mxu1  ;;  %v12822_v18 = vpop.f32.mrb[117].mxu0 }
 0xaec   :  { %v9309_v38 = vpop.f32.mrb[94].mxu1  ;;  %v9534_v8 = vpop.f32.mrb[118].mxu0 }
 0xaed   :  { %v9327_v48 = vadd.f32 %v9309_v38, %v22401_v63  ;;  %v22444_v25 = vadd.f32 %v9534_v8, %v9326_v50  ;;  %v12779_v36 = vpop.f32.mrb[95].mxu1  ;;  %v12825_v34 = vpop.f32.mrb[119].mxu0 }
 0xaee   :  { %v10036_v63 = vpop.permute.xlu1 %10035 }
 0xaf0   :  { %v9539_v58 = vpop.f32.mrb[120].mxu0  ;;  %v9699_v55 = vpop.f32.mrb[96].mxu1 }
 0xaf1   :  { %v22446_v17 = vadd.f32 %v9539_v58, %v9327_v48  ;;  %v9773_v59 = vadd.f32 %v9699_v55, %v22405_v60  ;;  %v12828_v16 = vpop.f32.mrb[121].mxu0  ;;  %v12835_v46 = vpop.f32.mrb[97].mxu1 }
 0xaf2   :  { %v10046_v44 = vpop.permute.xlu1 %10045 }
 0xaf4   :  { %v9704_v53 = vpop.f32.mrb[98].mxu1  ;;  %v9929_v33 = vpop.f32.mrb[122].mxu0 }
 0xaf5   :  { %v9774_v11 = vadd.f32 %v9704_v53, %v22408_v7  ;;  %v10003_v31 = vadd.f32 %v9929_v33, %v9773_v59  ;;  %v12838_v12 = vpop.f32.mrb[99].mxu1  ;;  %v12884_v35 = vpop.f32.mrb[123].mxu0 }
 0xaf6   :  { %v10056_v48 = vpop.permute.xlu1 %10055  ;;  %v10061_v53 = vpop.permute.xlu0 %10060 }
 0xaf7   :  { %v10108_v29 = vadd.f32 %v10036_v63, %v10003_v31 }
 0xaf8   :  { %v9709_v27 = vpop.f32.mrb[100].mxu1  ;;  %v9934_v57 = vpop.f32.mrb[124].mxu0 }
 0xaf9   :  { %v9775_v9 = vadd.f32 %v9709_v27, %v22411_v22  ;;  %v10004_v45 = vadd.f32 %v9934_v57, %v9774_v11  ;;  %v12841_v52 = vpop.f32.mrb[101].mxu1  ;;  %v12887_v49 = vpop.f32.mrb[125].mxu0  ;;  %v10123_v54 = vmax.f32 %v10108_v29, 0.0 }
 0xafa   :  { %v10066_v29 = vpop.permute.xlu1 %10065 }
 0xafb   :  { %v10109_v60 = vadd.f32 %v10041_v47, %v10004_v45 }
 0xafc   :  { %v9714_v24 = vpop.f32.mrb[102].mxu1  ;;  %v9939_v61 = vpop.f32.mrb[126].mxu0 }
 0xafd   :  { %v10124_v2 = vmax.f32 %v10109_v60, 0.0  ;;  %v9776_v7 = vadd.f32 %v9714_v24, %v22414_v0  ;;  %v10005_v6 = vadd.f32 %v9939_v61, %v9775_v9  ;;  %v12844_v42 = vpop.f32.mrb[103].mxu1  ;;  %v12890_v56 = vpop.f32.mrb[127].mxu0 }
 0xafe   :  { %v10071_v61 = vpop.permute.xlu0 %10070 }
 0xaff   :  { %v13763_v3 = vpack.c.bf16 %v10124_v2, %v10123_v54  ;;  %v10110_v41 = vadd.f32 %v10046_v44, %v10005_v6 }
 0xb00   :  { %v9719_v19 = vpop.f32.mrb[104].mxu1  ;;  %v9944_v39 = vpop.f32.mrb[128].mxu0 }
 0xb01   :  { %v9777_v22 = vadd.f32 %v9719_v19, %v22417_v62  ;;  %v10006_v37 = vadd.f32 %v9944_v39, %v9776_v7  ;;  %13764 = vmatpush3.bf16.msra.mxu1 %v13763_v3  ;;  %v12847_v30 = vpop.f32.mrb[105].mxu1  ;;  %v12893_v4 = vpop.f32.mrb[129].mxu0  ;;  %v10125_v10 = vmax.f32 %v10110_v41, 0.0 }
 0xb02   :  { %13765 = vmatprep.subr.bf16.mxu1 %v15121_v15  ;;  %v10076_v19 = vpop.permute.xlu1 %10075 }
 0xb03   :  { %v10111_v1 = vadd.f32 %v10051_v28, %v10006_v37 }
 0xb04   :  { %v9724_v23 = vpop.f32.mrb[106].mxu1  ;;  %v9949_v0 = vpop.f32.mrb[130].mxu0 }
 0xb05   :  { %v10126_v50 = vmax.f32 %v10111_v1, 0.0  ;;  %v9778_v51 = vadd.f32 %v9724_v23, %v22420_v32  ;;  %v10007_v18 = vadd.f32 %v9949_v0, %v9777_v22  ;;  %v12850_v38 = vpop.f32.mrb[107].mxu1  ;;  %v12896_v8 = vpop.f32.mrb[131].mxu0 }
 0xb06   :  { %v10081_v1 = vpop.permute.xlu0 %10080 }
 0xb07   :  { %v13766_v36 = vpack.c.bf16 %v10126_v50, %v10125_v10  ;;  %v10112_v58 = vadd.f32 %v10056_v48, %v10007_v18  ;;  %v10086_v48 = vpop.permute.xlu1 %10085 }
 0xb08   :  { %v9729_v62 = vpop.f32.mrb[108].mxu1  ;;  %v9954_v34 = vpop.f32.mrb[132].mxu0 }
 0xb09   :  { %v9779_v55 = vadd.f32 %v9729_v62, %v22423_v21  ;;  %v10008_v59 = vadd.f32 %v9954_v34, %v9778_v51  ;;  %13767 = vmatpush3.bf16.msra.mxu1 %v13766_v36  ;;  %v12853_v16 = vpop.f32.mrb[109].mxu1  ;;  %v12899_v46 = vpop.f32.mrb[133].mxu0  ;;  %v10127_v31 = vmax.f32 %v10112_v58, 0.0 }
 0xb0a   :  { %13768 = vmatprep.subr.bf16.mxu1 %v15121_v15  ;;  %v10091_v46 = vpop.permute.xlu0 %10090 }
 0xb0b   :  { %v10113_v33 = vadd.f32 %v10061_v53, %v10008_v59 }
 0xb0c   :  { %v9734_v11 = vpop.f32.mrb[110].mxu1  ;;  %v9959_v32 = vpop.f32.mrb[134].mxu0 }
 0xb0d   :  { %v10128_v12 = vmax.f32 %v10113_v33, 0.0  ;;  %v9780_v35 = vadd.f32 %v9734_v11, %v22426_v26  ;;  %v10009_v63 = vadd.f32 %v9959_v32, %v9779_v55  ;;  %v12856_v27 = vpop.f32.mrb[111].mxu1  ;;  %v12902_v57 = vpop.f32.mrb[135].mxu0 }
 0xb0e   :  { %v10096_v27 = vpop.permute.xlu1 %10095 }
 0xb0f   :  { %v13769_v9 = vpack.c.bf16 %v10128_v12, %v10127_v31  ;;  %v10114_v52 = vadd.f32 %v10066_v29, %v10009_v63 }
 0xb10   :  { %v9739_v21 = vpop.f32.mrb[112].mxu1  ;;  %v9964_v45 = vpop.f32.mrb[136].mxu0 }
 0xb11   :  { %v9781_v49 = vadd.f32 %v9739_v21, %v22429_v43  ;;  %v10010_v47 = vadd.f32 %v9964_v45, %v9780_v35  ;;  %13770 = vmatpush3.bf16.msra.mxu1 %v13769_v9  ;;  %v12859_v60 = vpop.f32.mrb[113].mxu1  ;;  %v12905_v24 = vpop.f32.mrb[137].mxu0  ;;  %v10129_v7 = vmax.f32 %v10114_v52, 0.0 }
 0xb12   :  { %13771 = vmatprep.subr.bf16.mxu1 %v15121_v15 }
 0xb13   :  { %v10115_v54 = vadd.f32 %v10071_v61, %v10010_v47  ;;  %v10101_v47 = vpop.permute.xlu0 %10100 }
 0xb14   :  { %v9744_v2 = vpop.f32.mrb[114].mxu1  ;;  %v9969_v26 = vpop.f32.mrb[138].mxu0 }
 0xb15   :  { %v10130_v6 = vmax.f32 %v10115_v54, 0.0  ;;  %v9782_v42 = vadd.f32 %v9744_v2, %v22432_v13  ;;  %v10011_v56 = vadd.f32 %v9969_v26, %v9781_v49  ;;  %v12862_v44 = vpop.f32.mrb[115].mxu1  ;;  %v12908_v3 = vpop.f32.mrb[139].mxu0 }
 0xb16   :  { %v10106_v26 = vpop.permute.xlu1 %10105  ;;  %v10140_v44 = vld [vmem:[%s22557_s7 + $0x10] sm:$0xff]  ;;  %v10141_v3 = vld [vmem:[%s22557_s7 + $0x18] sm:$0xff] }
 0xb17   :  { %v13772_v39 = vpack.c.bf16 %v10130_v6, %v10129_v7  ;;  %v10116_v22 = vadd.f32 %v10076_v19, %v10011_v56  ;;  %v10139_v56 = vld [vmem:[%s22557_s7 + $0x8] sm:$0xff]  ;;  %v10142_v19 = vld [vmem:[%s22557_s7 + $0x20] sm:$0xff] }
 0xb18   :  { %v9749_v43 = vpop.f32.mrb[116].mxu1  ;;  %v9974_v41 = vpop.f32.mrb[140].mxu0 }
 0xb19   :  { %v9783_v37 = vadd.f32 %v9749_v43, %v22435_v14  ;;  %v10012_v30 = vadd.f32 %v9974_v41, %v9782_v42  ;;  %13773 = vmatpush3.bf16.msra.mxu1 %v13772_v39  ;;  %v12865_v4 = vpop.f32.mrb[117].mxu1  ;;  %v12911_v28 = vpop.f32.mrb[141].mxu0  ;;  %v10131_v10 = vmax.f32 %v10116_v22, 0.0  ;;  %v10138_v42 = vld [vmem:[%s22557_s7] sm:$0xff]  ;;  %v10143_v39 = vld [vmem:[%s22557_s7 + $0x28] sm:$0xff]  ;;  %v10144_v43 = vld [vmem:[%s22557_s7 + $0x30] sm:$0xff] }
 0xb1a   :  { %13774 = vmatprep.subr.bf16.mxu1 %v15121_v15  ;;  %v10145_v41 = vld [vmem:[%s22557_s7 + $0x38] sm:$0xff]  ;;  %v10146_v22 = vld [vmem:[%s22557_s7 + $0x40] sm:$0xff] }
 0xb1b   :  { %v10117_v23 = vadd.f32 %v10081_v1, %v10012_v30  ;;  %v10148_v30 = vld [vmem:[%s22557_s7 + $0x50] sm:$0xf]  ;;  %v10163_v1 = vpop.permute.xlu0 %10162 }
 0xb1c   :  { %v9754_v0 = vpop.f32.mrb[118].mxu1  ;;  %v9979_v13 = vpop.f32.mrb[142].mxu0 }
 0xb1d   :  { %v10132_v50 = vmax.f32 %v10117_v23, 0.0  ;;  %v9784_v51 = vadd.f32 %v9754_v0, %v22438_v40  ;;  %v10013_v18 = vadd.f32 %v9979_v13, %v9783_v37  ;;  %v12868_v38 = vpop.f32.mrb[119].mxu1  ;;  %v12914_v8 = vpop.f32.mrb[143].mxu0  ;;  %v10147_v37 = vld [vmem:[%s22557_s7 + $0x48] sm:$0xff] }
 0xb1e   :  { %v10168_v0 = vpop.permute.xlu1 %10167 }
 0xb1f   :  { %v13775_v36 = vpack.c.bf16 %v10132_v50, %v10131_v10  ;;  %v10118_v34 = vadd.f32 %v10086_v48, %v10013_v18 }
 0xb20   :  { %v9759_v14 = vpop.f32.mrb[120].mxu1  ;;  %v9984_v62 = vpop.f32.mrb[144].mxu0 }
 0xb21   :  { %v9785_v58 = vadd.f32 %v9759_v14, %v22441_v20  ;;  %v10014_v55 = vadd.f32 %v9984_v62, %v9784_v51  ;;  %13776 = vmatpush3.bf16.msra.mxu1 %v13775_v36  ;;  %v12871_v59 = vpop.f32.mrb[121].mxu1  ;;  %v12917_v16 = vpop.f32.mrb[145].mxu0  ;;  %v10133_v11 = vmax.f32 %v10118_v34, 0.0 }
 0xb22   :  { %13777 = vmatprep.subr.bf16.mxu1 %v15121_v15  ;;  %v10173_v36 = vpop.permute.xlu0 %10172  ;;  %v10178_v62 = vpop.permute.xlu1 %10177 }
 0xb23   :  { %v10119_v53 = vadd.f32 %v10091_v46, %v10014_v55 }
 0xb24   :  { %v9764_v33 = vpop.f32.mrb[122].mxu1  ;;  %v9989_v40 = vpop.f32.mrb[146].mxu0 }
 0xb25   :  { %v10134_v32 = vmax.f32 %v10119_v53, 0.0  ;;  %v9786_v31 = vadd.f32 %v9764_v33, %v22444_v25  ;;  %v10015_v12 = vadd.f32 %v9989_v40, %v9785_v58  ;;  %v12874_v35 = vpop.f32.mrb[123].mxu1  ;;  %v12920_v63 = vpop.f32.mrb[147].mxu0 }
 0xb26   :  { %v10183_v40 = vpop.permute.xlu0 %10182 }
 0xb27   :  { %v13778_v57 = vpack.c.bf16 %v10134_v32, %v10133_v11  ;;  %v10120_v9 = vadd.f32 %v10096_v27, %v10015_v12  ;;  %v10188_v32 = vpop.permute.xlu1 %10187 }
 0xb28   :  { %v9769_v20 = vpop.f32.mrb[124].mxu1  ;;  %v9994_v29 = vpop.f32.mrb[148].mxu0 }
 0xb29   :  { %v9787_v21 = vadd.f32 %v9769_v20, %v22446_v17  ;;  %v10016_v45 = vadd.f32 %v9994_v29, %v9786_v31  ;;  %13779 = vmatpush3.bf16.msra.mxu1 %v13778_v57  ;;  %v12923_v52 = vpop.f32.mrb[149].mxu0  ;;  %v12877_v49 = vpop.f32.mrb[125].mxu1  ;;  %v10135_v25 = vmax.f32 %v10120_v9, 0.0 }
 0xb2a   :  { %13780 = vmatprep.subr.bf16.mxu1 %v15121_v15  ;;  %v10193_v9 = vpop.permute.xlu0 %10192 }
 0xb2b   :  { %v10121_v60 = vadd.f32 %v10101_v47, %v10016_v45  ;;  %v10198_v45 = vpop.permute.xlu1 %10197 }
 0xb2c   :  { %v9999_v24 = vpop.f32.mrb[150].mxu0 }
 0xb2d   :  { %v10136_v61 = vmax.f32 %v10121_v60, 0.0  ;;  %v10017_v54 = vadd.f32 %v9999_v24, %v9787_v21  ;;  %v12926_v2 = vpop.f32.mrb[151].mxu0 }
 0xb2e   :  { %v10203_v2 = vpop.permute.xlu0 %10202 }
 0xb2f   :  { %v13781_v7 = vpack.c.bf16 %v10136_v61, %v10135_v25  ;;  %v10122_v6 = vadd.f32 %v10106_v26, %v10017_v54 }
 0xb31   :  { %13782 = vmatpush3.bf16.msra.mxu1 %v13781_v7  ;;  %v10137_v17 = vmax.f32 %v10122_v6, 0.0  ;;  %v10208_v7 = vpop.permute.xlu1 %10207 }
 0xb32   :  { %12955 = vmatprep.subr.mxu1 %v15123_v5 }
 0xb35   :  { %12956 = vmatpush3.msra.mxu1 %v10137_v17 }
 0xb36   :  { %12958 = vmatmul.mubr.msk.f32.vlgmr.msra.gmra.mrb[126].mxu1 %vm10215_vm11, %v10138_v42  ;;  %13783 = vmatprep.subr.bf16.mxu1 %v15121_v15 }
 0xb37   :  { %12960 = vmatprep.mubr.msk.f32.mxu1 %vm15122_vm14, %v15123_v5 }
 0xb3a   :  { %12961 = vmatmul.mubr.msk.f32.gmra.mrb[128].mxu1 %vm10215_vm11, %v10139_v56 }
 0xb3b   :  { %12963 = vmatprep.mubr.msk.f32.mxu1 %vm15122_vm14, %v15123_v5 }
 0xb3e   :  { %12964 = vmatmul.mubr.msk.f32.gmra.mrb[130].mxu1 %vm10215_vm11, %v10140_v44 }
 0xb3f   :  { %12966 = vmatprep.mubr.msk.f32.mxu1 %vm15122_vm14, %v15123_v5 }
 0xb42   :  { %12967 = vmatmul.mubr.msk.f32.gmra.mrb[132].mxu1 %vm10215_vm11, %v10141_v3  ;;  %v10213_v3 = vpop.permute.xlu0 %10212 }
 0xb43   :  { %12969 = vmatprep.mubr.msk.f32.mxu1 %vm15122_vm14, %v15123_v5 }
 0xb46   :  { %12970 = vmatmul.mubr.msk.f32.gmra.mrb[134].mxu1 %vm10215_vm11, %v10142_v19 }
 0xb47   :  { %12972 = vmatprep.mubr.msk.f32.mxu1 %vm15122_vm14, %v15123_v5 }
 0xb4a   :  { %12973 = vmatmul.mubr.msk.f32.gmra.mrb[136].mxu1 %vm10215_vm11, %v10143_v39 }
 0xb4b   :  { %12975 = vmatprep.mubr.msk.f32.mxu1 %vm15122_vm14, %v15123_v5 }
 0xb4e   :  { %12976 = vmatmul.mubr.msk.f32.gmra.mrb[138].mxu1 %vm10215_vm11, %v10144_v43 }
 0xb4f   :  { %12978 = vmatprep.mubr.msk.f32.mxu1 %vm15122_vm14, %v15123_v5 }
 0xb52   :  { %12979 = vmatmul.mubr.msk.f32.gmra.mrb[140].mxu1 %vm10215_vm11, %v10145_v41 }
 0xb53   :  { %12981 = vmatprep.mubr.msk.f32.mxu1 %vm15122_vm14, %v15123_v5 }
 0xb56   :  { %12982 = vmatmul.mubr.msk.f32.gmra.mrb[142].mxu1 %vm10215_vm11, %v10146_v22 }
 0xb57   :  { %12984 = vmatprep.mubr.msk.f32.mxu1 %vm15122_vm14, %v15123_v5 }
 0xb5a   :  { %12985 = vmatmul.mubr.msk.f32.gmra.mrb[144].mxu1 %vm10215_vm11, %v10147_v37  ;;  %v10380_v37 = vld [vmem:[%s22558_s9] sm:$0x3] }
 0xb5b   :  { %12987 = vmatprep.mubr.msk.f32.mxu1 %vm15122_vm14, %v15123_v5 }
 0xb5e   :  { %12988 = vmatmul.mubr.msk.f32.gmra.mrb[146].mxu1 %vm10215_vm11, %v10148_v30 }
 0xb5f   :  { %13012 = vmatprep.mubr.msk.f32.mxu1 %vm15122_vm14, %v15123_v5  ;;  %vm10391_vm14 = vcmask 1043456  }
 0xc09   :  { %v10315_v4 = vpop.f32.mrb[126].mxu1 }
 0xc0a   :  { %v12959_v28 = vpop.f32.mrb[127].mxu1  ;;  %v10316_v23 = vadd.f32 %v10315_v4, %v10163_v1 }
 0xc0c   :  { %v10369_v51 = vmax.f32 %v10316_v23, 0.0 }
 0xc0d   :  { %v10320_v13 = vpop.f32.mrb[128].mxu1 }
 0xc0e   :  { %v10321_v10 = vadd.f32 %v10320_v13, %v10168_v0  ;;  %v12962_v50 = vpop.f32.mrb[129].mxu1 }
 0xc10   :  { %v10370_v18 = vmax.f32 %v10321_v10, 0.0 }
 0xc11   :  { %v10325_v38 = vpop.f32.mrb[130].mxu1 }
 0xc12   :  { %v13784_v8 = vpack.c.bf16 %v10370_v18, %v10369_v51  ;;  %v12965_v48 = vpop.f32.mrb[131].mxu1  ;;  %v10326_v14 = vadd.f32 %v10325_v38, %v10173_v36 }
 0xc14   :  { %13785 = vmatpush3.bf16.msra.mxu1 %v13784_v8  ;;  %v10371_v59 = vmax.f32 %v10326_v14, 0.0 }
 0xc15   :  { %v10330_v34 = vpop.f32.mrb[132].mxu1  ;;  %13786 = vmatprep.subr.bf16.mxu1 %v15121_v15 }
 0xc16   :  { %v10331_v58 = vadd.f32 %v10330_v34, %v10178_v62  ;;  %v12968_v55 = vpop.f32.mrb[133].mxu1 }
 0xc18   :  { %v10372_v16 = vmax.f32 %v10331_v58, 0.0 }
 0xc19   :  { %v10335_v46 = vpop.f32.mrb[134].mxu1 }
 0xc1a   :  { %v13787_v53 = vpack.c.bf16 %v10372_v16, %v10371_v59  ;;  %v12971_v33 = vpop.f32.mrb[135].mxu1  ;;  %v10336_v11 = vadd.f32 %v10335_v46, %v10183_v40 }
 0xc1c   :  { %13788 = vmatpush3.bf16.msra.mxu1 %v13787_v53  ;;  %v10373_v63 = vmax.f32 %v10336_v11, 0.0 }
 0xc1d   :  { %v10340_v31 = vpop.f32.mrb[136].mxu1  ;;  %13789 = vmatprep.subr.bf16.mxu1 %v15121_v15 }
 0xc1e   :  { %v10341_v12 = vadd.f32 %v10340_v31, %v10188_v32  ;;  %v12974_v35 = vpop.f32.mrb[137].mxu1 }
 0xc20   :  { %v10374_v27 = vmax.f32 %v10341_v12, 0.0 }
 0xc21   :  { %v10345_v57 = vpop.f32.mrb[138].mxu1 }
 0xc22   :  { %v13790_v20 = vpack.c.bf16 %v10374_v27, %v10373_v63  ;;  %v12977_v29 = vpop.f32.mrb[139].mxu1  ;;  %v10346_v21 = vadd.f32 %v10345_v57, %v10193_v9 }
 0xc24   :  { %13791 = vmatpush3.bf16.msra.mxu1 %v13790_v20  ;;  %v10375_v60 = vmax.f32 %v10346_v21, 0.0 }
 0xc25   :  { %v10350_v52 = vpop.f32.mrb[140].mxu1  ;;  %13792 = vmatprep.subr.bf16.mxu1 %v15121_v15 }
 0xc26   :  { %v10351_v49 = vadd.f32 %v10350_v52, %v10198_v45  ;;  %v12980_v47 = vpop.f32.mrb[141].mxu1 }
 0xc28   :  { %v10376_v24 = vmax.f32 %v10351_v49, 0.0 }
 0xc29   :  { %v10355_v25 = vpop.f32.mrb[142].mxu1 }
 0xc2a   :  { %v13793_v61 = vpack.c.bf16 %v10376_v24, %v10375_v60  ;;  %v12983_v54 = vpop.f32.mrb[143].mxu1  ;;  %v10356_v26 = vadd.f32 %v10355_v25, %v10203_v2 }
 0xc2c   :  { %13794 = vmatpush3.bf16.msra.mxu1 %v13793_v61  ;;  %v10377_v56 = vmax.f32 %v10356_v26, 0.0 }
 0xc2d   :  { %v10360_v6 = vpop.f32.mrb[144].mxu1  ;;  %13795 = vmatprep.subr.bf16.mxu1 %v15121_v15  ;;  %v10385_v15 = vpop.permute.xlu1 %10384 }
 0xc2e   :  { %v10361_v17 = vadd.f32 %v10360_v6, %v10208_v7  ;;  %v12986_v42 = vpop.f32.mrb[145].mxu1 }
 0xc30   :  { %v10378_v44 = vmax.f32 %v10361_v17, 0.0 }
 0xc31   :  { %v10365_v19 = vpop.f32.mrb[146].mxu1 }
 0xc32   :  { %v13796_v39 = vpack.c.bf16 %v10378_v44, %v10377_v56  ;;  %v10366_v43 = vadd.f32 %v10365_v19, %v10213_v3  ;;  %v12989_v41 = vpop.f32.mrb[147].mxu1 }
 0xc34   :  { %13797 = vmatpush3.bf16.msra.mxu1 %v13796_v39  ;;  %v10379_v22 = vmax.f32 %v10366_v43, 0.0 }
 0xc35   :  { %13010 = vmatprep.subr.mxu1 %v15123_v5 }
 0xc38   :  { %13011 = vmatpush3.msk.msra.mxu1 %vm10391_vm14, %v10379_v22 }
 0xc39   :  { %13013 = vmatmul.mubr.msk.f32.vlgmr.msra.gmra.mrb[148].mxu1 %vm10387_vm8, %v10380_v37 }
 0xd0c   :  { %v10461_v30 = vpop.f32.mrb[148].mxu1 }
 0xd0d   :  { %v10462_v4 = vadd.f32 %v10461_v30, %v10385_v15  ;;  %v13014_v28 = vpop.f32.mrb[149].mxu1 }
 0xd0f   :  { %10466 = vst.msk [vmem:[%s22559_s11] sm:$0x3] %vm10465_vm7, %v10462_v4 }

</bundles_post_ra>
